<compile_context>
chip_gen: v5e
topology: v5e:2x2
jax: 0.10.0
libtpu: 0.0.40
codegen_flags: <defaults>
</compile_context>

<pallas_src>
import jax
import jax.numpy as jnp
from jax.experimental import pallas as pl
from jax.experimental.pallas import tpu as pltpu


def _inception_a_kernel(x_ref, inv_ref,
                        wf_ref, b0_ref, b1a_ref, b2a_ref, b3_ref,
                        w1b_ref, b1b_ref, w2b_ref, b2b_ref, w2c_ref, b2c_ref,
                        o_ref):
    x = x_ref[...]                                    # [NB, H, W, 384] f32
    nb, h, w, c = x.shape
    m = nb * h * w
    xf = x.reshape(m, c)

    def relu(v):
        return jnp.maximum(v, 0.0)

    # ---- fused 1x1 convs over the shared input: 384 -> [96 | 64 | 64 | 96] ----
    z = jnp.dot(xf.astype(jnp.bfloat16), wf_ref[...],
                preferred_element_type=jnp.float32)   # [M, 320] f32 accum
    y0 = relu(z[:, 0:96] + b0_ref[...])               # branch 0 output
    t1 = relu(z[:, 96:160] + b1a_ref[...])            # branch 1 stem (64 ch)
    t2 = relu(z[:, 160:224] + b2a_ref[...])           # branch 2 stem (64 ch)
    u3 = z[:, 224:320]                                # branch 3: x @ w3 (pre-pool)

    def pad_hw(v):
        # zero-pad spatial dims: [NB, H, W, C] -> [NB, H+2, W+2, C]
        zr = jnp.zeros((nb, 1, v.shape[2], v.shape[3]), v.dtype)
        v = jnp.concatenate([zr, v, zr], axis=1)
        zc = jnp.zeros((nb, v.shape[1], 1, v.shape[3]), v.dtype)
        return jnp.concatenate([zc, v, zc], axis=2)

    def conv3x3(v, w_ref, b_ref):
        # v: [NB, H, W, Cin] f32; w_ref: [9*Cin, Cout] bf16 (im2col layout)
        cin = v.shape[-1]
        vp = pad_hw(v.astype(jnp.bfloat16))
        patches = jnp.concatenate(
            [vp[:, dy:dy + h, dx:dx + w, :].reshape(m, cin)
             for dy in range(3) for dx in range(3)], axis=-1)   # [M, 9*Cin]
        y = jnp.dot(patches, w_ref[...], preferred_element_type=jnp.float32)
        return relu(y + b_ref[...])                             # [M, Cout] f32

    # branch 1: 1x1(64) -> 3x3(96)
    y1 = conv3x3(t1.reshape(nb, h, w, 64), w1b_ref, b1b_ref)
    # branch 2: 1x1(64) -> 3x3(96) -> 3x3(96)
    y2 = conv3x3(t2.reshape(nb, h, w, 64), w2b_ref, b2b_ref)
    y2 = conv3x3(y2.reshape(nb, h, w, 96), w2c_ref, b2c_ref)

    # branch 3: avg-pool(3x3, stride 1, pad 1, count_include_pad=False) -> 1x1(96).
    # Pool and the 1x1 conv commute (both linear), so pool the 96-channel
    # u3 = x @ w3 and scale by the per-pixel 1/valid-count map afterwards.
    up = pad_hw(u3.reshape(nb, h, w, 96))             # f32
    s3 = up[:, 0:h, 0:w, :]
    for dy in range(3):
        for dx in range(3):
            if dy == 0 and dx == 0:
                continue
            s3 = s3 + up[:, dy:dy + h, dx:dx + w, :]
    inv = inv_ref[...][None, :, :, None]              # [1, H, W, 1]
    y3 = relu(s3 * inv + b3_ref[...])                 # [NB, H, W, 96]

    # concat(96,96,96,96) + residual + final ReLU, fused per channel slice
    o_ref[:, :, :, 0:96] = relu(y0.reshape(nb, h, w, 96) + x[..., 0:96])
    o_ref[:, :, :, 96:192] = relu(y1.reshape(nb, h, w, 96) + x[..., 96:192])
    o_ref[:, :, :, 192:288] = relu(y2.reshape(nb, h, w, 96) + x[..., 192:288])
    o_ref[:, :, :, 288:384] = relu(y3 + x[..., 288:384])


def _choose_block_n(n, hw, target_rows=256, max_rows=4096):
    """Smallest divisor of n whose flattened row count M = d*hw fills the MXU."""
    divisors = [d for d in range(1, n + 1) if n % d == 0]
    for d in divisors:
        if target_rows <= d * hw <= max_rows:
            return d
    under = [d for d in divisors if d * hw <= max_rows]
    return under[-1] if under else 1


def inception_a_pallas(x, params, block_n=None):
    N, H, W, C = x.shape
    assert C == 384, "Inception_A requires 384 input channels (residual add)"
    if block_n is None:
        block_n = _choose_block_n(N, H * W)
    assert N % block_n == 0
    grid = (N // block_n,)

    p = params
    # Fuse the four shared-input 1x1 convs: [384, 96 + 64 + 64 + 96] = [384, 320].
    wf = jnp.concatenate([p["w0"], p["w1a"], p["w2a"], p["w3"]],
                         axis=1).astype(jnp.bfloat16)
    # im2col layouts for the 3x3 convs: [3,3,Cin,Cout] -> [9*Cin, Cout].
    w1b = p["w1b"].reshape(-1, p["w1b"].shape[-1]).astype(jnp.bfloat16)  # [576, 96]
    w2b = p["w2b"].reshape(-1, p["w2b"].shape[-1]).astype(jnp.bfloat16)  # [576, 96]
    w2c = p["w2c"].reshape(-1, p["w2c"].shape[-1]).astype(jnp.bfloat16)  # [864, 96]
    b0, b1a, b2a, b3 = p["b0"], p["b1a"], p["b2a"], p["b3"]
    b1b, b2b, b2c = p["b1b"], p["b2b"], p["b2c"]

    # Per-pixel 1/count map for avg-pool(3, 1, pad=1, count_include_pad=False),
    # hoisted out of the kernel (constant index map -> loaded once).
    rh = jnp.arange(H)
    rw = jnp.arange(W)
    ch = 3 - (rh == 0).astype(jnp.int32) - (rh == H - 1).astype(jnp.int32)
    cw = 3 - (rw == 0).astype(jnp.int32) - (rw == W - 1).astype(jnp.int32)
    inv_cnt = 1.0 / (ch[:, None] * cw[None, :]).astype(jnp.float32)      # [H, W]

    operands = [x, inv_cnt, wf, b0, b1a, b2a, b3,
                w1b, b1b, w2b, b2b, w2c, b2c]

    def full_spec(a):
        nd = a.ndim
        return pl.BlockSpec(a.shape, lambda n, _nd=nd: (0,) * _nd)

    in_specs = [pl.BlockSpec((block_n, H, W, C), lambda n: (n, 0, 0, 0))]
    in_specs += [full_spec(a) for a in operands[1:]]
    out_spec = pl.BlockSpec((block_n, H, W, C), lambda n: (n, 0, 0, 0))

    return pl.pallas_call(
        _inception_a_kernel,
        out_shape=jax.ShapeDtypeStruct((N, H, W, C), jnp.float32),
        grid_spec=pltpu.PrefetchScalarGridSpec(
            num_scalar_prefetch=0,
            grid=grid,
            in_specs=in_specs,
            out_specs=out_spec,
        ),
        compiler_params=pltpu.CompilerParams(
            dimension_semantics=("parallel",),
            vmem_limit_bytes=32 * 1024 * 1024),
    )(*operands)


def make_params(key, in_channels=384, eps=1e-3):
    """Deterministic conv + (folded, eval-mode) BatchNorm parameters."""
    keys = iter(jax.random.split(key, 40))

    def conv_bn(cin, cout, k):
        w = jax.random.normal(next(keys), (k, k, cin, cout), jnp.float32)
        w = w * (1.0 / (k * k * cin) ** 0.5)
        gamma = 1.0 + 0.1 * jax.random.normal(next(keys), (cout,), jnp.float32)
        beta = 0.1 * jax.random.normal(next(keys), (cout,), jnp.float32)
        mean = 0.1 * jax.random.normal(next(keys), (cout,), jnp.float32)
        var = 0.5 + jax.random.uniform(next(keys), (cout,), jnp.float32)
        scale = gamma / jnp.sqrt(var + eps)
        wf = w * scale                                   # fold BN scale into weight
        bias = (beta - mean * scale).reshape(1, cout)    # folded BN bias
        if k == 1:
            wf = wf.reshape(cin, cout)
        return wf, bias

    p = {}
    p["w0"], p["b0"] = conv_bn(in_channels, 96, 1)
    p["w1a"], p["b1a"] = conv_bn(in_channels, 64, 1)
    p["w1b"], p["b1b"] = conv_bn(64, 96, 3)
    p["w2a"], p["b2a"] = conv_bn(in_channels, 64, 1)
    p["w2b"], p["b2b"] = conv_bn(64, 96, 3)
    p["w2c"], p["b2c"] = conv_bn(96, 96, 3)
    p["w3"], p["b3"] = conv_bn(in_channels, 96, 1)
    return p


def inception_a_ref(x, p):
    """Pure-JAX f32 reference (NHWC) with the same folded-BN parameters."""
    hi = jax.lax.Precision.HIGHEST

    def c1(v, w, b):
        return jax.nn.relu(jnp.einsum("nhwc,cd->nhwd", v, w, precision=hi)
                           + b.reshape(-1))

    def c3(v, w, b):
        y = jax.lax.conv_general_dilated(
            v, w, (1, 1), "SAME",
            dimension_numbers=("NHWC", "HWIO", "NHWC"), precision=hi)
        return jax.nn.relu(y + b.reshape(-1))

    x0 = c1(x, p["w0"], p["b0"])
    x1 = c3(c1(x, p["w1a"], p["b1a"]), p["w1b"], p["b1b"])
    x2 = c3(c3(c1(x, p["w2a"], p["b2a"]), p["w2b"], p["b2b"]),
            p["w2c"], p["b2c"])
    s = jax.lax.reduce_window(x, 0.0, jax.lax.add,
                              (1, 3, 3, 1), (1, 1, 1, 1), "SAME")
    cnt = jax.lax.reduce_window(jnp.ones_like(x[..., :1]), 0.0, jax.lax.add,
                                (1, 3, 3, 1), (1, 1, 1, 1), "SAME")
    x3 = c1(s / cnt, p["w3"], p["b3"])
    return jax.nn.relu(jnp.concatenate([x0, x1, x2, x3], axis=-1) + x)


if __name__ == "__main__":
    key = jax.random.PRNGKey(0)
    kx, kp = jax.random.split(key)

    # in_channels must be 384 (residual add against the 4x96-channel concat);
    # keep batch/spatial small for the test.
    N, H, W, C = 2, 8, 8, 384
    x = jax.random.normal(kx, (N, H, W, C), jnp.float32)
    params = make_params(kp, in_channels=C)

    out = jax.block_until_ready(inception_a_pallas(x, params))
    ref = inception_a_ref(x, params)
    assert out.shape == (N, H, W, C)

    # bf16 MXU operands (f32 accumulation) vs. the f32/HIGHEST-precision
    # reference -> allow a slightly looser tolerance than pure-f32 would need.
    err = float(jnp.max(jnp.abs(out - ref)))
    if not bool(jnp.allclose(out, ref, atol=5e-2, rtol=5e-2)):
        raise AssertionError(f"Pallas output mismatch, max abs err = {err}")

    print("KERNEL_OK")
</pallas_src>

<mosaic_0001>
module attributes {stable_mosaic.version = 11 : i64} {
  func.func @_inception_a_kernel(%arg0: i32, %arg1: memref<2x8x8x384xf32, #tpu.memory_space<vmem>>, %arg2: memref<8x8xf32, #tpu.memory_space<vmem>>, %arg3: memref<384x320xbf16, #tpu.memory_space<vmem>>, %arg4: memref<1x96xf32, #tpu.memory_space<vmem>>, %arg5: memref<1x64xf32, #tpu.memory_space<vmem>>, %arg6: memref<1x64xf32, #tpu.memory_space<vmem>>, %arg7: memref<1x96xf32, #tpu.memory_space<vmem>>, %arg8: memref<576x96xbf16, #tpu.memory_space<vmem>>, %arg9: memref<1x96xf32, #tpu.memory_space<vmem>>, %arg10: memref<576x96xbf16, #tpu.memory_space<vmem>>, %arg11: memref<1x96xf32, #tpu.memory_space<vmem>>, %arg12: memref<864x96xbf16, #tpu.memory_space<vmem>>, %arg13: memref<1x96xf32, #tpu.memory_space<vmem>>, %arg14: memref<2x8x8x384xf32, #tpu.memory_space<vmem>>) attributes {dimension_semantics = [#tpu.dimension_semantics<parallel>], iteration_bounds = array<i64: 1>, scalar_prefetch = 0 : i64, scratch_operands = 0 : i64, tpu.core_type = #tpu.core_type<tc>, window_params = [{transform_indices = @transform_0, window_bounds = array<i64: 2, 8, 8, 384>}, {pipeline_mode = #tpu.pipeline_mode<synchronous>, transform_indices = @transform_1, window_bounds = array<i64: 8, 8>}, {pipeline_mode = #tpu.pipeline_mode<synchronous>, transform_indices = @transform_2, window_bounds = array<i64: 384, 320>}, {pipeline_mode = #tpu.pipeline_mode<synchronous>, transform_indices = @transform_3, window_bounds = array<i64: 1, 96>}, {pipeline_mode = #tpu.pipeline_mode<synchronous>, transform_indices = @transform_4, window_bounds = array<i64: 1, 64>}, {pipeline_mode = #tpu.pipeline_mode<synchronous>, transform_indices = @transform_5, window_bounds = array<i64: 1, 64>}, {pipeline_mode = #tpu.pipeline_mode<synchronous>, transform_indices = @transform_6, window_bounds = array<i64: 1, 96>}, {pipeline_mode = #tpu.pipeline_mode<synchronous>, transform_indices = @transform_7, window_bounds = array<i64: 576, 96>}, {pipeline_mode = #tpu.pipeline_mode<synchronous>, transform_indices = @transform_8, window_bounds = array<i64: 1, 96>}, {pipeline_mode = #tpu.pipeline_mode<synchronous>, transform_indices = @transform_9, window_bounds = array<i64: 576, 96>}, {pipeline_mode = #tpu.pipeline_mode<synchronous>, transform_indices = @transform_10, window_bounds = array<i64: 1, 96>}, {pipeline_mode = #tpu.pipeline_mode<synchronous>, transform_indices = @transform_11, window_bounds = array<i64: 864, 96>}, {pipeline_mode = #tpu.pipeline_mode<synchronous>, transform_indices = @transform_12, window_bounds = array<i64: 1, 96>}, {transform_indices = @transform_13, window_bounds = array<i64: 2, 8, 8, 384>}]} {
    %c0 = arith.constant 0 : index
    %c0_0 = arith.constant 0 : index
    %c0_1 = arith.constant 0 : index
    %c0_2 = arith.constant 0 : index
    %0 = vector.load %arg1[%c0, %c0_0, %c0_1, %c0_2] : memref<2x8x8x384xf32, #tpu.memory_space<vmem>>, vector<2x8x8x384xf32>
    %1 = vector.shape_cast %0 : vector<2x8x8x384xf32> to vector<128x384xf32>
    %2 = arith.truncf %1 : vector<128x384xf32> to vector<128x384xbf16>
    %c0_3 = arith.constant 0 : index
    %c0_4 = arith.constant 0 : index
    %3 = vector.load %arg3[%c0_3, %c0_4] : memref<384x320xbf16, #tpu.memory_space<vmem>>, vector<384x320xbf16>
    %cst = arith.constant dense<0.000000e+00> : vector<128x320xf32>
    %4 = tpu.matmul %2, %3, %cst {dimension_numbers = #tpu.dot_dimension_numbers<[1], [0], [0], [1], [0, 0, 1, 1], [], []>} : vector<128x384xbf16>, vector<384x320xbf16>, vector<128x320xf32> -> vector<128x320xf32>
    %5 = vector.extract_strided_slice %4 {offsets = [0, 0], sizes = [128, 96], strides = [1, 1]} : vector<128x320xf32> to vector<128x96xf32>
    %c0_5 = arith.constant 0 : index
    %c0_6 = arith.constant 0 : index
    %6 = vector.load %arg4[%c0_5, %c0_6] : memref<1x96xf32, #tpu.memory_space<vmem>>, vector<1x96xf32>
    %7 = vector.broadcast %6 : vector<1x96xf32> to vector<128x96xf32>
    %8 = arith.addf %5, %7 : vector<128x96xf32>
    %cst_7 = arith.constant 0.000000e+00 : f32
    %9 = vector.broadcast %cst_7 : f32 to vector<128x96xf32>
    %10 = arith.maximumf %8, %9 : vector<128x96xf32>
    %11 = vector.extract_strided_slice %4 {offsets = [0, 96], sizes = [128, 64], strides = [1, 1]} : vector<128x320xf32> to vector<128x64xf32>
    %c0_8 = arith.constant 0 : index
    %c0_9 = arith.constant 0 : index
    %12 = vector.load %arg5[%c0_8, %c0_9] : memref<1x64xf32, #tpu.memory_space<vmem>>, vector<1x64xf32>
    %13 = vector.broadcast %12 : vector<1x64xf32> to vector<128x64xf32>
    %14 = arith.addf %11, %13 : vector<128x64xf32>
    %cst_10 = arith.constant 0.000000e+00 : f32
    %15 = vector.broadcast %cst_10 : f32 to vector<128x64xf32>
    %16 = arith.maximumf %14, %15 : vector<128x64xf32>
    %17 = vector.extract_strided_slice %4 {offsets = [0, 160], sizes = [128, 64], strides = [1, 1]} : vector<128x320xf32> to vector<128x64xf32>
    %c0_11 = arith.constant 0 : index
    %c0_12 = arith.constant 0 : index
    %18 = vector.load %arg6[%c0_11, %c0_12] : memref<1x64xf32, #tpu.memory_space<vmem>>, vector<1x64xf32>
    %19 = vector.broadcast %18 : vector<1x64xf32> to vector<128x64xf32>
    %20 = arith.addf %17, %19 : vector<128x64xf32>
    %cst_13 = arith.constant 0.000000e+00 : f32
    %21 = vector.broadcast %cst_13 : f32 to vector<128x64xf32>
    %22 = arith.maximumf %20, %21 : vector<128x64xf32>
    %23 = vector.extract_strided_slice %4 {offsets = [0, 224], sizes = [128, 96], strides = [1, 1]} : vector<128x320xf32> to vector<128x96xf32>
    %24 = vector.shape_cast %16 : vector<128x64xf32> to vector<2x8x8x64xf32>
    %25 = arith.truncf %24 : vector<2x8x8x64xf32> to vector<2x8x8x64xbf16>
    %cst_14 = arith.constant 0.000000e+00 : bf16
    %26 = vector.broadcast %cst_14 : bf16 to vector<2x1x8x64xbf16>
    %27 = tpu.concatenate %26, %25, %26 in 1 : vector<2x1x8x64xbf16>, vector<2x8x8x64xbf16>, vector<2x1x8x64xbf16> -> vector<2x10x8x64xbf16>
    %cst_15 = arith.constant 0.000000e+00 : bf16
    %28 = vector.broadcast %cst_15 : bf16 to vector<2x10x1x64xbf16>
    %29 = tpu.concatenate %28, %27, %28 in 2 : vector<2x10x1x64xbf16>, vector<2x10x8x64xbf16>, vector<2x10x1x64xbf16> -> vector<2x10x10x64xbf16>
    %30 = vector.extract_strided_slice %29 {offsets = [0, 0, 0, 0], sizes = [2, 8, 8, 64], strides = [1, 1, 1, 1]} : vector<2x10x10x64xbf16> to vector<2x8x8x64xbf16>
    %31 = vector.shape_cast %30 : vector<2x8x8x64xbf16> to vector<128x64xbf16>
    %32 = vector.extract_strided_slice %29 {offsets = [0, 0, 1, 0], sizes = [2, 8, 8, 64], strides = [1, 1, 1, 1]} : vector<2x10x10x64xbf16> to vector<2x8x8x64xbf16>
    %33 = vector.shape_cast %32 : vector<2x8x8x64xbf16> to vector<128x64xbf16>
    %34 = vector.extract_strided_slice %29 {offsets = [0, 0, 2, 0], sizes = [2, 8, 8, 64], strides = [1, 1, 1, 1]} : vector<2x10x10x64xbf16> to vector<2x8x8x64xbf16>
    %35 = vector.shape_cast %34 : vector<2x8x8x64xbf16> to vector<128x64xbf16>
    %36 = vector.extract_strided_slice %29 {offsets = [0, 1, 0, 0], sizes = [2, 8, 8, 64], strides = [1, 1, 1, 1]} : vector<2x10x10x64xbf16> to vector<2x8x8x64xbf16>
    %37 = vector.shape_cast %36 : vector<2x8x8x64xbf16> to vector<128x64xbf16>
    %38 = vector.extract_strided_slice %29 {offsets = [0, 1, 1, 0], sizes = [2, 8, 8, 64], strides = [1, 1, 1, 1]} : vector<2x10x10x64xbf16> to vector<2x8x8x64xbf16>
    %39 = vector.shape_cast %38 : vector<2x8x8x64xbf16> to vector<128x64xbf16>
    %40 = vector.extract_strided_slice %29 {offsets = [0, 1, 2, 0], sizes = [2, 8, 8, 64], strides = [1, 1, 1, 1]} : vector<2x10x10x64xbf16> to vector<2x8x8x64xbf16>
    %41 = vector.shape_cast %40 : vector<2x8x8x64xbf16> to vector<128x64xbf16>
    %42 = vector.extract_strided_slice %29 {offsets = [0, 2, 0, 0], sizes = [2, 8, 8, 64], strides = [1, 1, 1, 1]} : vector<2x10x10x64xbf16> to vector<2x8x8x64xbf16>
    %43 = vector.shape_cast %42 : vector<2x8x8x64xbf16> to vector<128x64xbf16>
    %44 = vector.extract_strided_slice %29 {offsets = [0, 2, 1, 0], sizes = [2, 8, 8, 64], strides = [1, 1, 1, 1]} : vector<2x10x10x64xbf16> to vector<2x8x8x64xbf16>
    %45 = vector.shape_cast %44 : vector<2x8x8x64xbf16> to vector<128x64xbf16>
    %46 = vector.extract_strided_slice %29 {offsets = [0, 2, 2, 0], sizes = [2, 8, 8, 64], strides = [1, 1, 1, 1]} : vector<2x10x10x64xbf16> to vector<2x8x8x64xbf16>
    %47 = vector.shape_cast %46 : vector<2x8x8x64xbf16> to vector<128x64xbf16>
    %48 = tpu.concatenate %31, %33, %35, %37, %39, %41, %43, %45, %47 in 1 : vector<128x64xbf16>, vector<128x64xbf16>, vector<128x64xbf16>, vector<128x64xbf16>, vector<128x64xbf16>, vector<128x64xbf16>, vector<128x64xbf16>, vector<128x64xbf16>, vector<128x64xbf16> -> vector<128x576xbf16>
    %c0_16 = arith.constant 0 : index
    %c0_17 = arith.constant 0 : index
    %49 = vector.load %arg8[%c0_16, %c0_17] : memref<576x96xbf16, #tpu.memory_space<vmem>>, vector<576x96xbf16>
    %cst_18 = arith.constant dense<0.000000e+00> : vector<128x96xf32>
    %50 = tpu.matmul %48, %49, %cst_18 {dimension_numbers = #tpu.dot_dimension_numbers<[1], [0], [0], [1], [0, 0, 1, 1], [], []>} : vector<128x576xbf16>, vector<576x96xbf16>, vector<128x96xf32> -> vector<128x96xf32>
    %c0_19 = arith.constant 0 : index
    %c0_20 = arith.constant 0 : index
    %51 = vector.load %arg9[%c0_19, %c0_20] : memref<1x96xf32, #tpu.memory_space<vmem>>, vector<1x96xf32>
    %52 = vector.broadcast %51 : vector<1x96xf32> to vector<128x96xf32>
    %53 = arith.addf %50, %52 : vector<128x96xf32>
    %cst_21 = arith.constant 0.000000e+00 : f32
    %54 = vector.broadcast %cst_21 : f32 to vector<128x96xf32>
    %55 = arith.maximumf %53, %54 : vector<128x96xf32>
    %56 = vector.shape_cast %22 : vector<128x64xf32> to vector<2x8x8x64xf32>
    %57 = arith.truncf %56 : vector<2x8x8x64xf32> to vector<2x8x8x64xbf16>
    %cst_22 = arith.constant 0.000000e+00 : bf16
    %58 = vector.broadcast %cst_22 : bf16 to vector<2x1x8x64xbf16>
    %59 = tpu.concatenate %58, %57, %58 in 1 : vector<2x1x8x64xbf16>, vector<2x8x8x64xbf16>, vector<2x1x8x64xbf16> -> vector<2x10x8x64xbf16>
    %cst_23 = arith.constant 0.000000e+00 : bf16
    %60 = vector.broadcast %cst_23 : bf16 to vector<2x10x1x64xbf16>
    %61 = tpu.concatenate %60, %59, %60 in 2 : vector<2x10x1x64xbf16>, vector<2x10x8x64xbf16>, vector<2x10x1x64xbf16> -> vector<2x10x10x64xbf16>
    %62 = vector.extract_strided_slice %61 {offsets = [0, 0, 0, 0], sizes = [2, 8, 8, 64], strides = [1, 1, 1, 1]} : vector<2x10x10x64xbf16> to vector<2x8x8x64xbf16>
    %63 = vector.shape_cast %62 : vector<2x8x8x64xbf16> to vector<128x64xbf16>
    %64 = vector.extract_strided_slice %61 {offsets = [0, 0, 1, 0], sizes = [2, 8, 8, 64], strides = [1, 1, 1, 1]} : vector<2x10x10x64xbf16> to vector<2x8x8x64xbf16>
    %65 = vector.shape_cast %64 : vector<2x8x8x64xbf16> to vector<128x64xbf16>
    %66 = vector.extract_strided_slice %61 {offsets = [0, 0, 2, 0], sizes = [2, 8, 8, 64], strides = [1, 1, 1, 1]} : vector<2x10x10x64xbf16> to vector<2x8x8x64xbf16>
    %67 = vector.shape_cast %66 : vector<2x8x8x64xbf16> to vector<128x64xbf16>
    %68 = vector.extract_strided_slice %61 {offsets = [0, 1, 0, 0], sizes = [2, 8, 8, 64], strides = [1, 1, 1, 1]} : vector<2x10x10x64xbf16> to vector<2x8x8x64xbf16>
    %69 = vector.shape_cast %68 : vector<2x8x8x64xbf16> to vector<128x64xbf16>
    %70 = vector.extract_strided_slice %61 {offsets = [0, 1, 1, 0], sizes = [2, 8, 8, 64], strides = [1, 1, 1, 1]} : vector<2x10x10x64xbf16> to vector<2x8x8x64xbf16>
    %71 = vector.shape_cast %70 : vector<2x8x8x64xbf16> to vector<128x64xbf16>
    %72 = vector.extract_strided_slice %61 {offsets = [0, 1, 2, 0], sizes = [2, 8, 8, 64], strides = [1, 1, 1, 1]} : vector<2x10x10x64xbf16> to vector<2x8x8x64xbf16>
    %73 = vector.shape_cast %72 : vector<2x8x8x64xbf16> to vector<128x64xbf16>
    %74 = vector.extract_strided_slice %61 {offsets = [0, 2, 0, 0], sizes = [2, 8, 8, 64], strides = [1, 1, 1, 1]} : vector<2x10x10x64xbf16> to vector<2x8x8x64xbf16>
    %75 = vector.shape_cast %74 : vector<2x8x8x64xbf16> to vector<128x64xbf16>
    %76 = vector.extract_strided_slice %61 {offsets = [0, 2, 1, 0], sizes = [2, 8, 8, 64], strides = [1, 1, 1, 1]} : vector<2x10x10x64xbf16> to vector<2x8x8x64xbf16>
    %77 = vector.shape_cast %76 : vector<2x8x8x64xbf16> to vector<128x64xbf16>
    %78 = vector.extract_strided_slice %61 {offsets = [0, 2, 2, 0], sizes = [2, 8, 8, 64], strides = [1, 1, 1, 1]} : vector<2x10x10x64xbf16> to vector<2x8x8x64xbf16>
    %79 = vector.shape_cast %78 : vector<2x8x8x64xbf16> to vector<128x64xbf16>
    %80 = tpu.concatenate %63, %65, %67, %69, %71, %73, %75, %77, %79 in 1 : vector<128x64xbf16>, vector<128x64xbf16>, vector<128x64xbf16>, vector<128x64xbf16>, vector<128x64xbf16>, vector<128x64xbf16>, vector<128x64xbf16>, vector<128x64xbf16>, vector<128x64xbf16> -> vector<128x576xbf16>
    %c0_24 = arith.constant 0 : index
    %c0_25 = arith.constant 0 : index
    %81 = vector.load %arg10[%c0_24, %c0_25] : memref<576x96xbf16, #tpu.memory_space<vmem>>, vector<576x96xbf16>
    %cst_26 = arith.constant dense<0.000000e+00> : vector<128x96xf32>
    %82 = tpu.matmul %80, %81, %cst_26 {dimension_numbers = #tpu.dot_dimension_numbers<[1], [0], [0], [1], [0, 0, 1, 1], [], []>} : vector<128x576xbf16>, vector<576x96xbf16>, vector<128x96xf32> -> vector<128x96xf32>
    %c0_27 = arith.constant 0 : index
    %c0_28 = arith.constant 0 : index
    %83 = vector.load %arg11[%c0_27, %c0_28] : memref<1x96xf32, #tpu.memory_space<vmem>>, vector<1x96xf32>
    %84 = vector.broadcast %83 : vector<1x96xf32> to vector<128x96xf32>
    %85 = arith.addf %82, %84 : vector<128x96xf32>
    %cst_29 = arith.constant 0.000000e+00 : f32
    %86 = vector.broadcast %cst_29 : f32 to vector<128x96xf32>
    %87 = arith.maximumf %85, %86 : vector<128x96xf32>
    %88 = vector.shape_cast %87 : vector<128x96xf32> to vector<2x8x8x96xf32>
    %89 = arith.truncf %88 : vector<2x8x8x96xf32> to vector<2x8x8x96xbf16>
    %cst_30 = arith.constant 0.000000e+00 : bf16
    %90 = vector.broadcast %cst_30 : bf16 to vector<2x1x8x96xbf16>
    %91 = tpu.concatenate %90, %89, %90 in 1 : vector<2x1x8x96xbf16>, vector<2x8x8x96xbf16>, vector<2x1x8x96xbf16> -> vector<2x10x8x96xbf16>
    %cst_31 = arith.constant 0.000000e+00 : bf16
    %92 = vector.broadcast %cst_31 : bf16 to vector<2x10x1x96xbf16>
    %93 = tpu.concatenate %92, %91, %92 in 2 : vector<2x10x1x96xbf16>, vector<2x10x8x96xbf16>, vector<2x10x1x96xbf16> -> vector<2x10x10x96xbf16>
    %94 = vector.extract_strided_slice %93 {offsets = [0, 0, 0, 0], sizes = [2, 8, 8, 96], strides = [1, 1, 1, 1]} : vector<2x10x10x96xbf16> to vector<2x8x8x96xbf16>
    %95 = vector.shape_cast %94 : vector<2x8x8x96xbf16> to vector<128x96xbf16>
    %96 = vector.extract_strided_slice %93 {offsets = [0, 0, 1, 0], sizes = [2, 8, 8, 96], strides = [1, 1, 1, 1]} : vector<2x10x10x96xbf16> to vector<2x8x8x96xbf16>
    %97 = vector.shape_cast %96 : vector<2x8x8x96xbf16> to vector<128x96xbf16>
    %98 = vector.extract_strided_slice %93 {offsets = [0, 0, 2, 0], sizes = [2, 8, 8, 96], strides = [1, 1, 1, 1]} : vector<2x10x10x96xbf16> to vector<2x8x8x96xbf16>
    %99 = vector.shape_cast %98 : vector<2x8x8x96xbf16> to vector<128x96xbf16>
    %100 = vector.extract_strided_slice %93 {offsets = [0, 1, 0, 0], sizes = [2, 8, 8, 96], strides = [1, 1, 1, 1]} : vector<2x10x10x96xbf16> to vector<2x8x8x96xbf16>
    %101 = vector.shape_cast %100 : vector<2x8x8x96xbf16> to vector<128x96xbf16>
    %102 = vector.extract_strided_slice %93 {offsets = [0, 1, 1, 0], sizes = [2, 8, 8, 96], strides = [1, 1, 1, 1]} : vector<2x10x10x96xbf16> to vector<2x8x8x96xbf16>
    %103 = vector.shape_cast %102 : vector<2x8x8x96xbf16> to vector<128x96xbf16>
    %104 = vector.extract_strided_slice %93 {offsets = [0, 1, 2, 0], sizes = [2, 8, 8, 96], strides = [1, 1, 1, 1]} : vector<2x10x10x96xbf16> to vector<2x8x8x96xbf16>
    %105 = vector.shape_cast %104 : vector<2x8x8x96xbf16> to vector<128x96xbf16>
    %106 = vector.extract_strided_slice %93 {offsets = [0, 2, 0, 0], sizes = [2, 8, 8, 96], strides = [1, 1, 1, 1]} : vector<2x10x10x96xbf16> to vector<2x8x8x96xbf16>
    %107 = vector.shape_cast %106 : vector<2x8x8x96xbf16> to vector<128x96xbf16>
    %108 = vector.extract_strided_slice %93 {offsets = [0, 2, 1, 0], sizes = [2, 8, 8, 96], strides = [1, 1, 1, 1]} : vector<2x10x10x96xbf16> to vector<2x8x8x96xbf16>
    %109 = vector.shape_cast %108 : vector<2x8x8x96xbf16> to vector<128x96xbf16>
    %110 = vector.extract_strided_slice %93 {offsets = [0, 2, 2, 0], sizes = [2, 8, 8, 96], strides = [1, 1, 1, 1]} : vector<2x10x10x96xbf16> to vector<2x8x8x96xbf16>
    %111 = vector.shape_cast %110 : vector<2x8x8x96xbf16> to vector<128x96xbf16>
    %112 = tpu.concatenate %95, %97, %99, %101, %103, %105, %107, %109, %111 in 1 : vector<128x96xbf16>, vector<128x96xbf16>, vector<128x96xbf16>, vector<128x96xbf16>, vector<128x96xbf16>, vector<128x96xbf16>, vector<128x96xbf16>, vector<128x96xbf16>, vector<128x96xbf16> -> vector<128x864xbf16>
    %c0_32 = arith.constant 0 : index
    %c0_33 = arith.constant 0 : index
    %113 = vector.load %arg12[%c0_32, %c0_33] : memref<864x96xbf16, #tpu.memory_space<vmem>>, vector<864x96xbf16>
    %cst_34 = arith.constant dense<0.000000e+00> : vector<128x96xf32>
    %114 = tpu.matmul %112, %113, %cst_34 {dimension_numbers = #tpu.dot_dimension_numbers<[1], [0], [0], [1], [0, 0, 1, 1], [], []>} : vector<128x864xbf16>, vector<864x96xbf16>, vector<128x96xf32> -> vector<128x96xf32>
    %c0_35 = arith.constant 0 : index
    %c0_36 = arith.constant 0 : index
    %115 = vector.load %arg13[%c0_35, %c0_36] : memref<1x96xf32, #tpu.memory_space<vmem>>, vector<1x96xf32>
    %116 = vector.broadcast %115 : vector<1x96xf32> to vector<128x96xf32>
    %117 = arith.addf %114, %116 : vector<128x96xf32>
    %cst_37 = arith.constant 0.000000e+00 : f32
    %118 = vector.broadcast %cst_37 : f32 to vector<128x96xf32>
    %119 = arith.maximumf %117, %118 : vector<128x96xf32>
    %120 = vector.shape_cast %23 : vector<128x96xf32> to vector<2x8x8x96xf32>
    %cst_38 = arith.constant 0.000000e+00 : f32
    %121 = vector.broadcast %cst_38 : f32 to vector<2x1x8x96xf32>
    %122 = tpu.concatenate %121, %120, %121 in 1 : vector<2x1x8x96xf32>, vector<2x8x8x96xf32>, vector<2x1x8x96xf32> -> vector<2x10x8x96xf32>
    %cst_39 = arith.constant 0.000000e+00 : f32
    %123 = vector.broadcast %cst_39 : f32 to vector<2x10x1x96xf32>
    %124 = tpu.concatenate %123, %122, %123 in 2 : vector<2x10x1x96xf32>, vector<2x10x8x96xf32>, vector<2x10x1x96xf32> -> vector<2x10x10x96xf32>
    %125 = vector.extract_strided_slice %124 {offsets = [0, 0, 0, 0], sizes = [2, 8, 8, 96], strides = [1, 1, 1, 1]} : vector<2x10x10x96xf32> to vector<2x8x8x96xf32>
    %126 = vector.extract_strided_slice %124 {offsets = [0, 0, 1, 0], sizes = [2, 8, 8, 96], strides = [1, 1, 1, 1]} : vector<2x10x10x96xf32> to vector<2x8x8x96xf32>
    %127 = arith.addf %125, %126 : vector<2x8x8x96xf32>
    %128 = vector.extract_strided_slice %124 {offsets = [0, 0, 2, 0], sizes = [2, 8, 8, 96], strides = [1, 1, 1, 1]} : vector<2x10x10x96xf32> to vector<2x8x8x96xf32>
    %129 = arith.addf %127, %128 : vector<2x8x8x96xf32>
    %130 = vector.extract_strided_slice %124 {offsets = [0, 1, 0, 0], sizes = [2, 8, 8, 96], strides = [1, 1, 1, 1]} : vector<2x10x10x96xf32> to vector<2x8x8x96xf32>
    %131 = arith.addf %129, %130 : vector<2x8x8x96xf32>
    %132 = vector.extract_strided_slice %124 {offsets = [0, 1, 1, 0], sizes = [2, 8, 8, 96], strides = [1, 1, 1, 1]} : vector<2x10x10x96xf32> to vector<2x8x8x96xf32>
    %133 = arith.addf %131, %132 : vector<2x8x8x96xf32>
    %134 = vector.extract_strided_slice %124 {offsets = [0, 1, 2, 0], sizes = [2, 8, 8, 96], strides = [1, 1, 1, 1]} : vector<2x10x10x96xf32> to vector<2x8x8x96xf32>
    %135 = arith.addf %133, %134 : vector<2x8x8x96xf32>
    %136 = vector.extract_strided_slice %124 {offsets = [0, 2, 0, 0], sizes = [2, 8, 8, 96], strides = [1, 1, 1, 1]} : vector<2x10x10x96xf32> to vector<2x8x8x96xf32>
    %137 = arith.addf %135, %136 : vector<2x8x8x96xf32>
    %138 = vector.extract_strided_slice %124 {offsets = [0, 2, 1, 0], sizes = [2, 8, 8, 96], strides = [1, 1, 1, 1]} : vector<2x10x10x96xf32> to vector<2x8x8x96xf32>
    %139 = arith.addf %137, %138 : vector<2x8x8x96xf32>
    %140 = vector.extract_strided_slice %124 {offsets = [0, 2, 2, 0], sizes = [2, 8, 8, 96], strides = [1, 1, 1, 1]} : vector<2x10x10x96xf32> to vector<2x8x8x96xf32>
    %141 = arith.addf %139, %140 : vector<2x8x8x96xf32>
    %c0_40 = arith.constant 0 : index
    %c0_41 = arith.constant 0 : index
    %142 = vector.load %arg2[%c0_40, %c0_41] : memref<8x8xf32, #tpu.memory_space<vmem>>, vector<8x8xf32>
    %143 = vector.shape_cast %142 : vector<8x8xf32> to vector<1x8x8x1xf32>
    %144 = vector.broadcast %143 : vector<1x8x8x1xf32> to vector<2x8x8x96xf32>
    %145 = arith.mulf %141, %144 : vector<2x8x8x96xf32>
    %c0_42 = arith.constant 0 : index
    %c0_43 = arith.constant 0 : index
    %146 = vector.load %arg7[%c0_42, %c0_43] : memref<1x96xf32, #tpu.memory_space<vmem>>, vector<1x96xf32>
    %147 = vector.shape_cast %146 : vector<1x96xf32> to vector<1x1x1x96xf32>
    %148 = vector.broadcast %147 : vector<1x1x1x96xf32> to vector<2x8x8x96xf32>
    %149 = arith.addf %145, %148 : vector<2x8x8x96xf32>
    %cst_44 = arith.constant 0.000000e+00 : f32
    %150 = vector.broadcast %cst_44 : f32 to vector<2x8x8x96xf32>
    %151 = arith.maximumf %149, %150 : vector<2x8x8x96xf32>
    %152 = vector.shape_cast %10 : vector<128x96xf32> to vector<2x8x8x96xf32>
    %153 = vector.extract_strided_slice %0 {offsets = [0, 0, 0, 0], sizes = [2, 8, 8, 96], strides = [1, 1, 1, 1]} : vector<2x8x8x384xf32> to vector<2x8x8x96xf32>
    %154 = arith.addf %152, %153 : vector<2x8x8x96xf32>
    %cst_45 = arith.constant 0.000000e+00 : f32
    %155 = vector.broadcast %cst_45 : f32 to vector<2x8x8x96xf32>
    %156 = arith.maximumf %154, %155 : vector<2x8x8x96xf32>
    %c0_46 = arith.constant 0 : index
    %c0_47 = arith.constant 0 : index
    %c0_48 = arith.constant 0 : index
    %c0_49 = arith.constant 0 : index
    %157 = vector.load %arg14[%c0_46, %c0_47, %c0_48, %c0_49] : memref<2x8x8x384xf32, #tpu.memory_space<vmem>>, vector<2x8x8x96xf32>
    tpu.vector_store %arg14[%c0_46, %c0_47, %c0_48, %c0_49], %156 {strides = array<i32>} : memref<2x8x8x384xf32, #tpu.memory_space<vmem>>, vector<2x8x8x96xf32>,
    %158 = vector.shape_cast %55 : vector<128x96xf32> to vector<2x8x8x96xf32>
    %159 = vector.extract_strided_slice %0 {offsets = [0, 0, 0, 96], sizes = [2, 8, 8, 96], strides = [1, 1, 1, 1]} : vector<2x8x8x384xf32> to vector<2x8x8x96xf32>
    %160 = arith.addf %158, %159 : vector<2x8x8x96xf32>
    %cst_50 = arith.constant 0.000000e+00 : f32
    %161 = vector.broadcast %cst_50 : f32 to vector<2x8x8x96xf32>
    %162 = arith.maximumf %160, %161 : vector<2x8x8x96xf32>
    %c0_51 = arith.constant 0 : index
    %c0_52 = arith.constant 0 : index
    %c0_53 = arith.constant 0 : index
    %c96 = arith.constant 96 : index
    %163 = vector.load %arg14[%c0_51, %c0_52, %c0_53, %c96] : memref<2x8x8x384xf32, #tpu.memory_space<vmem>>, vector<2x8x8x96xf32>
    tpu.vector_store %arg14[%c0_51, %c0_52, %c0_53, %c96], %162 {strides = array<i32>} : memref<2x8x8x384xf32, #tpu.memory_space<vmem>>, vector<2x8x8x96xf32>,
    %164 = vector.shape_cast %119 : vector<128x96xf32> to vector<2x8x8x96xf32>
    %165 = vector.extract_strided_slice %0 {offsets = [0, 0, 0, 192], sizes = [2, 8, 8, 96], strides = [1, 1, 1, 1]} : vector<2x8x8x384xf32> to vector<2x8x8x96xf32>
    %166 = arith.addf %164, %165 : vector<2x8x8x96xf32>
    %cst_54 = arith.constant 0.000000e+00 : f32
    %167 = vector.broadcast %cst_54 : f32 to vector<2x8x8x96xf32>
    %168 = arith.maximumf %166, %167 : vector<2x8x8x96xf32>
    %c0_55 = arith.constant 0 : index
    %c0_56 = arith.constant 0 : index
    %c0_57 = arith.constant 0 : index
    %c192 = arith.constant 192 : index
    %169 = vector.load %arg14[%c0_55, %c0_56, %c0_57, %c192] : memref<2x8x8x384xf32, #tpu.memory_space<vmem>>, vector<2x8x8x96xf32>
    tpu.vector_store %arg14[%c0_55, %c0_56, %c0_57, %c192], %168 {strides = array<i32>} : memref<2x8x8x384xf32, #tpu.memory_space<vmem>>, vector<2x8x8x96xf32>,
    %170 = vector.extract_strided_slice %0 {offsets = [0, 0, 0, 288], sizes = [2, 8, 8, 96], strides = [1, 1, 1, 1]} : vector<2x8x8x384xf32> to vector<2x8x8x96xf32>
    %171 = arith.addf %151, %170 : vector<2x8x8x96xf32>
    %cst_58 = arith.constant 0.000000e+00 : f32
    %172 = vector.broadcast %cst_58 : f32 to vector<2x8x8x96xf32>
    %173 = arith.maximumf %171, %172 : vector<2x8x8x96xf32>
    %c0_59 = arith.constant 0 : index
    %c0_60 = arith.constant 0 : index
    %c0_61 = arith.constant 0 : index
    %c288 = arith.constant 288 : index
    %174 = vector.load %arg14[%c0_59, %c0_60, %c0_61, %c288] : memref<2x8x8x384xf32, #tpu.memory_space<vmem>>, vector<2x8x8x96xf32>
    tpu.vector_store %arg14[%c0_59, %c0_60, %c0_61, %c288], %173 {strides = array<i32>} : memref<2x8x8x384xf32, #tpu.memory_space<vmem>>, vector<2x8x8x96xf32>,
    return
  }
  func.func @transform_0(%arg0: i32) -> (i32, i32, i32, i32) {
    %c0_i32 = arith.constant 0 : i32
    %c0_i32_0 = arith.constant 0 : i32
    %c0_i32_1 = arith.constant 0 : i32
    %c0_i32_2 = arith.constant 0 : i32
    return %arg0, %c0_i32, %c0_i32_0, %c0_i32_1 : i32, i32, i32, i32
  }
  func.func @transform_1(%arg0: i32) -> (i32, i32) {
    %c0_i32 = arith.constant 0 : i32
    %c0_i32_0 = arith.constant 0 : i32
    %c0_i32_1 = arith.constant 0 : i32
    return %c0_i32, %c0_i32_0 : i32, i32
  }
  func.func @transform_2(%arg0: i32) -> (i32, i32) {
    %c0_i32 = arith.constant 0 : i32
    %c0_i32_0 = arith.constant 0 : i32
    %c0_i32_1 = arith.constant 0 : i32
    return %c0_i32, %c0_i32_0 : i32, i32
  }
  func.func @transform_3(%arg0: i32) -> (i32, i32) {
    %c0_i32 = arith.constant 0 : i32
    %c0_i32_0 = arith.constant 0 : i32
    %c0_i32_1 = arith.constant 0 : i32
    return %c0_i32, %c0_i32_0 : i32, i32
  }
  func.func @transform_4(%arg0: i32) -> (i32, i32) {
    %c0_i32 = arith.constant 0 : i32
    %c0_i32_0 = arith.constant 0 : i32
    %c0_i32_1 = arith.constant 0 : i32
    return %c0_i32, %c0_i32_0 : i32, i32
  }
  func.func @transform_5(%arg0: i32) -> (i32, i32) {
    %c0_i32 = arith.constant 0 : i32
    %c0_i32_0 = arith.constant 0 : i32
    %c0_i32_1 = arith.constant 0 : i32
    return %c0_i32, %c0_i32_0 : i32, i32
  }
  func.func @transform_6(%arg0: i32) -> (i32, i32) {
    %c0_i32 = arith.constant 0 : i32
    %c0_i32_0 = arith.constant 0 : i32
    %c0_i32_1 = arith.constant 0 : i32
    return %c0_i32, %c0_i32_0 : i32, i32
  }
  func.func @transform_7(%arg0: i32) -> (i32, i32) {
    %c0_i32 = arith.constant 0 : i32
    %c0_i32_0 = arith.constant 0 : i32
    %c0_i32_1 = arith.constant 0 : i32
    return %c0_i32, %c0_i32_0 : i32, i32
  }
  func.func @transform_8(%arg0: i32) -> (i32, i32) {
    %c0_i32 = arith.constant 0 : i32
    %c0_i32_0 = arith.constant 0 : i32
    %c0_i32_1 = arith.constant 0 : i32
    return %c0_i32, %c0_i32_0 : i32, i32
  }
  func.func @transform_9(%arg0: i32) -> (i32, i32) {
    %c0_i32 = arith.constant 0 : i32
    %c0_i32_0 = arith.constant 0 : i32
    %c0_i32_1 = arith.constant 0 : i32
    return %c0_i32, %c0_i32_0 : i32, i32
  }
  func.func @transform_10(%arg0: i32) -> (i32, i32) {
    %c0_i32 = arith.constant 0 : i32
    %c0_i32_0 = arith.constant 0 : i32
    %c0_i32_1 = arith.constant 0 : i32
    return %c0_i32, %c0_i32_0 : i32, i32
  }
  func.func @transform_11(%arg0: i32) -> (i32, i32) {
    %c0_i32 = arith.constant 0 : i32
    %c0_i32_0 = arith.constant 0 : i32
    %c0_i32_1 = arith.constant 0 : i32
    return %c0_i32, %c0_i32_0 : i32, i32
  }
  func.func @transform_12(%arg0: i32) -> (i32, i32) {
    %c0_i32 = arith.constant 0 : i32
    %c0_i32_0 = arith.constant 0 : i32
    %c0_i32_1 = arith.constant 0 : i32
    return %c0_i32, %c0_i32_0 : i32, i32
  }
  func.func @transform_13(%arg0: i32) -> (i32, i32, i32, i32) {
    %c0_i32 = arith.constant 0 : i32
    %c0_i32_0 = arith.constant 0 : i32
    %c0_i32_1 = arith.constant 0 : i32
    %c0_i32_2 = arith.constant 0 : i32
    return %arg0, %c0_i32, %c0_i32_0, %c0_i32_1 : i32, i32, i32, i32
  }
}

</mosaic_0001>

<bundles_post_ra>
// kernel: tpu_custom_call.1
= control target key start
LH: loop header
LB: loop body
LE: loop exit
PB: predicated region body
PF: predicated region fallthrough
CT: control target
= control target key end

     0   :  { %s13840_s0 = inlined_call_operand.vmem [shape: f32[2,8,8,384], index: 0, kind: input, shape index: {}]   ;;  %s13841_s1 = inlined_call_operand.vmem [shape: f32[8,8], index: 1, kind: input, shape index: {}]   ;;  %s13842_s2 = inlined_call_operand.vmem [shape: bf16[384,320], index: 2, kind: input, shape index: {}]   ;;  %s13843_s3 = inlined_call_operand.vmem [shape: f32[1,96], index: 3, kind: input, shape index: {}]   ;;  %s13844_s4 = inlined_call_operand.vmem [shape: f32[1,64], index: 4, kind: input, shape index: {}]   ;;  %s13845_s5 = inlined_call_operand.vmem [shape: f32[1,64], index: 5, kind: input, shape index: {}]   ;;  %s13846_s6 = inlined_call_operand.vmem [shape: f32[1,96], index: 6, kind: input, shape index: {}]   ;;  %s13847_s7 = inlined_call_operand.vmem [shape: bf16[576,96], index: 7, kind: input, shape index: {}]   ;;  %s13848_s8 = inlined_call_operand.vmem [shape: f32[1,96], index: 8, kind: input, shape index: {}]   ;;  %s13849_s9 = inlined_call_operand.vmem [shape: bf16[576,96], index: 9, kind: input, shape index: {}]   ;;  %s13850_s10 = inlined_call_operand.vmem [shape: f32[1,96], index: 10, kind: input, shape index: {}]   ;;  %s13851_s11 = inlined_call_operand.vmem [shape: bf16[864,96], index: 11, kind: input, shape index: {}]   ;;  %s13852_s12 = inlined_call_operand.vmem [shape: f32[1,96], index: 12, kind: input, shape index: {}]   ;;  %s13853_s13 = inlined_call_operand.hbm [shape: f32[2,8,8,384], index: 13, kind: output, shape index: {}]  }
   0x1   :  { %v7293_v0 = vld [vmem:[%s13842_s2 + $0xa8] sm:$0xf]  ;;  %v8094_v1 = vld [vmem:[%s13842_s2 + $0xb0] sm:$0xf0]  ;;  %v7281_v5 = vld [vmem:[%s13842_s2 + $0x90] sm:$0xf] }
   0x2   :  { %v7389_v2 = vld [vmem:[%s13842_s2 + $0x168] sm:$0xf]  ;;  %v7294_v3 = vor.u32 %v8094_v1, %v7293_v0  ;;  %v8118_v4 = vld [vmem:[%s13842_s2 + $0x170] sm:$0xf0]  ;;  %v8091_v6 = vld [vmem:[%s13842_s2 + $0x98] sm:$0xf0] }
   0x3   :  { %v7390_v7 = vor.u32 %v8118_v4, %v7389_v2  ;;  %v7377_v8 = vld [vmem:[%s13842_s2 + $0x150] sm:$0xf]  ;;  %v8115_v9 = vld [vmem:[%s13842_s2 + $0x158] sm:$0xf0]  ;;  %v7282_v10 = vor.u32 %v8091_v6, %v7281_v5  ;;  %v7269_v12 = vld [vmem:[%s13842_s2 + $0x78] sm:$0xf] }
   0x4   :  { %598 = vmatpush.bf16.msra.mxu0 %v7294_v3  ;;  %8270 = vmatpush.bf16.msra.mxu2 %v7294_v3  ;;  %v7378_v11 = vor.u32 %v8115_v9, %v7377_v8  ;;  %v8088_v13 = vld [vmem:[%s13842_s2 + $0x80] sm:$0xf0]  ;;  %v7365_v14 = vld [vmem:[%s13842_s2 + $0x138] sm:$0xf]  ;;  %v7257_v18 = vld [vmem:[%s13842_s2 + $0x60] sm:$0xf] }
   0x5   :  { %647 = vmatpush.bf16.msra.mxu1 %v7390_v7  ;;  %8278 = vmatpush.bf16.msra.mxu3 %v7390_v7  ;;  %v8112_v15 = vld [vmem:[%s13842_s2 + $0x140] sm:$0xf0]  ;;  %v7270_v16 = vor.u32 %v8088_v13, %v7269_v12  ;;  %v8085_v19 = vld [vmem:[%s13842_s2 + $0x68] sm:$0xf0]  ;;  %v7353_v20 = vld [vmem:[%s13842_s2 + $0x120] sm:$0xf] }
   0x6   :  { %v7366_v17 = vor.u32 %v8112_v15, %v7365_v14  ;;  %v8109_v21 = vld [vmem:[%s13842_s2 + $0x128] sm:$0xf0]  ;;  %v7258_v22 = vor.u32 %v8085_v19, %v7257_v18  ;;  %v7245_v24 = vld [vmem:[%s13842_s2 + $0x48] sm:$0xf]  ;;  %v8082_v25 = vld [vmem:[%s13842_s2 + $0x50] sm:$0xf0] }
   0x7   :  { %v7354_v23 = vor.u32 %v8109_v21, %v7353_v20  ;;  %v7341_v26 = vld [vmem:[%s13842_s2 + $0x108] sm:$0xf]  ;;  %v8106_v27 = vld [vmem:[%s13842_s2 + $0x110] sm:$0xf0]  ;;  %v7246_v28 = vor.u32 %v8082_v25, %v7245_v24  ;;  %v7233_v30 = vld [vmem:[%s13842_s2 + $0x30] sm:$0xf] }
   0x8   :  { %599 = vmatpush.bf16.msra.mxu0 %v7282_v10  ;;  %8271 = vmatpush.bf16.msra.mxu2 %v7282_v10  ;;  %v7342_v29 = vor.u32 %v8106_v27, %v7341_v26  ;;  %v8079_v31 = vld [vmem:[%s13842_s2 + $0x38] sm:$0xf0]  ;;  %v7329_v32 = vld [vmem:[%s13842_s2 + $0xf0] sm:$0xf]  ;;  %v7221_v36 = vld [vmem:[%s13842_s2 + $0x18] sm:$0xf] }
   0x9   :  { %648 = vmatpush.bf16.msra.mxu1 %v7378_v11  ;;  %8279 = vmatpush.bf16.msra.mxu3 %v7378_v11  ;;  %v8103_v33 = vld [vmem:[%s13842_s2 + $0xf8] sm:$0xf0]  ;;  %v7234_v34 = vor.u32 %v8079_v31, %v7233_v30  ;;  %v8076_v37 = vld [vmem:[%s13842_s2 + $0x20] sm:$0xf0]  ;;  %v7317_v38 = vld [vmem:[%s13842_s2 + $0xd8] sm:$0xf] }
   0xa   :  { %v7330_v35 = vor.u32 %v8103_v33, %v7329_v32  ;;  %v8100_v39 = vld [vmem:[%s13842_s2 + $0xe0] sm:$0xf0]  ;;  %v7222_v40 = vor.u32 %v8076_v37, %v7221_v36  ;;  %v7209_v41 = vld [vmem:[%s13842_s2] sm:$0xf]  ;;  %v8073_v43 = vld [vmem:[%s13842_s2 + $0x8] sm:$0xf0] }
   0xb   :  { %v7318_v42 = vor.u32 %v8100_v39, %v7317_v38  ;;  %v7305_v44 = vld [vmem:[%s13842_s2 + $0xc0] sm:$0xf]  ;;  %v8097_v45 = vld [vmem:[%s13842_s2 + $0xc8] sm:$0xf0]  ;;  %v8573_v47 = vld [vmem:[%s13840_s0 + $0x18] sm:$0xff]  ;;  %v7210_v58 = vor.u32 %v8073_v43, %v7209_v41 }
   0xc   :  { %600 = vmatpush.bf16.msra.mxu0 %v7270_v16  ;;  %8272 = vmatpush.bf16.msra.mxu2 %v7270_v16  ;;  %v8568_v46 = vld [vmem:[%s13840_s0] sm:$0xff]  ;;  %v73_v49 = vld [vmem:[%s13840_s0 + $0xd8] sm:$0xff]  ;;  %v8093_v50 = vld [vmem:[%s13842_s2 + $0xac] sm:$0xf]  ;;  %v7306_v61 = vor.u32 %v8097_v45, %v7305_v44 }
   0xd   :  { %649 = vmatpush.bf16.msra.mxu1 %v7366_v17  ;;  %8280 = vmatpush.bf16.msra.mxu3 %v7366_v17  ;;  %v70_v48 = vld [vmem:[%s13840_s0 + $0xc0] sm:$0xff]  ;;  %v7295_v51 = vld [vmem:[%s13842_s2 + $0xb4] sm:$0xf0]  ;;  %v47_v52 = vld [vmem:[%s13840_s0 + $0x8] sm:$0xff] }
   0xe   :  { %v50_v53 = vld [vmem:[%s13840_s0 + $0x20] sm:$0xff]  ;;  %v71_v54 = vld [vmem:[%s13840_s0 + $0xc8] sm:$0xff]  ;;  %v8142_v57 = vld [vmem:[%s13842_s2 + $0x230] sm:$0xf0]  ;;  %v7298_v63 = vor.u32 %v8093_v50, %v7295_v51 }
   0xf   :  { %v74_v55 = vld [vmem:[%s13840_s0 + $0xe0] sm:$0xff]  ;;  %v7485_v56 = vld [vmem:[%s13842_s2 + $0x228] sm:$0xf]  ;;  %v8117_v59 = vld [vmem:[%s13842_s2 + $0x16c] sm:$0xf] }
  0x10   :  { %601 = vmatpush.bf16.msra.mxu0 %v7258_v22  ;;  %8273 = vmatpush.bf16.msra.mxu2 %v7258_v22  ;;  %v7391_v60 = vld [vmem:[%s13842_s2 + $0x174] sm:$0xf0]  ;;  %v8090_v62 = vld [vmem:[%s13842_s2 + $0x94] sm:$0xf]  ;;  %v7486_v0 = vor.u32 %v8142_v57, %v7485_v56  ;;  %v8141_v1 = vld [vmem:[%s13842_s2 + $0x22c] sm:$0xf] }
  0x11   :  { %650 = vmatpush.bf16.msra.mxu1 %v7354_v23  ;;  %8281 = vmatpush.bf16.msra.mxu3 %v7354_v23  ;;  %v7487_v2 = vld [vmem:[%s13842_s2 + $0x234] sm:$0xf0] }
  0x14   :  { %602 = vmatpush.bf16.msra.mxu0 %v7246_v28  ;;  %8274 = vmatpush.bf16.msra.mxu2 %v7246_v28 }
  0x15   :  { %651 = vmatpush.bf16.msra.mxu1 %v7342_v29  ;;  %8282 = vmatpush.bf16.msra.mxu3 %v7342_v29 }
  0x18   :  { %603 = vmatpush.bf16.msra.mxu0 %v7234_v34  ;;  %8275 = vmatpush.bf16.msra.mxu2 %v7234_v34 }
  0x19   :  { %652 = vmatpush.bf16.msra.mxu1 %v7330_v35  ;;  %8283 = vmatpush.bf16.msra.mxu3 %v7330_v35 }
  0x1c   :  { %604 = vmatpush.bf16.msra.mxu0 %v7222_v40  ;;  %8276 = vmatpush.bf16.msra.mxu2 %v7222_v40 }
  0x1d   :  { %653 = vmatpush.bf16.msra.mxu1 %v7318_v42  ;;  %8284 = vmatpush.bf16.msra.mxu3 %v7318_v42 }
  0x1e   :  { %18 = vsyncpa [#allocation3], 0  ;;  %v8622_v3 = vpack.c.bf16 %v8573_v47, %v8568_v46  ;;  %v8624_v4 = vpack.c.bf16 %v73_v49, %v70_v48  ;;  %v7283_v5 = vld [vmem:[%s13842_s2 + $0x9c] sm:$0xf0]  ;;  %v7473_v6 = vld [vmem:[%s13842_s2 + $0x210] sm:$0xf]  ;;  %v8635_v8 = vpack.c.bf16 %v50_v53, %v47_v52  ;;  %v8637_v9 = vpack.c.bf16 %v74_v55, %v71_v54 }
  0x1f   :  { %v8139_v7 = vld [vmem:[%s13842_s2 + $0x218] sm:$0xf0]  ;;  %v7394_v10 = vor.u32 %v8117_v59, %v7391_v60  ;;  %v7490_v11 = vor.u32 %v8141_v1, %v7487_v2  ;;  %v8114_v12 = vld [vmem:[%s13842_s2 + $0x154] sm:$0xf]  ;;  %v7379_v13 = vld [vmem:[%s13842_s2 + $0x15c] sm:$0xf0]  ;;  %v7286_v14 = vor.u32 %v8090_v62, %v7283_v5 }
  0x20   :  { %14003 = vst [vmem:[#allocation5_spill] sm:$0xff] %v8624_v4  ;;  %605 = vmatpush.bf16.msra.mxu0 %v7210_v58  ;;  %8277 = vmatpush.bf16.msra.mxu2 %v7210_v58  ;;  %v7474_v15 = vor.u32 %v8139_v7, %v7473_v6  ;;  %v8087_v16 = vld [vmem:[%s13842_s2 + $0x7c] sm:$0xf]  ;;  %v8138_v17 = vld [vmem:[%s13842_s2 + $0x214] sm:$0xf]  ;;  %v7382_v22 = vor.u32 %v8114_v12, %v7379_v13  ;;  %v8705_v39 = vld [vmem:[%s13840_s0 + $0x48] sm:$0xff] }
  0x21   :  { %14004 = vst [vmem:[#allocation6_spill] sm:$0xff] %v8635_v8  ;;  %654 = vmatpush.bf16.msra.mxu1 %v7306_v61  ;;  %8285 = vmatpush.bf16.msra.mxu3 %v7306_v61  ;;  %v7475_v18 = vld [vmem:[%s13842_s2 + $0x21c] sm:$0xf0]  ;;  %v7271_v19 = vld [vmem:[%s13842_s2 + $0x84] sm:$0xf0]  ;;  %v8700_v38 = vld [vmem:[%s13840_s0 + $0x30] sm:$0xff] }
  0x22   :  { %14005 = vst [vmem:[#allocation7_spill] sm:$0xff] %v8637_v9  ;;  %v7461_v20 = vld [vmem:[%s13842_s2 + $0x1f8] sm:$0xf]  ;;  %v8136_v21 = vld [vmem:[%s13842_s2 + $0x200] sm:$0xf0]  ;;  %v7478_v23 = vor.u32 %v8138_v17, %v7475_v18  ;;  %v7274_v26 = vor.u32 %v8087_v16, %v7271_v19  ;;  %v8710_v40 = vld [vmem:[%s13840_s0 + $0xf0] sm:$0xff]  ;;  %v8762_v1 = vpack.c.bf16 %v8705_v39, %v8700_v38 }
  0x23   :  { %606 = vmatmul.bf16.vlgmr.msra.gmra.mxu0 %v8622_v3  ;;  %626 = vmatmul.bf16.vlgmr.msra.gmra.mxu2 %v8624_v4  ;;  %v8111_v24 = vld [vmem:[%s13842_s2 + $0x13c] sm:$0xf]  ;;  %v7367_v25 = vld [vmem:[%s13842_s2 + $0x144] sm:$0xf0]  ;;  %v7462_v27 = vor.u32 %v8136_v21, %v7461_v20  ;;  %v8084_v28 = vld [vmem:[%s13842_s2 + $0x64] sm:$0xf] }
  0x24   :  { %696 = vmatpush.bf16.msrb.mxu2 %v7486_v0  ;;  %655 = vmatmul.bf16.vlgmr.msra.gmra.mxu1 %v8635_v8  ;;  %v8135_v29 = vld [vmem:[%s13842_s2 + $0x1fc] sm:$0xf]  ;;  %v7463_v30 = vld [vmem:[%s13842_s2 + $0x204] sm:$0xf0]  ;;  %v7259_v31 = vld [vmem:[%s13842_s2 + $0x6c] sm:$0xf0]  ;;  %v7370_v34 = vor.u32 %v8111_v24, %v7367_v25 }
  0x25   :  { %745 = vmatpush.bf16.msrb.mxu3 %v7298_v63  ;;  %794 = vmatpush.bf16.msrb.mxu0 %v7394_v10  ;;  %v7449_v32 = vld [vmem:[%s13842_s2 + $0x1e0] sm:$0xf]  ;;  %v8133_v33 = vld [vmem:[%s13842_s2 + $0x1e8] sm:$0xf0]  ;;  %v7466_v35 = vor.u32 %v8135_v29, %v7463_v30  ;;  %v8108_v36 = vld [vmem:[%s13842_s2 + $0x124] sm:$0xf]  ;;  %v7262_v42 = vor.u32 %v8084_v28, %v7259_v31 }
  0x26   :  { %675 = vmatmul.bf16.vlgmr.msra.gmra.mxu3 %v8637_v9  ;;  %843 = vmatpush.bf16.msrb.mxu1 %v7490_v11  ;;  %v7355_v37 = vld [vmem:[%s13842_s2 + $0x12c] sm:$0xf0]  ;;  %v79_v41 = vld [vmem:[%s13840_s0 + $0x108] sm:$0xff]  ;;  %v7450_v43 = vor.u32 %v8133_v33, %v7449_v32  ;;  %v8132_v45 = vld [vmem:[%s13842_s2 + $0x1e4] sm:$0xf]  ;;  %s8391_s28 = smov 96  }
  0x27   :  { %v8081_v44 = vld [vmem:[%s13842_s2 + $0x4c] sm:$0xf]  ;;  %v7451_v48 = vld [vmem:[%s13842_s2 + $0x1ec] sm:$0xf0]  ;;  %v7247_v49 = vld [vmem:[%s13842_s2 + $0x54] sm:$0xf0]  ;;  %v7358_v56 = vor.u32 %v8108_v36, %v7355_v37  ;;  %v8765_v2 = vpack.c.bf16 %v79_v41, %v8710_v40 }
  0x28   :  { %697 = vmatpush.bf16.msrb.mxu2 %v7474_v15  ;;  %v7437_v50 = vld [vmem:[%s13842_s2 + $0x1c8] sm:$0xf]  ;;  %v8130_v51 = vld [vmem:[%s13842_s2 + $0x1d0] sm:$0xf0]  ;;  %v53_v52 = vld [vmem:[%s13840_s0 + $0x38] sm:$0xff]  ;;  %v7454_v57 = vor.u32 %v8132_v45, %v7451_v48  ;;  %v7250_v60 = vor.u32 %v8081_v44, %v7247_v49  ;;  %vm4912_vm0 = vcmask 785408  }
  0x29   :  { %746 = vmatpush.bf16.msrb.mxu3 %v7286_v14  ;;  %795 = vmatpush.bf16.msrb.mxu0 %v7382_v22  ;;  %v56_v53 = vld [vmem:[%s13840_s0 + $0x50] sm:$0xff]  ;;  %v77_v54 = vld [vmem:[%s13840_s0 + $0xf8] sm:$0xff]  ;;  %v8105_v58 = vld [vmem:[%s13842_s2 + $0x10c] sm:$0xf]  ;;  %v7438_v61 = vor.u32 %v8130_v51, %v7437_v50  ;;  %14006 = vst [vmem:[#allocation8_spill] sm:$0xff] %v8765_v2  ;;  %vm1496_vm1 = vcmask 1040384  }
  0x2a   :  { %844 = vmatpush.bf16.msrb.mxu1 %v7478_v23  ;;  %v80_v55 = vld [vmem:[%s13840_s0 + $0x110] sm:$0xff]  ;;  %v7343_v59 = vld [vmem:[%s13842_s2 + $0x114] sm:$0xf0]  ;;  %v8129_v63 = vld [vmem:[%s13842_s2 + $0x1cc] sm:$0xf]  ;;  %v8776_v10 = vpack.c.bf16 %v56_v53, %v53_v52  ;;  %vm1516_vm3 = vcmask 1044480  }
  0x2b   :  { %v8078_v62 = vld [vmem:[%s13842_s2 + $0x34] sm:$0xf]  ;;  %v7439_v0 = vld [vmem:[%s13842_s2 + $0x1d4] sm:$0xf0]  ;;  %v7235_v5 = vld [vmem:[%s13842_s2 + $0x3c] sm:$0xf0]  ;;  %v8778_v11 = vpack.c.bf16 %v80_v55, %v77_v54  ;;  %v7346_v12 = vor.u32 %v8105_v58, %v7343_v59 }
  0x2c   :  { %698 = vmatpush.bf16.msrb.mxu2 %v7462_v27  ;;  %v7425_v6 = vld [vmem:[%s13842_s2 + $0x1b0] sm:$0xf]  ;;  %v8127_v7 = vld [vmem:[%s13842_s2 + $0x1b8] sm:$0xf0]  ;;  %14007 = vst [vmem:[#allocation9_spill] sm:$0xff] %v8776_v10  ;;  %v7442_v13 = vor.u32 %v8129_v63, %v7439_v0  ;;  %v7238_v14 = vor.u32 %v8078_v62, %v7235_v5  ;;  %v8847_v49 = vld [vmem:[%s13840_s0 + $0x60] sm:$0xff] }
  0x2d   :  { %747 = vmatpush.bf16.msrb.mxu3 %v7274_v26  ;;  %796 = vmatpush.bf16.msrb.mxu0 %v7370_v34  ;;  %14008 = vst [vmem:[#allocation10_spill] sm:$0xff] %v8778_v11  ;;  %v7426_v15 = vor.u32 %v8127_v7, %v7425_v6  ;;  %v8102_v16 = vld [vmem:[%s13842_s2 + $0xf4] sm:$0xf]  ;;  %v7331_v17 = vld [vmem:[%s13842_s2 + $0xfc] sm:$0xf0]  ;;  %v8852_v50 = vld [vmem:[%s13840_s0 + $0x78] sm:$0xff] }
  0x2e   :  { %845 = vmatpush.bf16.msrb.mxu1 %v7466_v35  ;;  %v8075_v18 = vld [vmem:[%s13842_s2 + $0x1c] sm:$0xf]  ;;  %v7223_v19 = vld [vmem:[%s13842_s2 + $0x24] sm:$0xf0]  ;;  %v8126_v20 = vld [vmem:[%s13842_s2 + $0x1b4] sm:$0xf]  ;;  %v7334_v21 = vor.u32 %v8102_v16, %v7331_v17  ;;  %v8876_v59 = vpack.c.bf16 %v8852_v50, %v8847_v49 }
  0x2f   :  { %v7427_v22 = vld [vmem:[%s13842_s2 + $0x1bc] sm:$0xf0]  ;;  %v7413_v23 = vld [vmem:[%s13842_s2 + $0x198] sm:$0xf]  ;;  %v8124_v24 = vld [vmem:[%s13842_s2 + $0x1a0] sm:$0xf0]  ;;  %v7226_v25 = vor.u32 %v8075_v18, %v7223_v19 }
  0x30   :  { %699 = vmatpush.bf16.msrb.mxu2 %v7450_v43  ;;  %v7430_v26 = vor.u32 %v8126_v20, %v7427_v22  ;;  %v7414_v27 = vor.u32 %v8124_v24, %v7413_v23  ;;  %v8099_v28 = vld [vmem:[%s13842_s2 + $0xdc] sm:$0xf]  ;;  %v7319_v29 = vld [vmem:[%s13842_s2 + $0xe4] sm:$0xf0]  ;;  %v8072_v30 = vld [vmem:[%s13842_s2 + $0x4] sm:$0xf] }
  0x31   :  { %748 = vmatpush.bf16.msrb.mxu3 %v7262_v42  ;;  %797 = vmatpush.bf16.msrb.mxu0 %v7358_v56  ;;  %v7211_v31 = vld [vmem:[%s13842_s2 + $0xc] sm:$0xf0]  ;;  %v8123_v32 = vld [vmem:[%s13842_s2 + $0x19c] sm:$0xf]  ;;  %v7415_v33 = vld [vmem:[%s13842_s2 + $0x1a4] sm:$0xf0]  ;;  %v7322_v36 = vor.u32 %v8099_v28, %v7319_v29 }
  0x32   :  { %846 = vmatpush.bf16.msrb.mxu1 %v7454_v57  ;;  %v7401_v34 = vld [vmem:[%s13842_s2 + $0x180] sm:$0xf]  ;;  %v8121_v35 = vld [vmem:[%s13842_s2 + $0x188] sm:$0xf0]  ;;  %v7418_v37 = vor.u32 %v8123_v32, %v7415_v33  ;;  %v8096_v41 = vld [vmem:[%s13842_s2 + $0xc4] sm:$0xf]  ;;  %v7214_v42 = vor.u32 %v8072_v30, %v7211_v31 }
  0x33   :  { %611 = vmatmul.bf16.gmra.mxu0 %v8762_v1  ;;  %631 = vmatmul.bf16.gmra.mxu2 %v8765_v2  ;;  %v7402_v43 = vor.u32 %v8121_v35, %v7401_v34  ;;  %v7307_v44 = vld [vmem:[%s13842_s2 + $0xcc] sm:$0xf0]  ;;  %v8120_v45 = vld [vmem:[%s13842_s2 + $0x184] sm:$0xf]  ;;  %v85_v52 = vld [vmem:[%s13840_s0 + $0x138] sm:$0xff]  ;;  %vm1824_vm7 = vcmask 1042432  }
  0x34   :  { %700 = vmatpush.bf16.msrb.mxu2 %v7438_v61  ;;  %660 = vmatmul.bf16.gmra.mxu1 %v8776_v10  ;;  %v7403_v48 = vld [vmem:[%s13842_s2 + $0x18c] sm:$0xf0]  ;;  %v8857_v51 = vld [vmem:[%s13840_s0 + $0x120] sm:$0xff]  ;;  %v59_v53 = vld [vmem:[%s13840_s0 + $0x68] sm:$0xff]  ;;  %v7310_v57 = vor.u32 %v8096_v41, %v7307_v44  ;;  %vm1497_vm2 = vsmask.f32 256 }
  0x35   :  { %749 = vmatpush.bf16.msrb.mxu3 %v7250_v60  ;;  %798 = vmatpush.bf16.msrb.mxu0 %v7346_v12  ;;  %v62_v54 = vld [vmem:[%s13840_s0 + $0x80] sm:$0xff]  ;;  %v83_v55 = vld [vmem:[%s13840_s0 + $0x128] sm:$0xff]  ;;  %v7406_v58 = vor.u32 %v8120_v45, %v7403_v48  ;;  %v8879_v60 = vpack.c.bf16 %v85_v52, %v8857_v51  ;;  %v8892_v63 = vld [vmem:[%s13840_s0 + $0x90] sm:$0xff]  ;;  %vm1517_vm5 = vsmask.f32 4352  ;;  %vm1825_vm8 = vcmask 1046532  }
  0x36   :  { %680 = vmatmul.bf16.gmra.mxu3 %v8778_v11  ;;  %847 = vmatpush.bf16.msrb.mxu1 %v7442_v13  ;;  %v86_v56 = vld [vmem:[%s13840_s0 + $0x140] sm:$0xff]  ;;  %v8881_v61 = vpack.c.bf16 %v62_v54, %v59_v53  ;;  %v8897_v0 = vld [vmem:[%s13840_s0 + $0xa8] sm:$0xff]  ;;  %v8902_v5 = vld [vmem:[%s13840_s0 + $0x150] sm:$0xff]  ;;  %vm1343_vm10 = vcmask 261120   ;;  %vm1611_vm11 = vsmask.f32 3328 }
  0x37   :  { %14009 = vst [vmem:[#allocation11_spill] sm:$0xff] %v8879_v60  ;;  %v8883_v62 = vpack.c.bf16 %v86_v56, %v83_v55  ;;  %v91_v6 = vld [vmem:[%s13840_s0 + $0x168] sm:$0xff]  ;;  %v65_v7 = vld [vmem:[%s13840_s0 + $0x98] sm:$0xff]  ;;  %v68_v12 = vld [vmem:[%s13840_s0 + $0xb0] sm:$0xff]  ;;  %vm1612_vm12 = vsmask.f32 7440 }
  0x38   :  { %701 = vmatpush.bf16.msrb.mxu2 %v7426_v15  ;;  %14010 = vst [vmem:[#allocation12_spill] sm:$0xff] %v8881_v61  ;;  %v89_v13 = vld [vmem:[%s13840_s0 + $0x158] sm:$0xff]  ;;  %v8921_v15 = vpack.c.bf16 %v8897_v0, %v8892_v63  ;;  %v8924_v16 = vpack.c.bf16 %v91_v6, %v8902_v5  ;;  %v8926_v17 = vpack.c.bf16 %v68_v12, %v65_v7  ;;  %v8297_v19 = vld [vmem:[%s13844_s4] ss:$0 sm:$0xff]  ;;  %v48_v20 = vld [vmem:[%s13840_s0 + $0x10] sm:$0xff]  ;;  %s8394_s4 = smov 64  }
  0x39   :  { %750 = vmatpush.bf16.msrb.mxu3 %v7238_v14  ;;  %799 = vmatpush.bf16.msrb.mxu0 %v7334_v21  ;;  %14011 = vst [vmem:[#allocation13_spill] sm:$0xff] %v8883_v62  ;;  %v92_v14 = vld [vmem:[%s13840_s0 + $0x170] sm:$0xff]  ;;  %v51_v21 = vld [vmem:[%s13840_s0 + $0x28] sm:$0xff]  ;;  %v54_v23 = vld [vmem:[%s13840_s0 + $0x40] sm:$0xff]  ;;  %vm2073_vm14 = vcmask 523264   ;;  %vm6105_vm15 = vcmask 1046528  }
  0x3a   :  { %848 = vmatpush.bf16.msrb.mxu1 %v7430_v26  ;;  %14012 = vst [vmem:[#allocation14_spill] sm:$0xff] %v8921_v15  ;;  %v8928_v18 = vpack.c.bf16 %v92_v14, %v89_v13  ;;  %1078 = vrot.lane.b32.xlu0 %v8297_v19, %s8391_s28  ;;  %v8944_v22 = vpack.c.bf16 %v51_v21, %v48_v20  ;;  %v57_v24 = vld [vmem:[%s13840_s0 + $0x58] sm:$0xff]  ;;  %v60_v26 = vld [vmem:[%s13840_s0 + $0x70] sm:$0xff]  ;;  %v66_v29 = vld [vmem:[%s13840_s0 + $0xa0] sm:$0xff]  ;;  %s7195_s17 = sshll.u32 %s13853_s13, 4  ;;  %s8397_s18 = smov 384   ;;  %s7196_s17 = int_to_ptr.hbm [resolvable:$true] %s7195_s17 }
  0x3b   :  { %14013 = vst [vmem:[#allocation15_spill] sm:$0xff] %v8924_v16  ;;  %v69_v30 = vld [vmem:[%s13840_s0 + $0xb8] sm:$0xff]  ;;  %v72_v32 = vld [vmem:[%s13840_s0 + $0xd0] sm:$0xff]  ;;  %v75_v33 = vld [vmem:[%s13840_s0 + $0xe8] sm:$0xff]  ;;  %s8398_s19 = smov 24  }
  0x3c   :  { %702 = vmatpush.bf16.msrb.mxu2 %v7414_v27  ;;  %14014 = vst [vmem:[#allocation16_spill] sm:$0xff] %v8926_v17  ;;  %v63_v27 = vld [vmem:[%s13840_s0 + $0x88] sm:$0xff]  ;;  %v8980_v31 = vpack.c.bf16 %v69_v30, %v66_v29  ;;  %v8992_v34 = vpack.c.bf16 %v75_v33, %v72_v32  ;;  %v78_v45 = vld [vmem:[%s13840_s0 + $0x100] sm:$0xff]  ;;  %v81_v48 = vld [vmem:[%s13840_s0 + $0x118] sm:$0xff] }
  0x3d   :  { %751 = vmatpush.bf16.msrb.mxu3 %v7226_v25  ;;  %800 = vmatpush.bf16.msrb.mxu0 %v7322_v36  ;;  %14015 = vst [vmem:[#allocation17_spill] sm:$0xff] %v8928_v18  ;;  %v8956_v25 = vpack.c.bf16 %v57_v24, %v54_v23  ;;  %v8968_v28 = vpack.c.bf16 %v63_v27, %v60_v26  ;;  %v84_v13 = vld [vmem:[%s13840_s0 + $0x130] sm:$0xff]  ;;  %v87_v14 = vld [vmem:[%s13840_s0 + $0x148] sm:$0xff]  ;;  %v90_v33 = vld [vmem:[%s13840_s0 + $0x160] sm:$0xff] }
  0x3e   :  { %849 = vmatpush.bf16.msrb.mxu1 %v7418_v37  ;;  %14016 = vst [vmem:[#allocation18_spill] sm:$0xff] %v8944_v22  ;;  %v9016_v54 = vpack.c.bf16 %v81_v48, %v78_v45  ;;  %v9042_v21 = vpack.c.bf16 %v87_v14, %v84_v13  ;;  %vm9328_vm4 = vmand %vm1496_vm1, %vm1497_vm2  ;;  %vm6181_vm2 = vcmask 1045504  }
  0x3f   :  { %14017 = vst [vmem:[#allocation19_spill] sm:$0xff] %v8956_v25  ;;  %vm9350_vm6 = vmand %vm1516_vm3, %vm1517_vm5  ;;  %vm6754_vm3 = vcmask 1048320  }
  0x40   :  { %703 = vmatpush.bf16.msrb.mxu2 %v7402_v43  ;;  %14018 = vst [vmem:[#allocation20_spill] sm:$0xff] %v8968_v28  ;;  %vm9413_vm9 = vmor %vm1824_vm7, %vm1825_vm8 }
  0x41   :  { %752 = vmatpush.bf16.msrb.mxu3 %v7214_v42  ;;  %801 = vmatpush.bf16.msrb.mxu0 %v7310_v57  ;;  %14019 = vst [vmem:[#allocation21_spill] sm:$0xff] %v8980_v31  ;;  %vm9472_vm13 = vmor %vm1611_vm11, %vm1612_vm12 }
  0x42   :  { %850 = vmatpush.bf16.msrb.mxu1 %v7406_v58  ;;  %14020 = vst [vmem:[#allocation22_spill] sm:$0xff] %v8992_v34 }
  0x43   :  { %616 = vmatmul.bf16.gmra.mxu0 %v8876_v59  ;;  %636 = vmatmul.bf16.gmra.mxu2 %v8879_v60  ;;  %14021 = vst [vmem:[#allocation23_spill] sm:$0xff] %v9016_v54 }
  0x44   :  { %665 = vmatmul.bf16.gmra.mxu1 %v8881_v61  ;;  %14022 = vst [vmem:[#allocation24_spill] sm:$0xff] %v9042_v21 }
  0x46   :  { %685 = vmatmul.bf16.gmra.mxu3 %v8883_v62 }
  0x53   :  { %621 = vmatmul.bf16.gmra.mxu0 %v8921_v15  ;;  %641 = vmatmul.bf16.gmra.mxu2 %v8924_v16 }
  0x54   :  { %670 = vmatmul.bf16.gmra.mxu1 %v8926_v17 }
  0x56   :  { %690 = vmatmul.bf16.gmra.mxu3 %v8928_v18 }
  0x63   :  { %704 = vmatmul.bf16.vlgmr.msrb.gmra.mxu2 %v8944_v22  ;;  %802 = vmatmul.bf16.vlgmr.msrb.gmra.mxu0 %v8635_v8 }
  0x64   :  { %851 = vmatmul.bf16.vlgmr.msrb.gmra.mxu1 %v8944_v22 }
  0x66   :  { %753 = vmatmul.bf16.vlgmr.msrb.gmra.mxu3 %v8622_v3 }
  0x73   :  { %709 = vmatmul.bf16.gmra.mxu2 %v8956_v25  ;;  %807 = vmatmul.bf16.gmra.mxu0 %v8776_v10 }
  0x74   :  { %856 = vmatmul.bf16.gmra.mxu1 %v8956_v25 }
  0x76   :  { %758 = vmatmul.bf16.gmra.mxu3 %v8762_v1 }
  0x83   :  { %714 = vmatmul.bf16.gmra.mxu2 %v8968_v28  ;;  %812 = vmatmul.bf16.gmra.mxu0 %v8881_v61 }
  0x84   :  { %861 = vmatmul.bf16.gmra.mxu1 %v8968_v28 }
  0x86   :  { %763 = vmatmul.bf16.gmra.mxu3 %v8876_v59 }
  0x93   :  { %719 = vmatmul.bf16.gmra.mxu2 %v8980_v31  ;;  %817 = vmatmul.bf16.gmra.mxu0 %v8926_v17 }
  0x94   :  { %866 = vmatmul.bf16.gmra.mxu1 %v8980_v31 }
  0x96   :  { %768 = vmatmul.bf16.gmra.mxu3 %v8921_v15 }
  0xa0   :  { %v8994_v35 = vpop.f32.mrf.mxu0 }
  0xa1   :  { %v656_v36 = vpop.f32.mrf.mxu1 }
  0xa3   :  { %724 = vmatmul.bf16.gmra.mxu2 %v8992_v34  ;;  %822 = vmatmul.bf16.gmra.mxu0 %v8637_v9 }
  0xa4   :  { %871 = vmatmul.bf16.gmra.mxu1 %v8992_v34 }
  0xa6   :  { %773 = vmatmul.bf16.gmra.mxu3 %v8624_v4  ;;  %v627_v37 = vpop.f32.mrf.mxu2 }
  0xa8   :  { %v9002_v43 = vpop.f32.mrf.mxu0 }
  0xa9   :  { %v676_v41 = vpop.f32.mrf.mxu3  ;;  %v9004_v44 = vpop.f32.mrf.mxu1 }
  0xaa   :  { %v9000_v42 = vadd.f32 %v676_v41, %v627_v37  ;;  %v93_v37 = vld [vmem:[%s13840_s0 + $0x178] sm:$0xff] }
  0xab   :  { %v9068_v48 = vpack.c.bf16 %v93_v37, %v90_v33 }
  0xac   :  { %v9089_v8 = vpop.permute.xlu0 %1078 }
  0xad   :  { %14023 = vst [vmem:[#allocation25_spill] sm:$0xff] %v9068_v48 }
  0xae   :  { %v9012_v52 = vpop.f32.mrf.mxu2 }
  0xb0   :  { %v9018_v55 = vpop.f32.mrf.mxu0 }
  0xb1   :  { %v9014_v53 = vpop.f32.mrf.mxu3  ;;  %v9020_v56 = vpop.f32.mrf.mxu1 }
  0xb3   :  { %729 = vmatmul.bf16.gmra.mxu2 %v9016_v54  ;;  %827 = vmatmul.bf16.gmra.mxu0 %v8778_v11 }
  0xb4   :  { %876 = vmatmul.bf16.gmra.mxu1 %v9016_v54 }
  0xb6   :  { %778 = vmatmul.bf16.gmra.mxu3 %v8765_v2  ;;  %v632_v57 = vpop.f32.mrf.mxu2 }
  0xb8   :  { %v9028_v7 = vpop.f32.mrf.mxu0 }
  0xb9   :  { %v681_v58 = vpop.f32.mrf.mxu3  ;;  %v9030_v12 = vpop.f32.mrf.mxu1 }
  0xba   :  { %v9026_v6 = vadd.f32 %v681_v58, %v632_v57 }
  0xbe   :  { %v9038_v19 = vpop.f32.mrf.mxu2 }
  0xc0   :  { %v9044_v23 = vpop.f32.mrf.mxu0 }
  0xc1   :  { %v9040_v20 = vpop.f32.mrf.mxu3  ;;  %v9046_v24 = vpop.f32.mrf.mxu1 }
  0xc3   :  { %734 = vmatmul.bf16.gmra.mxu2 %v9042_v21  ;;  %832 = vmatmul.bf16.gmra.mxu0 %v8883_v62 }
  0xc4   :  { %881 = vmatmul.bf16.gmra.mxu1 %v9042_v21 }
  0xc6   :  { %783 = vmatmul.bf16.gmra.mxu3 %v8879_v60  ;;  %v637_v26 = vpop.f32.mrf.mxu2 }
  0xc8   :  { %v9054_v30 = vpop.f32.mrf.mxu0 }
  0xc9   :  { %v686_v27 = vpop.f32.mrf.mxu3  ;;  %v9056_v32 = vpop.f32.mrf.mxu1 }
  0xca   :  { %v9052_v29 = vadd.f32 %v686_v27, %v637_v26 }
  0xce   :  { %v9064_v41 = vpop.f32.mrf.mxu2 }
  0xd0   :  { %v9070_v57 = vpop.f32.mrf.mxu0 }
  0xd1   :  { %v9066_v45 = vpop.f32.mrf.mxu3  ;;  %v9072_v58 = vpop.f32.mrf.mxu1 }
  0xd3   :  { %739 = vmatmul.bf16.gmra.mxu2 %v9068_v48  ;;  %837 = vmatmul.bf16.gmra.mxu0 %v8928_v18  ;;  %v657_v18 = vadd.f32 %v656_v36, %v8994_v35 }
  0xd4   :  { %886 = vmatmul.bf16.gmra.mxu1 %v9068_v48 }
  0xd6   :  { %788 = vmatmul.bf16.gmra.mxu3 %v8924_v16  ;;  %v642_v13 = vpop.f32.mrf.mxu2 }
  0xd8   :  { %v9080_v27 = vpop.f32.mrf.mxu0 }
  0xd9   :  { %v691_v14 = vpop.f32.mrf.mxu3  ;;  %v9082_v33 = vpop.f32.mrf.mxu1 }
  0xda   :  { %v9078_v26 = vadd.f32 %v691_v14, %v642_v13  ;;  %v9094_v14 = vld [vmem:[%s13843_s3] ss:$0 sm:$0xff]  ;;  %s8392_s3 = smov 32  }
  0xde   :  { %v9084_v37 = vpop.f32.mrf.mxu2 }
  0xe0   :  { %v803_v11 = vpop.f32.mrf.mxu0 }
  0xe1   :  { %v9086_v62 = vpop.f32.mrf.mxu3  ;;  %v852_v9 = vpop.f32.mrf.mxu1 }
  0xe6   :  { %v705_v17 = vpop.f32.mrf.mxu2 }
  0xe7   :  { %v706_v61 = vadd.f32 %v705_v17, %v657_v18  ;;  %v659_v17 = vadd.f32 %v9004_v44, %v9002_v43 }
  0xe8   :  { %v805_v13 = vpop.f32.mrf.mxu0 }
  0xe9   :  { %v754_v10 = vpop.f32.mrf.mxu3  ;;  %v854_v21 = vpop.f32.mrf.mxu1  ;;  %v1081_v34 = vadd.f32 %v9089_v8, %v706_v61  ;;  %v1043_v18 = vadd.f32 %v9094_v14, %v706_v61 }
  0xea   :  { %v804_v48 = vadd.f32 %v803_v11, %v754_v10 }
  0xeb   :  { %v1113_v11 = vmax.f32 %v1081_v34, 0.0  ;;  %v662_v34 = vadd.f32 %v9020_v56, %v9018_v55 }
  0xec   :  { %v9096_v54 = vadd.f32 %v852_v9, %v804_v48  ;;  %v1059_v9 = vmax.f32 %v1043_v18, 0.0 }
  0xee   :  { %14024 = vst [vmem:[#allocation26_spill] sm:$0xff] %v9096_v54  ;;  %v1082_v35 = vadd.f32 %v9089_v8, %v9096_v54  ;;  %v707_v10 = vpop.f32.mrf.mxu2 }
  0xef   :  { %v708_v16 = vadd.f32 %v707_v10, %v659_v17 }
  0xf0   :  { %v1114_v36 = vmax.f32 %v1082_v35, 0.0  ;;  %v808_v2 = vpop.f32.mrf.mxu0 }
  0xf1   :  { %v756_v31 = vpop.f32.mrf.mxu3  ;;  %v857_v48 = vpop.f32.mrf.mxu1  ;;  %v1083_v25 = vadd.f32 %v9089_v8, %v708_v16 }
  0xf2   :  { %v806_v60 = vadd.f32 %v805_v13, %v756_v31  ;;  %v1183_v28 = vpack.c.bf16 %v1114_v36, %v1113_v11  ;;  %v6482_v31 = vadd.f32 %v1059_v9, %v8568_v46 }
  0xf3   :  { %v1115_v44 = vmax.f32 %v1083_v25, 0.0 }
  0xf4   :  { %v9105_v4 = vadd.f32 %v854_v21, %v806_v60  ;;  %v1216_v54 = vunpack.c.h.b16 %v1183_v28  ;;  %v1215_v22 = vunpack.c.l.b16 %v1183_v28  ;;  %v6498_v17 = vmax.f32 %v6482_v31, 0.0 }
  0xf6   :  { %14025 = vst [vmem:[#allocation27_spill] sm:$0xff] %v9105_v4  ;;  %v1248_v15 = vpack.c.b16 %v1216_v54, %v1216_v54  ;;  %v1247_v43 = vpack.c.b16 %v1215_v22, %v1215_v22  ;;  %v1084_v61 = vadd.f32 %v9089_v8, %v9105_v4  ;;  %v710_v60 = vpop.f32.mrf.mxu2 }
  0xf7   :  { %v711_v13 = vadd.f32 %v710_v60, %v662_v34  ;;  %6514 = vst.msk [vmem:[#allocation2] sm:$0xff] %vm4912_vm0, %v6498_v17 }
  0xf8   :  { %1281 = vrot.lane.b32.xlu1 %v1248_v15, %s8392_s3  ;;  %1279 = vrot.lane.b32.xlu0 %v1247_v43, %s8392_s3  ;;  %v1116_v21 = vmax.f32 %v1084_v61, 0.0  ;;  %v810_v35 = vpop.f32.mrf.mxu0  ;;  %v1044_v43 = vadd.f32 %v9094_v14, %v708_v16 }
  0xf9   :  { %v759_v28 = vpop.f32.mrf.mxu3  ;;  %v1045_v18 = vadd.f32 %v9094_v14, %v711_v13  ;;  %v859_v10 = vpop.f32.mrf.mxu1  ;;  %v1085_v55 = vadd.f32 %v9089_v8, %v711_v13 }
  0xfa   :  { %v809_v54 = vadd.f32 %v808_v2, %v759_v28  ;;  %v1184_v22 = vpack.c.bf16 %v1116_v21, %v1115_v44  ;;  %v664_v2 = vadd.f32 %v9030_v12, %v9028_v7  ;;  %v1060_v12 = vmax.f32 %v1044_v43, 0.0 }
  0xfb   :  { %v1061_v15 = vmax.f32 %v1045_v18, 0.0  ;;  %v1117_v34 = vmax.f32 %v1085_v55, 0.0 }
  0xfc   :  { %v9116_v46 = vadd.f32 %v857_v48, %v809_v54  ;;  %v1218_v25 = vunpack.c.h.b16 %v1184_v22  ;;  %v1217_v56 = vunpack.c.l.b16 %v1184_v22 }
  0xfd   :  { %v6484_v61 = vadd.f32 %v1061_v15, %v8700_v38 }
  0xfe   :  { %14026 = vst [vmem:[#allocation28_spill] sm:$0xff] %v9116_v46  ;;  %v1086_v11 = vadd.f32 %v9089_v8, %v9116_v46  ;;  %v1250_v36 = vpack.c.b16 %v1218_v25, %v1218_v25  ;;  %v1249_v9 = vpack.c.b16 %v1217_v56, %v1217_v56  ;;  %v712_v48 = vpop.f32.mrf.mxu2  ;;  %v6483_v56 = vadd.f32 %v1060_v12, %v8573_v47 }
  0xff   :  { %v6500_v44 = vmax.f32 %v6484_v61, 0.0  ;;  %v713_v60 = vadd.f32 %v712_v48, %v664_v2 }
 0x100   :  { %v1118_v31 = vmax.f32 %v1086_v11, 0.0  ;;  %1285 = vrot.lane.b32.xlu2 %v1250_v36, %s8392_s3  ;;  %1283 = vrot.lane.b32.xlu1 %v1249_v9, %s8392_s3  ;;  %v813_v7 = vpop.f32.mrf.mxu0 }
 0x101   :  { %v761_v21 = vpop.f32.mrf.mxu3  ;;  %v862_v16 = vpop.f32.mrf.mxu1  ;;  %6516 = vst.msk [vmem:[#allocation2 + $0x30] sm:$0xff] %vm4912_vm0, %v6500_v44  ;;  %v1087_v38 = vadd.f32 %v9089_v8, %v713_v60  ;;  %v6499_v44 = vmax.f32 %v6483_v56, 0.0 }
 0x102   :  { %v811_v13 = vadd.f32 %v810_v35, %v761_v21  ;;  %v1185_v28 = vpack.c.bf16 %v1118_v31, %v1117_v34  ;;  %v667_v35 = vadd.f32 %v9046_v24, %v9044_v23 }
 0x103   :  { %v1119_v15 = vmax.f32 %v1087_v38, 0.0  ;;  %6515 = vst.msk [vmem:[#allocation2 + $0x18] sm:$0xff] %vm4912_vm0, %v6499_v44  ;;  %v1046_v38 = vadd.f32 %v9094_v14, %v713_v60 }
 0x104   :  { %v9129_v54 = vadd.f32 %v859_v10, %v811_v13  ;;  %v1219_v22 = vunpack.c.l.b16 %v1185_v28  ;;  %v1220_v18 = vunpack.c.h.b16 %v1185_v28 }
 0x106   :  { %14027 = vst [vmem:[#allocation29_spill] sm:$0xff] %v9129_v54  ;;  %v1088_v55 = vadd.f32 %v9089_v8, %v9129_v54  ;;  %v1251_v17 = vpack.c.b16 %v1219_v22, %v1219_v22  ;;  %v1252_v25 = vpack.c.b16 %v1220_v18, %v1220_v18  ;;  %v715_v10 = vpop.f32.mrf.mxu2 }
 0x107   :  { %v716_v36 = vadd.f32 %v715_v10, %v667_v35  ;;  %v1062_v10 = vmax.f32 %v1046_v38, 0.0 }
 0x108   :  { %v1120_v11 = vmax.f32 %v1088_v55, 0.0  ;;  %1287 = vrot.lane.b32.xlu2 %v1251_v17, %s8392_s3  ;;  %1289 = vrot.lane.b32.xlu0 %v1252_v25, %s8392_s3  ;;  %v815_v61 = vpop.f32.mrf.mxu0 }
 0x109   :  { %v764_v9 = vpop.f32.mrf.mxu3  ;;  %v1047_v34 = vadd.f32 %v9094_v14, %v716_v36  ;;  %v1089_v31 = vadd.f32 %v9089_v8, %v716_v36  ;;  %v864_v48 = vpop.f32.mrf.mxu1 }
 0x10a   :  { %v814_v2 = vadd.f32 %v813_v7, %v764_v9  ;;  %v1186_v43 = vpack.c.bf16 %v1120_v11, %v1119_v15  ;;  %v669_v7 = vadd.f32 %v9056_v32, %v9054_v30 }
 0x10b   :  { %v1063_v21 = vmax.f32 %v1047_v34, 0.0  ;;  %v6485_v34 = vadd.f32 %v1062_v10, %v8705_v39  ;;  %v8095_v39 = vld [vmem:[%s13842_s2 + $0xb8] sm:$0xf0]  ;;  %v8092_v10 = vld [vmem:[%s13842_s2 + $0xa0] sm:$0xf0] }
 0x10c   :  { %v9140_v23 = vadd.f32 %v862_v16, %v814_v2  ;;  %v1222_v47 = vunpack.c.h.b16 %v1186_v43  ;;  %v1221_v24 = vunpack.c.l.b16 %v1186_v43  ;;  %v1121_v16 = vmax.f32 %v1089_v31, 0.0 }
 0x10d   :  { %v6486_v22 = vadd.f32 %v1063_v21, %v8847_v49 }
 0x10e   :  { %14028 = vst [vmem:[#allocation30_spill] sm:$0xff] %v9140_v23  ;;  %v1090_v13 = vadd.f32 %v9089_v8, %v9140_v23  ;;  %v1254_v28 = vpack.c.b16 %v1222_v47, %v1222_v47  ;;  %v1253_v12 = vpack.c.b16 %v1221_v24, %v1221_v24  ;;  %v717_v55 = vpop.f32.mrf.mxu2 }
 0x10f   :  { %v6502_v17 = vmax.f32 %v6486_v22, 0.0  ;;  %v9151_v25 = vadd.f32 %v717_v55, %v669_v7  ;;  %v6501_v55 = vmax.f32 %v6485_v34, 0.0 }
 0x110   :  { %v1122_v18 = vmax.f32 %v1090_v13, 0.0  ;;  %1293 = vrot.lane.b32.xlu2 %v1254_v28, %s8392_s3  ;;  %1291 = vrot.lane.b32.xlu1 %v1253_v12, %s8392_s3  ;;  %v818_v11 = vpop.f32.mrf.mxu0  ;;  %v7301_v12 = vld [vmem:[%s13842_s2 + $0xb0] sm:$0xf] }
 0x111   :  { %v766_v35 = vpop.f32.mrf.mxu3  ;;  %v867_v30 = vpop.f32.mrf.mxu1  ;;  %6518 = vst.msk [vmem:[#allocation2 + $0x60] sm:$0xff] %vm4912_vm0, %v6502_v17  ;;  %v1091_v49 = vadd.f32 %v9089_v8, %v9151_v25  ;;  %v7302_v38 = vor.u32 %v8095_v39, %v7301_v12 }
 0x112   :  { %v816_v56 = vadd.f32 %v815_v61, %v766_v35  ;;  %v1187_v15 = vpack.c.bf16 %v1122_v18, %v1121_v16  ;;  %v672_v61 = vadd.f32 %v9072_v58, %v9070_v57  ;;  %6517 = vst.msk [vmem:[#allocation2 + $0x48] sm:$0xff] %vm4912_vm0, %v6501_v55 }
 0x113   :  { %v1123_v31 = vmax.f32 %v1091_v49, 0.0  ;;  %892 = vmatpush.bf16.msra.mxu2 %v7302_v38  ;;  %v8086_v38 = vld [vmem:[%s13842_s2 + $0x70] sm:$0xf0] }
 0x114   :  { %v9156_v32 = vadd.f32 %v864_v48, %v816_v56  ;;  %v1224_v60 = vunpack.c.h.b16 %v1187_v15  ;;  %v1223_v36 = vunpack.c.l.b16 %v1187_v15 }
 0x116   :  { %14029 = vst [vmem:[#allocation31_spill] sm:$0xff] %v9156_v32  ;;  %v1092_v9 = vadd.f32 %v9089_v8, %v9156_v32  ;;  %v1256_v2 = vpack.c.b16 %v1224_v60, %v1224_v60  ;;  %v1255_v43 = vpack.c.b16 %v1223_v36, %v1223_v36  ;;  %v720_v48 = vpop.f32.mrf.mxu2 }
 0x117   :  { %v721_v24 = vadd.f32 %v720_v48, %v672_v61 }
 0x118   :  { %v1124_v47 = vmax.f32 %v1092_v9, 0.0  ;;  %1297 = vrot.lane.b32.xlu1 %v1256_v2, %s8392_s3  ;;  %1295 = vrot.lane.b32.xlu0 %v1255_v43, %s8392_s3  ;;  %v820_v28 = vpop.f32.mrf.mxu0 }
 0x119   :  { %v769_v44 = vpop.f32.mrf.mxu3  ;;  %v1049_v57 = vadd.f32 %v9094_v14, %v721_v24  ;;  %v1093_v58 = vadd.f32 %v9089_v8, %v721_v24  ;;  %v869_v7 = vpop.f32.mrf.mxu1 }
 0x11a   :  { %v819_v21 = vadd.f32 %v818_v11, %v769_v44  ;;  %v1188_v13 = vpack.c.bf16 %v1124_v47, %v1123_v31  ;;  %v7289_v11 = vld [vmem:[%s13842_s2 + $0x98] sm:$0xf] }
 0x11b   :  { %v1065_v17 = vmax.f32 %v1049_v57, 0.0  ;;  %v7290_v60 = vor.u32 %v8092_v10, %v7289_v11  ;;  %v1125_v36 = vmax.f32 %v1093_v58, 0.0  ;;  %v7265_v58 = vld [vmem:[%s13842_s2 + $0x68] sm:$0xf] }
 0x11c   :  { %v9173_v22 = vadd.f32 %v867_v30, %v819_v21  ;;  %v1225_v16 = vunpack.c.l.b16 %v1188_v13  ;;  %v1226_v18 = vunpack.c.h.b16 %v1188_v13  ;;  %v674_v30 = vadd.f32 %v9082_v33, %v9080_v27  ;;  %v8089_v27 = vld [vmem:[%s13842_s2 + $0x88] sm:$0xf0] }
 0x11d   :  { %v6488_v49 = vadd.f32 %v1065_v17, %v8892_v63  ;;  %893 = vmatpush.bf16.msra.mxu2 %v7290_v60  ;;  %v7277_v63 = vld [vmem:[%s13842_s2 + $0x80] sm:$0xf]  ;;  %v1048_v17 = vadd.f32 %v9094_v14, %v9151_v25 }
 0x11e   :  { %14030 = vst [vmem:[#allocation32_spill] sm:$0xff] %v9173_v22  ;;  %v1094_v35 = vadd.f32 %v9089_v8, %v9173_v22  ;;  %v1257_v56 = vpack.c.b16 %v1225_v16, %v1225_v16  ;;  %v1258_v15 = vpack.c.b16 %v1226_v18, %v1226_v18  ;;  %v722_v2 = vpop.f32.mrf.mxu2  ;;  %v7278_v24 = vor.u32 %v8089_v27, %v7277_v63  ;;  %v7241_v27 = vld [vmem:[%s13842_s2 + $0x38] sm:$0xf] }
 0x11f   :  { %v6504_v43 = vmax.f32 %v6488_v49, 0.0  ;;  %v9189_v61 = vadd.f32 %v722_v2, %v674_v30  ;;  %v7266_v16 = vor.u32 %v8086_v38, %v7265_v58  ;;  %v7253_v30 = vld [vmem:[%s13842_s2 + $0x50] sm:$0xf]  ;;  %v8083_v49 = vld [vmem:[%s13842_s2 + $0x58] sm:$0xf0] }
 0x120   :  { %v1126_v9 = vmax.f32 %v1094_v35, 0.0  ;;  %1299 = vrot.lane.b32.xlu2 %v1257_v56, %s8392_s3  ;;  %1301 = vrot.lane.b32.xlu0 %v1258_v15, %s8392_s3  ;;  %v823_v48 = vpop.f32.mrf.mxu0 }
 0x121   :  { %v771_v34 = vpop.f32.mrf.mxu3  ;;  %v872_v33 = vpop.f32.mrf.mxu1  ;;  %6520 = vst.msk [vmem:[#allocation2 + $0x90] sm:$0xff] %vm4912_vm0, %v6504_v43  ;;  %v1095_v44 = vadd.f32 %v9089_v8, %v9189_v61  ;;  %894 = vmatpush.bf16.msra.mxu2 %v7278_v24  ;;  %v8080_v24 = vld [vmem:[%s13842_s2 + $0x40] sm:$0xf0] }
 0x122   :  { %v821_v31 = vadd.f32 %v820_v28, %v771_v34  ;;  %v1189_v47 = vpack.c.bf16 %v1126_v9, %v1125_v36  ;;  %v7254_v9 = vor.u32 %v8083_v49, %v7253_v30  ;;  %v1064_v34 = vmax.f32 %v1048_v17, 0.0  ;;  %v8077_v17 = vld [vmem:[%s13842_s2 + $0x28] sm:$0xf0] }
 0x123   :  { %v1127_v18 = vmax.f32 %v1095_v44, 0.0  ;;  %v8304_v44 = vld [vmem:[%s13840_s0 + $0xc0] sm:$0xff] }
 0x124   :  { %v9200_v21 = vadd.f32 %v869_v7, %v821_v31  ;;  %v1228_v13 = vunpack.c.h.b16 %v1189_v47  ;;  %v1227_v28 = vunpack.c.l.b16 %v1189_v47  ;;  %v6487_v58 = vadd.f32 %v1064_v34, %v8852_v50 }
 0x125   :  { %895 = vmatpush.bf16.msra.mxu2 %v7266_v16 }
 0x126   :  { %14031 = vst [vmem:[#allocation33_spill] sm:$0xff] %v9200_v21  ;;  %v1096_v12 = vadd.f32 %v9089_v8, %v9200_v21  ;;  %v1260_v39 = vpack.c.b16 %v1228_v13, %v1228_v13  ;;  %v1259_v57 = vpack.c.b16 %v1227_v28, %v1227_v28  ;;  %v725_v55 = vpop.f32.mrf.mxu2  ;;  %v7242_v28 = vor.u32 %v8080_v24, %v7241_v27 }
 0x127   :  { %v726_v35 = vadd.f32 %v725_v55, %v9000_v42  ;;  %v7229_v55 = vld [vmem:[%s13842_s2 + $0x20] sm:$0xf]  ;;  %v6503_v30 = vmax.f32 %v6487_v58, 0.0 }
 0x128   :  { %v1128_v7 = vmax.f32 %v1096_v12, 0.0  ;;  %1305 = vrot.lane.b32.xlu2 %v1260_v39, %s8392_s3  ;;  %1303 = vrot.lane.b32.xlu1 %v1259_v57, %s8392_s3  ;;  %v825_v10 = vpop.f32.mrf.mxu0 }
 0x129   :  { %v774_v56 = vpop.f32.mrf.mxu3  ;;  %v1051_v60 = vadd.f32 %v9094_v14, %v726_v35  ;;  %v874_v36 = vpop.f32.mrf.mxu1  ;;  %v1097_v25 = vadd.f32 %v9089_v8, %v726_v35  ;;  %896 = vmatpush.bf16.msra.mxu2 %v7254_v9  ;;  %6519 = vst.msk [vmem:[#allocation2 + $0x78] sm:$0xff] %vm4912_vm0, %v6503_v30 }
 0x12a   :  { %v824_v15 = vadd.f32 %v823_v48, %v774_v56  ;;  %v1190_v11 = vpack.c.bf16 %v1128_v7, %v1127_v18  ;;  %v7230_v56 = vor.u32 %v8077_v17, %v7229_v55 }
 0x12b   :  { %v1067_v31 = vmax.f32 %v1051_v60, 0.0  ;;  %v1129_v12 = vmax.f32 %v1097_v25, 0.0  ;;  %v7217_v25 = vld [vmem:[%s13842_s2 + $0x8] sm:$0xf] }
 0x12c   :  { %v9223_v42 = vadd.f32 %v872_v33, %v824_v15  ;;  %v1230_v2 = vunpack.c.h.b16 %v1190_v11  ;;  %v1229_v43 = vunpack.c.l.b16 %v1190_v11  ;;  %v679_v33 = vadd.f32 %v9014_v53, %v9012_v52 }
 0x12d   :  { %v6490_v13 = vadd.f32 %v8304_v44, %v1067_v31  ;;  %897 = vmatpush.bf16.msra.mxu2 %v7242_v28 }
 0x12e   :  { %14032 = vst [vmem:[#allocation34_spill] sm:$0xff] %v9223_v42  ;;  %v1098_v47 = vadd.f32 %v9089_v8, %v9223_v42  ;;  %v1262_v48 = vpack.c.b16 %v1230_v2, %v1230_v2  ;;  %v1261_v63 = vpack.c.b16 %v1229_v43, %v1229_v43  ;;  %v727_v57 = vpop.f32.mrf.mxu2  ;;  %v8074_v2 = vld [vmem:[%s13842_s2 + $0x10] sm:$0xf0] }
 0x12f   :  { %v6506_v38 = vmax.f32 %v6490_v13, 0.0  ;;  %v9241_v16 = vadd.f32 %v727_v57, %v679_v33  ;;  %v7218_v43 = vor.u32 %v8074_v2, %v7217_v25 }
 0x130   :  { %v1130_v39 = vmax.f32 %v1098_v47, 0.0  ;;  %1309 = vrot.lane.b32.xlu1 %v1262_v48, %s8392_s3  ;;  %1307 = vrot.lane.b32.xlu0 %v1261_v63, %s8392_s3  ;;  %v828_v7 = vpop.f32.mrf.mxu0  ;;  %v1050_v47 = vadd.f32 %v9094_v14, %v9189_v61 }
 0x131   :  { %v776_v18 = vpop.f32.mrf.mxu3  ;;  %v877_v35 = vpop.f32.mrf.mxu1  ;;  %6522 = vst.msk [vmem:[#allocation2 + $0xc0] sm:$0xff] %vm4912_vm0, %v6506_v38  ;;  %v1099_v50 = vadd.f32 %v9089_v8, %v9241_v16  ;;  %898 = vmatpush.bf16.msra.mxu2 %v7230_v56 }
 0x132   :  { %v826_v52 = vadd.f32 %v825_v10, %v776_v18  ;;  %v1191_v53 = vpack.c.bf16 %v1130_v39, %v1129_v12  ;;  %v1066_v58 = vmax.f32 %v1050_v47, 0.0 }
 0x134   :  { %v9252_v15 = vadd.f32 %v874_v36, %v826_v52  ;;  %v1232_v11 = vunpack.c.h.b16 %v1191_v53  ;;  %v1231_v10 = vunpack.c.l.b16 %v1191_v53  ;;  %v1131_v36 = vmax.f32 %v1099_v50, 0.0 }
 0x135   :  { %899 = vmatpush.bf16.msra.mxu2 %v7218_v43  ;;  %v684_v52 = vadd.f32 %v9040_v20, %v9038_v19 }
 0x136   :  { %14033 = vst [vmem:[#allocation35_spill] sm:$0xff] %v9252_v15  ;;  %v1100_v49 = vadd.f32 %v9089_v8, %v9252_v15  ;;  %v1264_v60 = vpack.c.b16 %v1232_v11, %v1232_v11  ;;  %v1263_v9 = vpack.c.b16 %v1231_v10, %v1231_v10  ;;  %v730_v31 = vpop.f32.mrf.mxu2 }
 0x137   :  { %v731_v48 = vadd.f32 %v730_v31, %v9026_v6 }
 0x138   :  { %v1132_v34 = vmax.f32 %v1100_v49, 0.0  ;;  %1313 = vrot.lane.b32.xlu1 %v1264_v60, %s8392_s3  ;;  %1311 = vrot.lane.b32.xlu0 %v1263_v9, %s8392_s3  ;;  %v830_v33 = vpop.f32.mrf.mxu0 }
 0x139   :  { %v779_v63 = vpop.f32.mrf.mxu3  ;;  %v1053_v44 = vadd.f32 %v9094_v14, %v731_v48  ;;  %v879_v13 = vpop.f32.mrf.mxu1  ;;  %v1101_v28 = vadd.f32 %v9089_v8, %v731_v48  ;;  %900 = vmatmul.bf16.vlgmr.msra.gmra.mxu2 %v8622_v3  ;;  %v6489_v3 = vadd.f32 %v1066_v58, %v8897_v0 }
 0x13a   :  { %v829_v27 = vadd.f32 %v828_v7, %v779_v63  ;;  %v1192_v24 = vpack.c.bf16 %v1132_v34, %v1131_v36  ;;  %v1052_v36 = vadd.f32 %v9094_v14, %v9241_v16 }
 0x13b   :  { %v1069_v61 = vmax.f32 %v1053_v44, 0.0  ;;  %v1133_v7 = vmax.f32 %v1101_v28, 0.0  ;;  %v6505_v60 = vmax.f32 %v6489_v3, 0.0  ;;  %v8393_v3 = vmov 0  }
 0x13c   :  { %v9270_v12 = vadd.f32 %v877_v35, %v829_v27  ;;  %v1234_v39 = vunpack.c.h.b16 %v1192_v24  ;;  %v1233_v57 = vunpack.c.l.b16 %v1192_v24  ;;  %v7493_v24 = vld [vmem:[%s13842_s2 + $0x230] sm:$0xf]  ;;  %v1068_v16 = vmax.f32 %v1052_v36, 0.0 }
 0x13d   :  { %v6492_v53 = vadd.f32 %v1069_v61, %v8710_v40  ;;  %6521 = vst.msk [vmem:[#allocation2 + $0xa8] sm:$0xff] %vm4912_vm0, %v6505_v60  ;;  %v8137_v60 = vld [vmem:[%s13842_s2 + $0x208] sm:$0xf0] }
 0x13e   :  { %14034 = vst [vmem:[#allocation36_spill] sm:$0xff] %v9270_v12  ;;  %v1102_v6 = vadd.f32 %v9089_v8, %v9270_v12  ;;  %v1266_v38 = vpack.c.b16 %v1234_v39, %v1234_v39  ;;  %v1265_v18 = vpack.c.b16 %v1233_v57, %v1233_v57  ;;  %v732_v17 = vpop.f32.mrf.mxu2 }
 0x13f   :  { %v6508_v35 = vmax.f32 %v6492_v53, 0.0  ;;  %v9281_v56 = vadd.f32 %v732_v17, %v684_v52 }
 0x140   :  { %v1134_v55 = vmax.f32 %v1102_v6, 0.0  ;;  %1317 = vrot.lane.b32.xlu1 %v1266_v38, %s8392_s3  ;;  %1315 = vrot.lane.b32.xlu0 %v1265_v18, %s8392_s3  ;;  %v833_v30 = vpop.f32.mrf.mxu0  ;;  %v689_v6 = vadd.f32 %v9066_v45, %v9064_v41  ;;  %v8140_v18 = vld [vmem:[%s13842_s2 + $0x220] sm:$0xf0] }
 0x141   :  { %v781_v50 = vpop.f32.mrf.mxu3  ;;  %v882_v19 = vpop.f32.mrf.mxu1  ;;  %6524 = vst.msk [vmem:[#allocation2 + $0xf0] sm:$0xff] %vm4912_vm0, %v6508_v35  ;;  %v1103_v40 = vadd.f32 %v9089_v8, %v9281_v56  ;;  %v1363_v35 = vrot.slane %v8393_v3, 7 }
 0x142   :  { %v831_v11 = vadd.f32 %v830_v33, %v781_v50  ;;  %v9283_v10 = vpack.c.bf16 %v1134_v55, %v1133_v7  ;;  %v8305_v50 = vld [vmem:[%s13840_s0 + $0xd8] sm:$0xff] }
 0x143   :  { %v1135_v25 = vmax.f32 %v1103_v40, 0.0 }
 0x144   :  { %v9288_v20 = vadd.f32 %v879_v13, %v831_v11  ;;  %v1235_v49 = vunpack.c.l.b16 %v9283_v10  ;;  %v6491_v11 = vadd.f32 %v8305_v50, %v1068_v16 }
 0x146   :  { %14035 = vst [vmem:[#allocation37_spill] sm:$0xff] %v9288_v20  ;;  %v1104_v0 = vadd.f32 %v9089_v8, %v9288_v20  ;;  %v1267_v9 = vpack.c.b16 %v1235_v49, %v1235_v49  ;;  %v735_v43 = vpop.f32.mrf.mxu2  ;;  %v7469_v49 = vld [vmem:[%s13842_s2 + $0x200] sm:$0xf] }
 0x147   :  { %v736_v34 = vadd.f32 %v735_v43, %v9052_v29  ;;  %v8143_v29 = vld [vmem:[%s13842_s2 + $0x238] sm:$0xf0]  ;;  %v1499_v43 = vsel %vm9328_vm4, 0, %v1363_v35 }
 0x148   :  { %v1136_v2 = vmax.f32 %v1104_v0, 0.0  ;;  %1319 = vrot.lane.b32.xlu1 %v1267_v9, %s8392_s3  ;;  %v835_v27 = vpop.f32.mrf.mxu0  ;;  %v7494_v57 = vor.u32 %v8143_v29, %v7493_v24  ;;  %v8134_v24 = vld [vmem:[%s13842_s2 + $0x1f0] sm:$0xf0] }
 0x149   :  { %v784_v31 = vpop.f32.mrf.mxu3  ;;  %v1055_v63 = vadd.f32 %v9094_v14, %v736_v34  ;;  %v1105_v33 = vadd.f32 %v9089_v8, %v736_v34  ;;  %905 = vmatmul.bf16.gmra.mxu2 %v8762_v1  ;;  %v884_v39 = vpop.f32.mrf.mxu1  ;;  %v7481_v1 = vld [vmem:[%s13842_s2 + $0x218] sm:$0xf] }
 0x14a   :  { %v834_v47 = vadd.f32 %v833_v30, %v784_v31  ;;  %v9298_v48 = vpack.c.bf16 %v1136_v2, %v1135_v25  ;;  %990 = vmatpush.bf16.msra.mxu0 %v7494_v57  ;;  %v7482_v55 = vor.u32 %v8140_v18, %v7481_v1  ;;  %v7470_v2 = vor.u32 %v8137_v60, %v7469_v49  ;;  %v8128_v60 = vld [vmem:[%s13842_s2 + $0x1c0] sm:$0xf0] }
 0x14b   :  { %v1071_v28 = vmax.f32 %v1055_v63, 0.0  ;;  %v1137_v52 = vmax.f32 %v1105_v33, 0.0  ;;  %v1519_v33 = vsel %vm9350_vm6, %v1499_v43, 0 }
 0x14c   :  { %v9305_v44 = vadd.f32 %v882_v19, %v834_v47  ;;  %v1237_v13 = vunpack.c.l.b16 %v9298_v48  ;;  %v6507_v47 = vmax.f32 %v6491_v11, 0.0  ;;  %v1552_v1 = vunpack.c.h.b16 %v1519_v33 }
 0x14d   :  { %v6494_v38 = vadd.f32 %v1071_v28, %v8857_v51 }
 0x14e   :  { %14036 = vst [vmem:[#allocation38_spill] sm:$0xff] %v9305_v44  ;;  %v1106_v58 = vadd.f32 %v9089_v8, %v9305_v44  ;;  %v1269_v61 = vpack.c.b16 %v1237_v13, %v1237_v13  ;;  %v737_v7 = vpop.f32.mrf.mxu2  ;;  %991 = vmatpush.bf16.msra.mxu0 %v7482_v55  ;;  %v9393_v11 = vpack.c.b16 %v1552_v1, %v1552_v1 }
 0x14f   :  { %v6510_v17 = vmax.f32 %v6494_v38, 0.0  ;;  %v9324_v41 = vadd.f32 %v737_v7, %v689_v6  ;;  %6523 = vst.msk [vmem:[#allocation2 + $0xd8] sm:$0xff] %vm4912_vm0, %v6507_v47  ;;  %v9373_v38 = vunpack.c.l.b16 %v1519_v33 }
 0x150   :  { %v1138_v53 = vmax.f32 %v1106_v58, 0.0  ;;  %1323 = vrot.lane.b32.xlu1 %v1269_v61, %s8392_s3  ;;  %v838_v36 = vpop.f32.mrf.mxu0 }
 0x151   :  { %v786_v51 = vpop.f32.mrf.mxu3  ;;  %v1107_v40 = vadd.f32 %v9089_v8, %v9324_v41  ;;  %6526 = vst.msk [vmem:[#allocation2 + $0x120] sm:$0xff] %vm4912_vm0, %v6510_v17  ;;  %v887_v63 = vpop.f32.mrf.mxu1  ;;  %v9391_v50 = vpack.c.b16 %v9373_v38, %v9373_v38 }
 0x152   :  { %v836_v30 = vadd.f32 %v835_v27, %v786_v51  ;;  %v9335_v19 = vpack.c.bf16 %v1138_v53, %v1137_v52  ;;  %992 = vmatpush.bf16.msra.mxu0 %v7470_v2  ;;  %v7457_v27 = vld [vmem:[%s13842_s2 + $0x1e8] sm:$0xf]  ;;  %v7445_v52 = vld [vmem:[%s13842_s2 + $0x1d0] sm:$0xf] }
 0x153   :  { %v1139_v13 = vmax.f32 %v1107_v40, 0.0  ;;  %v7458_v28 = vor.u32 %v8134_v24, %v7457_v27  ;;  %v7495_v33 = vrot.slane %v9391_v50, 9  ;;  %v12461_v24 = vld [vmem:[%s13840_s0 + $0x80] sm:$0xff] }
 0x154   :  { %v9346_v0 = vadd.f32 %v884_v39, %v836_v30  ;;  %v1239_v9 = vunpack.c.l.b16 %v9335_v19  ;;  %v1054_v39 = vadd.f32 %v9094_v14, %v9281_v56  ;;  %v8131_v56 = vld [vmem:[%s13842_s2 + $0x1d8] sm:$0xf0]  ;;  %v694_v30 = vadd.f32 %v9086_v62, %v9084_v37  ;;  %v8306_v62 = vld [vmem:[%s13840_s0 + $0x108] sm:$0xff] }
 0x155   :  { %v7446_v55 = vor.u32 %v8131_v56, %v7445_v52 }
 0x156   :  { %14039 = vst [vmem:[#allocation39_spill] sm:$0xff] %v9346_v0  ;;  %v1108_v34 = vadd.f32 %v9089_v8, %v9346_v0  ;;  %v1271_v31 = vpack.c.b16 %v1239_v9, %v1239_v9  ;;  %v740_v16 = vpop.f32.mrf.mxu2  ;;  %993 = vmatpush.bf16.msra.mxu0 %v7458_v28  ;;  %v1070_v17 = vmax.f32 %v1054_v39, 0.0 }
 0x157   :  { %v741_v57 = vadd.f32 %v740_v16, %v9078_v26  ;;  %v8125_v16 = vld [vmem:[%s13842_s2 + $0x1a8] sm:$0xf0] }
 0x158   :  { %v1140_v29 = vmax.f32 %v1108_v34, 0.0  ;;  %1327 = vrot.lane.b32.xlu1 %v1271_v31, %s8392_s3  ;;  %v840_v49 = vpop.f32.mrf.mxu0 }
 0x159   :  { %v789_v58 = vpop.f32.mrf.mxu3  ;;  %v1057_v18 = vadd.f32 %v9094_v14, %v741_v57  ;;  %v1109_v26 = vadd.f32 %v9089_v8, %v741_v57  ;;  %910 = vmatmul.bf16.gmra.mxu2 %v8876_v59  ;;  %v7433_v59 = vld [vmem:[%s13842_s2 + $0x1b8] sm:$0xf]  ;;  %v889_v47 = vpop.f32.mrf.mxu1 }
 0x15a   :  { %v839_v61 = vadd.f32 %v838_v36, %v789_v58  ;;  %v9371_v6 = vpack.c.bf16 %v1140_v29, %v1139_v13  ;;  %994 = vmatpush.bf16.msra.mxu0 %v7446_v55  ;;  %v7434_v36 = vor.u32 %v8128_v60, %v7433_v59  ;;  %v1829_v13 = vrot.slane %v9393_v11, 5  ;;  %v7421_v29 = vld [vmem:[%s13842_s2 + $0x1a0] sm:$0xf]  ;;  %v7409_v55 = vld [vmem:[%s13842_s2 + $0x188] sm:$0xf] }
 0x15b   :  { %v1073_v51 = vmax.f32 %v1057_v18, 0.0  ;;  %v1141_v9 = vmax.f32 %v1109_v26, 0.0  ;;  %v7422_v58 = vor.u32 %v8125_v16, %v7421_v29  ;;  %v14046_v59 = vld [vmem:[#allocation14_spill] sm:$0xff] }
 0x15c   :  { %v9383_v53 = vadd.f32 %v887_v63, %v839_v61  ;;  %v1241_v7 = vunpack.c.l.b16 %v9371_v6  ;;  %v9433_v61 = vsel %vm9413_vm9, %v7495_v33, %v1829_v13 }
 0x15d   :  { %v6496_v40 = vadd.f32 %v1073_v51, %v8902_v5  ;;  %v6493_v5 = vadd.f32 %v8306_v62, %v1070_v17 }
 0x15e   :  { %14042 = vst [vmem:[#allocation40_spill] sm:$0xff] %v9383_v53  ;;  %v1110_v3 = vadd.f32 %v9089_v8, %v9383_v53  ;;  %v1273_v35 = vpack.c.b16 %v1241_v7, %v1241_v7  ;;  %v742_v43 = vpop.f32.mrf.mxu2  ;;  %995 = vmatpush.bf16.msra.mxu0 %v7434_v36  ;;  %v1056_v7 = vadd.f32 %v9094_v14, %v9324_v41  ;;  %v1615_v41 = vshrl.u32 %v9391_v50, 16 }
 0x15f   :  { %v6512_v37 = vmax.f32 %v6496_v40, 0.0  ;;  %v9408_v34 = vadd.f32 %v742_v43, %v694_v30  ;;  %v6509_v52 = vmax.f32 %v6493_v5, 0.0  ;;  %v14047_v5 = vld [vmem:[#allocation18_spill] sm:$0xff] }
 0x160   :  { %v1142_v2 = vmax.f32 %v1110_v3, 0.0  ;;  %1331 = vrot.lane.b32.xlu1 %v1273_v35, %s8392_s3  ;;  %v1072_v60 = vmax.f32 %v1056_v7, 0.0 }
 0x161   :  { %v791_v31 = vpop.f32.mrf.mxu3  ;;  %6528 = vst.msk [vmem:[#allocation2 + $0x150] sm:$0xff] %vm4912_vm0, %v6512_v37  ;;  %v1111_v28 = vadd.f32 %v9089_v8, %v9408_v34  ;;  %v1617_v37 = vrot.slane %v1615_v41, 4 }
 0x162   :  { %v841_v63 = vadd.f32 %v840_v49, %v791_v31  ;;  %v9410_v27 = vpack.c.bf16 %v1142_v2, %v1141_v9  ;;  %996 = vmatpush.bf16.msra.mxu0 %v7422_v58  ;;  %6525 = vst.msk [vmem:[#allocation2 + $0x108] sm:$0xff] %vm4912_vm0, %v6509_v52  ;;  %v1618_v49 = vshll.u32 %v9391_v50, 16  ;;  %v1286_v2 = vpop.permute.xlu2 %1285  ;;  %v1624_v58 = vshll.u32 %v9393_v11, 16 }
 0x163   :  { %v1143_v56 = vmax.f32 %v1111_v28, 0.0  ;;  %v1058_v11 = vadd.f32 %v9094_v14, %v9408_v34 }
 0x164   :  { %v9428_v39 = vadd.f32 %v889_v47, %v841_v63  ;;  %v1243_v57 = vunpack.c.l.b16 %v9410_v27  ;;  %v1620_v31 = vrot.slane %v1618_v49, 5  ;;  %v8307_v47 = vld [vmem:[%s13840_s0 + $0x138] sm:$0xff] }
 0x165   :  { %v6495_v50 = vadd.f32 %v8307_v47, %v1072_v60  ;;  %v14050_v47 = vld [vmem:[#allocation5_spill] sm:$0xff] }
 0x166   :  { %14045 = vst [vmem:[#allocation41_spill] sm:$0xff] %v9428_v39  ;;  %v1112_v1 = vadd.f32 %v9089_v8, %v9428_v39  ;;  %v1275_v18 = vpack.c.b16 %v1243_v57, %v1243_v57  ;;  %v8122_v8 = vld [vmem:[%s13842_s2 + $0x190] sm:$0xf0]  ;;  %v1621_v57 = vor.u32 %v1620_v31, %v1617_v37 }
 0x167   :  { %v7410_v3 = vor.u32 %v8122_v8, %v7409_v55  ;;  %v6511_v52 = vmax.f32 %v6495_v50, 0.0  ;;  %v1074_v50 = vmax.f32 %v1058_v11, 0.0 }
 0x168   :  { %v1144_v26 = vmax.f32 %v1112_v1, 0.0  ;;  %1335 = vrot.lane.b32.xlu1 %v1275_v18, %s8392_s3 }
 0x169   :  { %997 = vmatpush.bf16.msra.mxu0 %v7410_v3  ;;  %915 = vmatmul.bf16.gmra.mxu2 %v14046_v59  ;;  %6527 = vst.msk [vmem:[#allocation2 + $0x138] sm:$0xff] %vm4912_vm0, %v6511_v52  ;;  %v1622_v3 = vrot.slane %v1621_v57, 4 }
 0x16a   :  { %v1282_v17 = vpop.permute.xlu1 %1281  ;;  %v9447_v51 = vpack.c.bf16 %v1144_v26, %v1143_v56  ;;  %v1280_v35 = vpop.permute.xlu0 %1279 }
 0x16b   :  { %v1344_v30 = vsel %vm1343_vm10, %v1280_v35, %v1282_v17  ;;  %v1288_v8 = vpop.permute.xlu2 %1287  ;;  %v1626_v35 = vrot.slane %v1624_v58, 5 }
 0x16c   :  { %v1245_v40 = vunpack.c.l.b16 %v9447_v51  ;;  %v1368_v9 = vshrl.u32 %v1344_v30, 16  ;;  %v1371_v62 = vshll.u32 %v1344_v30, 16  ;;  %998 = vmatmul.bf16.vlgmr.msra.gmra.mxu0 %v14047_v5 }
 0x16d   :  { %v1627_v31 = vsel %vm9472_vm13, %v1622_v3, %v1626_v35 }
 0x16e   :  { %v1277_v43 = vpack.c.b16 %v1245_v40, %v1245_v40  ;;  %v1370_v36 = vrot.slane %v1368_v9, 7  ;;  %v9494_v52 = vunpack.c.l.b16 %v1627_v31 }
 0x170   :  { %1339 = vrot.lane.b32.xlu1 %v1277_v43, %s8392_s3  ;;  %v1373_v63 = vor.u32 %v1371_v62, %v1370_v36  ;;  %14051 = vst [vmem:[#allocation14_spill] sm:$0xff] %v9494_v52 }
 0x172   :  { %v1284_v33 = vpop.permute.xlu1 %1283  ;;  %v1500_v13 = vsel %vm9328_vm4, 0, %v1373_v63 }
 0x173   :  { %v1345_v29 = vsel %vm1343_vm10, %v1284_v33, %v1286_v2  ;;  %v1520_v16 = vsel %vm9350_vm6, %v1500_v13, 0 }
 0x174   :  { %v1375_v28 = vshrl.u32 %v1345_v29, 16  ;;  %v1554_v1 = vunpack.c.h.b16 %v1520_v16  ;;  %v9465_v18 = vunpack.c.l.b16 %v1520_v16  ;;  %v1378_v26 = vshll.u32 %v1345_v29, 16 }
 0x176   :  { %v1377_v56 = vrot.slane %v1375_v28, 7  ;;  %v1584_v7 = vpack.c.b16 %v1554_v1, %v1554_v1  ;;  %v1583_v55 = vpack.c.b16 %v9465_v18, %v9465_v18 }
 0x178   :  { %v1380_v17 = vor.u32 %v1378_v26, %v1377_v56  ;;  %v1833_v30 = vrot.slane %v1584_v7, 5  ;;  %v1629_v41 = vshrl.u32 %v1583_v55, 16  ;;  %v1632_v49 = vshll.u32 %v1583_v55, 16  ;;  %v14052_v56 = vld [vmem:[#allocation19_spill] sm:$0xff] }
 0x179   :  { %v1638_v9 = vshll.u32 %v1584_v7, 16  ;;  %v7496_v2 = vrot.slane %v1583_v55, 9  ;;  %920 = vmatmul.bf16.gmra.mxu2 %v14050_v47 }
 0x17a   :  { %v1501_v59 = vsel %vm9328_vm4, 0, %v1380_v17  ;;  %v1290_v60 = vpop.permute.xlu0 %1289  ;;  %v1631_v62 = vrot.slane %v1629_v41, 4  ;;  %v1634_v14 = vrot.slane %v1632_v49, 5  ;;  %v8308_v17 = vld [vmem:[%s13840_s0 + $0x168] sm:$0xff]  ;;  %v1294_v41 = vpop.permute.xlu2 %1293 }
 0x17b   :  { %v1521_v43 = vsel %vm9350_vm6, %v1501_v59, 0  ;;  %v1346_v36 = vsel %vm1343_vm10, %v1288_v8, %v1290_v60  ;;  %v9488_v13 = vsel %vm9413_vm9, %v7496_v2, %v1833_v30  ;;  %v1640_v1 = vrot.slane %v1638_v9, 5 }
 0x17c   :  { %v1556_v34 = vunpack.c.h.b16 %v1521_v43  ;;  %v1382_v5 = vshrl.u32 %v1346_v36, 16  ;;  %v9481_v37 = vunpack.c.l.b16 %v1521_v43  ;;  %v1385_v63 = vshll.u32 %v1346_v36, 16  ;;  %1003 = vmatmul.bf16.gmra.mxu0 %v14052_v56 }
 0x17d   :  { %v1635_v33 = vor.u32 %v1634_v14, %v1631_v62  ;;  %v6497_v3 = vadd.f32 %v8308_v17, %v1074_v50  ;;  %v13877_v31 = vunpack.c.l.b16 %v9488_v13 }
 0x17e   :  { %v1586_v29 = vpack.c.b16 %v1556_v34, %v1556_v34  ;;  %v1384_v16 = vrot.slane %v1382_v5, 7  ;;  %v1585_v28 = vpack.c.b16 %v9481_v37, %v9481_v37  ;;  %v2003_v57 = vpack.c.b16 %v9481_v37, %v9465_v18 }
 0x17f   :  { %v1636_v58 = vrot.slane %v1635_v33, 4  ;;  %v6513_v33 = vmax.f32 %v6497_v3, 0.0 }
 0x180   :  { %v1837_v26 = vrot.slane %v1586_v29, 5  ;;  %v1387_v7 = vor.u32 %v1385_v63, %v1384_v16  ;;  %2011 = vrot.lane.b32.xlu2 %v2003_v57, %s8394_s4  ;;  %v1643_v55 = vshrl.u32 %v1585_v28, 16  ;;  %v1646_v8 = vshll.u32 %v1585_v28, 16 }
 0x181   :  { %v1641_v35 = vsel %vm9472_vm13, %v1636_v58, %v1640_v1  ;;  %v1652_v11 = vshll.u32 %v1586_v29, 16  ;;  %v7497_v30 = vrot.slane %v1585_v28, 9  ;;  %6529 = vst.msk [vmem:[#allocation2 + $0x168] sm:$0xff] %vm4912_vm0, %v6513_v33 }
 0x182   :  { %v1502_v49 = vsel %vm9328_vm4, 0, %v1387_v7  ;;  %v1292_v59 = vpop.permute.xlu1 %1291  ;;  %v9505_v60 = vunpack.c.l.b16 %v1641_v35  ;;  %v1645_v9 = vrot.slane %v1643_v55, 4  ;;  %v1648_v2 = vrot.slane %v1646_v8, 5 }
 0x183   :  { %v1522_v43 = vsel %vm9350_vm6, %v1502_v49, 0  ;;  %v1347_v36 = vsel %vm1343_vm10, %v1292_v59, %v1294_v41  ;;  %v1838_v62 = vsel %vm9413_vm9, %v7497_v30, %v1837_v26  ;;  %v1654_v5 = vrot.slane %v1652_v11, 5 }
 0x184   :  { %14053 = vst [vmem:[#allocation18_spill] sm:$0xff] %v9505_v60  ;;  %v1558_v14 = vunpack.c.h.b16 %v1522_v43  ;;  %v1389_v34 = vshrl.u32 %v1347_v36, 16  ;;  %v9513_v47 = vunpack.c.l.b16 %v1522_v43  ;;  %v1649_v50 = vor.u32 %v1648_v2, %v1645_v9 }
 0x185   :  { %v1982_v63 = vunpack.c.l.b16 %v1838_v62  ;;  %v1392_v28 = vshll.u32 %v1347_v36, 16  ;;  %v1956_v57 = vpack.c.b16 %v9505_v60, %v9494_v52  ;;  %v14065_v60 = vld [vmem:[#allocation15_spill] sm:$0xff] }
 0x186   :  { %v1588_v29 = vpack.c.b16 %v1558_v14, %v1558_v14  ;;  %v1391_v16 = vrot.slane %v1389_v34, 7  ;;  %v1587_v58 = vpack.c.b16 %v9513_v47, %v9513_v47  ;;  %v1650_v1 = vrot.slane %v1649_v50, 4  ;;  %v8299_v34 = vld [vmem:[%s13845_s5] ss:$0 sm:$0xff]  ;;  %v14055_v50 = vld [vmem:[#allocation8_spill] sm:$0xff] }
 0x187   :  { %v9523_v26 = vpack.c.b16 %v1982_v63, %v13877_v31 }
 0x188   :  { %v1841_v7 = vrot.slane %v1588_v29, 5  ;;  %v1394_v55 = vor.u32 %v1392_v28, %v1391_v16  ;;  %1964 = vrot.lane.b32.xlu2 %v1956_v57, %s8394_s4  ;;  %v1655_v8 = vsel %vm9472_vm13, %v1650_v1, %v1654_v5  ;;  %v1657_v17 = vshrl.u32 %v1587_v58, 16 }
 0x189   :  { %v1660_v3 = vshll.u32 %v1587_v58, 16  ;;  %v7498_v35 = vrot.slane %v1587_v58, 9  ;;  %v1666_v49 = vshll.u32 %v1588_v29, 16  ;;  %v9531_v59 = vunpack.c.l.b16 %v1655_v8  ;;  %925 = vmatmul.bf16.gmra.mxu2 %v14055_v50 }
 0x18a   :  { %v1503_v11 = vsel %vm9328_vm4, 0, %v1394_v55  ;;  %v1298_v30 = vpop.permute.xlu1 %1297  ;;  %v1296_v41 = vpop.permute.xlu0 %1295  ;;  %v1659_v43 = vrot.slane %v1657_v17, 4  ;;  %v1236_v8 = vunpack.c.h.b16 %v9283_v10 }
 0x18b   :  { %14054 = vst [vmem:[#allocation5_spill] sm:$0xff] %v9531_v59  ;;  %v1523_v9 = vsel %vm9350_vm6, %v1503_v11, 0  ;;  %v1348_v2 = vsel %vm1343_vm10, %v1296_v41, %v1298_v30  ;;  %v1662_v36 = vrot.slane %v1660_v3, 5  ;;  %v1842_v16 = vsel %vm9413_vm9, %v7498_v35, %v1841_v7  ;;  %v14056_v11 = vld [vmem:[#allocation20_spill] sm:$0xff]  ;;  %v1300_v41 = vpop.permute.xlu2 %1299 }
 0x18c   :  { %v1560_v62 = vunpack.c.h.b16 %v1523_v9  ;;  %v1396_v14 = vshrl.u32 %v1348_v2, 16  ;;  %v9539_v5 = vunpack.c.l.b16 %v1523_v9  ;;  %v1399_v33 = vshll.u32 %v1348_v2, 16  ;;  %1008 = vmatmul.bf16.gmra.mxu0 %v14056_v11 }
 0x18d   :  { %v1663_v29 = vor.u32 %v1662_v36, %v1659_v43  ;;  %v1668_v3 = vrot.slane %v1666_v49, 5  ;;  %v1983_v30 = vunpack.c.l.b16 %v1842_v16 }
 0x18e   :  { %v1590_v57 = vpack.c.b16 %v1560_v62, %v1560_v62  ;;  %v1398_v58 = vrot.slane %v1396_v14, 7  ;;  %v1589_v1 = vpack.c.b16 %v9539_v5, %v9539_v5  ;;  %v2004_v55 = vpack.c.b16 %v9539_v5, %v9513_v47 }
 0x18f   :  { %v1664_v17 = vrot.slane %v1663_v29, 4  ;;  %v9556_v62 = vpack.c.b16 %v1983_v30, %v1982_v63 }
 0x190   :  { %v1845_v7 = vrot.slane %v1590_v57, 5  ;;  %v1401_v35 = vor.u32 %v1399_v33, %v1398_v58  ;;  %1148 = vrot.lane.b32.xlu2 %v8299_v34, %s8392_s3  ;;  %2013 = vrot.lane.b32.xlu0 %v2004_v55, %s8394_s4  ;;  %v1671_v9 = vshrl.u32 %v1589_v1, 16  ;;  %v1674_v2 = vshll.u32 %v1589_v1, 16 }
 0x191   :  { %v1669_v43 = vsel %vm9472_vm13, %v1664_v17, %v1668_v3  ;;  %v1680_v36 = vshll.u32 %v1590_v57, 16  ;;  %14057 = vst [vmem:[#allocation19_spill] sm:$0xff] %v9556_v62  ;;  %v7499_v10 = vrot.slane %v1589_v1, 9  ;;  %v1268_v1 = vpack.c.b16 %v1236_v8, %v1236_v8 }
 0x192   :  { %v1504_v49 = vsel %vm9328_vm4, 0, %v1401_v35  ;;  %v1302_v14 = vpop.permute.xlu0 %1301  ;;  %v9560_v50 = vunpack.c.l.b16 %v1669_v43  ;;  %v1673_v33 = vrot.slane %v1671_v9, 4  ;;  %v1676_v29 = vrot.slane %v1674_v2, 5 }
 0x193   :  { %v1524_v34 = vsel %vm9350_vm6, %v1504_v49, 0  ;;  %v1349_v16 = vsel %vm1343_vm10, %v1300_v41, %v1302_v14  ;;  %v9567_v58 = vsel %vm9413_vm9, %v7499_v10, %v1845_v7  ;;  %v1682_v3 = vrot.slane %v1680_v36, 5 }
 0x194   :  { %14058 = vst [vmem:[#allocation8_spill] sm:$0xff] %v9560_v50  ;;  %v1562_v63 = vunpack.c.h.b16 %v1524_v34  ;;  %v1403_v57 = vshrl.u32 %v1349_v16, 16  ;;  %v9569_v55 = vunpack.c.l.b16 %v1524_v34  ;;  %v1677_v17 = vor.u32 %v1676_v29, %v1673_v33 }
 0x195   :  { %v1984_v11 = vunpack.c.l.b16 %v9567_v58  ;;  %v1406_v2 = vshll.u32 %v1349_v16, 16  ;;  %v1957_v43 = vpack.c.b16 %v9560_v50, %v9531_v59  ;;  %v1238_v36 = vunpack.c.h.b16 %v9298_v48  ;;  %v1306_v58 = vpop.permute.xlu2 %1305  ;;  %v8155_v59 = vld [vmem:[%s13847_s7 + $0x58] sm:$0xff] }
 0x196   :  { %v1592_v35 = vpack.c.b16 %v1562_v63, %v1562_v63  ;;  %v1405_v9 = vrot.slane %v1403_v57, 7  ;;  %v1591_v41 = vpack.c.b16 %v9569_v55, %v9569_v55  ;;  %v1678_v7 = vrot.slane %v1677_v17, 4 }
 0x197   :  { %v9578_v8 = vpack.c.b16 %v1984_v11, %v1983_v30  ;;  %v1270_v10 = vpack.c.b16 %v1238_v36, %v1238_v36  ;;  %v14061_v36 = vld [vmem:[#allocation21_spill] sm:$0xff] }
 0x198   :  { %v1849_v49 = vrot.slane %v1592_v35, 5  ;;  %v1408_v14 = vor.u32 %v1406_v2, %v1405_v9  ;;  %1321 = vrot.lane.b32.xlu2 %v1268_v1, %s8392_s3  ;;  %1966 = vrot.lane.b32.xlu0 %v1957_v43, %s8394_s4  ;;  %v1683_v33 = vsel %vm9472_vm13, %v1678_v7, %v1682_v3  ;;  %v1685_v29 = vshrl.u32 %v1591_v41, 16 }
 0x199   :  { %v1688_v34 = vshll.u32 %v1591_v41, 16  ;;  %v7500_v16 = vrot.slane %v1591_v41, 9  ;;  %v1694_v57 = vshll.u32 %v1592_v35, 16  ;;  %v9587_v17 = vunpack.c.l.b16 %v1683_v33  ;;  %v14060_v41 = vld [vmem:[#allocation11_spill] sm:$0xff] }
 0x19a   :  { %v1505_v63 = vsel %vm9328_vm4, 0, %v1408_v14  ;;  %v1304_v30 = vpop.permute.xlu1 %1303  ;;  %v1687_v48 = vrot.slane %v1685_v29, 4  ;;  %930 = vmatmul.bf16.gmra.mxu2 %v14060_v41 }
 0x19b   :  { %14059 = vst [vmem:[#allocation20_spill] sm:$0xff] %v9587_v17  ;;  %v1525_v1 = vsel %vm9350_vm6, %v1505_v63, 0  ;;  %v1350_v9 = vsel %vm1343_vm10, %v1304_v30, %v1306_v58  ;;  %v1690_v2 = vrot.slane %v1688_v34, 5  ;;  %v1850_v35 = vsel %vm9413_vm9, %v7500_v16, %v1849_v49  ;;  %v8159_v34 = vld [vmem:[%s13847_s7 + $0x78] sm:$0xff] }
 0x19c   :  { %v1564_v43 = vunpack.c.h.b16 %v1525_v1  ;;  %v1410_v3 = vshrl.u32 %v1350_v9, 16  ;;  %v9592_v7 = vunpack.c.l.b16 %v1525_v1  ;;  %v1413_v28 = vshll.u32 %v1350_v9, 16  ;;  %1013 = vmatmul.bf16.gmra.mxu0 %v14061_v36  ;;  %2537 = vmatpush.bf16.msrb.mxu2 %v8159_v34  ;;  %v8151_v34 = vld [vmem:[%s13847_s7 + $0x38] sm:$0xff] }
 0x19d   :  { %v1691_v14 = vor.u32 %v1690_v2, %v1687_v48  ;;  %v1696_v30 = vrot.slane %v1694_v57, 5  ;;  %v1985_v1 = vunpack.c.l.b16 %v1850_v35  ;;  %2488 = vmatpush.bf16.msra.mxu1 %v8151_v34 }
 0x19e   :  { %v9597_v33 = vpack.c.b16 %v1564_v43, %v1564_v43  ;;  %v1412_v56 = vrot.slane %v1410_v3, 7  ;;  %v1593_v58 = vpack.c.b16 %v9592_v7, %v9592_v7  ;;  %v2005_v29 = vpack.c.b16 %v9592_v7, %v9569_v55  ;;  %v8158_v3 = vld [vmem:[%s13847_s7 + $0x70] sm:$0xff] }
 0x19f   :  { %v1692_v63 = vrot.slane %v1691_v14, 4  ;;  %v1240_v43 = vunpack.c.h.b16 %v9335_v19  ;;  %v9618_v41 = vpack.c.b16 %v1985_v1, %v1984_v11 }
 0x1a0   :  { %v1853_v16 = vrot.slane %v9597_v33, 5  ;;  %v1415_v9 = vor.u32 %v1413_v28, %v1412_v56  ;;  %1325 = vrot.lane.b32.xlu2 %v1270_v10, %s8392_s3  ;;  %2015 = vrot.lane.b32.xlu0 %v2005_v29, %s8394_s4  ;;  %v1699_v48 = vshrl.u32 %v1593_v58, 16  ;;  %v1702_v2 = vshll.u32 %v1593_v58, 16 }
 0x1a1   :  { %v1697_v57 = vsel %vm9472_vm13, %v1692_v63, %v1696_v30  ;;  %14062 = vst [vmem:[#allocation11_spill] sm:$0xff] %v9618_v41  ;;  %v7501_v14 = vrot.slane %v1593_v58, 9  ;;  %2538 = vmatpush.bf16.msrb.mxu2 %v8158_v3 }
 0x1a2   :  { %v1506_v56 = vsel %vm9328_vm4, 0, %v1415_v9  ;;  %v1310_v28 = vpop.permute.xlu1 %1309  ;;  %v1308_v10 = vpop.permute.xlu0 %1307  ;;  %v9622_v35 = vunpack.c.l.b16 %v1697_v57  ;;  %v1701_v29 = vrot.slane %v1699_v48, 4  ;;  %v1704_v19 = vrot.slane %v1702_v2, 5  ;;  %v8157_v2 = vld [vmem:[%s13847_s7 + $0x68] sm:$0xff] }
 0x1a3   :  { %v1526_v63 = vsel %vm9350_vm6, %v1506_v56, 0  ;;  %v1351_v11 = vsel %vm1343_vm10, %v1308_v10, %v1310_v28  ;;  %v9632_v58 = vsel %vm9413_vm9, %v7501_v14, %v1853_v16  ;;  %v1272_v57 = vpack.c.b16 %v1240_v43, %v1240_v43 }
 0x1a4   :  { %14063 = vst [vmem:[#allocation21_spill] sm:$0xff] %v9622_v35  ;;  %v1566_v30 = vunpack.c.h.b16 %v1526_v63  ;;  %v1417_v36 = vshrl.u32 %v1351_v11, 16  ;;  %v1420_v9 = vshll.u32 %v1351_v11, 16  ;;  %v9634_v48 = vunpack.c.l.b16 %v1526_v63 }
 0x1a5   :  { %v1986_v56 = vunpack.c.l.b16 %v9632_v58  ;;  %v1958_v16 = vpack.c.b16 %v9622_v35, %v9587_v17  ;;  %v1705_v14 = vor.u32 %v1704_v19, %v1701_v29  ;;  %v1242_v63 = vunpack.c.h.b16 %v9371_v6  ;;  %v8150_v29 = vld [vmem:[%s13847_s7 + $0x30] sm:$0xff]  ;;  %2539 = vmatpush.bf16.msrb.mxu2 %v8157_v2 }
 0x1a6   :  { %v1596_v49 = vpack.c.b16 %v1566_v30, %v1566_v30  ;;  %v1419_v28 = vrot.slane %v1417_v36, 7  ;;  %v1595_v10 = vpack.c.b16 %v9634_v48, %v9634_v48  ;;  %v1708_v11 = vshll.u32 %v9597_v33, 16  ;;  %2489 = vmatpush.bf16.msra.mxu1 %v8150_v29 }
 0x1a7   :  { %v9646_v34 = vpack.c.b16 %v1986_v56, %v1985_v1  ;;  %v8156_v1 = vld [vmem:[%s13847_s7 + $0x60] sm:$0xff]  ;;  %v1274_v39 = vpack.c.b16 %v1242_v63, %v1242_v63 }
 0x1a8   :  { %v1422_v3 = vor.u32 %v1420_v9, %v1419_v28  ;;  %1329 = vrot.lane.b32.xlu2 %v1272_v57, %s8392_s3  ;;  %1968 = vrot.lane.b32.xlu0 %v1958_v16, %s8394_s4  ;;  %v1857_v19 = vrot.slane %v1596_v49, 5  ;;  %v1713_v58 = vshrl.u32 %v1595_v10, 16  ;;  %v1716_v30 = vshll.u32 %v1595_v10, 16  ;;  %v8149_v16 = vld [vmem:[%s13847_s7 + $0x28] sm:$0xff] }
 0x1a9   :  { %v7502_v36 = vrot.slane %v1595_v10, 9  ;;  %v1706_v28 = vrot.slane %v1705_v14, 4  ;;  %v1722_v33 = vshll.u32 %v1596_v49, 16  ;;  %v1710_v14 = vrot.slane %v1708_v11, 5  ;;  %2540 = vmatpush.bf16.msrb.mxu2 %v8156_v1  ;;  %v14066_v11 = vld [vmem:[#allocation22_spill] sm:$0xff] }
 0x1aa   :  { %v1507_v9 = vsel %vm9328_vm4, 0, %v1422_v3  ;;  %v1314_v57 = vpop.permute.xlu1 %1313  ;;  %v1312_v6 = vpop.permute.xlu0 %1311  ;;  %v1715_v31 = vrot.slane %v1713_v58, 4  ;;  %v1718_v50 = vrot.slane %v1716_v30, 5  ;;  %935 = vmatmul.bf16.gmra.mxu2 %v14065_v60  ;;  %2490 = vmatpush.bf16.msra.mxu1 %v8149_v16  ;;  %v8148_v60 = vld [vmem:[%s13847_s7 + $0x20] sm:$0xff]  ;;  %v1244_v1 = vunpack.c.h.b16 %v9410_v27 }
 0x1ab   :  { %v1527_v2 = vsel %vm9350_vm6, %v1507_v9, 0  ;;  %v1352_v43 = vsel %vm1343_vm10, %v1312_v6, %v1314_v57  ;;  %v1858_v9 = vsel %vm9413_vm9, %v7502_v36, %v1857_v19 }
 0x1ac   :  { %v1890_v10 = vunpack.c.h.b16 %v1527_v2  ;;  %v1424_v17 = vshrl.u32 %v1352_v43, 16  ;;  %v9666_v3 = vunpack.c.l.b16 %v1527_v2  ;;  %v1427_v49 = vshll.u32 %v1352_v43, 16  ;;  %1018 = vmatmul.bf16.gmra.mxu0 %v14066_v11 }
 0x1ad   :  { %v1719_v29 = vor.u32 %v1718_v50, %v1715_v31  ;;  %v1711_v31 = vsel %vm9472_vm13, %v1706_v28, %v1710_v14  ;;  %v1724_v43 = vrot.slane %v1722_v33, 5  ;;  %v1987_v19 = vunpack.c.l.b16 %v1858_v9  ;;  %2541 = vmatpush.bf16.msrb.mxu2 %v8155_v59  ;;  %v8154_v28 = vld [vmem:[%s13847_s7 + $0x50] sm:$0xff]  ;;  %v8147_v59 = vld [vmem:[%s13847_s7 + $0x18] sm:$0xff] }
 0x1ae   :  { %14064 = vst [vmem:[#allocation42_spill] sm:$0xff] %v9666_v3  ;;  %v1894_v58 = vpack.c.b16 %v1890_v10, %v1890_v10  ;;  %v1426_v30 = vrot.slane %v1424_v17, 7  ;;  %v2006_v63 = vpack.c.b16 %v9666_v3, %v9634_v48  ;;  %v1893_v57 = vpack.c.b16 %v9666_v3, %v9666_v3  ;;  %2491 = vmatpush.bf16.msra.mxu1 %v8148_v60  ;;  %v8153_v60 = vld [vmem:[%s13847_s7 + $0x48] sm:$0xff] }
 0x1af   :  { %v1720_v50 = vrot.slane %v1719_v29, 4  ;;  %v9692_v33 = vpack.c.b16 %v1987_v19, %v1986_v56  ;;  %v9696_v27 = vunpack.c.l.b16 %v1711_v31  ;;  %v1276_v11 = vpack.c.b16 %v1244_v1, %v1244_v1  ;;  %v8146_v1 = vld [vmem:[%s13847_s7 + $0x10] sm:$0xff] }
 0x1b0   :  { %v1429_v17 = vor.u32 %v1427_v49, %v1426_v30  ;;  %1333 = vrot.lane.b32.xlu2 %v1274_v39, %s8392_s3  ;;  %2017 = vrot.lane.b32.xlu0 %v2006_v63, %s8394_s4  ;;  %v1898_v36 = vshrl.u32 %v1893_v57, 16  ;;  %v1901_v6 = vshll.u32 %v1893_v57, 16  ;;  %v7510_v2 = vrot.slane %v1893_v57, 9 }
 0x1b1   :  { %v1725_v16 = vsel %vm9472_vm13, %v1720_v50, %v1724_v43  ;;  %v1927_v10 = vrot.slane %v1894_v58, 5  ;;  %14067 = vst [vmem:[#allocation15_spill] sm:$0xff] %v9696_v27  ;;  %v1907_v57 = vshll.u32 %v1894_v58, 16  ;;  %2542 = vmatpush.bf16.msrb.mxu2 %v8154_v28 }
 0x1b2   :  { %v1508_v39 = vsel %vm9328_vm4, 0, %v1429_v17  ;;  %v1318_v49 = vpop.permute.xlu1 %1317  ;;  %v1316_v14 = vpop.permute.xlu0 %1315  ;;  %v9698_v29 = vunpack.c.l.b16 %v1725_v16  ;;  %v1900_v9 = vrot.slane %v1898_v36, 4  ;;  %v1903_v63 = vrot.slane %v1901_v6, 5  ;;  %2492 = vmatpush.bf16.msra.mxu1 %v8147_v59 }
 0x1b3   :  { %v1528_v56 = vsel %vm9350_vm6, %v1508_v39, 0  ;;  %v1353_v30 = vsel %vm1343_vm10, %v1316_v14, %v1318_v49  ;;  %v9713_v36 = vsel %vm9413_vm9, %v7510_v2, %v1927_v10 }
 0x1b4   :  { %14068 = vst [vmem:[#allocation22_spill] sm:$0xff] %v9698_v29  ;;  %v1568_v50 = vunpack.c.h.b16 %v1528_v56  ;;  %v1431_v43 = vshrl.u32 %v1353_v30, 16  ;;  %v1434_v31 = vshll.u32 %v1353_v30, 16  ;;  %v9706_v17 = vunpack.c.l.b16 %v1528_v56 }
 0x1b5   :  { %v1904_v16 = vor.u32 %v1903_v63, %v1900_v9  ;;  %14069 = vst [vmem:[#allocation43_spill] sm:$0xff] %v9713_v36  ;;  %v1959_v58 = vpack.c.b16 %v9698_v29, %v9696_v27  ;;  %v13884_v6 = vunpack.c.l.b16 %v9713_v36  ;;  %v1909_v9 = vrot.slane %v1907_v57, 5  ;;  %2543 = vmatpush.bf16.msrb.mxu2 %v8153_v60  ;;  %v8152_v57 = vld [vmem:[%s13847_s7 + $0x40] sm:$0xff] }
 0x1b6   :  { %v1598_v39 = vpack.c.b16 %v1568_v50, %v1568_v50  ;;  %v1433_v49 = vrot.slane %v1431_v43, 7  ;;  %v1597_v28 = vpack.c.b16 %v9706_v17, %v9706_v17  ;;  %2493 = vmatpush.bf16.msra.mxu1 %v8146_v1 }
 0x1b7   :  { %v1905_v14 = vrot.slane %v1904_v16, 4  ;;  %v9729_v59 = vpack.c.b16 %v13884_v6, %v1987_v19 }
 0x1b8   :  { %v1861_v10 = vrot.slane %v1598_v39, 5  ;;  %v1436_v56 = vor.u32 %v1434_v31, %v1433_v49  ;;  %1337 = vrot.lane.b32.xlu2 %v1276_v11, %s8392_s3  ;;  %1970 = vrot.lane.b32.xlu0 %v1959_v58, %s8394_s4  ;;  %v1727_v30 = vshrl.u32 %v1597_v28, 16  ;;  %v1730_v63 = vshll.u32 %v1597_v28, 16 }
 0x1b9   :  { %v7503_v50 = vrot.slane %v1597_v28, 9  ;;  %v1910_v43 = vsel %vm9472_vm13, %v1905_v14, %v1909_v9  ;;  %v1246_v31 = vunpack.c.h.b16 %v9447_v51  ;;  %v1736_v16 = vshll.u32 %v1598_v39, 16  ;;  %v8145_v14 = vld [vmem:[%s13847_s7 + $0x8] sm:$0xff]  ;;  %2544 = vmatpush.bf16.msrb.mxu2 %v8152_v57 }
 0x1ba   :  { %v1509_v11 = vsel %vm9328_vm4, 0, %v1436_v56  ;;  %v1729_v49 = vrot.slane %v1727_v30, 4  ;;  %v1732_v60 = vrot.slane %v1730_v63, 5  ;;  %2494 = vmatpush.bf16.msra.mxu1 %v8145_v14 }
 0x1bb   :  { %v1529_v19 = vsel %vm9350_vm6, %v1509_v11, 0  ;;  %v9743_v58 = vsel %vm9413_vm9, %v7503_v50, %v1861_v10  ;;  %v1278_v39 = vpack.c.b16 %v1246_v31, %v1246_v31  ;;  %v8144_v10 = vld [vmem:[%s13847_s7] sm:$0xff]  ;;  %v1738_v63 = vrot.slane %v1736_v16, 5  ;;  %v14070_v50 = vld [vmem:[#allocation23_spill] sm:$0xff] }
 0x1bc   :  { %v1570_v28 = vunpack.c.h.b16 %v1529_v19  ;;  %v9745_v6 = vunpack.c.l.b16 %v1529_v19  ;;  %v1733_v9 = vor.u32 %v1732_v60, %v1729_v49  ;;  %1023 = vmatmul.bf16.gmra.mxu0 %v14070_v50 }
 0x1be   :  { %v1600_v51 = vpack.c.b16 %v1570_v28, %v1570_v28  ;;  %v2007_v1 = vpack.c.b16 %v9745_v6, %v9706_v17  ;;  %v1599_v56 = vpack.c.b16 %v9745_v6, %v9745_v6  ;;  %v1734_v30 = vrot.slane %v1733_v9, 4  ;;  %2495 = vmatpush.bf16.msra.mxu1 %v8144_v10  ;;  %v8175_v10 = vld [vmem:[%s13847_s7 + $0xf8] sm:$0xff] }
 0x1bf   :  { %2635 = vmatpush.bf16.msrb.mxu0 %v8175_v10  ;;  %v8171_v10 = vld [vmem:[%s13847_s7 + $0xd8] sm:$0xff] }
 0x1c0   :  { %1341 = vrot.lane.b32.xlu2 %v1278_v39, %s8392_s3  ;;  %2019 = vrot.lane.b32.xlu0 %v2007_v1, %s8394_s4  ;;  %v1741_v57 = vshrl.u32 %v1599_v56, 16  ;;  %v1744_v11 = vshll.u32 %v1599_v56, 16  ;;  %v7504_v31 = vrot.slane %v1599_v56, 9  ;;  %v1739_v19 = vsel %vm9472_vm13, %v1734_v30, %v1738_v63  ;;  %v9783_v63 = vpop.f32.mrf.mxu2 }
 0x1c1   :  { %v1865_v49 = vrot.slane %v1600_v51, 5  ;;  %v9762_v60 = vunpack.c.l.b16 %v1739_v19  ;;  %v1750_v9 = vshll.u32 %v1600_v51, 16  ;;  %v9768_v39 = vunpack.c.l.b16 %v1910_v43  ;;  %v8174_v43 = vld [vmem:[%s13847_s7 + $0xf0] sm:$0xff]  ;;  %14072 = vst [vmem:[#allocation44_spill] sm:$0xff] %v9783_v63 }
 0x1c2   :  { %v1743_v28 = vrot.slane %v1741_v57, 4  ;;  %v1746_v14 = vrot.slane %v1744_v11, 5  ;;  %v14073_v57 = vld [vmem:[#allocation24_spill] sm:$0xff] }
 0x1c3   :  { %14071 = vst [vmem:[#allocation23_spill] sm:$0xff] %v9762_v60  ;;  %v9766_v16 = vsel %vm9413_vm9, %v7504_v31, %v1865_v49  ;;  %v1960_v56 = vpack.c.b16 %v9762_v60, %v9494_v52  ;;  %v1752_v2 = vrot.slane %v1750_v9, 5  ;;  %2636 = vmatpush.bf16.msrb.mxu0 %v8174_v43  ;;  %v9789_v31 = vunpack.c.l.b16 %v9433_v61  ;;  %v8172_v61 = vld [vmem:[%s13847_s7 + $0xe0] sm:$0xff] }
 0x1c4   :  { %v1747_v1 = vor.u32 %v1746_v14, %v1743_v28  ;;  %v14076_v49 = vunpack.c.l.b16 %v9488_v13  ;;  %v8119_v13 = vld [vmem:[%s13842_s2 + $0x178] sm:$0xf0]  ;;  %v1933_v43 = vpack.c.b16 %v9465_v18, %v9373_v38  ;;  %v8170_v18 = vld [vmem:[%s13847_s7 + $0xd0] sm:$0xff] }
 0x1c5   :  { %14075 = vst [vmem:[#allocation45_spill] sm:$0xff] %v9789_v31 }
 0x1c6   :  { %v1748_v50 = vrot.slane %v1747_v1, 4  ;;  %v1995_v28 = vpack.c.b16 %v14076_v49, %v9789_v31  ;;  %v8116_v49 = vld [vmem:[%s13842_s2 + $0x160] sm:$0xf0] }
 0x1c8   :  { %1972 = vrot.lane.b32.xlu2 %v1960_v56, %s8394_s4  ;;  %v1753_v51 = vsel %vm9472_vm13, %v1748_v50, %v1752_v2  ;;  %v8173_v2 = vld [vmem:[%s13847_s7 + $0xe8] sm:$0xff]  ;;  %v9799_v14 = vpop.f32.mrf.mxu2  ;;  %v7397_v56 = vld [vmem:[%s13842_s2 + $0x170] sm:$0xf]  ;;  %v14078_v50 = vld [vmem:[#allocation25_spill] sm:$0xff] }
 0x1c9   :  { %v9786_v11 = vunpack.c.l.b16 %v1753_v51  ;;  %14077 = vst [vmem:[#allocation46_spill] sm:$0xff] %v9799_v14  ;;  %2637 = vmatpush.bf16.msrb.mxu0 %v8173_v2  ;;  %v7398_v51 = vor.u32 %v8119_v13, %v7397_v56  ;;  %v7385_v2 = vld [vmem:[%s13842_s2 + $0x158] sm:$0xf]  ;;  %v8113_v56 = vld [vmem:[%s13842_s2 + $0x148] sm:$0xf0]  ;;  %v1320_v13 = vpop.permute.xlu1 %1319 }
 0x1cb   :  { %14074 = vst [vmem:[#allocation24_spill] sm:$0xff] %v9786_v11  ;;  %941 = vmatpush.bf16.msra.mxu3 %v7398_v51  ;;  %v8169_v51 = vld [vmem:[%s13847_s7 + $0xc8] sm:$0xff] }
 0x1cc   :  { %1028 = vmatmul.bf16.gmra.mxu0 %v14073_v57 }
 0x1cd   :  { %2638 = vmatpush.bf16.msrb.mxu0 %v8172_v61  ;;  %v7373_v61 = vld [vmem:[%s13842_s2 + $0x140] sm:$0xf] }
 0x1d1   :  { %2639 = vmatpush.bf16.msrb.mxu0 %v8171_v10 }
 0x1d5   :  { %2640 = vmatpush.bf16.msrb.mxu0 %v8170_v18 }
 0x1d9   :  { %2641 = vmatpush.bf16.msrb.mxu0 %v8169_v51 }
 0x1da   :  { %v2012_v9 = vpop.permute.xlu2 %2011 }
 0x1db   :  { %v2108_v1 = vsel %vm2073_vm14, %v1995_v28, %v2012_v9  ;;  %v9824_v9 = vpop.f32.mrf.mxu2 }
 0x1dc   :  { %2545 = vmatmul.bf16.vlgmr.msrb.gmra.mxu2 %v2108_v1  ;;  %1033 = vmatmul.bf16.gmra.mxu0 %v14078_v50  ;;  %14079 = vst [vmem:[#allocation25_spill] sm:$0xff] %v9824_v9  ;;  %v7386_v1 = vor.u32 %v8116_v49, %v7385_v2  ;;  %v7374_v50 = vor.u32 %v8113_v56, %v7373_v61  ;;  %v14080_v2 = vld [vmem:[#allocation26_spill] sm:$0xff]  ;;  %v8168_v61 = vld [vmem:[%s13847_s7 + $0xc0] sm:$0xff]  ;;  %v7349_v9 = vld [vmem:[%s13842_s2 + $0x110] sm:$0xf] }
 0x1dd   :  { %2642 = vmatpush.bf16.msrb.mxu0 %v8168_v61  ;;  %v8104_v61 = vld [vmem:[%s13842_s2 + $0x100] sm:$0xf0] }
 0x1de   :  { %942 = vmatpush.bf16.msra.mxu3 %v7386_v1 }
 0x1e2   :  { %v1965_v57 = vpop.permute.xlu2 %1964  ;;  %943 = vmatpush.bf16.msra.mxu3 %v7374_v50 }
 0x1e3   :  { %v2076_v28 = vsel %vm2073_vm14, %v1933_v43, %v1965_v57  ;;  %v7361_v43 = vld [vmem:[%s13842_s2 + $0x128] sm:$0xf]  ;;  %v8110_v57 = vld [vmem:[%s13842_s2 + $0x130] sm:$0xf0]  ;;  %v9857_v19 = vpop.f32.mrf.mxu2 }
 0x1e4   :  { %2496 = vmatmul.bf16.vlgmr.msra.gmra.mxu1 %v2076_v28  ;;  %v7362_v56 = vor.u32 %v8110_v57, %v7361_v43  ;;  %14081 = vst [vmem:[#allocation47_spill] sm:$0xff] %v9857_v19  ;;  %v1324_v43 = vpop.permute.xlu1 %1323 }
 0x1e6   :  { %944 = vmatpush.bf16.msra.mxu3 %v7362_v56 }
 0x1ea   :  { %v9838_v10 = vpop.permute.xlu2 %1148 }
 0x1eb   :  { %v1151_v49 = vadd.f32 %v9838_v10, %v14080_v2  ;;  %v1153_v28 = vadd.f32 %v9838_v10, %v9116_v46  ;;  %v1152_v1 = vadd.f32 %v9838_v10, %v9105_v4  ;;  %v1154_v18 = vadd.f32 %v9838_v10, %v9129_v54  ;;  %v8107_v4 = vld [vmem:[%s13842_s2 + $0x118] sm:$0xf0] }
 0x1ec   :  { %v7350_v14 = vor.u32 %v8107_v4, %v7349_v9 }
 0x1ed   :  { %v1167_v50 = vmax.f32 %v1151_v49, 0.0  ;;  %v1169_v51 = vmax.f32 %v1153_v28, 0.0  ;;  %v1168_v30 = vmax.f32 %v1152_v1, 0.0  ;;  %v1170_v63 = vmax.f32 %v1154_v18, 0.0  ;;  %v7337_v1 = vld [vmem:[%s13842_s2 + $0xf8] sm:$0xf] }
 0x1ee   :  { %945 = vmatpush.bf16.msra.mxu3 %v7350_v14  ;;  %v7338_v9 = vor.u32 %v8104_v61, %v7337_v1  ;;  %v7325_v14 = vld [vmem:[%s13842_s2 + $0xe0] sm:$0xf] }
 0x1ef   :  { %v2749_v46 = vpack.c.bf16 %v1167_v50, %v1167_v50  ;;  %v2751_v54 = vpack.c.bf16 %v1169_v51, %v1169_v51  ;;  %v2750_v19 = vpack.c.bf16 %v1168_v30, %v1168_v30  ;;  %v2752_v18 = vpack.c.bf16 %v1170_v63, %v1170_v63  ;;  %v9880_v63 = vpop.f32.mrf.mxu2 }
 0x1f0   :  { %14082 = vst [vmem:[#allocation48_spill] sm:$0xff] %v9880_v63 }
 0x1f1   :  { %v2781_v57 = vunpack.c.l.b16 %v2749_v46  ;;  %v2783_v49 = vunpack.c.l.b16 %v2751_v54  ;;  %v2782_v30 = vunpack.c.l.b16 %v2750_v19  ;;  %v7313_v19 = vld [vmem:[%s13842_s2 + $0xc8] sm:$0xf] }
 0x1f2   :  { %v1322_v28 = vpop.permute.xlu2 %1321  ;;  %946 = vmatpush.bf16.msra.mxu3 %v7338_v9 }
 0x1f3   :  { %v1354_v56 = vsel %vm1343_vm10, %v1320_v13, %v1322_v28  ;;  %v2797_v50 = vpack.c.b16 %v2781_v57, %v2781_v57  ;;  %v2799_v51 = vpack.c.b16 %v2783_v49, %v2783_v49  ;;  %v8101_v13 = vld [vmem:[%s13842_s2 + $0xe8] sm:$0xf0]  ;;  %v2784_v57 = vunpack.c.l.b16 %v2752_v18 }
 0x1f4   :  { %v1438_v4 = vshrl.u32 %v1354_v56, 16  ;;  %v1441_v54 = vshll.u32 %v1354_v56, 16  ;;  %v7326_v49 = vor.u32 %v8101_v13, %v7325_v14  ;;  %v2798_v56 = vpack.c.b16 %v2782_v30, %v2782_v30 }
 0x1f5   :  { %2813 = vrot.lane.b32.xlu1 %v2797_v50, %s8391_s28  ;;  %2817 = vrot.lane.b32.xlu2 %v2799_v51, %s8391_s28  ;;  %v8098_v50 = vld [vmem:[%s13842_s2 + $0xd0] sm:$0xf0]  ;;  %v1328_v51 = vpop.permute.xlu1 %1327  ;;  %v2800_v9 = vpack.c.b16 %v2784_v57, %v2784_v57 }
 0x1f6   :  { %v1440_v46 = vrot.slane %v1438_v4, 7  ;;  %947 = vmatpush.bf16.msra.mxu3 %v7326_v49 }
 0x1f8   :  { %v1443_v28 = vor.u32 %v1441_v54, %v1440_v46  ;;  %v7314_v46 = vor.u32 %v8098_v50, %v7313_v19  ;;  %v9909_v50 = vpop.f32.mrf.mxu2 }
 0x1f9   :  { %14083 = vst [vmem:[#allocation49_spill] sm:$0xff] %v9909_v50 }
 0x1fa   :  { %v1510_v1 = vsel %vm9328_vm4, 0, %v1443_v28  ;;  %v1326_v61 = vpop.permute.xlu2 %1325  ;;  %948 = vmatpush.bf16.msra.mxu3 %v7314_v46 }
 0x1fb   :  { %v1530_v18 = vsel %vm9350_vm6, %v1510_v1, 0  ;;  %v1355_v4 = vsel %vm1343_vm10, %v1324_v43, %v1326_v61 }
 0x1fc   :  { %v1572_v54 = vunpack.c.h.b16 %v1530_v18  ;;  %v1445_v14 = vshrl.u32 %v1355_v4, 16  ;;  %v9893_v30 = vunpack.c.l.b16 %v1530_v18  ;;  %v1448_v49 = vshll.u32 %v1355_v4, 16  ;;  %v14084_v18 = vld [vmem:[#allocation6_spill] sm:$0xff] }
 0x1fd   :  { %2815 = vrot.lane.b32.xlu1 %v2798_v56, %s8391_s28  ;;  %2819 = vrot.lane.b32.xlu2 %v2800_v9, %s8391_s28  ;;  %v1155_v56 = vadd.f32 %v9838_v10, %v9140_v23 }
 0x1fe   :  { %v1447_v13 = vrot.slane %v1445_v14, 7  ;;  %v9899_v28 = vpack.c.b16 %v9893_v30, %v9893_v30  ;;  %v9903_v57 = vpack.c.b16 %v1572_v54, %v1572_v54  ;;  %949 = vmatmul.bf16.vlgmr.msra.gmra.mxu3 %v14084_v18 }
 0x1ff   :  { %v1171_v63 = vmax.f32 %v1155_v56, 0.0 }
 0x200   :  { %v1450_v1 = vor.u32 %v1448_v49, %v1447_v13  ;;  %v1755_v61 = vshrl.u32 %v9899_v28, 16  ;;  %v1758_v19 = vshll.u32 %v9899_v28, 16  ;;  %v1156_v13 = vadd.f32 %v9838_v10, %v9156_v32 }
 0x201   :  { %v1764_v18 = vshll.u32 %v9903_v57, 16 }
 0x202   :  { %v1511_v4 = vsel %vm9328_vm4, 0, %v1450_v1  ;;  %v1330_v9 = vpop.permute.xlu2 %1329  ;;  %v2014_v46 = vpop.permute.xlu0 %2013  ;;  %v1757_v14 = vrot.slane %v1755_v61, 4  ;;  %v1760_v54 = vrot.slane %v1758_v19, 5  ;;  %v1172_v29 = vmax.f32 %v1156_v13, 0.0 }
 0x203   :  { %v1531_v49 = vsel %vm9350_vm6, %v1511_v4, 0  ;;  %v1356_v43 = vsel %vm1343_vm10, %v1328_v51, %v1330_v9  ;;  %v2112_v50 = vsel %vm2073_vm14, %v9556_v62, %v2014_v46  ;;  %v1332_v61 = vpop.permute.xlu1 %1331  ;;  %v1766_v46 = vrot.slane %v1764_v18, 5 }
 0x204   :  { %v1452_v23 = vshrl.u32 %v1356_v43, 16  ;;  %2550 = vmatmul.bf16.gmra.mxu2 %v2112_v50  ;;  %v9922_v1 = vunpack.c.l.b16 %v1531_v49  ;;  %v1574_v19 = vunpack.c.h.b16 %v1531_v49  ;;  %v1761_v2 = vor.u32 %v1760_v54, %v1757_v14 }
 0x205   :  { %v1455_v32 = vshll.u32 %v1356_v43, 16  ;;  %v2753_v50 = vpack.c.bf16 %v1171_v63, %v1171_v63  ;;  %v14085_v63 = vpack.c.b16 %v9513_v47, %v9481_v37 }
 0x206   :  { %v1454_v60 = vrot.slane %v1452_v23, 7  ;;  %v1603_v4 = vpack.c.b16 %v9922_v1, %v9922_v1  ;;  %v2008_v51 = vpack.c.b16 %v9922_v1, %v9893_v30  ;;  %v1762_v9 = vrot.slane %v1761_v2, 4 }
 0x207   :  { %v1604_v35 = vpack.c.b16 %v1574_v19, %v1574_v19  ;;  %v9944_v19 = vadd.f32 %v9838_v10, %v9173_v22 }
 0x208   :  { %v1457_v36 = vor.u32 %v1455_v32, %v1454_v60  ;;  %2021 = vrot.lane.b32.xlu0 %v2008_v51, %s8394_s4  ;;  %v1769_v3 = vshrl.u32 %v1603_v4, 16  ;;  %v1772_v56 = vshll.u32 %v1603_v4, 16  ;;  %v1767_v23 = vsel %vm9472_vm13, %v1762_v9, %v1766_v46 }
 0x209   :  { %v9933_v49 = vunpack.c.l.b16 %v1767_v23  ;;  %v2785_v9 = vunpack.c.l.b16 %v2753_v50  ;;  %v9948_v46 = vpack.c.bf16 %v1172_v29, %v1172_v29  ;;  %v7506_v23 = vrot.slane %v1603_v4, 9 }
 0x20a   :  { %v1512_v43 = vsel %vm9328_vm4, 0, %v1457_v36  ;;  %v1334_v14 = vpop.permute.xlu2 %1333  ;;  %v1967_v54 = vpop.permute.xlu0 %1966  ;;  %v1771_v2 = vrot.slane %v1769_v3, 4  ;;  %v1774_v18 = vrot.slane %v1772_v56, 5  ;;  %v1873_v37 = vrot.slane %v1604_v35, 5 }
 0x20b   :  { %v1532_v32 = vsel %vm9350_vm6, %v1512_v43, 0  ;;  %v1357_v60 = vsel %vm1343_vm10, %v1332_v61, %v1334_v14  ;;  %v2080_v13 = vsel %vm2073_vm14, %v14085_v63, %v1967_v54  ;;  %v9946_v3 = vpop.f32.mrf.mxu2  ;;  %v1961_v14 = vpack.c.b16 %v9933_v49, %v9786_v11  ;;  %v1336_v63 = vpop.permute.xlu1 %1335 }
 0x20c   :  { %v1576_v36 = vunpack.c.h.b16 %v1532_v32  ;;  %v1459_v51 = vshrl.u32 %v1357_v60, 16  ;;  %2501 = vmatmul.bf16.gmra.mxu1 %v2080_v13  ;;  %2643 = vmatmul.bf16.vlgmr.msrb.gmra.mxu0 %v2080_v13  ;;  %14086 = vst [vmem:[#allocation6_spill] sm:$0xff] %v9946_v3  ;;  %v1462_v56 = vshll.u32 %v1357_v60, 16  ;;  %v9950_v61 = vunpack.c.l.b16 %v1532_v32  ;;  %v14087_v3 = vld [vmem:[#allocation9_spill] sm:$0xff] }
 0x20d   :  { %v1775_v54 = vor.u32 %v1774_v18, %v1771_v2  ;;  %v9958_v50 = vadd.f32 %v9838_v10, %v9223_v42  ;;  %v1778_v4 = vshll.u32 %v1604_v35, 16  ;;  %v2786_v60 = vunpack.c.l.b16 %v9948_v46 }
 0x20e   :  { %v1606_v47 = vpack.c.b16 %v1576_v36, %v1576_v36  ;;  %v1461_v43 = vrot.slane %v1459_v51, 7  ;;  %v1605_v13 = vpack.c.b16 %v9950_v61, %v9950_v61  ;;  %v1173_v36 = vmax.f32 %v9944_v19, 0.0  ;;  %954 = vmatmul.bf16.gmra.mxu3 %v14087_v3 }
 0x20f   :  { %v2801_v29 = vpack.c.b16 %v2785_v9, %v2785_v9  ;;  %v9970_v35 = vsel %vm9413_vm9, %v7506_v23, %v1873_v37  ;;  %v1780_v62 = vrot.slane %v1778_v4, 5 }
 0x210   :  { %v1464_v32 = vor.u32 %v1462_v56, %v1461_v43  ;;  %1974 = vrot.lane.b32.xlu0 %v1961_v14, %s8394_s4  ;;  %v1877_v2 = vrot.slane %v1606_v47, 5  ;;  %v1783_v18 = vshrl.u32 %v1605_v13, 16  ;;  %v1786_v51 = vshll.u32 %v1605_v13, 16 }
 0x211   :  { %v7507_v22 = vrot.slane %v1605_v13, 9  ;;  %v1776_v56 = vrot.slane %v1775_v54, 4  ;;  %v1792_v9 = vshll.u32 %v1606_v47, 16  ;;  %v13902_v4 = vunpack.c.l.b16 %v9970_v35 }
 0x212   :  { %v1513_v42 = vsel %vm9328_vm4, 0, %v1464_v32  ;;  %v1338_v11 = vpop.permute.xlu2 %1337  ;;  %v2016_v27 = vpop.permute.xlu0 %2015  ;;  %v1785_v43 = vrot.slane %v1783_v18, 4  ;;  %v1788_v0 = vrot.slane %v1786_v51, 5 }
 0x213   :  { %v1533_v19 = vsel %vm9350_vm6, %v1513_v42, 0  ;;  %v1358_v46 = vsel %vm1343_vm10, %v1336_v63, %v1338_v11  ;;  %v2116_v3 = vsel %vm2073_vm14, %v9618_v41, %v2016_v27  ;;  %v1878_v23 = vsel %vm9413_vm9, %v7507_v22, %v1877_v2  ;;  %v9983_v11 = vpop.f32.mrf.mxu2 }
 0x214   :  { %v1578_v14 = vunpack.c.h.b16 %v1533_v19  ;;  %v1466_v13 = vshrl.u32 %v1358_v46, 16  ;;  %2555 = vmatmul.bf16.gmra.mxu2 %v2116_v3  ;;  %v9977_v32 = vunpack.c.l.b16 %v1533_v19  ;;  %v1469_v54 = vshll.u32 %v1358_v46, 16  ;;  %14088 = vst [vmem:[#allocation9_spill] sm:$0xff] %v9983_v11  ;;  %v1340_v3 = vpop.permute.xlu1 %1339 }
 0x215   :  { %v1781_v47 = vsel %vm9472_vm13, %v1776_v56, %v1780_v62  ;;  %v1789_v18 = vor.u32 %v1788_v0, %v1785_v43  ;;  %v1992_v51 = vunpack.c.l.b16 %v1878_v23  ;;  %v1794_v22 = vrot.slane %v1792_v9, 5 }
 0x216   :  { %v9981_v37 = vpack.c.b16 %v1578_v14, %v1578_v14  ;;  %v1468_v42 = vrot.slane %v1466_v13, 7  ;;  %v2009_v27 = vpack.c.b16 %v9977_v32, %v9950_v61  ;;  %v1607_v63 = vpack.c.b16 %v9977_v32, %v9977_v32 }
 0x217   :  { %v1790_v14 = vrot.slane %v1789_v18, 4  ;;  %v9996_v13 = vpack.c.b16 %v1992_v51, %v13902_v4  ;;  %v2802_v41 = vpack.c.b16 %v2786_v60, %v2786_v60 }
 0x218   :  { %v1471_v19 = vor.u32 %v1469_v54, %v1468_v42  ;;  %2023 = vrot.lane.b32.xlu1 %v2009_v27, %s8394_s4  ;;  %2821 = vrot.lane.b32.xlu0 %v2801_v29, %s8391_s28  ;;  %v1797_v2 = vshrl.u32 %v1607_v63, 16  ;;  %v1800_v46 = vshll.u32 %v1607_v63, 16  ;;  %v7508_v11 = vrot.slane %v1607_v63, 9 }
 0x219   :  { %v1881_v0 = vrot.slane %v9981_v37, 5  ;;  %v10001_v54 = vunpack.c.l.b16 %v1781_v47  ;;  %v2755_v29 = vpack.c.bf16 %v1173_v36, %v1173_v36  ;;  %v14089_v27 = vpack.c.b16 %v9569_v55, %v9539_v5 }
 0x21a   :  { %v1514_v62 = vsel %vm9328_vm4, 0, %v1471_v19  ;;  %v1342_v56 = vpop.permute.xlu2 %1341  ;;  %v1969_v43 = vpop.permute.xlu0 %1968  ;;  %v1799_v9 = vrot.slane %v1797_v2, 4  ;;  %v1795_v18 = vsel %vm9472_vm13, %v1790_v14, %v1794_v22  ;;  %v1802_v36 = vrot.slane %v1800_v46, 5 }
 0x21b   :  { %v1534_v23 = vsel %vm9350_vm6, %v1514_v62, 0  ;;  %v1359_v42 = vsel %vm1343_vm10, %v1340_v3, %v1342_v56  ;;  %v2084_v63 = vsel %vm2073_vm14, %v14089_v27, %v1969_v43  ;;  %v10012_v47 = vunpack.c.l.b16 %v1795_v18  ;;  %v14091_v18 = vld [vmem:[#allocation12_spill] sm:$0xff] }
 0x21c   :  { %v1580_v19 = vunpack.c.h.b16 %v1534_v23  ;;  %v1473_v4 = vshrl.u32 %v1359_v42, 16  ;;  %2506 = vmatmul.bf16.gmra.mxu1 %v2084_v63  ;;  %2648 = vmatmul.bf16.gmra.mxu0 %v2084_v63  ;;  %v1476_v2 = vshll.u32 %v1359_v42, 16  ;;  %v10014_v62 = vunpack.c.l.b16 %v1534_v23  ;;  %v10025_v42 = vpop.f32.mrf.mxu2 }
 0x21d   :  { %v1882_v3 = vsel %vm9413_vm9, %v7508_v11, %v1881_v0  ;;  %v1962_v56 = vpack.c.b16 %v10012_v47, %v10001_v54  ;;  %v1175_v43 = vmax.f32 %v9958_v50, 0.0  ;;  %14090 = vst [vmem:[#allocation50_spill] sm:$0xff] %v10025_v42  ;;  %v1803_v11 = vor.u32 %v1802_v36, %v1799_v9 }
 0x21e   :  { %v1610_v5 = vpack.c.b16 %v1580_v19, %v1580_v19  ;;  %v1475_v55 = vrot.slane %v1473_v4, 7  ;;  %v1993_v22 = vunpack.c.l.b16 %v1882_v3  ;;  %v1609_v14 = vpack.c.b16 %v10014_v62, %v10014_v62  ;;  %959 = vmatmul.bf16.gmra.mxu3 %v14091_v18 }
 0x21f   :  { %v2787_v0 = vunpack.c.l.b16 %v2755_v29  ;;  %v2757_v18 = vpack.c.bf16 %v1175_v43, %v1175_v43 }
 0x220   :  { %v1885_v60 = vrot.slane %v1610_v5, 5  ;;  %v1478_v23 = vor.u32 %v1476_v2, %v1475_v55  ;;  %1976 = vrot.lane.b32.xlu1 %v1962_v56, %s8394_s4  ;;  %2823 = vrot.lane.b32.xlu0 %v2802_v41, %s8391_s28  ;;  %v10029_v4 = vpack.c.b16 %v1993_v22, %v1992_v51  ;;  %v1811_v27 = vshrl.u32 %v1609_v14, 16 }
 0x221   :  { %v1814_v63 = vshll.u32 %v1609_v14, 16  ;;  %v7509_v50 = vrot.slane %v1609_v14, 9  ;;  %v1806_v2 = vshll.u32 %v9981_v37, 16  ;;  %v1820_v55 = vshll.u32 %v1610_v5, 16 }
 0x222   :  { %v1515_v19 = vsel %vm9328_vm4, 0, %v1478_v23  ;;  %v2018_v3 = vpop.permute.xlu0 %2017  ;;  %v1813_v29 = vrot.slane %v1811_v27, 4  ;;  %v1804_v23 = vrot.slane %v1803_v11, 4  ;;  %v2803_v5 = vpack.c.b16 %v2787_v0, %v2787_v0 }
 0x223   :  { %v1535_v41 = vsel %vm9350_vm6, %v1515_v19, 0  ;;  %v2120_v51 = vsel %vm2073_vm14, %v9692_v33, %v2018_v3  ;;  %v1816_v9 = vrot.slane %v1814_v63, 5  ;;  %v1886_v37 = vsel %vm9413_vm9, %v7509_v50, %v1885_v60 }
 0x224   :  { %v1892_v36 = vunpack.c.h.b16 %v1535_v41  ;;  %2560 = vmatmul.bf16.gmra.mxu2 %v2120_v51  ;;  %v10041_v14 = vunpack.c.l.b16 %v1535_v41  ;;  %v1994_v56 = vunpack.c.l.b16 %v1886_v37  ;;  %v1808_v63 = vrot.slane %v1806_v2, 5  ;;  %v10059_v50 = vpop.f32.mrf.mxu2 }
 0x225   :  { %v1817_v46 = vor.u32 %v1816_v9, %v1813_v29  ;;  %v1822_v51 = vrot.slane %v1820_v55, 5  ;;  %14093 = vst [vmem:[#allocation51_spill] sm:$0xff] %v10059_v50  ;;  %v14094_v29 = vpack.c.b16 %v9634_v48, %v9592_v7  ;;  %v1160_v7 = vadd.f32 %v9838_v10, %v9252_v15 }
 0x226   :  { %14092 = vst [vmem:[#allocation12_spill] sm:$0xff] %v10041_v14  ;;  %v1896_v42 = vpack.c.b16 %v1892_v36, %v1892_v36  ;;  %v1895_v19 = vpack.c.b16 %v10041_v14, %v10041_v14  ;;  %v2010_v27 = vpack.c.b16 %v10041_v14, %v10014_v62  ;;  %v10049_v41 = vpack.c.b16 %v1994_v56, %v1993_v22 }
 0x227   :  { %v1818_v3 = vrot.slane %v1817_v46, 4  ;;  %v1809_v43 = vsel %vm9472_vm13, %v1804_v23, %v1808_v63  ;;  %v2789_v22 = vunpack.c.l.b16 %v2757_v18  ;;  %v1988_v23 = vunpack.c.l.b16 %v9743_v58 }
 0x228   :  { %2825 = vrot.lane.b32.xlu1 %v2803_v5, %s8391_s28  ;;  %2025 = vrot.lane.b32.xlu2 %v2010_v27, %s8394_s4  ;;  %v7511_v60 = vrot.slane %v1895_v19, 9  ;;  %v1931_v11 = vrot.slane %v1896_v42, 5  ;;  %v10071_v36 = vunpack.c.l.b16 %v1809_v43  ;;  %v1176_v63 = vmax.f32 %v1160_v7, 0.0 }
 0x229   :  { %2047 = vrot.lane.b32.xlu0 %v9523_v26, %s8394_s4  ;;  %v1823_v0 = vsel %vm9472_vm13, %v1818_v3, %v1822_v51  ;;  %v2805_v5 = vpack.c.b16 %v2789_v22, %v2789_v22  ;;  %v1999_v58 = vpack.c.b16 %v1988_v23, %v9789_v31  ;;  %v13906_v51 = vunpack.c.l.b16 %v9766_v16 }
 0x22a   :  { %v1971_v46 = vpop.permute.xlu0 %1970  ;;  %v10061_v2 = vunpack.c.l.b16 %v1823_v0  ;;  %v10065_v55 = vsel %vm9413_vm9, %v7511_v60, %v1931_v11  ;;  %v1912_v60 = vshrl.u32 %v1895_v19, 16  ;;  %v1915_v11 = vshll.u32 %v1895_v19, 16 }
 0x22b   :  { %v2088_v9 = vsel %vm2073_vm14, %v14094_v29, %v1971_v46  ;;  %v13904_v26 = vunpack.c.l.b16 %v10065_v55  ;;  %v1921_v0 = vshll.u32 %v1896_v42, 16  ;;  %v2758_v46 = vpack.c.bf16 %v1176_v63, %v1176_v63 }
 0x22c   :  { %2511 = vmatmul.bf16.gmra.mxu1 %v2088_v9  ;;  %2653 = vmatmul.bf16.gmra.mxu0 %v2088_v9  ;;  %v1963_v18 = vpack.c.b16 %v10061_v2, %v10071_v36  ;;  %v10093_v43 = vpop.f32.mrf.mxu2  ;;  %v1914_v22 = vrot.slane %v1912_v60, 4  ;;  %v1917_v29 = vrot.slane %v1915_v11, 5  ;;  %v1973_v9 = vpop.permute.xlu2 %1972 }
 0x22d   :  { %v10077_v37 = vpack.c.b16 %v13904_v26, %v1994_v56  ;;  %v14095_v56 = vld [vmem:[#allocation16_spill] sm:$0xff]  ;;  %v1923_v7 = vrot.slane %v1921_v0, 5 }
 0x22e   :  { %964 = vmatmul.bf16.gmra.mxu3 %v14095_v56  ;;  %14096 = vst [vmem:[#allocation16_spill] sm:$0xff] %v10093_v43 }
 0x230   :  { %2829 = vrot.lane.b32.xlu1 %v2805_v5, %s8391_s28  ;;  %1978 = vrot.lane.b32.xlu2 %v1963_v18, %s8394_s4  ;;  %v1918_v5 = vor.u32 %v1917_v29, %v1914_v22  ;;  %v1937_v18 = vpack.c.b16 %v9706_v17, %v9373_v38  ;;  %v1163_v17 = vadd.f32 %v9838_v10, %v9305_v44 }
 0x231   :  { %2049 = vrot.lane.b32.xlu0 %v9578_v8, %s8394_s4  ;;  %v2043_v8 = vpack.c.b16 %v13906_v51, %v1988_v23  ;;  %v7505_v23 = vrot.slane %v9899_v28, 9  ;;  %v14098_v28 = vld [vmem:[#allocation7_spill] sm:$0xff] }
 0x232   :  { %v2020_v27 = vpop.permute.xlu0 %2019  ;;  %v1919_v19 = vrot.slane %v1918_v5, 4  ;;  %v2092_v42 = vsel %vm2073_vm14, %v1937_v18, %v1973_v9 }
 0x233   :  { %v2124_v3 = vsel %vm2073_vm14, %v1999_v58, %v2020_v27  ;;  %v2790_v58 = vunpack.c.l.b16 %v2758_v46  ;;  %v1869_v27 = vrot.slane %v9903_v57, 5  ;;  %v1179_v57 = vmax.f32 %v1163_v17, 0.0 }
 0x234   :  { %2565 = vmatmul.bf16.gmra.mxu2 %v2124_v3  ;;  %v1924_v56 = vsel %vm9472_vm13, %v1919_v19, %v1923_v7  ;;  %v10109_v63 = vpop.f32.mrf.mxu2  ;;  %v14099_v46 = vunpack.c.l.b16 %v9970_v35 }
 0x235   :  { %14097 = vst [vmem:[#allocation52_spill] sm:$0xff] %v10109_v63  ;;  %v2806_v3 = vpack.c.b16 %v2790_v58, %v2790_v58  ;;  %v10118_v11 = vsel %vm9413_vm9, %v7505_v23, %v1869_v27  ;;  %v2761_v29 = vpack.c.bf16 %v1179_v57, %v1179_v57  ;;  %v14101_v58 = vld [vmem:[#allocation10_spill] sm:$0xff]  ;;  %v2065_v27 = vpack.c.b16 %v9494_v52, %v9768_v39 }
 0x236   :  { %v13905_v0 = vunpack.c.l.b16 %v10118_v11 }
 0x237   :  { %v2793_v9 = vunpack.c.l.b16 %v2761_v29 }
 0x238   :  { %2051 = vrot.lane.b32.xlu1 %v9646_v34, %s8394_s4  ;;  %v10107_v34 = vunpack.c.l.b16 %v1924_v56  ;;  %v2044_v22 = vpack.c.b16 %v14099_v46, %v13905_v0 }
 0x239   :  { %2055 = vrot.lane.b32.xlu0 %v2043_v8, %s8394_s4  ;;  %v2809_v5 = vpack.c.b16 %v2793_v9, %v2793_v9 }
 0x23c   :  { %2516 = vmatmul.bf16.gmra.mxu1 %v2092_v42  ;;  %v10126_v8 = vpop.f32.mrf.mxu2 }
 0x23d   :  { %14100 = vst [vmem:[#allocation7_spill] sm:$0xff] %v10126_v8 }
 0x23e   :  { %969 = vmatmul.bf16.gmra.mxu3 %v14098_v28 }
 0x240   :  { %2831 = vrot.lane.b32.xlu1 %v2806_v3, %s8391_s28 }
 0x244   :  { %v10131_v19 = vpop.f32.mrf.mxu2 }
 0x245   :  { %14102 = vst [vmem:[#allocation10_spill] sm:$0xff] %v10131_v19 }
 0x248   :  { %2057 = vrot.lane.b32.xlu1 %v2044_v22, %s8394_s4 }
 0x24c   :  { %v10142_v29 = vpop.f32.mrf.mxu2 }
 0x24d   :  { %14103 = vst [vmem:[#allocation53_spill] sm:$0xff] %v10142_v29 }
 0x24e   :  { %974 = vmatmul.bf16.gmra.mxu3 %v14101_v58 }
 0x24f   :  { %v2818_v18 = vpop.permute.xlu2 %2817 }
 0x250   :  { %v2860_v7 = vshrl.u32 %v2818_v18, 16  ;;  %2837 = vrot.lane.b32.xlu1 %v2809_v5, %s8391_s28  ;;  %v2863_v56 = vshll.u32 %v2818_v18, 16  ;;  %v8167_v5 = vld [vmem:[%s13847_s7 + $0xb8] sm:$0xff] }
 0x251   :  { %2586 = vmatpush.bf16.msrb.mxu3 %v8167_v5 }
 0x252   :  { %v2862_v42 = vrot.slane %v2860_v7, 7  ;;  %v8166_v7 = vld [vmem:[%s13847_s7 + $0xb0] sm:$0xff] }
 0x254   :  { %v2865_v23 = vor.u32 %v2863_v56, %v2862_v42 }
 0x255   :  { %2587 = vmatpush.bf16.msrb.mxu3 %v8166_v7 }
 0x256   :  { %v2975_v35 = vsel %vm9328_vm4, 0, %v2865_v23 }
 0x257   :  { %v2820_v3 = vpop.permute.xlu2 %2819  ;;  %v2991_v17 = vsel %vm9350_vm6, %v2975_v35, 0  ;;  %v14104_v35 = vld [vmem:[#allocation13_spill] sm:$0xff] }
 0x258   :  { %v2867_v28 = vshrl.u32 %v2820_v3, 16  ;;  %2067 = vrot.lane.b32.xlu1 %v2065_v27, %s8394_s4  ;;  %v2870_v46 = vshll.u32 %v2820_v3, 16  ;;  %v10140_v22 = vunpack.c.l.b16 %v2991_v17  ;;  %v3024_v23 = vunpack.c.h.b16 %v2991_v17 }
 0x25a   :  { %v2869_v57 = vrot.slane %v2867_v28, 7  ;;  %v3051_v58 = vpack.c.b16 %v10140_v22, %v10140_v22  ;;  %v3052_v5 = vpack.c.b16 %v3024_v23, %v3024_v23  ;;  %v10172_v23 = vld [vmem:[%s13848_s8] ss:$0 sm:$0xff] }
 0x25c   :  { %v2872_v9 = vor.u32 %v2870_v46, %v2869_v57  ;;  %v3104_v3 = vshrl.u32 %v3051_v58, 16  ;;  %v3107_v28 = vshll.u32 %v3051_v58, 16  ;;  %v8165_v57 = vld [vmem:[%s13847_s7 + $0xa8] sm:$0xff]  ;;  %v7666_v29 = vrot.slane %v3051_v58, 9 }
 0x25d   :  { %2588 = vmatpush.bf16.msrb.mxu3 %v8165_v57 }
 0x25e   :  { %v2976_v18 = vsel %vm9328_vm4, 0, %v2872_v9  ;;  %979 = vmatmul.bf16.gmra.mxu3 %v14104_v35  ;;  %v8164_v35 = vld [vmem:[%s13847_s7 + $0xa0] sm:$0xff]  ;;  %v3106_v26 = vrot.slane %v3104_v3, 4  ;;  %v3109_v7 = vrot.slane %v3107_v28, 5 }
 0x25f   :  { %v2992_v42 = vsel %vm9350_vm6, %v2976_v18, 0  ;;  %v10164_v18 = vpop.f32.mrf.mxu2 }
 0x260   :  { %v10156_v56 = vunpack.c.l.b16 %v2992_v42  ;;  %v3026_v60 = vunpack.c.h.b16 %v2992_v42  ;;  %14105 = vst [vmem:[#allocation13_spill] sm:$0xff] %v10164_v18  ;;  %v3281_v42 = vrot.slane %v3052_v5, 5  ;;  %v3110_v14 = vor.u32 %v3109_v7, %v3106_v26 }
 0x261   :  { %v2497_v18 = vpop.f32.mrf.mxu1  ;;  %2589 = vmatpush.bf16.msrb.mxu3 %v8164_v35  ;;  %v3113_v35 = vshll.u32 %v3052_v5, 16 }
 0x262   :  { %v3053_v27 = vpack.c.b16 %v10156_v56, %v10156_v56  ;;  %v3054_v63 = vpack.c.b16 %v3026_v60, %v3026_v60  ;;  %v10176_v3 = vsel %vm9413_vm9, %v7666_v29, %v3281_v42  ;;  %v2498_v58 = vadd.f32 %v10172_v23, %v2497_v18  ;;  %v14106_v18 = vld [vmem:[#allocation17_spill] sm:$0xff] }
 0x263   :  { %v3111_v26 = vrot.slane %v3110_v14, 4  ;;  %v3115_v5 = vrot.slane %v3113_v35, 5 }
 0x264   :  { %v3118_v46 = vshrl.u32 %v3053_v27, 16  ;;  %v3121_v9 = vshll.u32 %v3053_v27, 16  ;;  %v3127_v60 = vshll.u32 %v3054_v63, 16  ;;  %v3285_v44 = vrot.slane %v3054_v63, 5 }
 0x265   :  { %v3116_v63 = vsel %vm9472_vm13, %v3111_v26, %v3115_v5 }
 0x266   :  { %v3120_v0 = vrot.slane %v3118_v46, 4  ;;  %v3123_v51 = vrot.slane %v3121_v9, 5  ;;  %v3129_v42 = vrot.slane %v3127_v60, 5 }
 0x267   :  { %v2814_v17 = vpop.permute.xlu1 %2813  ;;  %v2546_v7 = vpop.f32.mrf.mxu2 }
 0x268   :  { %v2846_v48 = vshrl.u32 %v2814_v17, 16  ;;  %v2849_v8 = vshll.u32 %v2814_v17, 16  ;;  %v3124_v46 = vor.u32 %v3123_v51, %v3120_v0 }
 0x26a   :  { %v2848_v57 = vrot.slane %v2846_v48, 7  ;;  %v3125_v0 = vrot.slane %v3124_v46, 4 }
 0x26c   :  { %v2851_v28 = vor.u32 %v2849_v8, %v2848_v57  ;;  %v10188_v57 = vadd.f32 %v2546_v7, %v2498_v58  ;;  %v3130_v58 = vsel %vm9472_vm13, %v3125_v0, %v3129_v42  ;;  %v8162_v42 = vld [vmem:[%s13847_s7 + $0x90] sm:$0xff] }
 0x26e   :  { %v2973_v9 = vsel %vm9328_vm4, 0, %v2851_v28  ;;  %984 = vmatmul.bf16.gmra.mxu3 %v14106_v18  ;;  %v7667_v28 = vrot.slane %v3053_v27, 9  ;;  %v13911_v27 = vunpack.c.l.b16 %v10176_v3 }
 0x26f   :  { %v2989_v48 = vsel %vm9350_vm6, %v2973_v9, 0  ;;  %v2816_v17 = vpop.permute.xlu1 %2815 }
 0x270   :  { %v10185_v29 = vunpack.c.l.b16 %v2989_v48  ;;  %v3020_v8 = vunpack.c.h.b16 %v2989_v48  ;;  %v2853_v51 = vshrl.u32 %v2816_v17, 16  ;;  %v2856_v14 = vshll.u32 %v2816_v17, 16 }
 0x271   :  { %v10194_v43 = vsel %vm9413_vm9, %v7667_v28, %v3285_v44  ;;  %v14109_v28 = vunpack.c.l.b16 %v9766_v16 }
 0x272   :  { %v3047_v19 = vpack.c.b16 %v10185_v29, %v10185_v29  ;;  %v3048_v9 = vpack.c.b16 %v3020_v8, %v3020_v8  ;;  %v2855_v50 = vrot.slane %v2853_v51, 7  ;;  %v13910_v60 = vunpack.c.l.b16 %v10194_v43 }
 0x273   :  { %v10209_v51 = vunpack.c.l.b16 %v3130_v58 }
 0x274   :  { %v2858_v48 = vor.u32 %v2856_v14, %v2855_v50  ;;  %v3076_v46 = vshrl.u32 %v3047_v19, 16  ;;  %v3079_v15 = vshll.u32 %v3047_v19, 16  ;;  %v3085_v44 = vshll.u32 %v3048_v9, 16  ;;  %v8163_v50 = vld [vmem:[%s13847_s7 + $0x98] sm:$0xff] }
 0x275   :  { %14107 = vst [vmem:[#allocation17_spill] sm:$0xff] %v10209_v51  ;;  %v10215_v26 = vpack.c.b16 %v13910_v60, %v13911_v27  ;;  %2590 = vmatpush.bf16.msrb.mxu3 %v8163_v50  ;;  %v14110_v14 = vunpack.c.l.b16 %v10118_v11 }
 0x276   :  { %v2974_v17 = vsel %vm9328_vm4, 0, %v2858_v48  ;;  %v3078_v35 = vrot.slane %v3076_v46, 4  ;;  %v3081_v7 = vrot.slane %v3079_v15, 5  ;;  %v10228_v48 = vunpack.c.l.b16 %v3116_v63 }
 0x277   :  { %v2990_v8 = vsel %vm9350_vm6, %v2974_v17, 0  ;;  %14108 = vst [vmem:[#allocation54_spill] sm:$0xff] %v10215_v26  ;;  %v10226_v5 = vpack.c.b16 %v14110_v14, %v14109_v28 }
 0x278   :  { %v10217_v0 = vunpack.c.l.b16 %v2990_v8  ;;  %v3022_v18 = vunpack.c.h.b16 %v2990_v8  ;;  %v3082_v15 = vor.u32 %v3081_v7, %v3078_v35  ;;  %14111 = vst [vmem:[#allocation55_spill] sm:$0xff] %v10228_v48  ;;  %v3087_v35 = vrot.slane %v3085_v44, 5 }
 0x279   :  { %2591 = vmatpush.bf16.msrb.mxu3 %v8162_v42  ;;  %v8160_v42 = vld [vmem:[%s13847_s7 + $0x80] sm:$0xff] }
 0x27a   :  { %v3049_v46 = vpack.c.b16 %v10217_v0, %v10217_v0  ;;  %v3050_v58 = vpack.c.b16 %v3022_v18, %v3022_v18  ;;  %v2022_v17 = vpop.permute.xlu0 %2021  ;;  %v3083_v8 = vrot.slane %v3082_v15, 4  ;;  %v1161_v18 = vadd.f32 %v9838_v10, %v9270_v12 }
 0x27b   :  { %v2128_v7 = vsel %vm2073_vm14, %v10226_v5, %v2022_v17  ;;  %v1162_v17 = vadd.f32 %v9838_v10, %v9288_v20 }
 0x27c   :  { %2570 = vmatmul.bf16.gmra.mxu2 %v2128_v7  ;;  %v3088_v16 = vsel %vm9472_vm13, %v3083_v8, %v3087_v35  ;;  %v3090_v11 = vshrl.u32 %v3049_v46, 16  ;;  %v3093_v63 = vshll.u32 %v3049_v46, 16  ;;  %v3099_v14 = vshll.u32 %v3050_v58, 16  ;;  %v8161_v7 = vld [vmem:[%s13847_s7 + $0x88] sm:$0xff] }
 0x27d   :  { %v10238_v28 = vunpack.c.l.b16 %v3088_v16  ;;  %2592 = vmatpush.bf16.msrb.mxu3 %v8161_v7  ;;  %v7664_v16 = vrot.slane %v3047_v19, 9  ;;  %v1177_v50 = vmax.f32 %v1161_v18, 0.0  ;;  %v1178_v20 = vmax.f32 %v1162_v17, 0.0 }
 0x27e   :  { %v3092_v15 = vrot.slane %v3090_v11, 4  ;;  %v3095_v44 = vrot.slane %v3093_v63, 5  ;;  %v3273_v11 = vrot.slane %v3048_v9, 5  ;;  %v10252_v63 = vpop.f32.mrf.mxu1  ;;  %v3101_v12 = vrot.slane %v3099_v14, 5  ;;  %v10267_v9 = vpop.f32.mrf.mxu0 }
 0x27f   :  { %14112 = vst [vmem:[#allocation56_spill] sm:$0xff] %v10238_v28  ;;  %v3395_v8 = vpack.c.b16 %v10238_v28, %v9494_v52  ;;  %v2759_v7 = vpack.c.bf16 %v1177_v50, %v1177_v50 }
 0x280   :  { %v3096_v35 = vor.u32 %v3095_v44, %v3092_v15  ;;  %14113 = vst [vmem:[#allocation57_spill] sm:$0xff] %v10252_v63  ;;  %v10257_v26 = vsel %vm9413_vm9, %v7664_v16, %v3273_v11  ;;  %v10259_v15 = vpop.f32.mrf.mxu2  ;;  %v14116_v44 = vpack.c.b16 %v9893_v30, %v9745_v6 }
 0x281   :  { %3403 = vrot.lane.b32.xlu2 %v3395_v8, %s8394_s4  ;;  %14114 = vst [vmem:[#allocation58_spill] sm:$0xff] %v10257_v26  ;;  %2593 = vmatpush.bf16.msrb.mxu3 %v8160_v42  ;;  %v10274_v17 = vpop.f32.mrf.mxu3  ;;  %v2760_v8 = vpack.c.bf16 %v1178_v20, %v1178_v20  ;;  %v2791_v42 = vunpack.c.l.b16 %v2759_v7 }
 0x282   :  { %v1975_v60 = vpop.permute.xlu0 %1974  ;;  %v3097_v27 = vrot.slane %v3096_v35, 4  ;;  %14115 = vst [vmem:[#allocation59_spill] sm:$0xff] %v10259_v15  ;;  %v1165_v35 = vadd.f32 %v9838_v10, %v9383_v53 }
 0x283   :  { %v10265_v19 = vsel %vm2073_vm14, %v14116_v44, %v1975_v60  ;;  %14117 = vst [vmem:[#allocation60_spill] sm:$0xff] %v10267_v9  ;;  %v2792_v16 = vunpack.c.l.b16 %v2760_v8 }
 0x284   :  { %2521 = vmatmul.bf16.gmra.mxu1 %v10265_v19  ;;  %v3102_v18 = vsel %vm9472_vm13, %v3097_v27, %v3101_v12  ;;  %14119 = vst [vmem:[#allocation62_spill] sm:$0xff] %v10274_v17  ;;  %v7665_v12 = vrot.slane %v3049_v46, 9  ;;  %v3277_v27 = vrot.slane %v3050_v58, 5  ;;  %v1181_v6 = vmax.f32 %v1165_v35, 0.0 }
 0x285   :  { %v10272_v14 = vunpack.c.l.b16 %v3102_v18  ;;  %v13915_v46 = vunpack.c.l.b16 %v10257_v26  ;;  %v2808_v63 = vpack.c.b16 %v2792_v16, %v2792_v16 }
 0x286   :  { %v3278_v11 = vsel %vm9413_vm9, %v7665_v12, %v3277_v27  ;;  %v10305_v35 = vpop.f32.mrf.mxu0 }
 0x287   :  { %14118 = vst [vmem:[#allocation61_spill] sm:$0xff] %v10272_v14  ;;  %v3396_v60 = vpack.c.b16 %v10228_v48, %v10272_v14  ;;  %v3420_v58 = vunpack.c.l.b16 %v3278_v11  ;;  %v2807_v11 = vpack.c.b16 %v2791_v42, %v2791_v42  ;;  %v2763_v48 = vpack.c.bf16 %v1181_v6, %v1181_v6  ;;  %v8187_v6 = vld [vmem:[%s13849_s9 + $0x38] sm:$0xff] }
 0x288   :  { %v2551_v44 = vpop.f32.mrf.mxu2  ;;  %14124 = vst [vmem:[#allocation66_spill] sm:$0xff] %v10305_v35  ;;  %3925 = vmatpush.bf16.msra.mxu2 %v8187_v6 }
 0x289   :  { %2053 = vrot.lane.b32.xlu2 %v9729_v59, %s8394_s4  ;;  %3405 = vrot.lane.b32.xlu0 %v3396_v60, %s8394_s4  ;;  %v2502_v20 = vpop.f32.mrf.mxu1  ;;  %v8179_v59 = vld [vmem:[%s13847_s7 + $0x118] sm:$0xff]  ;;  %v10295_v7 = vpop.f32.mrf.mxu3  ;;  %v10299_v8 = vpack.c.b16 %v3420_v58, %v13915_v46  ;;  %v14122_v60 = vunpack.c.l.b16 %v10176_v3  ;;  %v8178_v46 = vld [vmem:[%s13847_s7 + $0x110] sm:$0xff] }
 0x28a   :  { %v2024_v50 = vpop.permute.xlu1 %2023  ;;  %v2822_v18 = vpop.permute.xlu0 %2821  ;;  %14120 = vst [vmem:[#allocation63_spill] sm:$0xff] %v10295_v7  ;;  %2688 = vmatpush.bf16.msrb.mxu1 %v8179_v59  ;;  %v14126_v59 = vpack.c.b16 %v9950_v61, %v9922_v1  ;;  %v2503_v1 = vadd.f32 %v10172_v23, %v2502_v20  ;;  %v8176_v20 = vld [vmem:[%s13847_s7 + $0x100] sm:$0xff] }
 0x28b   :  { %v2132_v30 = vsel %vm2073_vm14, %v9996_v13, %v2024_v50  ;;  %v2874_v15 = vshrl.u32 %v2822_v18, 16  ;;  %14121 = vst [vmem:[#allocation64_spill] sm:$0xff] %v10299_v8  ;;  %v10303_v12 = vpack.c.b16 %v14122_v60, %v3420_v58  ;;  %v2877_v50 = vshll.u32 %v2822_v18, 16 }
 0x28c   :  { %2575 = vmatmul.bf16.gmra.mxu2 %v2132_v30  ;;  %v1158_v30 = vadd.f32 %v9838_v10, %v9200_v21  ;;  %v2795_v60 = vunpack.c.l.b16 %v2763_v48 }
 0x28d   :  { %14123 = vst [vmem:[#allocation65_spill] sm:$0xff] %v10303_v12  ;;  %v2876_v27 = vrot.slane %v2874_v15, 7 }
 0x28e   :  { %v1174_v58 = vmax.f32 %v1158_v30, 0.0  ;;  %2689 = vmatpush.bf16.msrb.mxu1 %v8178_v46  ;;  %v2026_v46 = vpop.permute.xlu2 %2025  ;;  %v10351_v6 = vpop.f32.mrf.mxu0 }
 0x28f   :  { %v2879_v53 = vor.u32 %v2877_v50, %v2876_v27  ;;  %14129 = vst [vmem:[#allocation70_spill] sm:$0xff] %v10351_v6 }
 0x290   :  { %v10338_v61 = vpop.f32.mrf.mxu2 }
 0x291   :  { %2833 = vrot.lane.b32.xlu2 %v2807_v11, %s8391_s28  ;;  %2835 = vrot.lane.b32.xlu0 %v2808_v63, %s8391_s28  ;;  %v10314_v3 = vpop.f32.mrf.mxu1  ;;  %v2977_v15 = vsel %vm9328_vm4, 0, %v2879_v53  ;;  %v8177_v53 = vld [vmem:[%s13847_s7 + $0x108] sm:$0xff]  ;;  %14127 = vst [vmem:[#allocation68_spill] sm:$0xff] %v10338_v61  ;;  %v10340_v48 = vpop.f32.mrf.mxu3 }
 0x292   :  { %14125 = vst [vmem:[#allocation67_spill] sm:$0xff] %v10314_v3  ;;  %v1977_v18 = vpop.permute.xlu1 %1976  ;;  %v2993_v42 = vsel %vm9350_vm6, %v2977_v15, 0  ;;  %v2824_v16 = vpop.permute.xlu0 %2823  ;;  %v2756_v3 = vpack.c.bf16 %v1174_v58, %v1174_v58  ;;  %2690 = vmatpush.bf16.msrb.mxu1 %v8177_v53  ;;  %v10360_v53 = vadd.f32 %v2551_v44, %v2503_v1  ;;  %v14131_v1 = vld [vmem:[#allocation5_spill] sm:$0xff] }
 0x293   :  { %v10327_v63 = vsel %vm2073_vm14, %v14126_v59, %v1977_v18  ;;  %v10334_v50 = vunpack.c.l.b16 %v2993_v42  ;;  %v3028_v30 = vunpack.c.h.b16 %v2993_v42  ;;  %v2881_v11 = vshrl.u32 %v2824_v16, 16  ;;  %14128 = vst [vmem:[#allocation69_spill] sm:$0xff] %v10340_v48 }
 0x294   :  { %2526 = vmatmul.bf16.gmra.mxu1 %v10327_v63  ;;  %v2884_v27 = vshll.u32 %v2824_v16, 16  ;;  %v2811_v42 = vpack.c.b16 %v2795_v60, %v2795_v60  ;;  %v14130_v60 = vld [vmem:[#allocation39_spill] sm:$0xff]  ;;  %v2788_v6 = vunpack.c.l.b16 %v2756_v3 }
 0x295   :  { %v10344_v15 = vpack.c.b16 %v10334_v50, %v10334_v50  ;;  %v10346_v18 = vpack.c.b16 %v3028_v30, %v3028_v30  ;;  %v2883_v59 = vrot.slane %v2881_v11, 7  ;;  %v1164_v58 = vadd.f32 %v9838_v10, %v14130_v60  ;;  %v14132_v60 = vld [vmem:[#allocation18_spill] sm:$0xff] }
 0x296   :  { %2691 = vmatpush.bf16.msrb.mxu1 %v8176_v20 }
 0x297   :  { %v2886_v61 = vor.u32 %v2884_v27, %v2883_v59  ;;  %v3132_v28 = vshrl.u32 %v10344_v15, 16  ;;  %v3135_v14 = vshll.u32 %v10344_v15, 16  ;;  %v3141_v12 = vshll.u32 %v10346_v18, 16 }
 0x298   :  { %v2556_v7 = vpop.f32.mrf.mxu2 }
 0x299   :  { %2059 = vrot.lane.b32.xlu2 %v10029_v4, %s8394_s4  ;;  %2841 = vrot.lane.b32.xlu0 %v2811_v42, %s8391_s28  ;;  %v2507_v16 = vpop.f32.mrf.mxu1  ;;  %v2978_v30 = vsel %vm9328_vm4, 0, %v2886_v61  ;;  %v3134_v27 = vrot.slane %v3132_v28, 4  ;;  %v3137_v59 = vrot.slane %v3135_v14, 5  ;;  %v2136_v42 = vsel %vm2073_vm14, %v10049_v41, %v2026_v46  ;;  %v10379_v20 = vpop.f32.mrf.mxu3 }
 0x29a   :  { %v2826_v11 = vpop.permute.xlu1 %2825  ;;  %v2994_v21 = vsel %vm9350_vm6, %v2978_v30, 0  ;;  %v14133_v61 = vpack.c.b16 %v14131_v1, %v14132_v60  ;;  %v1180_v30 = vmax.f32 %v1164_v58, 0.0  ;;  %v3143_v46 = vrot.slane %v3141_v12, 5  ;;  %14134 = vst [vmem:[#allocation5_spill] sm:$0xff] %v10379_v20  ;;  %v1979_v1 = vpop.permute.xlu2 %1978 }
 0x29b   :  { %v2888_v4 = vshrl.u32 %v2826_v11, 16  ;;  %v2048_v26 = vpop.permute.xlu0 %2047  ;;  %v10369_v44 = vunpack.c.l.b16 %v2994_v21  ;;  %v3138_v14 = vor.u32 %v3137_v59, %v3134_v27  ;;  %v2891_v9 = vshll.u32 %v2826_v11, 16 }
 0x29c   :  { %v2140_v28 = vsel %vm2073_vm14, %v14133_v61, %v2048_v26  ;;  %2580 = vmatmul.bf16.gmra.mxu2 %v2136_v42  ;;  %v3030_v17 = vunpack.c.h.b16 %v2994_v21  ;;  %v2804_v60 = vpack.c.b16 %v2788_v6, %v2788_v6  ;;  %v2762_v12 = vpack.c.bf16 %v1180_v30, %v1180_v30 }
 0x29d   :  { %v2890_v48 = vrot.slane %v2888_v4, 7  ;;  %2594 = vmatmul.bf16.vlgmr.msrb.gmra.mxu3 %v2140_v28  ;;  %v10377_v35 = vpack.c.b16 %v10369_v44, %v10369_v44  ;;  %v3139_v3 = vrot.slane %v3138_v14, 4 }
 0x29e   :  { %v10394_v6 = vpack.c.b16 %v3030_v17, %v3030_v17  ;;  %v14138_v17 = vpack.c.b16 %v10014_v62, %v9977_v32  ;;  %v2794_v62 = vunpack.c.l.b16 %v2762_v12 }
 0x29f   :  { %v2893_v8 = vor.u32 %v2891_v9, %v2890_v48  ;;  %v3144_v26 = vsel %vm9472_vm13, %v3139_v3, %v3143_v46  ;;  %v3146_v11 = vshrl.u32 %v10377_v35, 16  ;;  %v3149_v58 = vshll.u32 %v10377_v35, 16  ;;  %v10392_v48 = vpop.f32.mrf.mxu0 }
 0x2a0   :  { %v10388_v27 = vunpack.c.l.b16 %v3144_v26  ;;  %14136 = vst [vmem:[#allocation71_spill] sm:$0xff] %v10392_v48  ;;  %v10409_v46 = vsel %vm2073_vm14, %v14138_v17, %v1979_v1  ;;  %v7668_v1 = vrot.slane %v10344_v15, 9  ;;  %v3289_v17 = vrot.slane %v10346_v18, 5  ;;  %v10435_v15 = vpop.f32.mrf.mxu2 }
 0x2a1   :  { %v2979_v21 = vsel %vm9328_vm4, 0, %v2893_v8  ;;  %2827 = vrot.lane.b32.xlu0 %v2804_v60, %s8391_s28  ;;  %v3148_v42 = vrot.slane %v3146_v11, 4  ;;  %v3151_v61 = vrot.slane %v3149_v58, 5  ;;  %v8186_v8 = vld [vmem:[%s13849_s9 + $0x30] sm:$0xff]  ;;  %v10403_v30 = vpop.f32.mrf.mxu1  ;;  %v2508_v60 = vadd.f32 %v10172_v23, %v2507_v16  ;;  %14141 = vst [vmem:[#allocation74_spill] sm:$0xff] %v10435_v15  ;;  %v14142_v15 = vld [vmem:[#allocation20_spill] sm:$0xff] }
 0x2a2   :  { %14135 = vst [vmem:[#allocation18_spill] sm:$0xff] %v10388_v27  ;;  %v2995_v59 = vsel %vm9350_vm6, %v2979_v21, 0  ;;  %v2830_v4 = vpop.permute.xlu1 %2829  ;;  %v3397_v26 = vpack.c.b16 %v10388_v27, %v10209_v51  ;;  %3926 = vmatpush.bf16.msra.mxu2 %v8186_v8  ;;  %v3155_v16 = vshll.u32 %v10394_v6, 16  ;;  %v3290_v12 = vsel %vm9413_vm9, %v7668_v1, %v3289_v17 }
 0x2a3   :  { %v10401_v28 = vunpack.c.l.b16 %v2995_v59  ;;  %v3032_v14 = vunpack.c.h.b16 %v2995_v59  ;;  %14137 = vst [vmem:[#allocation72_spill] sm:$0xff] %v10403_v30  ;;  %v2902_v3 = vshrl.u32 %v2830_v4, 16  ;;  %v3152_v11 = vor.u32 %v3151_v61, %v3148_v42  ;;  %v2050_v8 = vpop.permute.xlu0 %2049 }
 0x2a4   :  { %2531 = vmatmul.bf16.gmra.mxu1 %v10409_v46  ;;  %v2905_v32 = vshll.u32 %v2830_v4, 16  ;;  %3407 = vrot.lane.b32.xlu2 %v3397_v26, %s8394_s4  ;;  %v10429_v4 = vpop.f32.mrf.mxu3  ;;  %v10431_v26 = vadd.f32 %v2556_v7, %v2508_v60  ;;  %v2810_v60 = vpack.c.b16 %v2794_v62, %v2794_v62  ;;  %v3157_v51 = vrot.slane %v3155_v16, 5 }
 0x2a5   :  { %v10417_v58 = vpack.c.b16 %v10401_v28, %v10401_v28  ;;  %v10419_v21 = vpack.c.b16 %v3032_v14, %v3032_v14  ;;  %v2904_v59 = vrot.slane %v2902_v3, 7  ;;  %v3153_v30 = vrot.slane %v3152_v11, 4  ;;  %v14139_v14 = vld [vmem:[#allocation41_spill] sm:$0xff]  ;;  %14140 = vst [vmem:[#allocation73_spill] sm:$0xff] %v10429_v4 }
 0x2a6   :  { %v1166_v3 = vadd.f32 %v9838_v10, %v14139_v14  ;;  %v14143_v14 = vld [vmem:[#allocation8_spill] sm:$0xff]  ;;  %v7669_v62 = vrot.slane %v10377_v35, 9  ;;  %v3293_v16 = vrot.slane %v10394_v6, 5  ;;  %v3423_v20 = vunpack.c.l.b16 %v3290_v12 }
 0x2a7   :  { %v2907_v9 = vor.u32 %v2905_v32, %v2904_v59  ;;  %v3160_v42 = vshrl.u32 %v10417_v58, 16  ;;  %v3163_v61 = vshll.u32 %v10417_v58, 16  ;;  %v3169_v32 = vshll.u32 %v10419_v21, 16  ;;  %v10454_v48 = vpop.f32.mrf.mxu0 }
 0x2a8   :  { %14145 = vst [vmem:[#allocation20_spill] sm:$0xff] %v10454_v48  ;;  %v10472_v35 = vsel %vm9413_vm9, %v7669_v62, %v3293_v16  ;;  %v14147_v6 = vunpack.c.l.b16 %v10194_v43 }
 0x2a9   :  { %v2981_v18 = vsel %vm9328_vm4, 0, %v2907_v9  ;;  %2061 = vrot.lane.b32.xlu0 %v10077_v37, %s8394_s4  ;;  %v3162_v59 = vrot.slane %v3160_v42, 4  ;;  %v3165_v11 = vrot.slane %v3163_v61, 5  ;;  %v14144_v37 = vpack.c.b16 %v14142_v15, %v14143_v14  ;;  %v2512_v14 = vpop.f32.mrf.mxu1  ;;  %14146 = vst [vmem:[#allocation8_spill] sm:$0xff] %v10472_v35 }
 0x2aa   :  { %v2997_v10 = vsel %vm9350_vm6, %v2981_v18, 0  ;;  %v10444_v7 = vpop.permute.xlu1 %2051  ;;  %v3158_v18 = vsel %vm9472_vm13, %v3153_v30, %v3157_v51  ;;  %v3171_v15 = vrot.slane %v3169_v32, 5  ;;  %v1182_v51 = vmax.f32 %v1166_v3, 0.0  ;;  %v8184_v3 = vld [vmem:[%s13849_s9 + $0x20] sm:$0xff] }
 0x2ab   :  { %v10448_v17 = vunpack.c.l.b16 %v2997_v10  ;;  %v3034_v9 = vunpack.c.h.b16 %v2997_v10  ;;  %v2144_v42 = vsel %vm2073_vm14, %v14144_v37, %v2050_v8  ;;  %v3166_v61 = vor.u32 %v3165_v11, %v3162_v59  ;;  %v8185_v59 = vld [vmem:[%s13849_s9 + $0x28] sm:$0xff] }
 0x2ac   :  { %2839 = vrot.lane.b32.xlu2 %v2810_v60, %s8391_s28  ;;  %v10476_v30 = vpack.c.b16 %v3423_v20, %v14147_v6  ;;  %3927 = vmatpush.bf16.msra.mxu2 %v8185_v59  ;;  %v10485_v60 = vunpack.c.l.b16 %v3158_v18  ;;  %v13925_v43 = vunpack.c.l.b16 %v10472_v35  ;;  %v2561_v18 = vpop.f32.mrf.mxu2 }
 0x2ad   :  { %v10462_v1 = vpack.c.b16 %v10448_v17, %v10448_v17  ;;  %v10464_v10 = vpack.c.b16 %v3034_v9, %v3034_v9  ;;  %2599 = vmatmul.bf16.gmra.mxu3 %v2144_v42  ;;  %v3167_v8 = vrot.slane %v3166_v61, 4 }
 0x2ae   :  { %14148 = vst [vmem:[#allocation75_spill] sm:$0xff] %v10476_v30  ;;  %v10497_v59 = vpack.c.b16 %v13925_v43, %v3423_v20  ;;  %v2513_v30 = vadd.f32 %v10172_v23, %v2512_v14  ;;  %v3297_v20 = vrot.slane %v10419_v21, 5  ;;  %v8182_v21 = vld [vmem:[%s13849_s9 + $0x10] sm:$0xff] }
 0x2af   :  { %v3172_v12 = vsel %vm9472_vm13, %v3167_v8, %v3171_v15  ;;  %v3174_v11 = vshrl.u32 %v10462_v1, 16  ;;  %v3177_v32 = vshll.u32 %v10462_v1, 16  ;;  %14149 = vst [vmem:[#allocation76_spill] sm:$0xff] %v10485_v60  ;;  %v3183_v61 = vshll.u32 %v10464_v10, 16  ;;  %v10493_v15 = vpop.f32.mrf.mxu3 }
 0x2b0   :  { %v10487_v9 = vunpack.c.l.b16 %v3172_v12  ;;  %v2764_v8 = vpack.c.bf16 %v1182_v51, %v1182_v51  ;;  %14151 = vst [vmem:[#allocation78_spill] sm:$0xff] %v10493_v15  ;;  %3928 = vmatpush.bf16.msra.mxu2 %v8184_v3 }
 0x2b1   :  { %v3176_v37 = vrot.slane %v3174_v11, 4  ;;  %v3179_v42 = vrot.slane %v3177_v32, 5  ;;  %v8183_v11 = vld [vmem:[%s13849_s9 + $0x18] sm:$0xff]  ;;  %v7670_v32 = vrot.slane %v10417_v58, 9  ;;  %v3185_v35 = vrot.slane %v3183_v61, 5  ;;  %v10516_v14 = vpop.f32.mrf.mxu1 }
 0x2b2   :  { %14150 = vst [vmem:[#allocation77_spill] sm:$0xff] %v10487_v9  ;;  %v2832_v62 = vpop.permute.xlu1 %2831  ;;  %v3398_v16 = vpack.c.b16 %v10487_v9, %v10485_v60  ;;  %v14152_v9 = vld [vmem:[#allocation19_spill] sm:$0xff]  ;;  %v2796_v3 = vunpack.c.l.b16 %v2764_v8  ;;  %v10525_v8 = vadd.f32 %v2561_v18, %v2513_v30  ;;  %v14159_v18 = vld [vmem:[#allocation21_spill] sm:$0xff] }
 0x2b3   :  { %v2909_v6 = vshrl.u32 %v2832_v62, 16  ;;  %v3180_v12 = vor.u32 %v3179_v42, %v3176_v37  ;;  %v10508_v37 = vpop.f32.mrf.mxu0  ;;  %v10512_v42 = vsel %vm9413_vm9, %v7670_v32, %v3297_v20  ;;  %14155 = vst [vmem:[#allocation80_spill] sm:$0xff] %v10516_v14  ;;  %v14158_v30 = vld [vmem:[#allocation15_spill] sm:$0xff] }
 0x2b4   :  { %7656 = vmatmul.msk.bf16.vlgmr.msrb.gmra.mxu1 %vm2073_vm14, %v14152_v9  ;;  %3409 = vrot.lane.b32.xlu1 %v3398_v16, %s8394_s4  ;;  %14153 = vst [vmem:[#allocation19_spill] sm:$0xff] %v10508_v37  ;;  %v2912_v9 = vshll.u32 %v2832_v62, 16  ;;  %v2812_v20 = vpack.c.b16 %v2796_v3, %v2796_v3  ;;  %v3301_v62 = vrot.slane %v10464_v10, 5  ;;  %v8180_v10 = vld [vmem:[%s13849_s9] sm:$0xff] }
 0x2b5   :  { %v2911_v51 = vrot.slane %v2909_v6, 7  ;;  %v3181_v43 = vrot.slane %v3180_v12, 4  ;;  %14154 = vst [vmem:[#allocation79_spill] sm:$0xff] %v10512_v42  ;;  %3929 = vmatpush.bf16.msra.mxu2 %v8183_v11  ;;  %v14160_v11 = vpack.c.b16 %v14158_v30, %v14159_v18  ;;  %v14164_v18 = vld [vmem:[#allocation11_spill] sm:$0xff] }
 0x2b6   :  { %14157 = vst [vmem:[#allocation82_spill] sm:$0xff] %v10525_v8 }
 0x2b7   :  { %v3186_v16 = vsel %vm9472_vm13, %v3181_v43, %v3185_v35  ;;  %v2914_v6 = vor.u32 %v2912_v9, %v2911_v51  ;;  %v8181_v35 = vld [vmem:[%s13849_s9 + $0x8] sm:$0xff]  ;;  %v7671_v43 = vrot.slane %v10462_v1, 9  ;;  %v2148_v51 = vsel %vm2073_vm14, %v14160_v11, %v10444_v7  ;;  %v10543_v3 = vpop.f32.mrf.mxu3  ;;  %v10545_v9 = vpop.f32.mrf.mxu2 }
 0x2b8   :  { %v10523_v61 = vunpack.c.l.b16 %v3186_v16  ;;  %14161 = vst [vmem:[#allocation15_spill] sm:$0xff] %v10543_v3 }
 0x2b9   :  { %3930 = vmatpush.bf16.msra.mxu2 %v8182_v21  ;;  %14162 = vst [vmem:[#allocation21_spill] sm:$0xff] %v10545_v9  ;;  %v2982_v16 = vsel %vm9328_vm4, 0, %v2914_v6  ;;  %v10551_v1 = vsel %vm9413_vm9, %v7671_v43, %v3301_v62 }
 0x2ba   :  { %14156 = vst [vmem:[#allocation81_spill] sm:$0xff] %v10523_v61  ;;  %v10527_v12 = vpop.permute.xlu1 %2057  ;;  %v3399_v32 = vpack.c.b16 %v10523_v61, %v9494_v52  ;;  %v2998_v7 = vsel %vm9350_vm6, %v2982_v16, 0  ;;  %v14167_v16 = vld [vmem:[#allocation42_spill] sm:$0xff] }
 0x2bb   :  { %v10556_v21 = vpop.f32.mrf.mxu0  ;;  %v10560_v30 = vunpack.c.l.b16 %v2998_v7  ;;  %v2063_v58 = vpack.c.b16 %v9373_v38, %v14167_v16 }
 0x2bc   :  { %3411 = vrot.lane.b32.xlu2 %v3399_v32, %s8394_s4  ;;  %2843 = vrot.lane.b32.xlu1 %v2812_v20, %s8391_s28  ;;  %14163 = vst [vmem:[#allocation83_spill] sm:$0xff] %v10556_v21  ;;  %v2517_v32 = vpop.f32.mrf.mxu1 }
 0x2bd   :  { %2604 = vmatmul.bf16.gmra.mxu3 %v2148_v51  ;;  %3931 = vmatpush.bf16.msra.mxu2 %v8181_v35  ;;  %v2518_v6 = vadd.f32 %v10172_v23, %v2517_v32  ;;  %v3036_v35 = vunpack.c.h.b16 %v2998_v7  ;;  %v10569_v62 = vpack.c.b16 %v10560_v30, %v10560_v30 }
 0x2bf   :  { %v10565_v43 = vpop.f32.mrf.mxu3  ;;  %v2566_v11 = vpop.f32.mrf.mxu2  ;;  %v3188_v7 = vshrl.u32 %v10569_v62, 16  ;;  %v3191_v14 = vshll.u32 %v10569_v62, 16 }
 0x2c0   :  { %14165 = vst [vmem:[#allocation11_spill] sm:$0xff] %v10565_v43  ;;  %v10571_v51 = vadd.f32 %v2566_v11, %v2518_v6 }
 0x2c1   :  { %3932 = vmatpush.bf16.msra.mxu2 %v8180_v10  ;;  %v10577_v10 = vpack.c.b16 %v3036_v35, %v3036_v35  ;;  %v3190_v27 = vrot.slane %v3188_v7, 4  ;;  %v3193_v60 = vrot.slane %v3191_v14, 5 }
 0x2c2   :  { %v2838_v20 = vpop.permute.xlu1 %2837  ;;  %14166 = vst [vmem:[#allocation84_spill] sm:$0xff] %v10571_v51 }
 0x2c3   :  { %v10575_v9 = vpop.f32.mrf.mxu0  ;;  %v3197_v6 = vshll.u32 %v10577_v10, 16  ;;  %v3194_v37 = vor.u32 %v3193_v60, %v3190_v27 }
 0x2c4   :  { %7657 = vmatmul.msk.bf16.gmra.mxu1 %vm2073_vm14, %v14164_v18  ;;  %14168 = vst [vmem:[#allocation42_spill] sm:$0xff] %v10575_v9 }
 0x2c5   :  { %v3195_v16 = vrot.slane %v3194_v37, 4  ;;  %v3199_v51 = vrot.slane %v3197_v6, 5  ;;  %v14174_v37 = vld [vmem:[#allocation43_spill] sm:$0xff] }
 0x2c7   :  { %v10583_v11 = vpop.f32.mrf.mxu3 }
 0x2c8   :  { %14169 = vst [vmem:[#allocation85_spill] sm:$0xff] %v10583_v11 }
 0x2ca   :  { %v2068_v32 = vpop.permute.xlu1 %2067 }
 0x2cb   :  { %v2172_v18 = vsel %vm2073_vm14, %v2063_v58, %v2068_v32  ;;  %v10585_v21 = vpop.f32.mrf.mxu0  ;;  %v3200_v58 = vsel %vm9472_vm13, %v3195_v16, %v3199_v51  ;;  %v3373_v32 = vpack.c.b16 %v10185_v29, %v9373_v38  ;;  %v14175_v51 = vunpack.c.l.b16 %v14174_v37  ;;  %v14176_v16 = vld [vmem:[#allocation22_spill] sm:$0xff] }
 0x2cc   :  { %2658 = vmatmul.bf16.gmra.mxu0 %v2172_v18  ;;  %14170 = vst [vmem:[#allocation86_spill] sm:$0xff] %v10585_v21  ;;  %v10591_v35 = vunpack.c.l.b16 %v3200_v58  ;;  %v14177_v58 = vpack.c.b16 %v9768_v39, %v14176_v16  ;;  %v2056_v39 = vpop.permute.xlu0 %2055 }
 0x2cd   :  { %v2071_v7 = vpack.c.b16 %v9789_v31, %v14175_v51 }
 0x2ce   :  { %14171 = vst [vmem:[#allocation87_spill] sm:$0xff] %v10591_v35 }
 0x2cf   :  { %v10597_v18 = vpop.f32.mrf.mxu3 }
 0x2d0   :  { %14172 = vst [vmem:[#allocation88_spill] sm:$0xff] %v10597_v18 }
 0x2d4   :  { %7658 = vmatmul.msk.bf16.gmra.mxu1 %vm2073_vm14, %v9692_v33  ;;  %v10601_v33 = vpop.f32.mrf.mxu0 }
 0x2d5   :  { %14173 = vst [vmem:[#allocation89_spill] sm:$0xff] %v10601_v33 }
 0x2d7   :  { %v10611_v61 = vpop.f32.mrf.mxu3 }
 0x2d8   :  { %14178 = vst [vmem:[#allocation43_spill] sm:$0xff] %v10611_v61 }
 0x2db   :  { %v3404_v27 = vpop.permute.xlu2 %3403 }
 0x2dc   :  { %v3513_v60 = vsel %vm2073_vm14, %v3373_v32, %v3404_v27  ;;  %2663 = vmatmul.bf16.gmra.mxu0 %v10265_v19  ;;  %v10613_v32 = vpop.f32.mrf.mxu0  ;;  %v2930_v19 = vshrl.u32 %v2838_v20, 16 }
 0x2dd   :  { %3933 = vmatmul.bf16.vlgmr.msra.gmra.mxu2 %v3513_v60  ;;  %14179 = vst [vmem:[#allocation22_spill] sm:$0xff] %v10613_v32 }
 0x2de   :  { %v2932_v37 = vrot.slane %v2930_v19, 7  ;;  %v14182_v19 = vld [vmem:[#allocation24_spill] sm:$0xff] }
 0x2df   :  { %v10616_v33 = vpop.f32.mrf.mxu3 }
 0x2e0   :  { %14180 = vst [vmem:[#allocation90_spill] sm:$0xff] %v10616_v33 }
 0x2e3   :  { %v2054_v6 = vpop.permute.xlu2 %2053 }
 0x2e4   :  { %7659 = vmatmul.msk.bf16.gmra.mxu1 %vm2073_vm14, %v2071_v7  ;;  %v2152_v14 = vsel %vm2073_vm14, %v14177_v58, %v2054_v6  ;;  %v2933_v7 = vshll.u32 %v2838_v20, 16  ;;  %v10618_v6 = vpop.f32.mrf.mxu0 }
 0x2e5   :  { %2609 = vmatmul.bf16.gmra.mxu3 %v2152_v14  ;;  %14181 = vst [vmem:[#allocation91_spill] sm:$0xff] %v10618_v6 }
 0x2e6   :  { %v2935_v16 = vor.u32 %v2933_v7, %v2932_v37 }
 0x2eb   :  { %v2834_v27 = vpop.permute.xlu2 %2833 }
 0x2ec   :  { %v2916_v60 = vshrl.u32 %v2834_v27, 16  ;;  %2668 = vmatmul.bf16.gmra.mxu0 %v10327_v63  ;;  %v2919_v21 = vshll.u32 %v2834_v27, 16  ;;  %v14183_v27 = vld [vmem:[#allocation23_spill] sm:$0xff]  ;;  %v10646_v6 = vpop.f32.mrf.mxu0 }
 0x2ed   :  { %v14184_v20 = vpack.c.b16 %v14182_v19, %v14183_v27  ;;  %v10642_v19 = vpop.f32.mrf.mxu1  ;;  %14187 = vst [vmem:[#allocation92_spill] sm:$0xff] %v10646_v6 }
 0x2ee   :  { %v2918_v51 = vrot.slane %v2916_v60, 7  ;;  %v2985_v60 = vsel %vm9328_vm4, 0, %v2935_v16  ;;  %14186 = vst [vmem:[#allocation23_spill] sm:$0xff] %v10642_v19 }
 0x2f0   :  { %v2921_v11 = vor.u32 %v2919_v21, %v2918_v51  ;;  %v2156_v21 = vsel %vm2073_vm14, %v14184_v20, %v2056_v39  ;;  %v3001_v51 = vsel %vm9350_vm6, %v2985_v60, 0 }
 0x2f1   :  { %v10644_v16 = vunpack.c.l.b16 %v3001_v51 }
 0x2f2   :  { %v2983_v14 = vsel %vm9328_vm4, 0, %v2921_v11 }
 0x2f3   :  { %v2999_v58 = vsel %vm9350_vm6, %v2983_v14, 0  ;;  %v10638_v7 = vpop.permute.xlu2 %2059  ;;  %v10640_v14 = vpop.f32.mrf.mxu3 }
 0x2f4   :  { %v10624_v18 = vunpack.c.l.b16 %v2999_v58  ;;  %v3038_v63 = vunpack.c.h.b16 %v2999_v58  ;;  %7660 = vmatmul.msk.bf16.gmra.mxu1 %vm2073_vm14, %v10226_v5  ;;  %14185 = vst [vmem:[#allocation24_spill] sm:$0xff] %v10640_v14  ;;  %v10659_v14 = vpop.f32.mrf.mxu2  ;;  %v10692_v3 = vpop.f32.mrf.mxu0 }
 0x2f5   :  { %2614 = vmatmul.bf16.gmra.mxu3 %v2156_v21  ;;  %14189 = vst [vmem:[#allocation93_spill] sm:$0xff] %v10659_v14  ;;  %v8210_v14 = vld [vmem:[%s13849_s9 + $0xf0] sm:$0xff] }
 0x2f6   :  { %v3065_v11 = vpack.c.b16 %v10624_v18, %v10624_v18  ;;  %v3066_v37 = vpack.c.b16 %v3038_v63, %v3038_v63  ;;  %v14188_v63 = vpack.c.b16 %v10140_v22, %v10217_v0  ;;  %14192 = vst [vmem:[#allocation95_spill] sm:$0xff] %v10692_v3  ;;  %v14196_v3 = vpack.c.b16 %v10334_v50, %v10156_v56 }
 0x2f8   :  { %v3202_v5 = vshrl.u32 %v3065_v11, 16  ;;  %v3205_v58 = vshll.u32 %v3065_v11, 16  ;;  %v3211_v20 = vshll.u32 %v3066_v37, 16  ;;  %v3309_v15 = vrot.slane %v3066_v37, 5 }
 0x2fa   :  { %v3204_v39 = vrot.slane %v3202_v5, 4  ;;  %v3207_v27 = vrot.slane %v3205_v58, 5  ;;  %v3213_v5 = vrot.slane %v3211_v20, 5  ;;  %v8211_v58 = vld [vmem:[%s13849_s9 + $0xf8] sm:$0xff]  ;;  %v3305_v20 = vrot.slane %v10577_v10, 5 }
 0x2fb   :  { %v3406_v21 = vpop.permute.xlu0 %3405  ;;  %4072 = vmatpush.bf16.msra.mxu1 %v8211_v58 }
 0x2fc   :  { %2673 = vmatmul.bf16.gmra.mxu0 %v10409_v46  ;;  %v10653_v60 = vsel %vm2073_vm14, %v14188_v63, %v3406_v21  ;;  %v3208_v33 = vor.u32 %v3207_v27, %v3204_v39  ;;  %v10663_v46 = vpack.c.b16 %v10644_v16, %v10644_v16  ;;  %v10671_v63 = vpop.f32.mrf.mxu3 }
 0x2fd   :  { %3938 = vmatmul.bf16.gmra.mxu2 %v10653_v60  ;;  %14190 = vst [vmem:[#allocation94_spill] sm:$0xff] %v10671_v63  ;;  %v3042_v63 = vunpack.c.h.b16 %v3001_v51 }
 0x2fe   :  { %v3209_v19 = vrot.slane %v3208_v33, 4  ;;  %v3408_v6 = vpop.permute.xlu2 %3407  ;;  %v7672_v33 = vrot.slane %v10569_v62, 9  ;;  %v14191_v62 = vpack.c.b16 %v10001_v54, %v9933_v49  ;;  %v8209_v49 = vld [vmem:[%s13849_s9 + $0xe8] sm:$0xff] }
 0x2ff   :  { %4073 = vmatpush.bf16.msra.mxu1 %v8210_v14  ;;  %v2571_v54 = vpop.f32.mrf.mxu2  ;;  %v10729_v43 = vsel %vm2073_vm14, %v14196_v3, %v3408_v6 }
 0x300   :  { %v3214_v21 = vsel %vm9472_vm13, %v3209_v19, %v3213_v5  ;;  %v3230_v19 = vshrl.u32 %v10663_v46, 16  ;;  %v3233_v5 = vshll.u32 %v10663_v46, 16  ;;  %v2160_v10 = vsel %vm2073_vm14, %v14191_v62, %v10527_v12 }
 0x301   :  { %v2522_v39 = vpop.f32.mrf.mxu1  ;;  %v10667_v27 = vunpack.c.l.b16 %v3214_v21  ;;  %v7673_v21 = vrot.slane %v3065_v11, 9 }
 0x302   :  { %v3232_v12 = vrot.slane %v3230_v19, 4  ;;  %v3235_v11 = vrot.slane %v3233_v5, 5 }
 0x303   :  { %v2836_v32 = vpop.permute.xlu0 %2835  ;;  %v3400_v61 = vpack.c.b16 %v10667_v27, %v10591_v35  ;;  %v10690_v35 = vsel %vm9413_vm9, %v7672_v33, %v3305_v20  ;;  %4074 = vmatpush.bf16.msra.mxu1 %v8209_v49 }
 0x304   :  { %v2923_v58 = vshrl.u32 %v2836_v32, 16  ;;  %7661 = vmatmul.msk.bf16.gmra.mxu1 %vm2073_vm14, %v9996_v13  ;;  %v2926_v13 = vshll.u32 %v2836_v32, 16  ;;  %v13932_v37 = vunpack.c.l.b16 %v10690_v35  ;;  %v10731_v8 = vpop.f32.mrf.mxu3 }
 0x305   :  { %3413 = vrot.lane.b32.xlu0 %v3400_v61, %s8394_s4  ;;  %2619 = vmatmul.bf16.gmra.mxu3 %v2160_v10  ;;  %v10699_v61 = vsel %vm9413_vm9, %v7673_v21, %v3309_v15  ;;  %v8208_v15 = vld [vmem:[%s13849_s9 + $0xe0] sm:$0xff]  ;;  %14197 = vst [vmem:[#allocation99_spill] sm:$0xff] %v10731_v8 }
 0x306   :  { %v2925_v9 = vrot.slane %v2923_v58, 7  ;;  %14193 = vst [vmem:[#allocation96_spill] sm:$0xff] %v10699_v61  ;;  %v2840_v33 = vpop.permute.xlu2 %2839  ;;  %v13931_v20 = vunpack.c.l.b16 %v10699_v61  ;;  %v10703_v58 = vpack.c.b16 %v3042_v63, %v3042_v63 }
 0x307   :  { %v2937_v32 = vshrl.u32 %v2840_v33, 16  ;;  %v2940_v10 = vshll.u32 %v2840_v33, 16  ;;  %4075 = vmatpush.bf16.msra.mxu1 %v8208_v15 }
 0x308   :  { %v2928_v51 = vor.u32 %v2926_v13, %v2925_v9  ;;  %v8195_v9 = vld [vmem:[%s13849_s9 + $0x78] sm:$0xff]  ;;  %v10719_v63 = vpack.c.b16 %v13931_v20, %v13932_v37  ;;  %v3236_v13 = vor.u32 %v3235_v11, %v3232_v12  ;;  %v2523_v20 = vadd.f32 %v10172_v23, %v2522_v39  ;;  %v10751_v39 = vpop.f32.mrf.mxu0 }
 0x309   :  { %v10705_v14 = vpop.f32.mrf.mxu1  ;;  %v2939_v5 = vrot.slane %v2937_v32, 7  ;;  %3974 = vmatpush.bf16.msra.mxu3 %v8195_v9  ;;  %v14198_v12 = vpack.c.b16 %v10217_v0, %v10185_v29  ;;  %v3239_v11 = vshll.u32 %v10703_v58, 16  ;;  %v8207_v23 = vld [vmem:[%s13849_s9 + $0xd8] sm:$0xff]  ;;  %14199 = vst [vmem:[#allocation100_spill] sm:$0xff] %v10751_v39 }
 0x30a   :  { %14194 = vst [vmem:[#allocation97_spill] sm:$0xff] %v10705_v14  ;;  %v2984_v62 = vsel %vm9328_vm4, 0, %v2928_v51  ;;  %v3237_v0 = vrot.slane %v3236_v13, 4  ;;  %v10761_v37 = vadd.f32 %v2571_v54, %v2523_v20 }
 0x30b   :  { %14195 = vst [vmem:[#allocation98_spill] sm:$0xff] %v10719_v63  ;;  %v3000_v19 = vsel %vm9350_vm6, %v2984_v62, 0  ;;  %v2842_v21 = vpop.permute.xlu0 %2841  ;;  %v2942_v62 = vor.u32 %v2940_v10, %v2939_v5  ;;  %4076 = vmatpush.bf16.msra.mxu1 %v8207_v23  ;;  %v14202_v23 = vpack.c.b16 %v10071_v36, %v10012_v47  ;;  %v8205_v47 = vld [vmem:[%s13849_s9 + $0xc8] sm:$0xff] }
 0x30c   :  { %v10723_v49 = vunpack.c.l.b16 %v3000_v19  ;;  %v3040_v51 = vunpack.c.h.b16 %v3000_v19  ;;  %v2944_v14 = vshrl.u32 %v2842_v21, 16  ;;  %v2947_v32 = vshll.u32 %v2842_v21, 16  ;;  %v10759_v21 = vpop.f32.mrf.mxu2  ;;  %14201 = vst [vmem:[#allocation102_spill] sm:$0xff] %v10761_v37  ;;  %v10794_v8 = vpop.f32.mrf.mxu3 }
 0x30d   :  { %3449 = vrot.lane.b32.xlu0 %v14198_v12, %s8394_s4  ;;  %3943 = vmatmul.bf16.gmra.mxu2 %v10729_v43  ;;  %v2986_v29 = vsel %vm9328_vm4, 0, %v2942_v62  ;;  %14200 = vst [vmem:[#allocation101_spill] sm:$0xff] %v10759_v21  ;;  %v3241_v12 = vrot.slane %v3239_v11, 5 }
 0x30e   :  { %v10742_v33 = vpack.c.b16 %v10723_v49, %v10723_v49  ;;  %v10744_v3 = vpack.c.b16 %v3040_v51, %v3040_v51  ;;  %v2946_v6 = vrot.slane %v2944_v14, 7  ;;  %v3002_v9 = vsel %vm9350_vm6, %v2986_v29, 0  ;;  %14203 = vst [vmem:[#allocation103_spill] sm:$0xff] %v10794_v8 }
 0x30f   :  { %v10757_v10 = vunpack.c.l.b16 %v3002_v9  ;;  %v3044_v15 = vunpack.c.h.b16 %v3002_v9  ;;  %v3242_v11 = vsel %vm9472_vm13, %v3237_v0, %v3241_v12 }
 0x310   :  { %v2949_v19 = vor.u32 %v2947_v32, %v2946_v6  ;;  %v3216_v5 = vshrl.u32 %v10742_v33, 16  ;;  %v3219_v14 = vshll.u32 %v10742_v33, 16  ;;  %v3225_v6 = vshll.u32 %v10744_v3, 16  ;;  %v8206_v32 = vld [vmem:[%s13849_s9 + $0xd0] sm:$0xff] }
 0x311   :  { %v2527_v51 = vpop.f32.mrf.mxu1  ;;  %v10771_v29 = vpack.c.b16 %v10757_v10, %v10757_v10  ;;  %v10786_v21 = vpack.c.b16 %v3044_v15, %v3044_v15  ;;  %4077 = vmatpush.bf16.msra.mxu1 %v8206_v32  ;;  %v3313_v42 = vrot.slane %v10744_v3, 5 }
 0x312   :  { %v2987_v13 = vsel %vm9328_vm4, 0, %v2949_v19  ;;  %v3218_v62 = vrot.slane %v3216_v5, 4  ;;  %v3221_v63 = vrot.slane %v3219_v14, 5  ;;  %v2164_v14 = vsel %vm2073_vm14, %v14202_v23, %v10638_v7 }
 0x313   :  { %v3003_v54 = vsel %vm9350_vm6, %v2987_v13, 0  ;;  %v2828_v20 = vpop.permute.xlu0 %2827  ;;  %v3244_v39 = vshrl.u32 %v10771_v29, 16  ;;  %v3247_v0 = vshll.u32 %v10771_v29, 16  ;;  %v3227_v37 = vrot.slane %v3225_v6, 5 }
 0x314   :  { %v10777_v9 = vunpack.c.l.b16 %v3003_v54  ;;  %v3046_v19 = vunpack.c.h.b16 %v3003_v54  ;;  %v2895_v5 = vshrl.u32 %v2828_v20, 16  ;;  %7662 = vmatmul.msk.bf16.gmra.mxu1 %vm2073_vm14, %v10049_v41  ;;  %v3222_v13 = vor.u32 %v3221_v63, %v3218_v62 }
 0x315   :  { %2624 = vmatmul.bf16.gmra.mxu3 %v2164_v14  ;;  %v2898_v41 = vshll.u32 %v2828_v20, 16  ;;  %v3246_v63 = vrot.slane %v3244_v39, 4  ;;  %v3249_v15 = vrot.slane %v3247_v0, 5  ;;  %v3253_v20 = vshll.u32 %v10786_v21, 16  ;;  %v8203_v39 = vld [vmem:[%s13849_s9 + $0xb8] sm:$0xff]  ;;  %4078 = vmatpush.bf16.msra.mxu1 %v8205_v47 }
 0x316   :  { %v10792_v12 = vpack.c.b16 %v10777_v9, %v10777_v9  ;;  %v2897_v54 = vrot.slane %v2895_v5, 7  ;;  %v10799_v36 = vpack.c.b16 %v3046_v19, %v3046_v19  ;;  %v3223_v7 = vrot.slane %v3222_v13, 4  ;;  %v8215_v19 = vld [vmem:[%s13849_s9 + $0x118] sm:$0xff]  ;;  %4023 = vmatpush.bf16.msra.mxu0 %v8203_v39 }
 0x317   :  { %v3250_v32 = vor.u32 %v3249_v15, %v3246_v63  ;;  %v7675_v13 = vrot.slane %v10663_v46, 9  ;;  %v10824_v63 = vpop.f32.mrf.mxu0  ;;  %v2576_v15 = vpop.f32.mrf.mxu2  ;;  %4125 = vmatpush.bf16.msrb.mxu2 %v8215_v19  ;;  %v7674_v39 = vrot.slane %v10742_v33, 9  ;;  %v7676_v33 = vrot.slane %v10771_v29, 9 }
 0x318   :  { %v2900_v62 = vor.u32 %v2898_v41, %v2897_v54  ;;  %v3258_v23 = vshrl.u32 %v10792_v12, 16  ;;  %v3261_v14 = vshll.u32 %v10792_v12, 16  ;;  %v3228_v6 = vsel %vm9472_vm13, %v3223_v7, %v3227_v37  ;;  %v8204_v7 = vld [vmem:[%s13849_s9 + $0xc0] sm:$0xff]  ;;  %14205 = vst [vmem:[#allocation105_spill] sm:$0xff] %v10824_v63 }
 0x319   :  { %v10803_v5 = vpop.f32.mrf.mxu1  ;;  %v10817_v54 = vunpack.c.l.b16 %v3228_v6  ;;  %v10819_v41 = vunpack.c.l.b16 %v3242_v11  ;;  %v3251_v46 = vrot.slane %v3250_v32, 4  ;;  %v8309_v11 = vld [vmem:[%s13848_s8] ss:$0 sm:$0xff]  ;;  %v8194_v32 = vld [vmem:[%s13849_s9 + $0x70] sm:$0xff]  ;;  %4079 = vmatpush.bf16.msra.mxu1 %v8204_v7 }
 0x31a   :  { %14204 = vst [vmem:[#allocation104_spill] sm:$0xff] %v10803_v5  ;;  %v2980_v0 = vsel %vm9328_vm4, 0, %v2900_v62  ;;  %v3260_v37 = vrot.slane %v3258_v23, 4  ;;  %v3263_v8 = vrot.slane %v3261_v14, 5  ;;  %v3267_v62 = vshll.u32 %v10799_v36, 16  ;;  %3975 = vmatpush.bf16.msra.mxu3 %v8194_v32 }
 0x31b   :  { %v10828_v5 = vsel %vm9350_vm6, %v2980_v0, 0  ;;  %v2528_v47 = vadd.f32 %v8309_v11, %v2527_v51  ;;  %v3401_v23 = vpack.c.b16 %v10819_v41, %v10817_v54  ;;  %v3317_v14 = vrot.slane %v10703_v58, 5  ;;  %v2062_v61 = vpop.permute.xlu0 %2061 }
 0x31c   :  { %v10837_v6 = vunpack.c.l.b16 %v10828_v5  ;;  %v3255_v0 = vrot.slane %v3253_v20, 5  ;;  %v3264_v19 = vor.u32 %v3263_v8, %v3260_v37  ;;  %v3269_v4 = vrot.slane %v3267_v62, 5 }
 0x31d   :  { %3415 = vrot.lane.b32.xlu1 %v3401_v23, %s8394_s4  ;;  %v10853_v8 = vsel %vm9413_vm9, %v7675_v13, %v3317_v14  ;;  %v3321_v20 = vrot.slane %v10786_v21, 5  ;;  %v10857_v37 = vadd.f32 %v2576_v15, %v2528_v47  ;;  %v10864_v62 = vsel %vm9413_vm9, %v7674_v39, %v3313_v42 }
 0x31e   :  { %v3444_v51 = vpack.c.b16 %v10837_v6, %v10401_v28  ;;  %v3256_v63 = vsel %vm9472_vm13, %v3251_v46, %v3255_v0  ;;  %v3265_v48 = vrot.slane %v3264_v19, 4  ;;  %v14206_v23 = vunpack.c.l.b16 %v10065_v55 }
 0x31f   :  { %v10869_v32 = vunpack.c.l.b16 %v3256_v63  ;;  %v13939_v21 = vunpack.c.l.b16 %v10864_v62  ;;  %v7677_v42 = vrot.slane %v10792_v12, 9  ;;  %v3325_v63 = vrot.slane %v10799_v36, 5  ;;  %v2644_v47 = vpop.f32.mrf.mxu0  ;;  %v10893_v14 = vpop.f32.mrf.mxu2 }
 0x320   :  { %v2595_v58 = vpop.f32.mrf.mxu3  ;;  %3455 = vrot.lane.b32.xlu0 %v3444_v51, %s8394_s4  ;;  %v3270_v3 = vsel %vm9472_vm13, %v3265_v48, %v3269_v4  ;;  %v2072_v13 = vpack.c.b16 %v9789_v31, %v14206_v23  ;;  %v13938_v48 = vunpack.c.l.b16 %v10853_v8  ;;  %14208 = vst [vmem:[#allocation106_spill] sm:$0xff] %v10893_v14  ;;  %v3376_v0 = vpack.c.b16 %v10401_v28, %v10369_v44 }
 0x321   :  { %v2596_v7 = vadd.f32 %v2595_v58, %v10188_v57  ;;  %v2532_v46 = vpop.f32.mrf.mxu1  ;;  %v10871_v29 = vunpack.c.l.b16 %v3270_v3  ;;  %v14207_v57 = vpack.c.b16 %v10107_v34, %v10061_v2  ;;  %v8202_v2 = vld [vmem:[%s13849_s9 + $0xb0] sm:$0xff]  ;;  %v14209_v36 = vpack.c.b16 %v10156_v56, %v10140_v22 }
 0x322   :  { %v10901_v12 = vpack.c.b16 %v13938_v48, %v13939_v21  ;;  %v3447_v39 = vpack.c.b16 %v10757_v10, %v10644_v16  ;;  %v10912_v28 = vsel %vm9413_vm9, %v7677_v42, %v3325_v63  ;;  %4024 = vmatpush.bf16.msra.mxu0 %v8202_v2  ;;  %v13936_v4 = vunpack.c.l.b16 %v10551_v1 }
 0x323   :  { %v2168_v15 = vsel %vm2073_vm14, %v14207_v57, %v2062_v61  ;;  %v3402_v55 = vpack.c.b16 %v10871_v29, %v10869_v32  ;;  %v10891_v61 = vsel %vm9413_vm9, %v7676_v33, %v3321_v20  ;;  %v3432_v58 = vunpack.c.l.b16 %v10912_v28 }
 0x324   :  { %7663 = vmatmul.msk.bf16.gmra.mxu1 %vm2073_vm14, %v2072_v13  ;;  %v13937_v33 = vunpack.c.l.b16 %v10891_v61  ;;  %v2533_v13 = vadd.f32 %v8309_v11, %v2532_v46  ;;  %v3445_v57 = vpack.c.b16 %v10560_v30, %v10448_v17  ;;  %v14212_v46 = vld [vmem:[#allocation54_spill] sm:$0xff] }
 0x325   :  { %2629 = vmatmul.bf16.gmra.mxu3 %v2168_v15  ;;  %3451 = vrot.lane.b32.xlu1 %v14209_v36, %s8394_s4  ;;  %v8193_v15 = vld [vmem:[%s13849_s9 + $0x68] sm:$0xff]  ;;  %v2645_v36 = vadd.f32 %v2644_v47, %v2596_v7  ;;  %v8214_v7 = vld [vmem:[%s13849_s9 + $0x110] sm:$0xff] }
 0x326   :  { %3417 = vrot.lane.b32.xlu2 %v3402_v55, %s8394_s4  ;;  %v3410_v19 = vpop.permute.xlu1 %3409  ;;  %v10931_v3 = vpack.c.b16 %v3432_v58, %v13937_v33  ;;  %v14211_v55 = vpack.c.b16 %v10369_v44, %v10334_v50  ;;  %3976 = vmatpush.bf16.msra.mxu3 %v8193_v15  ;;  %v2066_v15 = vpack.c.b16 %v9494_v52, %v10107_v34 }
 0x327   :  { %v10915_v51 = vsel %vm2073_vm14, %v3376_v0, %v3410_v19  ;;  %v10945_v63 = vpop.f32.mrf.mxu0  ;;  %v2581_v2 = vpop.f32.mrf.mxu2  ;;  %4126 = vmatpush.bf16.msrb.mxu2 %v8214_v7 }
 0x328   :  { %v10921_v56 = vpop.f32.mrf.mxu3  ;;  %3948 = vmatmul.bf16.gmra.mxu2 %v10915_v51  ;;  %3461 = vrot.lane.b32.xlu0 %v3447_v39, %s8394_s4  ;;  %v10949_v19 = vadd.f32 %v2581_v2, %v2533_v13  ;;  %v14213_v13 = vunpack.c.l.b16 %v10690_v35 }
 0x329   :  { %v10925_v20 = vpop.f32.mrf.mxu1 }
 0x32a   :  { %14210 = vst [vmem:[#allocation107_spill] sm:$0xff] %v10925_v20 }
 0x32d   :  { %3457 = vrot.lane.b32.xlu1 %v3445_v57, %s8394_s4 }
 0x32e   :  { %3453 = vrot.lane.b32.xlu2 %v14211_v55, %s8394_s4  ;;  %v2844_v42 = vpop.permute.xlu1 %2843  ;;  %v3412_v55 = vpop.permute.xlu2 %3411 }
 0x32f   :  { %v2951_v0 = vshrl.u32 %v2844_v42, 16  ;;  %v2954_v57 = vshll.u32 %v2844_v42, 16  ;;  %v3481_v42 = vpack.c.b16 %v14213_v13, %v13936_v4 }
 0x330   :  { %v2600_v11 = vpop.f32.mrf.mxu3  ;;  %3487 = vrot.lane.b32.xlu0 %v14212_v46, %s8394_s4  ;;  %v2649_v46 = vpop.f32.mrf.mxu0 }
 0x331   :  { %v2953_v39 = vrot.slane %v2951_v0, 7  ;;  %v2601_v23 = vadd.f32 %v2600_v11, %v10360_v53  ;;  %v2693_v22 = vpop.f32.mrf.mxu1  ;;  %v8201_v53 = vld [vmem:[%s13849_s9 + $0xa8] sm:$0xff] }
 0x332   :  { %v10952_v50 = vadd.f32 %v2693_v22, %v2645_v36  ;;  %v3377_v22 = vpack.c.b16 %v10448_v17, %v9373_v38  ;;  %4025 = vmatpush.bf16.msra.mxu0 %v8201_v53  ;;  %v3330_v36 = vunpack.c.h.b16 %v10828_v5  ;;  %v8192_v5 = vld [vmem:[%s13849_s9 + $0x60] sm:$0xff] }
 0x333   :  { %v2956_v44 = vor.u32 %v2954_v57, %v2953_v39  ;;  %3977 = vmatpush.bf16.msra.mxu3 %v8192_v5  ;;  %v2650_v21 = vadd.f32 %v2649_v46, %v2601_v23 }
 0x334   :  { %4080 = vmatmul.bf16.vlgmr.msra.gmra.mxu1 %v10653_v60  ;;  %v3333_v60 = vpack.c.b16 %v10837_v6, %v10837_v6  ;;  %v3529_v0 = vsel %vm2073_vm14, %v3377_v22, %v3412_v55  ;;  %v3334_v13 = vpack.c.b16 %v3330_v36, %v3330_v36 }
 0x335   :  { %v2988_v47 = vsel %vm9328_vm4, 0, %v2956_v44 }
 0x336   :  { %v3004_v34 = vsel %vm9350_vm6, %v2988_v47, 0  ;;  %2069 = vrot.lane.b32.xlu2 %v2066_v15, %s8394_s4  ;;  %v3338_v55 = vshrl.u32 %v3333_v60, 16  ;;  %v3341_v15 = vshll.u32 %v3333_v60, 16  ;;  %v3446_v47 = vpack.c.b16 %v10723_v49, %v10624_v18 }
 0x337   :  { %v3332_v2 = vunpack.c.h.b16 %v3004_v34  ;;  %v10978_v11 = vunpack.c.l.b16 %v3004_v34  ;;  %v3367_v20 = vrot.slane %v3334_v13, 5 }
 0x338   :  { %v10980_v17 = vpop.f32.mrf.mxu3  ;;  %3953 = vmatmul.bf16.gmra.mxu2 %v3529_v0  ;;  %3493 = vrot.lane.b32.xlu0 %v3481_v42, %s8394_s4  ;;  %v3340_v0 = vrot.slane %v3338_v55, 4  ;;  %v11013_v23 = vpop.f32.mrf.mxu0 }
 0x339   :  { %v3336_v39 = vpack.c.b16 %v3332_v2, %v3332_v2  ;;  %v10984_v57 = vpop.f32.mrf.mxu1  ;;  %v3335_v35 = vpack.c.b16 %v10978_v11, %v10978_v11  ;;  %v3448_v44 = vpack.c.b16 %v10978_v11, %v10777_v9  ;;  %14215 = vst [vmem:[#allocation108_spill] sm:$0xff] %v11013_v23 }
 0x33b   :  { %3463 = vrot.lane.b32.xlu1 %v3448_v44, %s8394_s4  ;;  %v7679_v7 = vrot.slane %v3335_v35, 9  ;;  %v3371_v53 = vrot.slane %v3336_v39, 5  ;;  %v3352_v22 = vshrl.u32 %v3335_v35, 16  ;;  %v3355_v34 = vshll.u32 %v3335_v35, 16 }
 0x33c   :  { %v3343_v44 = vrot.slane %v3341_v15, 5  ;;  %v8200_v15 = vld [vmem:[%s13849_s9 + $0xa0] sm:$0xff] }
 0x33d   :  { %v10998_v42 = vsel %vm9413_vm9, %v7679_v7, %v3371_v53  ;;  %v3354_v4 = vrot.slane %v3352_v22, 4  ;;  %v3357_v33 = vrot.slane %v3355_v34, 5  ;;  %v7678_v53 = vrot.slane %v3333_v60, 9  ;;  %4026 = vmatpush.bf16.msra.mxu0 %v8200_v15 }
 0x33e   :  { %3459 = vrot.lane.b32.xlu2 %v3446_v47, %s8394_s4  ;;  %v13940_v2 = vunpack.c.l.b16 %v10998_v42  ;;  %v3344_v55 = vor.u32 %v3343_v44, %v3340_v0 }
 0x33f   :  { %v3358_v28 = vor.u32 %v3357_v33, %v3354_v4 }
 0x340   :  { %v2605_v48 = vpop.f32.mrf.mxu3  ;;  %v3484_v36 = vpack.c.b16 %v13940_v2, %v3432_v58  ;;  %v14216_v58 = vld [vmem:[#allocation64_spill] sm:$0xff]  ;;  %v3345_v60 = vrot.slane %v3344_v55, 4  ;;  %v2654_v15 = vpop.f32.mrf.mxu0 }
 0x341   :  { %v2606_v35 = vadd.f32 %v2605_v48, %v10431_v26  ;;  %v2698_v7 = vpop.f32.mrf.mxu1  ;;  %v3347_v26 = vshll.u32 %v3334_v13, 16  ;;  %v3361_v48 = vshll.u32 %v3336_v39, 16  ;;  %v3359_v46 = vrot.slane %v3358_v28, 4  ;;  %v14222_v39 = vld [vmem:[#allocation79_spill] sm:$0xff] }
 0x342   :  { %v11007_v47 = vadd.f32 %v2698_v7, %v2650_v21  ;;  %3499 = vrot.lane.b32.xlu0 %v3484_v36, %s8394_s4  ;;  %v11020_v21 = vsel %vm9413_vm9, %v7678_v53, %v3367_v20  ;;  %v14221_v20 = vld [vmem:[#allocation26_spill] sm:$0xff]  ;;  %v13942_v0 = vunpack.c.l.b16 %v14222_v39  ;;  %v14224_v53 = vld [vmem:[#allocation63_spill] sm:$0xff] }
 0x343   :  { %3489 = vrot.lane.b32.xlu1 %v10497_v59, %s8394_s4  ;;  %v13941_v5 = vunpack.c.l.b16 %v11020_v21  ;;  %v3349_v22 = vrot.slane %v3347_v26, 5  ;;  %v14218_v59 = vld [vmem:[#allocation96_spill] sm:$0xff]  ;;  %v3363_v13 = vrot.slane %v3361_v48, 5  ;;  %v14223_v7 = vld [vmem:[#allocation46_spill] sm:$0xff] }
 0x344   :  { %14214 = vst [vmem:[#allocation54_spill] sm:$0xff] %v11007_v47  ;;  %4085 = vmatmul.bf16.gmra.mxu1 %v10729_v43  ;;  %v14219_v4 = vunpack.c.l.b16 %v14218_v59  ;;  %v14220_v43 = vunpack.c.l.b16 %v10864_v62  ;;  %v953_v55 = vadd.f32 %v14224_v53, %v14223_v7  ;;  %v8191_v26 = vld [vmem:[%s13849_s9 + $0x58] sm:$0xff]  ;;  %v14230_v7 = vld [vmem:[#allocation62_spill] sm:$0xff] }
 0x345   :  { %v3350_v44 = vsel %vm9472_vm13, %v3345_v60, %v3349_v22  ;;  %v3364_v36 = vsel %vm9472_vm13, %v3359_v46, %v3363_v13  ;;  %v3480_v62 = vpack.c.b16 %v13941_v5, %v13942_v0  ;;  %3978 = vmatpush.bf16.msra.mxu3 %v8191_v26  ;;  %v2655_v46 = vadd.f32 %v2654_v15, %v2606_v35  ;;  %v8199_v35 = vld [vmem:[%s13849_s9 + $0x98] sm:$0xff]  ;;  %v14262_v5 = vld [vmem:[#allocation83_spill] sm:$0xff] }
 0x346   :  { %3485 = vrot.lane.b32.xlu2 %v14216_v58, %s8394_s4  ;;  %v3482_v33 = vpack.c.b16 %v14220_v43, %v14219_v4  ;;  %v11045_v28 = vunpack.c.l.b16 %v3350_v44  ;;  %v11051_v48 = vunpack.c.l.b16 %v3364_v36  ;;  %v14225_v58 = vld [vmem:[#allocation66_spill] sm:$0xff]  ;;  %v14227_v13 = vunpack.c.l.b16 %v10853_v8  ;;  %v14229_v36 = vld [vmem:[#allocation44_spill] sm:$0xff]  ;;  %4027 = vmatpush.bf16.msra.mxu0 %v8199_v35 }
 0x347   :  { %v1002_v60 = vadd.f32 %v14225_v58, %v953_v55  ;;  %v951_v53 = vadd.f32 %v14230_v7, %v14229_v36  ;;  %v8190_v55 = vld [vmem:[%s13849_s9 + $0x50] sm:$0xff]  ;;  %v14235_v26 = vld [vmem:[#allocation48_spill] sm:$0xff]  ;;  %v14236_v58 = vld [vmem:[#allocation73_spill] sm:$0xff] }
 0x348   :  { %v3503_v59 = vpack.c.b16 %v9494_v52, %v11045_v28  ;;  %v14237_v35 = vld [vmem:[#allocation20_spill] sm:$0xff]  ;;  %v8198_v7 = vld [vmem:[%s13849_s9 + $0x90] sm:$0xff] }
 0x349   :  { %v11025_v34 = vpop.f32.mrf.mxu1  ;;  %3979 = vmatpush.bf16.msra.mxu3 %v8190_v55  ;;  %v14239_v36 = vld [vmem:[#allocation28_spill] sm:$0xff]  ;;  %v14241_v55 = vld [vmem:[#allocation5_spill] sm:$0xff] }
 0x34a   :  { %14217 = vst [vmem:[#allocation64_spill] sm:$0xff] %v11025_v34  ;;  %5925 = vrot.lane.b32.xlu0 %v14221_v20, %s8392_s3  ;;  %v14228_v20 = vunpack.c.l.b16 %v10891_v61  ;;  %v14234_v61 = vld [vmem:[#allocation29_spill] sm:$0xff]  ;;  %4028 = vmatpush.bf16.msra.mxu0 %v8198_v7  ;;  %v14250_v7 = vld [vmem:[#allocation70_spill] sm:$0xff] }
 0x34b   :  { %3495 = vrot.lane.b32.xlu1 %v3482_v33, %s8394_s4  ;;  %v8213_v33 = vld [vmem:[%s13849_s9 + $0x108] sm:$0xff] }
 0x34c   :  { %v3483_v44 = vpack.c.b16 %v14228_v20, %v14227_v13  ;;  %4127 = vmatpush.bf16.msrb.mxu2 %v8213_v33  ;;  %v8188_v33 = vld [vmem:[%s13849_s9 + $0x40] sm:$0xff]  ;;  %v11099_v20 = vpop.f32.mrf.mxu3 }
 0x34d   :  { %14238 = vst [vmem:[#allocation46_spill] sm:$0xff] %v11099_v20 }
 0x34e   :  { %3491 = vrot.lane.b32.xlu2 %v3480_v62, %s8394_s4  ;;  %v11079_v62 = vpop.f32.mrf.mxu0 }
 0x34f   :  { %14231 = vst [vmem:[#allocation26_spill] sm:$0xff] %v11079_v62 }
 0x351   :  { %v2703_v22 = vpop.f32.mrf.mxu1 }
 0x352   :  { %v11056_v4 = vadd.f32 %v2703_v22, %v2655_v46  ;;  %5931 = vrot.lane.b32.xlu0 %v1002_v60, %s8392_s3  ;;  %v961_v60 = vadd.f32 %v14236_v58, %v14235_v26  ;;  %v3504_v46 = vpack.c.b16 %v9494_v52, %v11051_v48  ;;  %v8189_v22 = vld [vmem:[%s13849_s9 + $0x48] sm:$0xff]  ;;  %v14244_v26 = vld [vmem:[#allocation69_spill] sm:$0xff] }
 0x353   :  { %3505 = vrot.lane.b32.xlu1 %v3503_v59, %s8394_s4  ;;  %3980 = vmatpush.bf16.msra.mxu3 %v8189_v22 }
 0x354   :  { %14226 = vst [vmem:[#allocation96_spill] sm:$0xff] %v11056_v4  ;;  %4090 = vmatmul.bf16.gmra.mxu1 %v10915_v51  ;;  %v14232_v51 = vld [vmem:[#allocation60_spill] sm:$0xff]  ;;  %v1010_v13 = vadd.f32 %v14237_v35, %v961_v60 }
 0x355   :  { %v1000_v15 = vadd.f32 %v14232_v51, %v951_v53  ;;  %v14240_v53 = vld [vmem:[#allocation47_spill] sm:$0xff] }
 0x356   :  { %3497 = vrot.lane.b32.xlu2 %v3483_v44, %s8394_s4  ;;  %v2659_v59 = vpop.f32.mrf.mxu0  ;;  %v958_v51 = vadd.f32 %v14241_v55, %v14240_v53  ;;  %v14251_v55 = vld [vmem:[#allocation9_spill] sm:$0xff] }
 0x357   :  { %3981 = vmatpush.bf16.msra.mxu3 %v8188_v33  ;;  %v14247_v33 = vld [vmem:[#allocation82_spill] sm:$0xff] }
 0x359   :  { %v11082_v8 = vpop.f32.mrf.mxu1 }
 0x35a   :  { %14233 = vst [vmem:[#allocation79_spill] sm:$0xff] %v11082_v8  ;;  %5937 = vrot.lane.b32.xlu0 %v14234_v61, %s8392_s3  ;;  %v14243_v61 = vld [vmem:[#allocation25_spill] sm:$0xff] }
 0x35b   :  { %5927 = vrot.lane.b32.xlu1 %v1000_v15, %s8392_s3  ;;  %v14242_v15 = vld [vmem:[#allocation27_spill] sm:$0xff]  ;;  %v956_v58 = vadd.f32 %v14244_v26, %v14243_v61 }
 0x35d   :  { %v1005_v53 = vadd.f32 %v14250_v7, %v956_v58  ;;  %v8212_v58 = vld [vmem:[%s13849_s9 + $0x100] sm:$0xff]  ;;  %v14259_v7 = vld [vmem:[#allocation30_spill] sm:$0xff] }
 0x35e   :  { %3507 = vrot.lane.b32.xlu2 %v3504_v46, %s8394_s4  ;;  %v14245_v46 = vld [vmem:[#allocation71_spill] sm:$0xff]  ;;  %v11114_v35 = vpop.f32.mrf.mxu0  ;;  %4128 = vmatpush.bf16.msrb.mxu2 %v8212_v58 }
 0x35f   :  { %v1007_v22 = vadd.f32 %v14245_v46, %v958_v51  ;;  %14246 = vst [vmem:[#allocation63_spill] sm:$0xff] %v11114_v35  ;;  %v14254_v51 = vld [vmem:[#allocation42_spill] sm:$0xff] }
 0x360   :  { %v14328_v35 = vld [vmem:[#allocation18_spill] sm:$0xff] }
 0x361   :  { %v2708_v44 = vpop.f32.mrf.mxu1 }
 0x362   :  { %5943 = vrot.lane.b32.xlu0 %v1010_v13, %s8392_s3 }
 0x363   :  { %5933 = vrot.lane.b32.xlu1 %v14239_v36, %s8392_s3  ;;  %v14248_v36 = vld [vmem:[#allocation32_spill] sm:$0xff] }
 0x366   :  { %5929 = vrot.lane.b32.xlu2 %v14242_v15, %s8392_s3  ;;  %v14252_v15 = vld [vmem:[#allocation11_spill] sm:$0xff] }
 0x367   :  { %v968_v61 = vadd.f32 %v14252_v15, %v14251_v55  ;;  %v14260_v15 = vld [vmem:[#allocation49_spill] sm:$0xff] }
 0x368   :  { %v2610_v60 = vpop.f32.mrf.mxu3 }
 0x369   :  { %v2611_v13 = vadd.f32 %v2610_v60, %v14247_v33  ;;  %v11119_v43 = vpop.f32.mrf.mxu1  ;;  %v1017_v46 = vadd.f32 %v14254_v51, %v968_v61  ;;  %v14256_v33 = vld [vmem:[#allocation31_spill] sm:$0xff]  ;;  %v14261_v61 = vld [vmem:[#allocation78_spill] sm:$0xff] }
 0x36a   :  { %5949 = vrot.lane.b32.xlu0 %v14248_v36, %s8392_s3  ;;  %14249 = vst [vmem:[#allocation66_spill] sm:$0xff] %v11119_v43  ;;  %v963_v51 = vadd.f32 %v14261_v61, %v14260_v15  ;;  %v14267_v15 = vld [vmem:[#allocation43_spill] sm:$0xff] }
 0x36b   :  { %v2660_v2 = vadd.f32 %v2659_v59, %v2611_v13  ;;  %5939 = vrot.lane.b32.xlu1 %v1007_v22, %s8392_s3  ;;  %v2664_v59 = vpop.f32.mrf.mxu0  ;;  %v14258_v22 = vld [vmem:[#allocation15_spill] sm:$0xff] }
 0x36d   :  { %v11125_v26 = vadd.f32 %v2708_v44, %v2660_v2  ;;  %v8197_v2 = vld [vmem:[%s13849_s9 + $0x88] sm:$0xff] }
 0x36e   :  { %5935 = vrot.lane.b32.xlu2 %v1005_v53, %s8392_s3  ;;  %v14257_v44 = vld [vmem:[#allocation6_spill] sm:$0xff]  ;;  %v3378_v53 = vpack.c.b16 %v10624_v18, %v10560_v30  ;;  %4029 = vmatpush.bf16.msra.mxu0 %v8197_v2  ;;  %v14265_v18 = vld [vmem:[#allocation19_spill] sm:$0xff]  ;;  %v14266_v2 = vld [vmem:[#allocation16_spill] sm:$0xff] }
 0x36f   :  { %14253 = vst [vmem:[#allocation44_spill] sm:$0xff] %v11125_v26  ;;  %v966_v13 = vadd.f32 %v14258_v22, %v14257_v44  ;;  %v14263_v44 = vld [vmem:[#allocation84_spill] sm:$0xff]  ;;  %v1012_v58 = vadd.f32 %v14265_v18, %v963_v51  ;;  %v976_v61 = vadd.f32 %v14267_v15, %v14266_v2  ;;  %v14276_v2 = vld [vmem:[#allocation51_spill] sm:$0xff] }
 0x370   :  { %v11129_v60 = vpop.f32.mrf.mxu3  ;;  %v14277_v15 = vld [vmem:[#allocation88_spill] sm:$0xff] }
 0x371   :  { %14255 = vst [vmem:[#allocation62_spill] sm:$0xff] %v11129_v60  ;;  %v2713_v36 = vpop.f32.mrf.mxu1  ;;  %v1015_v0 = vadd.f32 %v14262_v5, %v966_v13  ;;  %v14270_v5 = vld [vmem:[#allocation58_spill] sm:$0xff] }
 0x372   :  { %5955 = vrot.lane.b32.xlu0 %v1017_v46, %s8392_s3  ;;  %v14271_v13 = vunpack.c.l.b16 %v14270_v5  ;;  %v14278_v5 = vld [vmem:[#allocation33_spill] sm:$0xff] }
 0x373   :  { %5945 = vrot.lane.b32.xlu1 %v14256_v33, %s8392_s3  ;;  %v11160_v14 = vpop.f32.mrf.mxu0 }
 0x374   :  { %14268 = vst [vmem:[#allocation60_spill] sm:$0xff] %v11160_v14 }
 0x376   :  { %5941 = vrot.lane.b32.xlu2 %v14259_v7, %s8392_s3  ;;  %v14264_v7 = vld [vmem:[#allocation35_spill] sm:$0xff] }
 0x377   :  { %v3414_v55 = vpop.permute.xlu0 %3413 }
 0x378   :  { %v2615_v46 = vpop.f32.mrf.mxu3  ;;  %v11149_v33 = vsel %vm2073_vm14, %v3378_v53, %v3414_v55  ;;  %v3433_v55 = vpack.c.b16 %v14271_v13, %v9789_v31 }
 0x379   :  { %v2616_v22 = vadd.f32 %v2615_v46, %v14263_v44  ;;  %3958 = vmatmul.bf16.gmra.mxu2 %v11149_v33  ;;  %v6375_v46 = vlaneseq  ;;  %v14273_v44 = vld [vmem:[#allocation22_spill] sm:$0xff] }
 0x37a   :  { %5961 = vrot.lane.b32.xlu0 %v14264_v7, %s8392_s3 }
 0x37b   :  { %v2665_v30 = vadd.f32 %v2664_v59, %v2616_v22  ;;  %5951 = vrot.lane.b32.xlu1 %v1015_v0, %s8392_s3  ;;  %v8196_v0 = vld [vmem:[%s13849_s9 + $0x80] sm:$0xff]  ;;  %v11171_v59 = vpop.f32.mrf.mxu1  ;;  %v1025_v22 = vadd.f32 %v14273_v44, %v976_v61  ;;  %v6376_v18 = vshrl.u32 %v6375_v46, 7  ;;  %v973_v61 = vadd.f32 %v14277_v15, %v14276_v2  ;;  %v2669_v13 = vpop.f32.mrf.mxu0  ;;  %v14284_v2 = vld [vmem:[#allocation86_spill] sm:$0xff] }
 0x37c   :  { %14272 = vst [vmem:[#allocation48_spill] sm:$0xff] %v11171_v59  ;;  %4030 = vmatpush.bf16.msra.mxu0 %v8196_v0 }
 0x37d   :  { %v11162_v53 = vadd.f32 %v2713_v36, %v2665_v30  ;;  %8296 = vset.pattern.permute.xlu1 %v6376_v18  ;;  %8295 = vset.pattern.permute.xlu0 %v6376_v18 }
 0x37e   :  { %5947 = vrot.lane.b32.xlu2 %v1012_v58, %s8392_s3  ;;  %v14275_v58 = vld [vmem:[#allocation34_spill] sm:$0xff] }
 0x37f   :  { %14269 = vst [vmem:[#allocation29_spill] sm:$0xff] %v11162_v53  ;;  %v3450_v51 = vpop.permute.xlu0 %3449  ;;  %8294 = vset.pattern.permute.xlu2 %v6376_v18  ;;  %v14282_v53 = vld [vmem:[#allocation102_spill] sm:$0xff] }
 0x380   :  { %v11174_v7 = vpop.permute.xlu2 %3417  ;;  %v3545_v36 = vsel %vm2073_vm14, %v3433_v55, %v3450_v51  ;;  %v11177_v30 = vpop.f32.mrf.mxu3  ;;  %v14279_v55 = vld [vmem:[#allocation50_spill] sm:$0xff]  ;;  %v14280_v51 = vld [vmem:[#allocation85_spill] sm:$0xff] }
 0x381   :  { %14274 = vst [vmem:[#allocation73_spill] sm:$0xff] %v11177_v30  ;;  %3982 = vmatmul.bf16.vlgmr.msra.gmra.mxu3 %v3545_v36  ;;  %v971_v46 = vadd.f32 %v14280_v51, %v14279_v55  ;;  %v14283_v18 = vld [vmem:[#allocation38_spill] sm:$0xff]  ;;  %v14288_v51 = vld [vmem:[#allocation12_spill] sm:$0xff] }
 0x382   :  { %5967 = vrot.lane.b32.xlu0 %v1025_v22, %s8392_s3  ;;  %v14281_v22 = vld [vmem:[#allocation89_spill] sm:$0xff]  ;;  %v14286_v30 = vld [vmem:[#allocation94_spill] sm:$0xff] }
 0x383   :  { %5957 = vrot.lane.b32.xlu1 %v14275_v58, %s8392_s3  ;;  %v1022_v36 = vadd.f32 %v14281_v22, %v973_v61  ;;  %v2718_v59 = vpop.f32.mrf.mxu1  ;;  %v1020_v15 = vadd.f32 %v14284_v2, %v971_v46  ;;  %v2064_v61 = vpack.c.b16 %v9373_v38, %v14288_v51  ;;  %v14298_v51 = vld [vmem:[#allocation90_spill] sm:$0xff] }
 0x386   :  { %5953 = vrot.lane.b32.xlu2 %v14278_v5, %s8392_s3  ;;  %v14285_v5 = vld [vmem:[#allocation10_spill] sm:$0xff] }
 0x387   :  { %v983_v26 = vadd.f32 %v14286_v30, %v14285_v5  ;;  %v14297_v5 = vld [vmem:[#allocation52_spill] sm:$0xff] }
 0x388   :  { %v11188_v0 = vpop.permute.xlu2 %3453  ;;  %v2620_v44 = vpop.f32.mrf.mxu3 }
 0x389   :  { %v2621_v58 = vadd.f32 %v2620_v44, %v14282_v53  ;;  %v3379_v53 = vpack.c.b16 %v10644_v16, %v10723_v49  ;;  %v14293_v16 = vld [vmem:[#allocation37_spill] sm:$0xff]  ;;  %v14294_v49 = vld [vmem:[#allocation7_spill] sm:$0xff] }
 0x38a   :  { %5973 = vrot.lane.b32.xlu0 %v14283_v18, %s8392_s3 }
 0x38b   :  { %v2670_v14 = vadd.f32 %v2669_v13, %v2621_v58  ;;  %5963 = vrot.lane.b32.xlu1 %v1022_v36, %s8392_s3  ;;  %v14289_v13 = vld [vmem:[#allocation95_spill] sm:$0xff]  ;;  %v11206_v36 = vpop.f32.mrf.mxu0  ;;  %v11217_v18 = vpop.f32.mrf.mxu1 }
 0x38c   :  { %v1032_v58 = vadd.f32 %v14289_v13, %v983_v26  ;;  %14290 = vst [vmem:[#allocation28_spill] sm:$0xff] %v11206_v36  ;;  %v14295_v26 = vld [vmem:[#allocation24_spill] sm:$0xff] }
 0x38d   :  { %v11198_v55 = vadd.f32 %v2718_v59, %v2670_v14  ;;  %14292 = vst [vmem:[#allocation5_spill] sm:$0xff] %v11217_v18  ;;  %v981_v2 = vadd.f32 %v14295_v26, %v14294_v49  ;;  %v14300_v18 = vld [vmem:[#allocation65_spill] sm:$0xff] }
 0x38e   :  { %5959 = vrot.lane.b32.xlu2 %v1020_v15, %s8392_s3  ;;  %v14296_v15 = vld [vmem:[#allocation36_spill] sm:$0xff]  ;;  %v14301_v26 = vld [vmem:[#allocation41_spill] sm:$0xff] }
 0x38f   :  { %14287 = vst [vmem:[#allocation20_spill] sm:$0xff] %v11198_v55  ;;  %v3416_v44 = vpop.permute.xlu1 %3415 }
 0x390   :  { %v2070_v22 = vpop.permute.xlu2 %2069  ;;  %v11208_v46 = vpop.f32.mrf.mxu3  ;;  %v11212_v14 = vsel %vm2073_vm14, %v3379_v53, %v3416_v44 }
 0x391   :  { %14291 = vst [vmem:[#allocation47_spill] sm:$0xff] %v11208_v46  ;;  %v2176_v30 = vsel %vm2073_vm14, %v2064_v61, %v2070_v22  ;;  %3963 = vmatmul.bf16.gmra.mxu2 %v11212_v14  ;;  %v978_v61 = vadd.f32 %v14298_v51, %v14297_v5  ;;  %v14299_v22 = vld [vmem:[#allocation92_spill] sm:$0xff] }
 0x392   :  { %2678 = vmatmul.bf16.gmra.mxu0 %v2176_v30  ;;  %v11215_v59 = vpop.permute.xlu0 %3455  ;;  %5979 = vrot.lane.b32.xlu0 %v1032_v58, %s8392_s3  ;;  %v1030_v13 = vadd.f32 %v14299_v22, %v981_v2  ;;  %v11243_v2 = vld [vmem:[%s13841_s1] sm:$0xff] }
 0x393   :  { %5969 = vrot.lane.b32.xlu1 %v14293_v16, %s8392_s3  ;;  %v2674_v49 = vpop.f32.mrf.mxu0 }
 0x396   :  { %5965 = vrot.lane.b32.xlu2 %v14296_v15, %s8392_s3  ;;  %v14302_v15 = vld [vmem:[#allocation91_spill] sm:$0xff] }
 0x397   :  { %v3452_v53 = vpop.permute.xlu1 %3451  ;;  %v1027_v5 = vadd.f32 %v14302_v15, %v978_v61 }
 0x398   :  { %v11228_v44 = vpop.permute.xlu2 %3459  ;;  %v2625_v30 = vpop.f32.mrf.mxu3  ;;  %v3549_v58 = vsel %vm2073_vm14, %v14300_v18, %v3452_v53 }
 0x399   :  { %v2626_v16 = vadd.f32 %v2625_v30, %v10857_v37  ;;  %3987 = vmatmul.bf16.gmra.mxu3 %v3549_v58  ;;  %v11245_v53 = vpop.f32.mrf.mxu2  ;;  %v2723_v37 = vpop.f32.mrf.mxu1  ;;  %v6381_v30 = vperm.slane %v11243_v2, 1 }
 0x39a   :  { %v11234_v36 = vpop.permute.xlu0 %3461  ;;  %5985 = vrot.lane.b32.xlu0 %v14301_v26, %s8392_s3  ;;  %14303 = vst [vmem:[#allocation27_spill] sm:$0xff] %v11245_v53  ;;  %v14305_v26 = vld [vmem:[#allocation61_spill] sm:$0xff]  ;;  %v14313_v53 = vld [vmem:[#allocation39_spill] sm:$0xff] }
 0x39b   :  { %5975 = vrot.lane.b32.xlu1 %v1030_v13, %s8392_s3  ;;  %v2675_v51 = vadd.f32 %v2674_v49, %v2626_v16  ;;  %v14306_v13 = vld [vmem:[#allocation56_spill] sm:$0xff]  ;;  %v14309_v49 = vpack.c.b16 %v10777_v9, %v10757_v10  ;;  %v6416_v10 = vperm.slane %v11243_v2, 6  ;;  %v14314_v9 = vld [vmem:[#allocation53_spill] sm:$0xff] }
 0x39c   :  { %v14307_v46 = vpack.c.b16 %v14305_v26, %v14306_v13  ;;  %v14312_v26 = vld [vmem:[#allocation103_spill] sm:$0xff] }
 0x39d   :  { %v11247_v22 = vadd.f32 %v2723_v37, %v2675_v51  ;;  %v11262_v15 = vsel %vm2073_vm14, %v14309_v49, %v11174_v7  ;;  %v14310_v51 = vld [vmem:[#allocation40_spill] sm:$0xff]  ;;  %v14311_v37 = vld [vmem:[#allocation13_spill] sm:$0xff]  ;;  %v14315_v7 = vld [vmem:[#allocation99_spill] sm:$0xff] }
 0x39e   :  { %5971 = vrot.lane.b32.xlu2 %v1027_v5, %s8392_s3  ;;  %v986_v49 = vadd.f32 %v14315_v7, %v14314_v9  ;;  %v6388_v7 = vperm.slane %v11243_v2, 2 }
 0x39f   :  { %14304 = vst [vmem:[#allocation25_spill] sm:$0xff] %v11247_v22  ;;  %v3458_v13 = vpop.permute.xlu1 %3457 }
 0x3a0   :  { %v3486_v58 = vpop.permute.xlu2 %3485  ;;  %v11255_v16 = vpop.f32.mrf.mxu3 }
 0x3a1   :  { %v3577_v61 = vsel %vm2073_vm14, %v14307_v46, %v3486_v58  ;;  %14308 = vst [vmem:[#allocation69_spill] sm:$0xff] %v11255_v16  ;;  %3968 = vmatmul.bf16.gmra.mxu2 %v11262_v15  ;;  %v988_v46 = vadd.f32 %v14312_v26, %v14311_v37  ;;  %v11269_v58 = vpop.f32.mrf.mxu2 }
 0x3a2   :  { %4031 = vmatmul.bf16.vlgmr.msra.gmra.mxu0 %v3577_v61  ;;  %v3488_v5 = vpop.permute.xlu0 %3487  ;;  %6386 = vperm.xlu0 %8295, %v6381_v30   ;;  %v14316_v30 = vld [vmem:[#allocation105_spill] sm:$0xff] }
 0x3a3   :  { %5981 = vrot.lane.b32.xlu1 %v14310_v51, %s8392_s3  ;;  %v1037_v22 = vadd.f32 %v14316_v30, %v988_v46  ;;  %v14317_v51 = vld [vmem:[#allocation75_spill] sm:$0xff] }
 0x3a4   :  { %v3553_v37 = vsel %vm2073_vm14, %v14317_v51, %v11188_v0 }
 0x3a6   :  { %5977 = vrot.lane.b32.xlu2 %v14313_v53, %s8392_s3  ;;  %v14318_v53 = vld [vmem:[#allocation100_spill] sm:$0xff] }
 0x3a7   :  { %v1035_v55 = vadd.f32 %v14318_v53, %v986_v49 }
 0x3a8   :  { %v11276_v61 = vpop.permute.xlu2 %3491  ;;  %v2630_v16 = vpop.f32.mrf.mxu3 }
 0x3a9   :  { %v11283_v26 = vadd.f32 %v2630_v16, %v10949_v19  ;;  %3992 = vmatmul.bf16.gmra.mxu3 %v3553_v37  ;;  %v11292_v46 = vpop.f32.mrf.mxu2  ;;  %v14319_v19 = vld [vmem:[#allocation17_spill] sm:$0xff]  ;;  %v14320_v16 = vld [vmem:[#allocation55_spill] sm:$0xff] }
 0x3aa   :  { %6421 = vperm.xlu0 %8295, %v6416_v10   ;;  %v11287_v43 = vpop.permute.xlu0 %3493  ;;  %v14321_v30 = vpack.c.b16 %v14319_v19, %v14320_v16  ;;  %v14324_v16 = vunpack.c.l.b16 %v14222_v39 }
 0x3ab   :  { %5987 = vrot.lane.b32.xlu1 %v1037_v22, %s8392_s3  ;;  %v6374_v22 = vperm.slane %v11243_v2, 0 }
 0x3ac   :  { %v3581_v10 = vsel %vm2073_vm14, %v14321_v30, %v3488_v5  ;;  %v14322_v5 = vld [vmem:[#allocation8_spill] sm:$0xff]  ;;  %v6402_v30 = vperm.slane %v11243_v2, 4 }
 0x3ad   :  { %v11289_v9 = vpop.permute.xlu1 %3463  ;;  %v14323_v19 = vunpack.c.l.b16 %v14322_v5 }
 0x3ae   :  { %5983 = vrot.lane.b32.xlu2 %v1035_v55, %s8392_s3  ;;  %v8310_v55 = vld [vmem:[%s13840_s0 + $0x8] sm:$0xff] }
 0x3b0   :  { %v11295_v0 = vpop.permute.xlu2 %3497 }
 0x3b1   :  { %7824 = vmatmul.msk.bf16.vlgmr.msrb.gmra.mxu2 %vm2073_vm14, %v14300_v18  ;;  %v11310_v53 = vpop.f32.mrf.mxu2  ;;  %v3436_v18 = vpack.c.b16 %v14324_v16, %v14323_v19  ;;  %v6423_v19 = vperm.slane %v11243_v2, 7 }
 0x3b2   :  { %4036 = vmatmul.bf16.gmra.mxu0 %v3581_v10  ;;  %6564 = vrot.lane.b32.xlu0 %v8310_v55, %s8392_s3  ;;  %v6395_v55 = vperm.slane %v11243_v2, 3 }
 0x3b3   :  { %6393 = vperm.xlu1 %8296, %v6388_v7   ;;  %v3557_v10 = vsel %vm2073_vm14, %v3436_v18, %v11215_v59 }
 0x3b4   :  { %v11308_v49 = vpop.permute.xlu0 %3499 }
 0x3b5   :  { %v3490_v37 = vpop.permute.xlu1 %3489 }
 0x3b6   :  { %6379 = vperm.xlu2 %8294, %v6374_v22   ;;  %v8311_v22 = vld [vmem:[%s13840_s0 + $0x30] sm:$0xff] }
 0x3b8   :  { %v11317_v7 = vpop.permute.xlu2 %3507 }
 0x3b9   :  { %3997 = vmatmul.bf16.gmra.mxu3 %v3557_v10  ;;  %v11333_v59 = vpop.f32.mrf.mxu2  ;;  %v14327_v10 = vld [vmem:[#allocation76_spill] sm:$0xff] }
 0x3ba   :  { %6570 = vrot.lane.b32.xlu0 %v8311_v22, %s8392_s3  ;;  %v6409_v22 = vperm.slane %v11243_v2, 5  ;;  %v14331_v2 = vunpack.c.l.b16 %v10551_v1  ;;  %v8314_v1 = vld [vmem:[%s13840_s0] sm:$0xff] }
 0x3bb   :  { %6407 = vperm.xlu1 %8296, %v6402_v30   ;;  %v14329_v30 = vpack.c.b16 %v14327_v10, %v14328_v35  ;;  %v3501_v35 = vpack.c.b16 %v9373_v38, %v10837_v6  ;;  %v8313_v6 = vld [vmem:[%s13840_s0 + $0x18] sm:$0xff] }
 0x3bc   :  { %v11326_v5 = vpop.permute.xlu0 %5925 }
 0x3bd   :  { %14325 = vst [vmem:[#allocation71_spill] sm:$0xff] %v11326_v5  ;;  %v11328_v39 = vpop.permute.xlu1 %3495  ;;  %v3585_v60 = vsel %vm2073_vm14, %v14329_v30, %v3490_v37 }
 0x3be   :  { %6400 = vperm.xlu2 %8294, %v6395_v55   ;;  %v8312_v55 = vld [vmem:[%s13840_s0 + $0x50] sm:$0xff] }
 0x3c0   :  { %v11331_v16 = vpop.permute.xlu2 %5929 }
 0x3c1   :  { %14326 = vst [vmem:[#allocation82_spill] sm:$0xff] %v11331_v16  ;;  %7825 = vmatmul.msk.bf16.gmra.mxu2 %vm2073_vm14, %v14317_v51  ;;  %v3437_v51 = vpack.c.b16 %v14331_v2, %v9789_v31  ;;  %v11357_v30 = vpop.f32.mrf.mxu2  ;;  %v8315_v2 = vld [vmem:[%s13840_s0 + $0x38] sm:$0xff] }
 0x3c2   :  { %4041 = vmatmul.bf16.gmra.mxu0 %v3585_v60  ;;  %6576 = vrot.lane.b32.xlu0 %v8312_v55, %s8392_s3 }
 0x3c3   :  { %6428 = vperm.xlu1 %8296, %v6423_v19   ;;  %v3561_v19 = vsel %vm2073_vm14, %v3437_v51, %v3458_v13  ;;  %v14335_v13 = vld [vmem:[#allocation77_spill] sm:$0xff] }
 0x3c4   :  { %v11346_v16 = vpop.permute.xlu0 %5931 }
 0x3c5   :  { %14330 = vst [vmem:[#allocation32_spill] sm:$0xff] %v11346_v16  ;;  %v3506_v10 = vpop.permute.xlu1 %3505 }
 0x3c6   :  { %6414 = vperm.xlu2 %8294, %v6409_v22   ;;  %v3609_v60 = vsel %vm2073_vm14, %v3501_v35, %v3506_v10  ;;  %v3470_v35 = vpack.c.b16 %v11045_v28, %v14335_v13  ;;  %v8316_v28 = vld [vmem:[%s13840_s0 + $0x20] sm:$0xff] }
 0x3c7   :  { %4095 = vmatmul.bf16.gmra.mxu1 %v3609_v60 }
 0x3c8   :  { %v11354_v37 = vpop.permute.xlu2 %5935  ;;  %v3589_v60 = vsel %vm2073_vm14, %v3470_v35, %v11276_v61 }
 0x3c9   :  { %14332 = vst [vmem:[#allocation70_spill] sm:$0xff] %v11354_v37  ;;  %4002 = vmatmul.bf16.gmra.mxu3 %v3561_v19  ;;  %v11384_v19 = vpop.f32.mrf.mxu2 }
 0x3cb   :  { %6566 = vrot.lane.b32.xlu1 %v8313_v6, %s8392_s3 }
 0x3cc   :  { %v11363_v22 = vpop.permute.xlu0 %5937 }
 0x3cd   :  { %14333 = vst [vmem:[#allocation9_spill] sm:$0xff] %v11363_v22  ;;  %v11365_v55 = vpop.permute.xlu1 %5927 }
 0x3ce   :  { %14334 = vst [vmem:[#allocation11_spill] sm:$0xff] %v11365_v55  ;;  %6562 = vrot.lane.b32.xlu2 %v8314_v1, %s8392_s3 }
 0x3d0   :  { %v11373_v10 = vpop.permute.xlu2 %5941 }
 0x3d1   :  { %14336 = vst [vmem:[#allocation42_spill] sm:$0xff] %v11373_v10  ;;  %7826 = vmatmul.msk.bf16.gmra.mxu2 %vm2073_vm14, %v3436_v18  ;;  %v14340_v18 = vld [vmem:[#allocation98_spill] sm:$0xff]  ;;  %v11400_v35 = vpop.f32.mrf.mxu2 }
 0x3d2   :  { %4046 = vmatmul.bf16.gmra.mxu0 %v3589_v60  ;;  %v3565_v1 = vsel %vm2073_vm14, %v14340_v18, %v11228_v44  ;;  %v14345_v44 = vld [vmem:[#allocation87_spill] sm:$0xff] }
 0x3d3   :  { %6572 = vrot.lane.b32.xlu1 %v8315_v2, %s8392_s3  ;;  %v8317_v2 = vld [vmem:[%s13840_s0 + $0x48] sm:$0xff] }
 0x3d4   :  { %v11382_v51 = vpop.permute.xlu0 %5943 }
 0x3d5   :  { %14337 = vst [vmem:[#allocation31_spill] sm:$0xff] %v11382_v51  ;;  %v11386_v6 = vpop.permute.xlu1 %5933 }
 0x3d6   :  { %14338 = vst [vmem:[#allocation6_spill] sm:$0xff] %v11386_v6  ;;  %6568 = vrot.lane.b32.xlu2 %v8316_v28, %s8392_s3  ;;  %v14344_v28 = vunpack.c.l.b16 %v11020_v21 }
 0x3d7   :  { %4100 = vmatmul.bf16.gmra.mxu1 %v11149_v33 }
 0x3d8   :  { %v11393_v61 = vpop.permute.xlu2 %5947  ;;  %v3509_v10 = vpack.c.b16 %v9789_v31, %v14344_v28  ;;  %v3569_v28 = vsel %vm2073_vm14, %v10901_v12, %v11234_v36 }
 0x3d9   :  { %14339 = vst [vmem:[#allocation15_spill] sm:$0xff] %v11393_v61  ;;  %4007 = vmatmul.bf16.gmra.mxu3 %v3565_v1  ;;  %v14346_v1 = vld [vmem:[#allocation81_spill] sm:$0xff] }
 0x3dc   :  { %v11398_v13 = vpop.permute.xlu0 %5949 }
 0x3dd   :  { %14341 = vst [vmem:[#allocation30_spill] sm:$0xff] %v11398_v13  ;;  %v11402_v60 = vpop.permute.xlu1 %5939  ;;  %v14347_v13 = vpack.c.b16 %v14345_v44, %v14346_v1 }
 0x3de   :  { %14342 = vst [vmem:[#allocation49_spill] sm:$0xff] %v11402_v60  ;;  %6574 = vrot.lane.b32.xlu2 %v8317_v2, %s8392_s3  ;;  %v11423_v2 = vpop.f32.mrf.mxu2 }
 0x3df   :  { %v3593_v51 = vsel %vm2073_vm14, %v14347_v13, %v11287_v43  ;;  %v14352_v13 = vpack.c.b16 %v10817_v54, %v10667_v27 }
 0x3e0   :  { %v11408_v33 = vpop.permute.xlu2 %5953 }
 0x3e1   :  { %14343 = vst [vmem:[#allocation78_spill] sm:$0xff] %v11408_v33  ;;  %7827 = vmatmul.msk.bf16.gmra.mxu2 %vm2073_vm14, %v3509_v10 }
 0x3e2   :  { %4051 = vmatmul.bf16.gmra.mxu0 %v3593_v51 }
 0x3e4   :  { %v11419_v22 = vpop.permute.xlu0 %5955 }
 0x3e5   :  { %14348 = vst [vmem:[#allocation83_spill] sm:$0xff] %v11419_v22  ;;  %v11421_v60 = vpop.permute.xlu1 %5945 }
 0x3e6   :  { %14349 = vst [vmem:[#allocation84_spill] sm:$0xff] %v11421_v60  ;;  %v11435_v10 = vpop.f32.mrf.mxu2  ;;  %v11482_v60 = vpop.f32.mrf.mxu0 }
 0x3e7   :  { %4105 = vmatmul.bf16.gmra.mxu1 %v11212_v14  ;;  %v3597_v14 = vsel %vm2073_vm14, %v14352_v13, %v11328_v39  ;;  %v8395_v13 = vmov 0.0   ;;  %14361 = vst [vmem:[#allocation33_spill] sm:$0xff] %v11482_v60 }
 0x3e8   :  { %v5960_v21 = vpop.permute.xlu2 %5959 }
 0x3e9   :  { %4012 = vmatmul.bf16.gmra.mxu3 %v3569_v28  ;;  %v3573_v28 = vsel %vm2073_vm14, %v10931_v3, %v11289_v9 }
 0x3ec   :  { %v11429_v44 = vpop.permute.xlu0 %5961 }
 0x3ed   :  { %v11431_v43 = vpop.permute.xlu1 %5951 }
 0x3ee   :  { %14350 = vst [vmem:[#allocation35_spill] sm:$0xff] %v11431_v43  ;;  %v11454_v27 = vpop.f32.mrf.mxu2 }
 0x3f0   :  { %v11433_v51 = vpop.permute.xlu2 %5965 }
 0x3f1   :  { %14351 = vst [vmem:[#allocation19_spill] sm:$0xff] %v11433_v51  ;;  %7828 = vmatmul.msk.bf16.gmra.mxu2 %vm2073_vm14, %v14340_v18  ;;  %v11450_v51 = vpop.f32.mrf.mxu1  ;;  %v6006_v18 = vrot.slane %v8395_v13, 7 }
 0x3f2   :  { %4056 = vmatmul.bf16.gmra.mxu0 %v3597_v14  ;;  %14354 = vst [vmem:[#allocation43_spill] sm:$0xff] %v11450_v51  ;;  %v14356_v14 = vpack.c.b16 %v10869_v32, %v10819_v41  ;;  %v3502_v41 = vpack.c.b16 %v9373_v38, %v10978_v11 }
 0x3f3   :  { %v6058_v9 = vsel %vm1496_vm1, %v6006_v18, 0.0 }
 0x3f4   :  { %v11444_v36 = vpop.permute.xlu0 %5967 }
 0x3f5   :  { %14353 = vst [vmem:[#allocation16_spill] sm:$0xff] %v11444_v36  ;;  %v5958_v1 = vpop.permute.xlu1 %5957  ;;  %v11462_v36 = vsel %vm1496_vm1, 0.0, %v6006_v18 }
 0x3f6   :  { %14357 = vst [vmem:[#allocation22_spill] sm:$0xff] %v11462_v36  ;;  %v6106_v32 = vrot.slane %v11462_v36, 1  ;;  %v5997_v18 = vsel %vm1343_vm10, %v5958_v1, %v5960_v21  ;;  %v6182_v16 = vrot.slane %v11462_v36, 2 }
 0x3f7   :  { %4110 = vmatmul.bf16.gmra.mxu1 %v11262_v15  ;;  %v3601_v15 = vsel %vm2073_vm14, %v14356_v14, %v11295_v0  ;;  %v6107_v0 = vrot.slane %v6058_v9, 1  ;;  %v6015_v6 = vrot.slane %v5997_v18, 7 }
 0x3f8   :  { %v11452_v33 = vpop.permute.xlu2 %5971 }
 0x3f9   :  { %14355 = vst [vmem:[#allocation58_spill] sm:$0xff] %v11452_v33  ;;  %4017 = vmatmul.bf16.gmra.mxu3 %v3573_v28  ;;  %v11467_v28 = vpop.f32.mrf.mxu3  ;;  %v11471_v13 = vpop.f32.mrf.mxu1  ;;  %v11485_v11 = vsel %vm6105_vm15, %v6106_v32, %v6107_v0  ;;  %v11500_v0 = vsel %vm1496_vm1, 0.0, %v6015_v6  ;;  %v6067_v18 = vsel %vm1496_vm1, %v6015_v6, 0.0 }
 0x3fa   :  { %14358 = vst [vmem:[#allocation34_spill] sm:$0xff] %v11467_v28  ;;  %v6131_v51 = vrot.slane %v6067_v18, 1 }
 0x3fb   :  { %14359 = vst [vmem:[#allocation51_spill] sm:$0xff] %v11471_v13  ;;  %v6130_v13 = vrot.slane %v11500_v0, 1 }
 0x3fc   :  { %v5974_v54 = vpop.permute.xlu0 %5973  ;;  %v11469_v22 = vpop.f32.mrf.mxu2  ;;  %14362 = vst [vmem:[#allocation50_spill] sm:$0xff] %v11485_v11 }
 0x3fd   :  { %v5964_v39 = vpop.permute.xlu1 %5963  ;;  %14365 = vst [vmem:[#allocation102_spill] sm:$0xff] %v11500_v0 }
 0x400   :  { %v5978_v33 = vpop.permute.xlu2 %5977 }
 0x401   :  { %7829 = vmatmul.msk.bf16.gmra.mxu2 %vm2073_vm14, %v10901_v12  ;;  %v11509_v37 = vpop.f32.mrf.mxu1 }
 0x402   :  { %4061 = vmatmul.bf16.gmra.mxu0 %v3601_v15  ;;  %v3613_v15 = vsel %vm2073_vm14, %v3502_v41, %v11317_v7  ;;  %14366 = vst [vmem:[#allocation38_spill] sm:$0xff] %v11509_v37 }
 0x404   :  { %v5980_v14 = vpop.permute.xlu0 %5979 }
 0x405   :  { %v11476_v43 = vpop.permute.xlu1 %5969  ;;  %v6002_v12 = vsel %vm1343_vm10, %v5978_v33, %v5980_v14  ;;  %v6183_v33 = vrot.slane %v6058_v9, 2 }
 0x406   :  { %14360 = vst [vmem:[#allocation88_spill] sm:$0xff] %v11476_v43  ;;  %v6020_v61 = vrot.slane %v6002_v12, 7  ;;  %v11494_v12 = vpop.f32.mrf.mxu3 }
 0x407   :  { %4115 = vmatmul.bf16.gmra.mxu1 %v3613_v15  ;;  %v11503_v15 = vpop.f32.mrf.mxu2 }
 0x408   :  { %v11489_v43 = vsel %vm1496_vm1, 0.0, %v6020_v61  ;;  %v6072_v21 = vsel %vm1496_vm1, %v6020_v61, 0.0 }
 0x409   :  { %14363 = vst [vmem:[#allocation85_spill] sm:$0xff] %v11489_v43  ;;  %v6145_v1 = vrot.slane %v11489_v43, 1  ;;  %v6146_v7 = vrot.slane %v6072_v21, 1  ;;  %v6221_v41 = vrot.slane %v11489_v43, 2  ;;  %v6222_v14 = vrot.slane %v6072_v21, 2 }
 0x40a   :  { %v6166_v21 = vadd.f32 %v11485_v11, %v11462_v36 }
 0x40b   :  { %v11497_v32 = vsel %vm6105_vm15, %v6145_v1, %v6146_v7  ;;  %v11512_v5 = vsel %vm6181_vm2, %v6221_v41, %v6222_v14  ;;  %v11516_v7 = vsel %vm6181_vm2, %v6182_v16, %v6183_v33  ;;  %v14370_v41 = vpack.c.b16 %v11051_v48, %v10871_v29 }
 0x40c   :  { %14364 = vst [vmem:[#allocation89_spill] sm:$0xff] %v11497_v32  ;;  %v6179_v61 = vadd.f32 %v11497_v32, %v11489_v43  ;;  %v5998_v16 = vsel %vm1343_vm10, %v11429_v44, %v5964_v39  ;;  %v11546_v48 = vsel %vm6105_vm15, %v6130_v13, %v6131_v51 }
 0x40d   :  { %v5976_v9 = vpop.permute.xlu1 %5975  ;;  %14367 = vst [vmem:[#allocation86_spill] sm:$0xff] %v11512_v5 }
 0x40e   :  { %v6001_v1 = vsel %vm1343_vm10, %v5974_v54, %v5976_v9  ;;  %14368 = vst [vmem:[#allocation10_spill] sm:$0xff] %v11516_v7  ;;  %v11519_v6 = vadd.f32 %v11512_v5, %v6179_v61  ;;  %v3605_v54 = vsel %vm2073_vm14, %v14370_v41, %v11308_v49  ;;  %v11537_v61 = vadd.f32 %v11516_v7, %v6166_v21  ;;  %v11551_v44 = vpop.f32.mrf.mxu3 }
 0x40f   :  { %v6019_v55 = vrot.slane %v6001_v1, 7  ;;  %v2679_v28 = vpop.f32.mrf.mxu0  ;;  %14373 = vst [vmem:[#allocation37_spill] sm:$0xff] %v11546_v48  ;;  %v6206_v41 = vrot.slane %v11500_v0, 2 }
 0x410   :  { %v11523_v11 = vadd.f32 %v2679_v28, %v11283_v26  ;;  %14372 = vst [vmem:[#allocation95_spill] sm:$0xff] %v11537_v61  ;;  %v6265_v29 = vadd.f32 %v11537_v61, %v11500_v0 }
 0x411   :  { %v11533_v33 = vsel %vm1496_vm1, 0.0, %v6019_v55  ;;  %v6071_v14 = vsel %vm1496_vm1, %v6019_v55, 0.0  ;;  %7830 = vmatmul.msk.bf16.gmra.mxu2 %vm2073_vm14, %v10931_v3  ;;  %v6016_v55 = vrot.slane %v5998_v16, 7  ;;  %v6207_v3 = vrot.slane %v6067_v18, 2  ;;  %v4081_v16 = vpop.f32.mrf.mxu1 }
 0x412   :  { %14369 = vst [vmem:[#allocation94_spill] sm:$0xff] %v11523_v11  ;;  %v6142_v26 = vrot.slane %v11533_v33, 1  ;;  %v6143_v28 = vrot.slane %v6071_v14, 1  ;;  %v6218_v9 = vrot.slane %v11533_v33, 2  ;;  %v6219_v1 = vrot.slane %v6071_v14, 2  ;;  %4066 = vmatmul.bf16.gmra.mxu0 %v3605_v54 }
 0x413   :  { %14371 = vst [vmem:[#allocation12_spill] sm:$0xff] %v11533_v33  ;;  %v6293_v51 = vadd.f32 %v6265_v29, %v11546_v48  ;;  %v11571_v36 = vsel %vm6181_vm2, %v6206_v41, %v6207_v3  ;;  %v5984_v29 = vpop.permute.xlu2 %5983  ;;  %v14380_v3 = vunpack.c.l.b16 %v10998_v42 }
 0x414   :  { %v11549_v49 = vsel %vm6105_vm15, %v6142_v26, %v6143_v28  ;;  %v11555_v21 = vpop.f32.mrf.mxu2  ;;  %v11559_v54 = vsel %vm6181_vm2, %v6218_v9, %v6219_v1  ;;  %v11566_v26 = vsel %vm1496_vm1, 0.0, %v6016_v55  ;;  %v6068_v28 = vsel %vm1496_vm1, %v6016_v55, 0.0  ;;  %14378 = vst [vmem:[#allocation90_spill] sm:$0xff] %v11571_v36 }
 0x415   :  { %14374 = vst [vmem:[#allocation7_spill] sm:$0xff] %v11549_v49  ;;  %v6178_v39 = vadd.f32 %v11549_v49, %v11533_v33  ;;  %v6317_v18 = vadd.f32 %v6293_v51, %v11571_v36  ;;  %v6133_v9 = vrot.slane %v11566_v26, 1  ;;  %v6134_v1 = vrot.slane %v6068_v28, 1 }
 0x416   :  { %14375 = vst [vmem:[#allocation24_spill] sm:$0xff] %v11559_v54  ;;  %v3510_v51 = vpack.c.b16 %v9789_v31, %v14380_v3 }
 0x417   :  { %v11562_v13 = vpop.f32.mrf.mxu0  ;;  %v6254_v14 = vadd.f32 %v11559_v54, %v6178_v39  ;;  %14377 = vst [vmem:[#allocation52_spill] sm:$0xff] %v11566_v26  ;;  %v6333_v33 = vadd.f32 %v6317_v18, %v11566_v26  ;;  %v11583_v41 = vsel %vm6105_vm15, %v6133_v9, %v6134_v1 }
 0x418   :  { %14376 = vst [vmem:[#allocation36_spill] sm:$0xff] %v11562_v13 }
 0x419   :  { %v6270_v7 = vadd.f32 %v6254_v14, %v11489_v43  ;;  %14379 = vst [vmem:[#allocation92_spill] sm:$0xff] %v11583_v41  ;;  %v5982_v43 = vpop.permute.xlu1 %5981  ;;  %v4083_v36 = vpop.f32.mrf.mxu1  ;;  %v6349_v48 = vadd.f32 %v6333_v33, %v11583_v41 }
 0x41a   :  { %v6003_v18 = vsel %vm1343_vm10, %v5982_v43, %v5984_v29 }
 0x41b   :  { %v6298_v49 = vadd.f32 %v6270_v7, %v11497_v32  ;;  %v6209_v7 = vrot.slane %v11566_v26, 2  ;;  %v6210_v32 = vrot.slane %v6068_v28, 2  ;;  %v6021_v3 = vrot.slane %v6003_v18, 7  ;;  %v11605_v28 = vld [vmem:[%s13850_s10] ss:$0 sm:$0xff]  ;;  %v5986_v26 = vpop.permute.xlu0 %5985 }
 0x41c   :  { %v11576_v39 = vpop.f32.mrf.mxu2  ;;  %v11578_v54 = vpop.f32.mrf.mxu3 }
 0x41d   :  { %v6322_v14 = vadd.f32 %v6298_v49, %v11512_v5  ;;  %v11594_v49 = vpop.permute.xlu2 %6379  ;;  %v11597_v9 = vsel %vm6181_vm2, %v6209_v7, %v6210_v32  ;;  %v11609_v33 = vsel %vm1496_vm1, 0.0, %v6021_v3  ;;  %v6073_v29 = vsel %vm1496_vm1, %v6021_v3, 0.0  ;;  %v11615_v32 = vld [vmem:[%s13846_s6] ss:$0 sm:$0xff] }
 0x41e   :  { %14381 = vst [vmem:[#allocation65_spill] sm:$0xff] %v11594_v49  ;;  %v6365_v1 = vadd.f32 %v6349_v48, %v11597_v9  ;;  %v3935_v48 = vadd.f32 %v11605_v28, %v11269_v58  ;;  %v6148_v3 = vrot.slane %v11609_v33, 1  ;;  %v6149_v41 = vrot.slane %v6073_v29, 1 }
 0x41f   :  { %v4032_v55 = vpop.f32.mrf.mxu0  ;;  %14382 = vst [vmem:[#allocation41_spill] sm:$0xff] %v11597_v9  ;;  %v6271_v58 = vadd.f32 %v11519_v6, %v11609_v33  ;;  %v6225_v60 = vrot.slane %v6073_v29, 2 }
 0x420   :  { %v6438_v43 = vmul.f32 %v11594_v49, %v6365_v1  ;;  %14383 = vst [vmem:[#allocation91_spill] sm:$0xff] %v11609_v33  ;;  %v3984_v9 = vadd.f32 %v11494_v12, %v3935_v48  ;;  %v11634_v11 = vsel %vm6105_vm15, %v6148_v3, %v6149_v41  ;;  %v3937_v12 = vadd.f32 %v11605_v28, %v11292_v46 }
 0x421   :  { %7831 = vmatmul.msk.bf16.gmra.mxu2 %vm2073_vm14, %v3510_v51  ;;  %v11619_v51 = vpop.f32.mrf.mxu1  ;;  %v5988_v7 = vpop.permute.xlu1 %5987  ;;  %14385 = vst [vmem:[#allocation56_spill] sm:$0xff] %v11634_v11  ;;  %v6224_v48 = vrot.slane %v11609_v33, 2 }
 0x422   :  { %v11624_v1 = vadd.f32 %v11615_v32, %v6438_v43  ;;  %v6004_v61 = vsel %vm1343_vm10, %v5986_v26, %v5988_v7  ;;  %v4033_v37 = vadd.f32 %v4032_v55, %v3984_v9  ;;  %v6299_v55 = vadd.f32 %v6271_v58, %v11634_v11 }
 0x423   :  { %v6022_v43 = vrot.slane %v6004_v61, 7  ;;  %v3986_v6 = vadd.f32 %v11551_v44, %v3937_v12  ;;  %v11652_v29 = vsel %vm6181_vm2, %v6224_v48, %v6225_v60  ;;  %v3940_v60 = vadd.f32 %v11605_v28, %v11310_v53 }
 0x424   :  { %v11592_v0 = vpop.f32.mrf.mxu2  ;;  %v11599_v42 = vpop.f32.mrf.mxu3  ;;  %14384 = vst [vmem:[#allocation61_spill] sm:$0xff] %v11624_v1  ;;  %v6338_v1 = vadd.f32 %v6322_v14, %v11609_v33  ;;  %v4082_v26 = vadd.f32 %v4081_v16, %v4033_v37  ;;  %v6323_v58 = vadd.f32 %v6299_v55, %v11652_v29 }
 0x425   :  { %v11640_v8 = vpop.permute.xlu2 %6400  ;;  %v11647_v61 = vsel %vm1496_vm1, 0.0, %v6022_v43  ;;  %v6074_v14 = vsel %vm1496_vm1, %v6022_v43, 0.0  ;;  %14388 = vst [vmem:[#allocation103_spill] sm:$0xff] %v11652_v29 }
 0x426   :  { %14386 = vst [vmem:[#allocation40_spill] sm:$0xff] %v11640_v8  ;;  %v6354_v46 = vadd.f32 %v6338_v1, %v11634_v11  ;;  %v6280_v44 = vrot.slane %v11647_v61, 1  ;;  %v6281_v12 = vrot.slane %v6074_v14, 1  ;;  %v11659_v8 = vpop.permute.xlu0 %6386  ;;  %v6305_v53 = vrot.slane %v6074_v14, 2 }
 0x427   :  { %v4034_v5 = vpop.f32.mrf.mxu0  ;;  %14387 = vst [vmem:[#allocation13_spill] sm:$0xff] %v11647_v61 }
 0x428   :  { %v4035_v37 = vadd.f32 %v4034_v5, %v3986_v6  ;;  %v6370_v33 = vadd.f32 %v6354_v46, %v11652_v29  ;;  %14389 = vst [vmem:[#allocation39_spill] sm:$0xff] %v11659_v8  ;;  %v6339_v5 = vadd.f32 %v6323_v58, %v11647_v61  ;;  %v11665_v55 = vsel %vm6105_vm15, %v6280_v44, %v6281_v12 }
 0x429   :  { %v11644_v41 = vpop.f32.mrf.mxu1  ;;  %14390 = vst [vmem:[#allocation53_spill] sm:$0xff] %v11665_v55  ;;  %v3989_v46 = vadd.f32 %v11578_v54, %v3940_v60  ;;  %v3942_v58 = vadd.f32 %v11605_v28, %v11333_v59 }
 0x42a   :  { %v4084_v1 = vadd.f32 %v4083_v36, %v4035_v37  ;;  %v6304_v36 = vrot.slane %v11647_v61, 2 }
 0x42c   :  { %v11621_v18 = vpop.f32.mrf.mxu2  ;;  %v11629_v13 = vpop.f32.mrf.mxu3  ;;  %v11688_v14 = vsel %vm6181_vm2, %v6304_v36, %v6305_v53 }
 0x42d   :  { %v11667_v6 = vpop.permute.xlu2 %6414  ;;  %14393 = vst [vmem:[#allocation75_spill] sm:$0xff] %v11688_v14 }
 0x42e   :  { %14391 = vst [vmem:[#allocation99_spill] sm:$0xff] %v11667_v6  ;;  %v6443_v29 = vmul.f32 %v11667_v6, %v6370_v33  ;;  %v3991_v33 = vadd.f32 %v11599_v42, %v3942_v58 }
 0x42f   :  { %v4037_v49 = vpop.f32.mrf.mxu0 }
 0x430   :  { %v4038_v12 = vadd.f32 %v4037_v49, %v3989_v46 }
 0x431   :  { %v11676_v44 = vpop.f32.mrf.mxu1 }
 0x434   :  { %v4130_v9 = vpop.f32.mrf.mxu2 }
 0x435   :  { %v4131_v7 = vadd.f32 %v4130_v9, %v4082_v26  ;;  %v11656_v26 = vpop.f32.mrf.mxu3 }
 0x437   :  { %v4039_v3 = vpop.f32.mrf.mxu0  ;;  %v4170_v16 = vmax.f32 %v4131_v7, 0.0 }
 0x439   :  { %v4186_v9 = vpack.c.bf16 %v4170_v16, %v4170_v16 }
 0x43b   :  { %v4203_v43 = vshrl.u32 %v4186_v9, 16  ;;  %v4206_v11 = vshll.u32 %v4186_v9, 16  ;;  %v6355_v9 = vadd.f32 %v6339_v5, %v11665_v55  ;;  %v4040_v5 = vadd.f32 %v4039_v3, %v3991_v33 }
 0x43c   :  { %v4132_v48 = vpop.f32.mrf.mxu2 }
 0x43d   :  { %v4205_v7 = vrot.slane %v4203_v43, 7  ;;  %v4133_v16 = vadd.f32 %v4132_v48, %v4084_v1  ;;  %v11692_v60 = vpop.f32.mrf.mxu3  ;;  %v6371_v42 = vadd.f32 %v6355_v9, %v11688_v14  ;;  %v3945_v9 = vadd.f32 %v11605_v28, %v11357_v30 }
 0x43f   :  { %v11671_v8 = vpop.f32.mrf.mxu0  ;;  %v4208_v37 = vor.u32 %v4206_v11, %v4205_v7  ;;  %v4171_v62 = vmax.f32 %v4133_v16, 0.0  ;;  %v11685_v11 = vadd.f32 %v11615_v32, %v6443_v29  ;;  %v11696_v16 = vpop.permute.xlu0 %6421 }
 0x440   :  { %14394 = vst [vmem:[#allocation100_spill] sm:$0xff] %v11696_v16 }
 0x441   :  { %v4330_v54 = vsel %vm9328_vm4, 0, %v4208_v37  ;;  %v4187_v43 = vpack.c.bf16 %v4171_v62, %v4171_v62  ;;  %14392 = vst [vmem:[#allocation105_spill] sm:$0xff] %v11685_v11  ;;  %v4087_v62 = vadd.f32 %v11619_v51, %v4038_v12 }
 0x442   :  { %v4346_v1 = vsel %vm9350_vm6, %v4330_v54, 0  ;;  %v6444_v54 = vmul.f32 %v11696_v16, %v6371_v42 }
 0x443   :  { %v11690_v59 = vunpack.c.l.b16 %v4346_v1  ;;  %v4377_v49 = vunpack.c.h.b16 %v4346_v1  ;;  %v4210_v48 = vshrl.u32 %v4187_v43, 16  ;;  %v4213_v53 = vshll.u32 %v4187_v43, 16 }
 0x444   :  { %v4135_v7 = vpop.f32.mrf.mxu2  ;;  %v11704_v12 = vadd.f32 %v11615_v32, %v6444_v54  ;;  %v4089_v43 = vadd.f32 %v11644_v41, %v4040_v5 }
 0x445   :  { %v4404_v29 = vpack.c.b16 %v11690_v59, %v11690_v59  ;;  %v4405_v46 = vpack.c.b16 %v4377_v49, %v4377_v49  ;;  %v4212_v36 = vrot.slane %v4210_v48, 7  ;;  %v4136_v37 = vadd.f32 %v4135_v7, %v4087_v62  ;;  %v11711_v62 = vpop.f32.mrf.mxu1 }
 0x446   :  { %14395 = vst [vmem:[#allocation17_spill] sm:$0xff] %v11704_v12 }
 0x447   :  { %v11700_v58 = vpop.f32.mrf.mxu0  ;;  %v4630_v1 = vrot.slane %v4405_v46, 5  ;;  %v4215_v3 = vor.u32 %v4213_v53, %v4212_v36  ;;  %v4172_v33 = vmax.f32 %v4136_v37, 0.0  ;;  %v7832_v51 = vrot.slane %v4404_v29, 9 }
 0x448   :  { %v4433_v48 = vshrl.u32 %v4404_v29, 16  ;;  %v4436_v32 = vshll.u32 %v4404_v29, 16  ;;  %v4442_v41 = vshll.u32 %v4405_v46, 16 }
 0x449   :  { %v4331_v49 = vsel %vm9328_vm4, 0, %v4215_v3  ;;  %v4188_v42 = vpack.c.bf16 %v4172_v33, %v4172_v33  ;;  %v11717_v36 = vsel %vm9413_vm9, %v7832_v51, %v4630_v1  ;;  %v3994_v3 = vadd.f32 %v11629_v13, %v3945_v9  ;;  %v11725_v33 = vpop.f32.mrf.mxu3 }
 0x44a   :  { %v4347_v7 = vsel %vm9350_vm6, %v4331_v49, 0  ;;  %v13976_v30 = vunpack.c.l.b16 %v11717_v36  ;;  %v4435_v54 = vrot.slane %v4433_v48, 4  ;;  %v4438_v12 = vrot.slane %v4436_v32, 5 }
 0x44b   :  { %v4378_v53 = vunpack.c.l.b16 %v4347_v7  ;;  %v4379_v37 = vunpack.c.h.b16 %v4347_v7  ;;  %v4217_v5 = vshrl.u32 %v4188_v42, 16  ;;  %v4220_v1 = vshll.u32 %v4188_v42, 16 }
 0x44c   :  { %v4137_v11 = vpop.f32.mrf.mxu2  ;;  %v4790_v7 = vpack.c.b16 %v13976_v30, %v9789_v31  ;;  %v4439_v46 = vor.u32 %v4438_v12, %v4435_v54  ;;  %v4043_v9 = vadd.f32 %v11671_v8, %v3994_v3  ;;  %v4444_v55 = vrot.slane %v4442_v41, 5 }
 0x44d   :  { %v11721_v14 = vpack.c.b16 %v4378_v53, %v4378_v53  ;;  %v11723_v49 = vpack.c.b16 %v4379_v37, %v4379_v37  ;;  %v4138_v51 = vadd.f32 %v4137_v11, %v4089_v43  ;;  %v4219_v29 = vrot.slane %v4217_v5, 7  ;;  %v11739_v30 = vpop.f32.mrf.mxu1 }
 0x44e   :  { %v4814_v13 = vpack.c.b16 %v4378_v53, %v11690_v59  ;;  %4798 = vrot.lane.b32.xlu2 %v4790_v7, %s8394_s4  ;;  %v4440_v11 = vrot.slane %v4439_v46, 4  ;;  %v3947_v43 = vadd.f32 %v11605_v28, %v11384_v19  ;;  %v14396_v16 = vunpack.c.l.b16 %v11717_v36 }
 0x44f   :  { %v11730_v48 = vpop.f32.mrf.mxu0  ;;  %v4173_v32 = vmax.f32 %v4138_v51, 0.0  ;;  %v4222_v37 = vor.u32 %v4220_v1, %v4219_v29  ;;  %v4634_v5 = vrot.slane %v11723_v49, 5  ;;  %v7833_v54 = vrot.slane %v11721_v14, 9 }
 0x450   :  { %4822 = vrot.lane.b32.xlu1 %v4814_v13, %s8392_s3  ;;  %v4445_v8 = vsel %vm9472_vm13, %v4440_v11, %v4444_v55  ;;  %v4092_v1 = vadd.f32 %v11676_v44, %v4043_v9  ;;  %v3996_v51 = vadd.f32 %v11656_v26, %v3947_v43 }
 0x451   :  { %v4189_v42 = vpack.c.bf16 %v4173_v32, %v4173_v32  ;;  %v4332_v12 = vsel %vm9328_vm4, 0, %v4222_v37  ;;  %v11749_v19 = vunpack.c.l.b16 %v4445_v8  ;;  %v11764_v26 = vsel %vm9413_vm9, %v7833_v54, %v4634_v5  ;;  %v11767_v43 = vpop.f32.mrf.mxu3 }
 0x452   :  { %v4348_v3 = vsel %vm9350_vm6, %v4332_v12, 0  ;;  %v4045_v9 = vadd.f32 %v11700_v58, %v3996_v51  ;;  %v4777_v5 = vunpack.c.l.b16 %v11764_v26  ;;  %v4447_v51 = vshrl.u32 %v11721_v14, 16 }
 0x453   :  { %v4224_v41 = vshrl.u32 %v4189_v42, 16  ;;  %v4380_v29 = vunpack.c.l.b16 %v4348_v3  ;;  %v4381_v7 = vunpack.c.h.b16 %v4348_v3  ;;  %v4227_v32 = vshll.u32 %v4189_v42, 16 }
 0x454   :  { %v4140_v13 = vpop.f32.mrf.mxu2  ;;  %v4752_v55 = vpack.c.b16 %v11749_v19, %v9494_v52  ;;  %v3950_v3 = vadd.f32 %v11605_v28, %v11400_v35  ;;  %v4094_v35 = vadd.f32 %v11711_v62, %v4045_v9  ;;  %v4449_v26 = vrot.slane %v4447_v51, 4 }
 0x455   :  { %v4226_v46 = vrot.slane %v4224_v41, 7  ;;  %v4141_v37 = vadd.f32 %v4140_v13, %v4092_v1  ;;  %v11754_v11 = vpack.c.b16 %v4380_v29, %v4380_v29  ;;  %v11756_v61 = vpack.c.b16 %v4381_v7, %v4381_v7 }
 0x456   :  { %v11760_v44 = vpack.c.b16 %v4380_v29, %v4378_v53  ;;  %4760 = vrot.lane.b32.xlu0 %v4752_v55, %s8391_s28  ;;  %v4850_v20 = vpack.c.b16 %v4777_v5, %v14396_v16  ;;  %v3955_v16 = vadd.f32 %v11605_v28, %v11435_v10 }
 0x457   :  { %v11758_v12 = vpop.f32.mrf.mxu0  ;;  %v4229_v42 = vor.u32 %v4227_v32, %v4226_v46  ;;  %v4174_v8 = vmax.f32 %v4141_v37, 0.0  ;;  %v4638_v58 = vrot.slane %v11756_v61, 5  ;;  %v7834_v1 = vrot.slane %v11754_v11, 9  ;;  %v11787_v37 = vpop.f32.mrf.mxu1 }
 0x458   :  { %4876 = vrot.lane.b32.xlu2 %v11760_v44, %s8394_s4  ;;  %v3999_v46 = vadd.f32 %v11692_v60, %v3950_v3  ;;  %v4456_v32 = vshll.u32 %v11723_v49, 16  ;;  %v4461_v9 = vshrl.u32 %v11754_v11, 16 }
 0x459   :  { %v4333_v53 = vsel %vm9328_vm4, 0, %v4229_v42  ;;  %v4190_v41 = vpack.c.bf16 %v4174_v8, %v4174_v8  ;;  %v4450_v42 = vshll.u32 %v11721_v14, 16  ;;  %v11797_v60 = vsel %vm9413_vm9, %v7834_v1, %v4638_v58  ;;  %v11809_v58 = vpop.f32.mrf.mxu3 }
 0x45a   :  { %v4349_v54 = vsel %vm9350_vm6, %v4333_v53, 0  ;;  %v3952_v14 = vadd.f32 %v11605_v28, %v11423_v2  ;;  %v4048_v36 = vadd.f32 %v11730_v48, %v3999_v46 }
 0x45b   :  { %v11782_v7 = vunpack.c.l.b16 %v4349_v54  ;;  %v4231_v13 = vshrl.u32 %v4190_v41, 16  ;;  %v4234_v53 = vshll.u32 %v4190_v41, 16  ;;  %v4452_v49 = vrot.slane %v4450_v42, 5 }
 0x45c   :  { %v4142_v55 = vpop.f32.mrf.mxu2  ;;  %v4001_v48 = vadd.f32 %v11725_v33, %v3952_v14  ;;  %v4383_v46 = vunpack.c.h.b16 %v4349_v54  ;;  %v4470_v42 = vshll.u32 %v11756_v61, 16 }
 0x45d   :  { %v4233_v8 = vrot.slane %v4231_v13, 7  ;;  %v4143_v6 = vadd.f32 %v4142_v55, %v4094_v35  ;;  %v4815_v62 = vpack.c.b16 %v11782_v7, %v4380_v29  ;;  %v4453_v29 = vor.u32 %v4452_v49, %v4449_v26 }
 0x45e   :  { %4858 = vrot.lane.b32.xlu0 %v4850_v20, %s8391_s28  ;;  %v4464_v20 = vshll.u32 %v11754_v11, 16  ;;  %v4458_v13 = vrot.slane %v4456_v32, 5  ;;  %v4463_v35 = vrot.slane %v4461_v9, 4  ;;  %v11838_v14 = vpack.c.b16 %v4383_v46, %v4383_v46 }
 0x45f   :  { %v11792_v4 = vpop.f32.mrf.mxu0  ;;  %v4236_v3 = vor.u32 %v4234_v53, %v4233_v8  ;;  %v4175_v51 = vmax.f32 %v4143_v6, 0.0  ;;  %v13980_v6 = vunpack.c.l.b16 %v11797_v60  ;;  %v4454_v10 = vrot.slane %v4453_v29, 4  ;;  %v11830_v54 = vpop.f32.mrf.mxu1 }
 0x460   :  { %4824 = vrot.lane.b32.xlu2 %v4815_v62, %s8392_s3  ;;  %v4097_v8 = vadd.f32 %v11739_v30, %v4048_v36  ;;  %v4466_v32 = vrot.slane %v4464_v20, 5  ;;  %v11824_v62 = vpack.c.b16 %v11782_v7, %v11782_v7  ;;  %v4050_v29 = vadd.f32 %v11758_v12, %v4001_v48 }
 0x461   :  { %v4334_v41 = vsel %vm9328_vm4, 0, %v4236_v3  ;;  %v4191_v1 = vpack.c.bf16 %v4175_v51, %v4175_v51  ;;  %v4459_v11 = vsel %vm9472_vm13, %v4454_v10, %v4458_v13  ;;  %v11828_v33 = vpack.c.b16 %v13980_v6, %v4777_v5 }
 0x462   :  { %v4350_v2 = vsel %vm9350_vm6, %v4334_v41, 0  ;;  %v4467_v3 = vor.u32 %v4466_v32, %v4463_v35  ;;  %v11836_v51 = vunpack.c.l.b16 %v4459_v11  ;;  %v4472_v5 = vrot.slane %v4470_v42, 5  ;;  %v11856_v11 = vpop.f32.mrf.mxu3 }
 0x463   :  { %v11816_v55 = vunpack.c.l.b16 %v4350_v2  ;;  %v4238_v26 = vshrl.u32 %v4191_v1, 16  ;;  %v4241_v9 = vshll.u32 %v4191_v1, 16  ;;  %14397 = vst [vmem:[#allocation55_spill] sm:$0xff] %v11828_v33  ;;  %v4385_v36 = vunpack.c.h.b16 %v4350_v2 }
 0x464   :  { %v4145_v53 = vpop.f32.mrf.mxu2  ;;  %v4468_v20 = vrot.slane %v4467_v3, 4  ;;  %v4475_v46 = vshrl.u32 %v11824_v62, 16  ;;  %v4478_v2 = vshll.u32 %v11824_v62, 16  ;;  %v4004_v12 = vadd.f32 %v11767_v43, %v3955_v16 }
 0x465   :  { %v4240_v49 = vrot.slane %v4238_v26, 7  ;;  %v11834_v61 = vpack.c.b16 %v11816_v55, %v11816_v55  ;;  %v4146_v30 = vadd.f32 %v4145_v53, %v4097_v8  ;;  %v4484_v8 = vshll.u32 %v11838_v14, 16 }
 0x466   :  { %4800 = vrot.lane.b32.xlu0 %v11828_v33, %s8394_s4  ;;  %v4473_v26 = vsel %vm9472_vm13, %v4468_v20, %v4472_v5  ;;  %v11854_v53 = vpack.c.b16 %v4385_v36, %v4385_v36  ;;  %v4099_v43 = vadd.f32 %v11787_v37, %v4050_v29  ;;  %v4480_v3 = vrot.slane %v4478_v2, 5 }
 0x467   :  { %v4243_v41 = vor.u32 %v4241_v9, %v4240_v49  ;;  %v4176_v1 = vmax.f32 %v4146_v30, 0.0  ;;  %v4054_v13 = vpop.f32.mrf.mxu0  ;;  %v4489_v42 = vshrl.u32 %v11834_v61, 16  ;;  %v11858_v32 = vunpack.c.l.b16 %v4473_v26 }
 0x468   :  { %v4477_v49 = vrot.slane %v4475_v46, 4  ;;  %v11867_v36 = vpack.c.b16 %v11816_v55, %v11782_v7  ;;  %v4492_v10 = vshll.u32 %v11834_v61, 16  ;;  %v4498_v6 = vshll.u32 %v11854_v53, 16  ;;  %v4103_v7 = vpop.f32.mrf.mxu1 }
 0x469   :  { %v4335_v35 = vsel %vm9328_vm4, 0, %v4243_v41  ;;  %v4192_v48 = vpack.c.bf16 %v4176_v1, %v4176_v1  ;;  %v4753_v5 = vpack.c.b16 %v11858_v32, %v11836_v51  ;;  %v4491_v1 = vrot.slane %v4489_v42, 4 }
 0x46a   :  { %v4351_v9 = vsel %vm9350_vm6, %v4335_v35, 0  ;;  %v4481_v46 = vor.u32 %v4480_v3, %v4477_v49  ;;  %v4486_v35 = vrot.slane %v4484_v8, 5  ;;  %v4053_v29 = vadd.f32 %v11792_v4, %v4004_v12  ;;  %v4010_v33 = vpop.f32.mrf.mxu3 }
 0x46b   :  { %v4245_v30 = vshrl.u32 %v4192_v48, 16  ;;  %v4248_v41 = vshll.u32 %v4192_v48, 16  ;;  %v11871_v37 = vunpack.c.l.b16 %v4351_v9  ;;  %4762 = vrot.lane.b32.xlu1 %v4753_v5, %s8391_s28  ;;  %v3957_v49 = vadd.f32 %v11605_v28, %v11454_v27 }
 0x46c   :  { %v4147_v16 = vpop.f32.mrf.mxu2  ;;  %v4482_v42 = vrot.slane %v4481_v46, 4  ;;  %v3960_v8 = vadd.f32 %v11605_v28, %v11469_v22  ;;  %v7835_v4 = vrot.slane %v11824_v62, 9  ;;  %v11891_v27 = vadd.f32 %v11605_v28, %v11503_v15 }
 0x46d   :  { %v4247_v20 = vrot.slane %v4245_v30, 7  ;;  %v4148_v26 = vadd.f32 %v4147_v16, %v4099_v43  ;;  %v4494_v30 = vrot.slane %v4492_v10, 5  ;;  %v4642_v43 = vrot.slane %v11838_v14, 5 }
 0x46e   :  { %4878 = vrot.lane.b32.xlu0 %v11867_v36, %s8394_s4  ;;  %v4006_v22 = vadd.f32 %v11809_v58, %v3957_v49  ;;  %v4102_v14 = vadd.f32 %v11830_v54, %v4053_v29  ;;  %v4500_v62 = vrot.slane %v4498_v6, 5  ;;  %v4414_v54 = vpack.c.b16 %v11871_v37, %v11871_v37 }
 0x46f   :  { %v4250_v2 = vor.u32 %v4248_v41, %v4247_v20  ;;  %v4177_v48 = vmax.f32 %v4148_v26, 0.0  ;;  %v11885_v3 = vpop.f32.mrf.mxu0  ;;  %v4487_v41 = vsel %vm9472_vm13, %v4482_v42, %v4486_v35  ;;  %v4495_v10 = vor.u32 %v4494_v30, %v4491_v1 }
 0x470   :  { %v4387_v20 = vunpack.c.h.b16 %v4351_v9  ;;  %v4646_v26 = vrot.slane %v11854_v53, 5  ;;  %v11900_v42 = vunpack.c.l.b16 %v4487_v41  ;;  %v4055_v58 = vadd.f32 %v4054_v13, %v4006_v22 }
 0x471   :  { %v4336_v12 = vsel %vm9328_vm4, 0, %v4250_v2  ;;  %v4193_v16 = vpack.c.bf16 %v4177_v48, %v4177_v48  ;;  %v4816_v48 = vpack.c.b16 %v11871_v37, %v11816_v55  ;;  %v4496_v15 = vrot.slane %v4495_v10, 4 }
 0x472   :  { %v4352_v1 = vsel %vm9350_vm6, %v4336_v12, 0  ;;  %v11904_v6 = vsel %vm9413_vm9, %v7835_v4, %v4642_v43  ;;  %v4415_v53 = vpack.c.b16 %v4387_v20, %v4387_v20  ;;  %v7836_v43 = vrot.slane %v11834_v61, 9  ;;  %v4106_v20 = vpop.f32.mrf.mxu1  ;;  %v4013_v34 = vpop.f32.mrf.mxu3 }
 0x473   :  { %v4252_v46 = vshrl.u32 %v4193_v16, 16  ;;  %v4255_v30 = vshll.u32 %v4193_v16, 16  ;;  %4894 = vrot.lane.b32.xlu1 %v4753_v5, %s8392_s3  ;;  %v4501_v29 = vsel %vm9472_vm13, %v4496_v15, %v4500_v62  ;;  %v11912_v49 = vunpack.c.l.b16 %v4352_v1 }
 0x474   :  { %v4150_v2 = vpop.f32.mrf.mxu2  ;;  %v11914_v12 = vunpack.c.l.b16 %v4501_v29  ;;  %v3965_v4 = vadd.f32 %v11605_v28, %v11555_v21  ;;  %v4779_v41 = vunpack.c.l.b16 %v11904_v6  ;;  %v11924_v10 = vadd.f32 %v11605_v28, %v11576_v39 }
 0x475   :  { %v4151_v35 = vadd.f32 %v4150_v2, %v4102_v14  ;;  %v4254_v9 = vrot.slane %v4252_v46, 7  ;;  %v4009_v22 = vadd.f32 %v11856_v11, %v3960_v8  ;;  %v4104_v61 = vadd.f32 %v4103_v7, %v4055_v58 }
 0x476   :  { %4826 = vrot.lane.b32.xlu0 %v4816_v48, %s8392_s3  ;;  %v4754_v14 = vpack.c.b16 %v11914_v12, %v11900_v42  ;;  %v4389_v62 = vunpack.c.h.b16 %v4352_v1  ;;  %v4503_v2 = vshrl.u32 %v4414_v54, 16  ;;  %v4650_v48 = vrot.slane %v4415_v53, 5 }
 0x477   :  { %v4178_v55 = vmax.f32 %v4151_v35, 0.0  ;;  %v4257_v13 = vor.u32 %v4255_v30, %v4254_v9  ;;  %v11933_v35 = vpack.c.b16 %v11912_v49, %v11912_v49  ;;  %v4059_v39 = vpop.f32.mrf.mxu0  ;;  %v4647_v8 = vsel %vm9413_vm9, %v7836_v43, %v4646_v26 }
 0x478   :  { %4764 = vrot.lane.b32.xlu2 %v4754_v14, %s8391_s28  ;;  %v4506_v15 = vshll.u32 %v4414_v54, 16  ;;  %v14398_v58 = vunpack.c.l.b16 %v11797_v60  ;;  %v4505_v29 = vrot.slane %v4503_v2, 4  ;;  %v4512_v5 = vshll.u32 %v4415_v53, 16 }
 0x479   :  { %v4194_v16 = vpack.c.bf16 %v4178_v55, %v4178_v55  ;;  %v4337_v21 = vsel %vm9328_vm4, 0, %v4257_v13  ;;  %v7837_v55 = vrot.slane %v4414_v54, 9  ;;  %v4417_v47 = vpack.c.b16 %v4389_v62, %v4389_v62 }
 0x47a   :  { %v4851_v9 = vpack.c.b16 %v4779_v41, %v14398_v58  ;;  %v4353_v6 = vsel %vm9350_vm6, %v4337_v21, 0  ;;  %v4508_v13 = vrot.slane %v4506_v15, 5  ;;  %v4058_v43 = vadd.f32 %v11885_v3, %v4009_v22 }
 0x47b   :  { %v4259_v46 = vshrl.u32 %v4194_v16, 16  ;;  %v4262_v1 = vshll.u32 %v4194_v16, 16  ;;  %v4780_v16 = vunpack.c.l.b16 %v4647_v8  ;;  %v4517_v60 = vshrl.u32 %v11933_v35, 16 }
 0x47c   :  { %v4152_v11 = vpop.f32.mrf.mxu2  ;;  %4860 = vrot.lane.b32.xlu1 %v4851_v9, %s8391_s28  ;;  %v4520_v54 = vshll.u32 %v11933_v35, 16  ;;  %v4014_v2 = vadd.f32 %v4013_v34, %v3965_v4  ;;  %v11951_v62 = vsel %vm9413_vm9, %v7837_v55, %v4650_v48  ;;  %v4514_v3 = vrot.slane %v4512_v5, 5 }
 0x47d   :  { %v4261_v7 = vrot.slane %v4259_v46, 7  ;;  %v4153_v30 = vadd.f32 %v4152_v11, %v4104_v61  ;;  %v4509_v46 = vor.u32 %v4508_v13, %v4505_v29  ;;  %v4011_v61 = vadd.f32 %v4010_v33, %v11891_v27 }
 0x47e   :  { %v4687_v11 = vunpack.c.h.b16 %v4353_v6  ;;  %v4519_v15 = vrot.slane %v4517_v60, 4  ;;  %v4526_v22 = vshll.u32 %v4417_v47, 16  ;;  %v11953_v8 = vunpack.c.l.b16 %v4353_v6 }
 0x47f   :  { %v4264_v23 = vor.u32 %v4262_v1, %v4261_v7  ;;  %v4179_v26 = vmax.f32 %v4153_v30, 0.0  ;;  %v4108_v1 = vpop.f32.mrf.mxu1  ;;  %v11956_v33 = vpack.c.b16 %v4780_v16, %v4779_v41  ;;  %v4107_v27 = vadd.f32 %v4106_v20, %v4058_v43  ;;  %v4062_v6 = vpop.f32.mrf.mxu0 }
 0x480   :  { %4896 = vrot.lane.b32.xlu2 %v4754_v14, %s8392_s3  ;;  %v4510_v4 = vrot.slane %v4509_v46, 4  ;;  %v4522_v58 = vrot.slane %v4520_v54, 5  ;;  %v4781_v5 = vunpack.c.l.b16 %v11951_v62  ;;  %v4654_v30 = vrot.slane %v4417_v47, 5 }
 0x481   :  { %v4195_v21 = vpack.c.bf16 %v4179_v26, %v4179_v26  ;;  %v4338_v53 = vsel %vm9328_vm4, 0, %v4264_v23  ;;  %14399 = vst [vmem:[#allocation8_spill] sm:$0xff] %v11956_v33  ;;  %v11958_v23 = vpack.c.b16 %v4687_v11, %v4687_v11  ;;  %v7838_v14 = vrot.slane %v11933_v35, 9 }
 0x482   :  { %v4354_v48 = vsel %vm9350_vm6, %v4338_v53, 0  ;;  %v4523_v29 = vor.u32 %v4522_v58, %v4519_v15  ;;  %v4528_v41 = vrot.slane %v4526_v22, 5  ;;  %v4690_v20 = vpack.c.b16 %v11953_v8, %v11953_v8  ;;  %v4015_v15 = vpop.f32.mrf.mxu3 }
 0x483   :  { %v4266_v7 = vshrl.u32 %v4195_v21, 16  ;;  %v4060_v13 = vadd.f32 %v4059_v39, %v4011_v61  ;;  %v4269_v26 = vshll.u32 %v4195_v21, 16  ;;  %v11968_v43 = vunpack.c.l.b16 %v4354_v48 }
 0x484   :  { %v4155_v34 = vpop.f32.mrf.mxu2  ;;  %4802 = vrot.lane.b32.xlu1 %v11956_v33, %s8394_s4  ;;  %v4515_v47 = vsel %vm9472_vm13, %v4510_v4, %v4514_v3  ;;  %v4524_v60 = vrot.slane %v4523_v29, 4  ;;  %v4704_v11 = vshll.u32 %v11958_v23, 16  ;;  %v4063_v35 = vadd.f32 %v4062_v6, %v4014_v2 }
 0x485   :  { %v4268_v9 = vrot.slane %v4266_v7, 7  ;;  %v4156_v55 = vadd.f32 %v4155_v34, %v4107_v27  ;;  %14400 = vst [vmem:[#allocation76_spill] sm:$0xff] %v11968_v43  ;;  %v4852_v53 = vpack.c.b16 %v4781_v5, %v4780_v16  ;;  %v11977_v61 = vpack.c.b16 %v11912_v49, %v11871_v37 }
 0x486   :  { %v4529_v39 = vsel %vm9472_vm13, %v4524_v60, %v4528_v41  ;;  %v11981_v21 = vsel %vm9413_vm9, %v7838_v14, %v4654_v30  ;;  %v4391_v3 = vunpack.c.h.b16 %v4354_v48  ;;  %v11983_v22 = vunpack.c.l.b16 %v4515_v47 }
 0x487   :  { %v4180_v46 = vmax.f32 %v4156_v55, 0.0  ;;  %v4271_v54 = vor.u32 %v4269_v26, %v4268_v9  ;;  %v11985_v7 = vunpack.c.l.b16 %v4529_v39  ;;  %v4109_v2 = vadd.f32 %v4108_v1, %v4060_v13  ;;  %v4111_v1 = vpop.f32.mrf.mxu1 }
 0x488   :  { %v11989_v16 = vpack.c.b16 %v11968_v43, %v11968_v43  ;;  %4862 = vrot.lane.b32.xlu2 %v4852_v53, %s8391_s28  ;;  %v4695_v34 = vshrl.u32 %v4690_v20, 16  ;;  %v4698_v4 = vshll.u32 %v4690_v20, 16  ;;  %v4782_v30 = vunpack.c.l.b16 %v11981_v21  ;;  %v12005_v53 = vpop.permute.xlu1 %6393 }
 0x489   :  { %v4196_v62 = vpack.c.bf16 %v4180_v46, %v4180_v46  ;;  %v4339_v58 = vsel %vm9328_vm4, 0, %v4271_v54  ;;  %v4755_v48 = vpack.c.b16 %v11985_v7, %v11983_v22  ;;  %v4724_v41 = vrot.slane %v11958_v23, 5  ;;  %14401 = vst [vmem:[#allocation18_spill] sm:$0xff] %v12005_v53 }
 0x48a   :  { %v4697_v29 = vrot.slane %v4695_v34, 4  ;;  %v4700_v14 = vrot.slane %v4698_v4, 5  ;;  %v11998_v13 = vpack.c.b16 %v4391_v3, %v4391_v3  ;;  %v7846_v46 = vrot.slane %v4690_v20, 9 }
 0x48b   :  { %v4273_v27 = vshrl.u32 %v4196_v62, 16  ;;  %v4276_v55 = vshll.u32 %v4196_v62, 16  ;;  %4766 = vrot.lane.b32.xlu0 %v4755_v48, %s8391_s28  ;;  %v3970_v47 = vadd.f32 %v11605_v28, %v11592_v0  ;;  %v4706_v62 = vrot.slane %v4704_v11, 5 }
 0x48c   :  { %v4157_v37 = vpop.f32.mrf.mxu2  ;;  %4880 = vrot.lane.b32.xlu1 %v11977_v61, %s8394_s4  ;;  %v4701_v54 = vor.u32 %v4700_v14, %v4697_v29  ;;  %v4016_v39 = vadd.f32 %v4015_v15, %v11924_v10  ;;  %v12010_v23 = vsel %vm9350_vm6, %v4339_v58, 0  ;;  %v12014_v20 = vpack.c.b16 %v4782_v30, %v4781_v5 }
 0x48d   :  { %v4158_v9 = vadd.f32 %v4157_v37, %v4109_v2  ;;  %v4275_v6 = vrot.slane %v4273_v27, 7  ;;  %v4064_v2 = vpop.f32.mrf.mxu0  ;;  %v4531_v0 = vshrl.u32 %v11989_v16, 16  ;;  %v4540_v37 = vshll.u32 %v11998_v13, 16 }
 0x48e   :  { %14402 = vst [vmem:[#allocation77_spill] sm:$0xff] %v12014_v20  ;;  %v4702_v27 = vrot.slane %v4701_v54, 4  ;;  %v4112_v11 = vadd.f32 %v4111_v1, %v4063_v35  ;;  %v12020_v10 = vsel %vm9413_vm9, %v7846_v46, %v4724_v41  ;;  %v4658_v15 = vrot.slane %v11998_v13, 5  ;;  %v4018_v35 = vpop.f32.mrf.mxu3 }
 0x48f   :  { %v4181_v26 = vmax.f32 %v4158_v9, 0.0  ;;  %v4278_v60 = vor.u32 %v4276_v55, %v4275_v6  ;;  %14403 = vst [vmem:[#allocation98_spill] sm:$0xff] %v12020_v10  ;;  %v12024_v4 = vunpack.c.l.b16 %v12010_v23  ;;  %v4817_v58 = vpack.c.b16 %v11953_v8, %v11912_v49 }
 0x490   :  { %4804 = vrot.lane.b32.xlu2 %v12014_v20, %s8394_s4  ;;  %v4707_v29 = vsel %vm9472_vm13, %v4702_v27, %v4706_v62  ;;  %v4065_v14 = vadd.f32 %v4064_v2, %v4016_v39  ;;  %v13982_v41 = vunpack.c.l.b16 %v12020_v10  ;;  %v4533_v13 = vrot.slane %v4531_v0, 4 }
 0x491   :  { %v4197_v21 = vpack.c.bf16 %v4181_v26, %v4181_v26  ;;  %v4340_v3 = vsel %vm9328_vm4, 0, %v4278_v60  ;;  %v4534_v26 = vshll.u32 %v11989_v16, 16  ;;  %v7839_v54 = vrot.slane %v11989_v16, 9  ;;  %v8223_v16 = vld [vmem:[%s13851_s11 + $0x38] sm:$0xff] }
 0x492   :  { %v4356_v5 = vsel %vm9350_vm6, %v4340_v3, 0  ;;  %v4113_v3 = vpop.f32.mrf.mxu1  ;;  %v12043_v62 = vpack.c.b16 %v12024_v4, %v12024_v4  ;;  %v12045_v39 = vunpack.c.l.b16 %v4707_v29  ;;  %v4542_v27 = vrot.slane %v4540_v37, 5  ;;  %5534 = vmatpush.bf16.msrb.mxu3 %v8223_v16 }
 0x493   :  { %v4280_v34 = vshrl.u32 %v4197_v21, 16  ;;  %v4283_v6 = vshll.u32 %v4197_v21, 16  ;;  %v12036_v46 = vunpack.c.l.b16 %v4356_v5  ;;  %4898 = vrot.lane.b32.xlu0 %v4755_v48, %s8392_s3  ;;  %v4019_v21 = vadd.f32 %v4018_v35, %v3970_v47  ;;  %v8239_v48 = vld [vmem:[%s13851_s11 + $0xb8] sm:$0xff]  ;;  %v12064_v35 = vpop.permute.xlu1 %6407 }
 0x494   :  { %v4160_v9 = vpop.f32.mrf.mxu2  ;;  %4828 = vrot.lane.b32.xlu1 %v4817_v58, %s8392_s3  ;;  %v4536_v2 = vrot.slane %v4534_v26, 5  ;;  %v4853_v37 = vpack.c.b16 %v13982_v41, %v4782_v30  ;;  %v4114_v58 = vadd.f32 %v4113_v3, %v4065_v14  ;;  %14404 = vst [vmem:[#allocation87_spill] sm:$0xff] %v12064_v35  ;;  %v12072_v29 = vsel %vm9413_vm9, %v7839_v54, %v4658_v15 }
 0x495   :  { %v4282_v1 = vrot.slane %v4280_v34, 7  ;;  %v4161_v55 = vadd.f32 %v4160_v9, %v4112_v11  ;;  %v4874_v34 = vpack.c.b16 %v9373_v38, %v11953_v8  ;;  %v8231_v8 = vld [vmem:[%s13851_s11 + $0x78] sm:$0xff]  ;;  %5632 = vmatpush.bf16.msrb.mxu1 %v8239_v48  ;;  %v4067_v30 = vpop.f32.mrf.mxu0  ;;  %v4892_v14 = vpack.c.b16 %v9494_v52, %v12045_v39 }
 0x496   :  { %v4537_v9 = vor.u32 %v4536_v2, %v4533_v13  ;;  %5583 = vmatpush.bf16.msrb.mxu0 %v8231_v8  ;;  %v4548_v15 = vshll.u32 %v12043_v62, 16  ;;  %v4393_v48 = vunpack.c.h.b16 %v12010_v23  ;;  %v13983_v16 = vunpack.c.l.b16 %v12072_v29 }
 0x497   :  { %v4285_v60 = vor.u32 %v4283_v6, %v4282_v1  ;;  %v4182_v49 = vmax.f32 %v4161_v55, 0.0  ;;  %v4395_v1 = vunpack.c.h.b16 %v4356_v5  ;;  %v12068_v6 = vpack.c.b16 %v12036_v46, %v12036_v46  ;;  %v8238_v5 = vld [vmem:[%s13851_s11 + $0xb0] sm:$0xff] }
 0x498   :  { %4882 = vrot.lane.b32.xlu2 %v4874_v34, %s8394_s4  ;;  %v4538_v26 = vrot.slane %v4537_v9, 4  ;;  %v12086_v34 = vpop.permute.xlu2 %6562  ;;  %v4068_v47 = vadd.f32 %v4067_v30, %v4019_v21  ;;  %v3972_v23 = vadd.f32 %v11605_v28, %v11621_v18  ;;  %v8222_v28 = vld [vmem:[%s13851_s11 + $0x30] sm:$0xff] }
 0x499   :  { %v4198_v0 = vpack.c.bf16 %v4182_v49, %v4182_v49  ;;  %v4341_v11 = vsel %vm9328_vm4, 0, %v4285_v60  ;;  %v4545_v60 = vshrl.u32 %v12043_v62, 16  ;;  %v12094_v41 = vpack.c.b16 %v4395_v1, %v4395_v1  ;;  %5633 = vmatpush.bf16.msrb.mxu1 %v8238_v5  ;;  %v8230_v18 = vld [vmem:[%s13851_s11 + $0x70] sm:$0xff]  ;;  %5535 = vmatpush.bf16.msrb.mxu3 %v8222_v28  ;;  %v8221_v28 = vld [vmem:[%s13851_s11 + $0x28] sm:$0xff] }
 0x49a   :  { %v12084_v49 = vsel %vm9350_vm6, %v4341_v11, 0  ;;  %v4543_v9 = vsel %vm9472_vm13, %v4538_v26, %v4542_v27  ;;  %v4559_v30 = vshrl.u32 %v12068_v6, 16  ;;  %v4116_v26 = vpop.f32.mrf.mxu1  ;;  %v4818_v5 = vpack.c.b16 %v12024_v4, %v11968_v43  ;;  %5584 = vmatpush.bf16.msrb.mxu0 %v8230_v18 }
 0x49b   :  { %v4287_v55 = vshrl.u32 %v4198_v0, 16  ;;  %v4290_v3 = vshll.u32 %v4198_v0, 16  ;;  %4864 = vrot.lane.b32.xlu0 %v4853_v37, %s8391_s28  ;;  %v4547_v27 = vrot.slane %v4545_v60, 4  ;;  %v12105_v21 = vunpack.c.l.b16 %v4543_v9  ;;  %v8237_v37 = vld [vmem:[%s13851_s11 + $0xa8] sm:$0xff] }
 0x49c   :  { %v4162_v13 = vpop.f32.mrf.mxu2  ;;  %4900 = vrot.lane.b32.xlu1 %v4892_v14, %s8392_s3  ;;  %v12117_v14 = vpack.c.b16 %v4393_v48, %v4393_v48  ;;  %v4794_v60 = vpack.c.b16 %v13983_v16, %v9789_v31  ;;  %v4117_v9 = vadd.f32 %v4116_v26, %v4068_v47  ;;  %v8247_v48 = vld [vmem:[%s13851_s11 + $0xf8] sm:$0xff]  ;;  %v8236_v47 = vld [vmem:[%s13851_s11 + $0xa0] sm:$0xff] }
 0x49d   :  { %v4289_v54 = vrot.slane %v4287_v55, 7  ;;  %v4163_v2 = vadd.f32 %v4162_v13, %v4114_v58  ;;  %v12101_v58 = vunpack.c.l.b16 %v12084_v49  ;;  %v4550_v55 = vrot.slane %v4548_v15, 5  ;;  %5634 = vmatpush.bf16.msrb.mxu1 %v8237_v37  ;;  %5681 = vmatpush.bf16.msra.mxu2 %v8247_v48  ;;  %v12152_v37 = vpop.permute.xlu1 %6428 }
 0x49e   :  { %v4562_v15 = vshll.u32 %v12068_v6, 16  ;;  %v4756_v35 = vpack.c.b16 %v12105_v21, %v9494_v52  ;;  %14405 = vst [vmem:[#allocation81_spill] sm:$0xff] %v12152_v37  ;;  %5536 = vmatpush.bf16.msrb.mxu3 %v8221_v28 }
 0x49f   :  { %v4292_v11 = vor.u32 %v4290_v3, %v4289_v54  ;;  %v4183_v0 = vmax.f32 %v4163_v2, 0.0  ;;  %v4568_v54 = vshll.u32 %v12094_v41, 16  ;;  %v4551_v16 = vor.u32 %v4550_v55, %v4547_v27  ;;  %v8229_v27 = vld [vmem:[%s13851_s11 + $0x68] sm:$0xff]  ;;  %v8246_v55 = vld [vmem:[%s13851_s11 + $0xf0] sm:$0xff] }
 0x4a0   :  { %4830 = vrot.lane.b32.xlu2 %v4818_v5, %s8392_s3  ;;  %v4564_v53 = vrot.slane %v4562_v15, 5  ;;  %v4397_v5 = vunpack.c.h.b16 %v12084_v49  ;;  %v4069_v15 = vpop.f32.mrf.mxu0  ;;  %v12162_v10 = vpop.permute.xlu2 %6568  ;;  %v7840_v49 = vrot.slane %v12043_v62, 9  ;;  %5585 = vmatpush.bf16.msrb.mxu0 %v8229_v27  ;;  %v8228_v62 = vld [vmem:[%s13851_s11 + $0x60] sm:$0xff] }
 0x4a1   :  { %v4342_v1 = vsel %vm9328_vm4, 0, %v4292_v11  ;;  %v4199_v13 = vpack.c.bf16 %v4183_v0, %v4183_v0  ;;  %v4020_v11 = vpop.f32.mrf.mxu3  ;;  %v12135_v0 = vpack.c.b16 %v12101_v58, %v12101_v58  ;;  %v4552_v37 = vrot.slane %v4551_v16, 4  ;;  %5635 = vmatpush.bf16.msrb.mxu1 %v8236_v47  ;;  %5682 = vmatpush.bf16.msra.mxu2 %v8246_v55  ;;  %v8245_v47 = vld [vmem:[%s13851_s11 + $0xe8] sm:$0xff] }
 0x4a2   :  { %v12128_v3 = vsel %vm9350_vm6, %v4342_v1, 0  ;;  %v4561_v1 = vrot.slane %v4559_v30, 4  ;;  %v4554_v30 = vshll.u32 %v12117_v14, 16  ;;  %v12175_v16 = vpack.c.b16 %v4397_v5, %v4397_v5  ;;  %v4118_v27 = vpop.f32.mrf.mxu1  ;;  %v8318_v55 = vld [vmem:[%s13840_s0 + $0x68] sm:$0xff]  ;;  %v8234_v5 = vld [vmem:[%s13851_s11 + $0x90] sm:$0xff] }
 0x4a3   :  { %v4294_v2 = vshrl.u32 %v4199_v13, 16  ;;  %v4297_v26 = vshll.u32 %v4199_v13, 16  ;;  %v12157_v13 = vunpack.c.l.b16 %v12128_v3  ;;  %4806 = vrot.lane.b32.xlu0 %v4794_v60, %s8394_s4 }
 0x4a4   :  { %v4165_v8 = vpop.f32.mrf.mxu2  ;;  %4768 = vrot.lane.b32.xlu1 %v4756_v35, %s8391_s28  ;;  %v4556_v35 = vrot.slane %v4554_v30, 5  ;;  %5586 = vmatpush.bf16.msrb.mxu0 %v8228_v62 }
 0x4a5   :  { %v4296_v18 = vrot.slane %v4294_v2, 7  ;;  %v4166_v31 = vadd.f32 %v4165_v8, %v4117_v9  ;;  %v4565_v8 = vor.u32 %v4564_v53, %v4561_v1  ;;  %v4662_v2 = vrot.slane %v12117_v14, 5  ;;  %v8235_v53 = vld [vmem:[%s13851_s11 + $0x98] sm:$0xff]  ;;  %5683 = vmatpush.bf16.msra.mxu2 %v8245_v47  ;;  %v8320_v47 = vld [vmem:[%s13840_s0 + $0x60] sm:$0xff] }
 0x4a6   :  { %v4021_v9 = vadd.f32 %v4020_v11, %v3972_v23  ;;  %v4573_v23 = vshrl.u32 %v12135_v0, 16  ;;  %v4570_v14 = vrot.slane %v4568_v54, 5  ;;  %v12179_v1 = vpack.c.b16 %v12157_v13, %v12157_v13  ;;  %5636 = vmatpush.bf16.msrb.mxu1 %v8235_v53 }
 0x4a7   :  { %v4299_v52 = vor.u32 %v4297_v26, %v4296_v18  ;;  %v4184_v48 = vmax.f32 %v4166_v31, 0.0  ;;  %v4566_v20 = vrot.slane %v4565_v8, 4  ;;  %v8220_v31 = vld [vmem:[%s13851_s11 + $0x20] sm:$0xff]  ;;  %v12197_v30 = vsel %vm9413_vm9, %v7840_v49, %v4662_v2  ;;  %v12203_v8 = vpop.permute.xlu0 %6564  ;;  %v8219_v2 = vld [vmem:[%s13851_s11 + $0x18] sm:$0xff] }
 0x4a8   :  { %v4070_v11 = vadd.f32 %v4069_v15, %v4021_v9  ;;  %6580 = vrot.lane.b32.xlu2 %v8318_v55, %s8392_s3  ;;  %v4576_v15 = vshll.u32 %v12135_v0, 16  ;;  %5537 = vmatpush.bf16.msrb.mxu3 %v8220_v31  ;;  %v8227_v49 = vld [vmem:[%s13851_s11 + $0x58] sm:$0xff]  ;;  %v4582_v53 = vshll.u32 %v12175_v16, 16  ;;  %v4399_v31 = vunpack.c.h.b16 %v12128_v3  ;;  %v12234_v55 = vpop.permute.xlu1 %6566 }
 0x4a9   :  { %v4200_v60 = vpack.c.bf16 %v4184_v48, %v4184_v48  ;;  %v4343_v54 = vsel %vm9328_vm4, 0, %v4299_v52  ;;  %v4571_v26 = vsel %vm9472_vm13, %v4566_v20, %v4570_v14  ;;  %v4557_v52 = vsel %vm9472_vm13, %v4552_v37, %v4556_v35  ;;  %5587 = vmatpush.bf16.msrb.mxu0 %v8227_v49 }
 0x4aa   :  { %v4575_v20 = vrot.slane %v4573_v23, 4  ;;  %v12207_v9 = vsel %vm9350_vm6, %v4343_v54, 0  ;;  %v4119_v14 = vadd.f32 %v4118_v27, %v4070_v11  ;;  %v12216_v35 = vunpack.c.l.b16 %v4571_v26  ;;  %v8244_v11 = vld [vmem:[%s13851_s11 + $0xe0] sm:$0xff]  ;;  %5637 = vmatpush.bf16.msrb.mxu1 %v8234_v5  ;;  %v8218_v27 = vld [vmem:[%s13851_s11 + $0x10] sm:$0xff]  ;;  %v12252_v5 = vpop.permute.xlu2 %6574 }
 0x4ab   :  { %v4301_v18 = vshrl.u32 %v4200_v60, 16  ;;  %v4304_v37 = vshll.u32 %v4200_v60, 16  ;;  %v4578_v54 = vrot.slane %v4576_v15, 5  ;;  %v4587_v60 = vshrl.u32 %v12179_v1, 16  ;;  %14407 = vst [vmem:[#allocation110_spill] sm:$0xff] %v12252_v5  ;;  %5684 = vmatpush.bf16.msra.mxu2 %v8244_v11 }
 0x4ac   :  { %v4167_v23 = vpop.f32.mrf.mxu2  ;;  %14406 = vst [vmem:[#allocation109_spill] sm:$0xff] %v12216_v35  ;;  %6578 = vrot.lane.b32.xlu1 %v8320_v47, %s8392_s3  ;;  %v12231_v26 = vunpack.c.l.b16 %v4557_v52  ;;  %v12237_v3 = vunpack.c.l.b16 %v12207_v9  ;;  %v7841_v15 = vrot.slane %v12068_v6, 9  ;;  %5538 = vmatpush.bf16.msrb.mxu3 %v8219_v2  ;;  %v8226_v6 = vld [vmem:[%s13851_s11 + $0x50] sm:$0xff]  ;;  %v12260_v2 = vpack.c.b16 %v4399_v31, %v4399_v31 }
 0x4ad   :  { %v4303_v48 = vrot.slane %v4301_v18, 7  ;;  %v8319_v18 = vld [vmem:[%s13840_s0 + $0x78] sm:$0xff]  ;;  %v4168_v47 = vadd.f32 %v4167_v23, %v4119_v14  ;;  %v4589_v28 = vrot.slane %v4587_v60, 4  ;;  %v12268_v23 = vpack.c.b16 %v12036_v46, %v12024_v4  ;;  %v8232_v4 = vld [vmem:[%s13851_s11 + $0x80] sm:$0xff]  ;;  %5588 = vmatpush.bf16.msrb.mxu0 %v8226_v6 }
 0x4ae   :  { %6582 = vrot.lane.b32.xlu0 %v8319_v18, %s8392_s3  ;;  %v4590_v18 = vshll.u32 %v12179_v1, 16  ;;  %v8243_v14 = vld [vmem:[%s13851_s11 + $0xd8] sm:$0xff]  ;;  %v4584_v60 = vrot.slane %v4582_v53, 5  ;;  %v14409_v11 = vunpack.c.l.b16 %v12072_v29  ;;  %v14410_v31 = vunpack.c.l.b16 %v12197_v30 }
 0x4af   :  { %v4306_v62 = vor.u32 %v4304_v37, %v4303_v48  ;;  %v8233_v48 = vld [vmem:[%s13851_s11 + $0x88] sm:$0xff]  ;;  %v4579_v37 = vor.u32 %v4578_v54, %v4575_v20  ;;  %v4670_v20 = vrot.slane %v12175_v16, 5  ;;  %v4757_v54 = vpack.c.b16 %v12216_v35, %v12231_v26  ;;  %14408 = vst [vmem:[#allocation111_spill] sm:$0xff] %v12268_v23  ;;  %5685 = vmatpush.bf16.msra.mxu2 %v8243_v14 }
 0x4b0   :  { %v4854_v33 = vpack.c.b16 %v14410_v31, %v14409_v11  ;;  %5638 = vmatpush.bf16.msrb.mxu1 %v8233_v48  ;;  %v4401_v53 = vunpack.c.h.b16 %v12207_v9  ;;  %v7842_v5 = vrot.slane %v12135_v0, 9  ;;  %5539 = vmatpush.bf16.msrb.mxu3 %v8218_v27  ;;  %v8242_v9 = vld [vmem:[%s13851_s11 + $0xd0] sm:$0xff]  ;;  %v12302_v0 = vpop.permute.xlu0 %6570 }
 0x4b1   :  { %v4344_v52 = vsel %vm9328_vm4, 0, %v4306_v62  ;;  %v4592_v62 = vrot.slane %v4590_v18, 5  ;;  %v4580_v16 = vrot.slane %v4579_v37, 4  ;;  %v12272_v18 = vpack.c.b16 %v12237_v3, %v12237_v3  ;;  %4770 = vrot.lane.b32.xlu2 %v4757_v54, %s8391_s28  ;;  %14412 = vst [vmem:[#allocation112_spill] sm:$0xff] %v12302_v0 }
 0x4b2   :  { %v12264_v49 = vsel %vm9350_vm6, %v4344_v52, 0  ;;  %v14411_v52 = vrot.slane %v12094_v41, 5  ;;  %v4185_v37 = vmax.f32 %v4168_v47, 0.0  ;;  %v8217_v41 = vld [vmem:[%s13851_s11 + $0x8] sm:$0xff]  ;;  %v12316_v11 = vsel %vm9413_vm9, %v7842_v5, %v4670_v20 }
 0x4b3   :  { %v4593_v29 = vor.u32 %v4592_v62, %v4589_v28  ;;  %v12297_v48 = vunpack.c.l.b16 %v12264_v49  ;;  %v4596_v28 = vshll.u32 %v12260_v2, 16  ;;  %v4585_v27 = vsel %vm9472_vm13, %v4580_v16, %v4584_v60  ;;  %v12324_v16 = vpop.permute.xlu1 %6572  ;;  %5686 = vmatpush.bf16.msra.mxu2 %v8242_v9  ;;  %v8241_v20 = vld [vmem:[%s13851_s11 + $0xc8] sm:$0xff] }
 0x4b4   :  { %v12283_v43 = vsel %vm9413_vm9, %v7841_v15, %v14411_v52  ;;  %v8225_v15 = vld [vmem:[%s13851_s11 + $0x48] sm:$0xff]  ;;  %4866 = vrot.lane.b32.xlu1 %v4854_v33, %s8391_s28  ;;  %5639 = vmatpush.bf16.msrb.mxu1 %v8232_v4  ;;  %v4601_v6 = vshrl.u32 %v12272_v18, 16  ;;  %v12312_v62 = vpack.c.b16 %v4401_v53, %v4401_v53  ;;  %v4201_v14 = vpack.c.bf16 %v4185_v37, %v4185_v37  ;;  %v8216_v33 = vld [vmem:[%s13851_s11] sm:$0xff]  ;;  %v12330_v52 = vpop.permute.xlu2 %4798 }
 0x4b5   :  { %v4785_v47 = vunpack.c.l.b16 %v12283_v43  ;;  %v4594_v31 = vrot.slane %v4593_v29, 4  ;;  %5540 = vmatpush.bf16.msrb.mxu3 %v8217_v41  ;;  %5589 = vmatpush.bf16.msrb.mxu0 %v8225_v15  ;;  %v8224_v43 = vld [vmem:[%s13851_s11 + $0x40] sm:$0xff]  ;;  %v12328_v60 = vpack.c.b16 %v12297_v48, %v12297_v48  ;;  %v12332_v5 = vunpack.c.l.b16 %v4585_v27 }
 0x4b6   :  { %4884 = vrot.lane.b32.xlu0 %v12268_v23, %s8394_s4  ;;  %v4603_v4 = vrot.slane %v4601_v6, 4  ;;  %v4604_v53 = vshll.u32 %v12272_v18, 16  ;;  %v4598_v37 = vrot.slane %v4596_v28, 5  ;;  %v4819_v29 = vpack.c.b16 %v12101_v58, %v12036_v46 }
 0x4b7   :  { %v14413_v41 = vunpack.c.l.b16 %v12197_v30  ;;  %v4610_v23 = vshll.u32 %v12312_v62, 16  ;;  %v4308_v0 = vshrl.u32 %v4201_v14, 16  ;;  %v4786_v6 = vunpack.c.l.b16 %v12316_v11  ;;  %5687 = vmatpush.bf16.msra.mxu2 %v8241_v20 }
 0x4b8   :  { %v4606_v27 = vrot.slane %v4604_v53, 5  ;;  %v4599_v28 = vsel %vm9472_vm13, %v4594_v31, %v4598_v37  ;;  %v4615_v30 = vshrl.u32 %v12328_v60, 16  ;;  %v8240_v53 = vld [vmem:[%s13851_s11 + $0xc0] sm:$0xff]  ;;  %v4674_v11 = vrot.slane %v12260_v2, 5  ;;  %v12364_v20 = vpop.permute.xlu0 %6576 }
 0x4b9   :  { %4902 = vrot.lane.b32.xlu2 %v4757_v54, %s8392_s3  ;;  %v12343_v15 = vpack.c.b16 %v4785_v47, %v14413_v41  ;;  %5541 = vmatpush.bf16.msrb.mxu3 %v8216_v33  ;;  %v4618_v54 = vshll.u32 %v12328_v60, 16  ;;  %v7843_v31 = vrot.slane %v12179_v1, 9  ;;  %v4403_v33 = vunpack.c.h.b16 %v12264_v49 }
 0x4ba   :  { %5590 = vmatpush.bf16.msrb.mxu0 %v8224_v43  ;;  %v4607_v46 = vor.u32 %v4606_v27, %v4603_v4  ;;  %v4310_v4 = vrot.slane %v4308_v0, 7  ;;  %v12366_v37 = vunpack.c.l.b16 %v4599_v28  ;;  %v4612_v27 = vrot.slane %v4610_v23, 5 }
 0x4bb   :  { %14414 = vst [vmem:[#allocation113_spill] sm:$0xff] %v12343_v15  ;;  %v4855_v9 = vpack.c.b16 %v4786_v6, %v4785_v47  ;;  %v4617_v35 = vrot.slane %v4615_v30, 4  ;;  %v4620_v2 = vrot.slane %v4618_v54, 5  ;;  %5688 = vmatpush.bf16.msra.mxu2 %v8240_v53  ;;  %v4675_v1 = vsel %vm9413_vm9, %v7843_v31, %v4674_v11 }
 0x4bc   :  { %4808 = vrot.lane.b32.xlu1 %v12343_v15, %s8394_s4  ;;  %v4608_v43 = vrot.slane %v4607_v46, 4  ;;  %v4431_v49 = vpack.c.b16 %v4403_v33, %v4403_v33  ;;  %v12372_v46 = vpop.permute.xlu2 %4876  ;;  %v4758_v47 = vpack.c.b16 %v12366_v37, %v12332_v5  ;;  %v4787_v28 = vunpack.c.l.b16 %v4675_v1 }
 0x4bd   :  { %v4621_v30 = vor.u32 %v4620_v2, %v4617_v35  ;;  %v4730_v54 = vpack.c.b16 %v11690_v59, %v9373_v38  ;;  %v4678_v53 = vrot.slane %v12312_v62, 5  ;;  %v7844_v11 = vrot.slane %v12272_v18, 9 }
 0x4be   :  { %4832 = vrot.lane.b32.xlu0 %v4819_v29, %s8392_s3  ;;  %v4311_v29 = vshll.u32 %v4201_v14, 16  ;;  %v4613_v23 = vsel %vm9472_vm13, %v4608_v43, %v4612_v27  ;;  %v12381_v14 = vpack.c.b16 %v12157_v13, %v12101_v58  ;;  %v12394_v35 = vpack.c.b16 %v4787_v28, %v4786_v6 }
 0x4bf   :  { %v4622_v43 = vrot.slane %v4621_v30, 4  ;;  %v4820_v18 = vpack.c.b16 %v12237_v3, %v12157_v13  ;;  %v12419_v13 = vpack.c.b16 %v12297_v48, %v12237_v3 }
 0x4c0   :  { %v4313_v0 = vor.u32 %v4311_v29, %v4310_v4 }
 0x4c1   :  { %4868 = vrot.lane.b32.xlu2 %v4855_v9, %s8391_s28  ;;  %v12386_v9 = vunpack.c.l.b16 %v4613_v23  ;;  %v4682_v23 = vrot.slane %v4431_v49, 5 }
 0x4c2   :  { %v4823_v41 = vpop.permute.xlu1 %4822 }
 0x4c3   :  { %v4971_v15 = vsel %vm1343_vm10, %v12330_v52, %v4823_v41  ;;  %v4345_v41 = vsel %vm9328_vm4, 0, %v4313_v0  ;;  %v4846_v59 = vpack.c.b16 %v12386_v9, %v12366_v37  ;;  %v14416_v0 = vpack.c.b16 %v11836_v51, %v11749_v19 }
 0x4c4   :  { %5640 = vmatmul.bf16.vlgmr.msrb.gmra.mxu1 %v4971_v15  ;;  %4886 = vrot.lane.b32.xlu1 %v12381_v14, %s8394_s4  ;;  %v4624_v15 = vshll.u32 %v4431_v49, 16  ;;  %v4361_v45 = vsel %vm9350_vm6, %v4345_v41, 0  ;;  %v4825_v6 = vpop.permute.xlu2 %4824 }
 0x4c5   :  { %v4689_v27 = vunpack.c.h.b16 %v4361_v45  ;;  %v4688_v25 = vunpack.c.l.b16 %v4361_v45 }
 0x4c6   :  { %4772 = vrot.lane.b32.xlu0 %v4758_v47, %s8391_s28  ;;  %v4626_v62 = vrot.slane %v4624_v15, 5 }
 0x4c7   :  { %v4693_v15 = vpack.c.b16 %v4689_v27, %v4689_v27  ;;  %v4875_v40 = vpack.c.b16 %v9373_v38, %v4688_v25 }
 0x4c8   :  { %v4761_v58 = vpop.permute.xlu0 %4760  ;;  %v4627_v4 = vsel %vm9472_vm13, %v4622_v43, %v4626_v62 }
 0x4c9   :  { %v4915_v31 = vsel %vm4912_vm0, %v4730_v54, %v4761_v58  ;;  %v4946_v33 = vsel %vm2073_vm14, %v4761_v58, %v12330_v52  ;;  %4810 = vrot.lane.b32.xlu2 %v12394_v35, %s8394_s4  ;;  %v4679_v52 = vsel %vm9413_vm9, %v7844_v11, %v4678_v53  ;;  %v12413_v29 = vunpack.c.l.b16 %v4627_v4 }
 0x4ca   :  { %5542 = vmatmul.bf16.vlgmr.msrb.gmra.mxu3 %v4915_v31  ;;  %5591 = vmatmul.bf16.vlgmr.msrb.gmra.mxu0 %v4946_v33  ;;  %v4788_v2 = vunpack.c.l.b16 %v4679_v52  ;;  %v4692_v54 = vpack.c.b16 %v4688_v25, %v4688_v25  ;;  %v4728_v51 = vrot.slane %v4693_v15, 5  ;;  %v4821_v31 = vpack.c.b16 %v4688_v25, %v12297_v48 }
 0x4cb   :  { %14415 = vst [vmem:[#allocation114_spill] sm:$0xff] %v12413_v29  ;;  %v12431_v49 = vpack.c.b16 %v12413_v29, %v12386_v9  ;;  %v4718_v43 = vshll.u32 %v4693_v15, 16 }
 0x4cc   :  { %4834 = vrot.lane.b32.xlu1 %v4820_v18, %s8392_s3  ;;  %v4856_v53 = vpack.c.b16 %v4788_v2, %v4787_v28  ;;  %v4709_v58 = vshrl.u32 %v4692_v54, 16  ;;  %v4712_v11 = vshll.u32 %v4692_v54, 16  ;;  %v7847_v28 = vrot.slane %v4692_v54, 9 }
 0x4ce   :  { %4904 = vrot.lane.b32.xlu0 %v4758_v47, %s8392_s3  ;;  %v7845_v47 = vrot.slane %v12328_v60, 9  ;;  %v4711_v62 = vrot.slane %v4709_v58, 4  ;;  %v4714_v45 = vrot.slane %v4712_v11, 5  ;;  %v12444_v18 = vsel %vm9413_vm9, %v7847_v28, %v4728_v51  ;;  %v12500_v11 = vld [vmem:[%s13840_s0 + $0x98] sm:$0xff]  ;;  %v12507_v28 = vld [vmem:[%s13840_s0 + $0xc8] sm:$0xff] }
 0x4cf   :  { %v13997_v52 = vunpack.c.l.b16 %v12444_v18 }
 0x4d0   :  { %v12415_v1 = vpop.permute.xlu0 %4858  ;;  %v4683_v19 = vsel %vm9413_vm9, %v7845_v47, %v4682_v23  ;;  %v4715_v27 = vor.u32 %v4714_v45, %v4711_v62  ;;  %v8327_v45 = vld [vmem:[%s13840_s0 + $0xd8] sm:$0xff] }
 0x4d1   :  { %v4996_v30 = vsel %vm4912_vm0, %v14416_v0, %v12415_v1  ;;  %4888 = vrot.lane.b32.xlu2 %v12419_v13, %s8394_s4  ;;  %v4789_v60 = vunpack.c.l.b16 %v4683_v19 }
 0x4d2   :  { %5689 = vmatmul.bf16.vlgmr.msra.gmra.mxu2 %v4996_v30  ;;  %v12433_v3 = vpop.permute.xlu2 %4764 }
 0x4d3   :  { %v12448_v4 = vpack.c.b16 %v4789_v60, %v4788_v2  ;;  %v12454_v48 = vpack.c.b16 %v13997_v52, %v4789_v60  ;;  %v4716_v2 = vrot.slane %v4715_v27, 4 }
 0x4d4   :  { %4774 = vrot.lane.b32.xlu1 %v12431_v49, %s8391_s28 }
 0x4d6   :  { %4870 = vrot.lane.b32.xlu0 %v4856_v53, %s8391_s28  ;;  %v8322_v53 = vld [vmem:[%s13840_s0 + $0x90] sm:$0xff] }
 0x4d8   :  { %v4801_v41 = vpop.permute.xlu0 %4800 }
 0x4d9   :  { %v4974_v33 = vsel %vm1343_vm10, %v4801_v41, %v4825_v6  ;;  %4836 = vrot.lane.b32.xlu2 %v4821_v31, %s8392_s3  ;;  %v4720_v6 = vrot.slane %v4718_v43, 5  ;;  %v14417_v43 = vpack.c.b16 %v11900_v42, %v11858_v32  ;;  %v8329_v32 = vld [vmem:[%s13840_s0 + $0xf0] sm:$0xff] }
 0x4da   :  { %5645 = vmatmul.bf16.gmra.mxu1 %v4974_v33  ;;  %v12450_v23 = vpop.permute.xlu2 %4896  ;;  %v4923_v33 = vsel %vm4912_vm0, %v11867_v36, %v12433_v3  ;;  %v8328_v36 = vld [vmem:[%s13840_s0 + $0xc0] sm:$0xff] }
 0x4db   :  { %v4721_v30 = vsel %vm9472_vm13, %v4716_v2, %v4720_v6 }
 0x4dc   :  { %6584 = vrot.lane.b32.xlu1 %v12461_v24, %s8392_s3  ;;  %v12470_v54 = vunpack.c.l.b16 %v4721_v30  ;;  %v12541_v30 = vld [vmem:[%s13840_s0 + $0xf8] sm:$0xff] }
 0x4dd   :  { %v4763_v0 = vpop.permute.xlu1 %4762 }
 0x4de   :  { %4812 = vrot.lane.b32.xlu0 %v12448_v4, %s8394_s4  ;;  %v4919_v47 = vsel %vm4912_vm0, %v11760_v44, %v4763_v0  ;;  %v4949_v15 = vsel %vm2073_vm14, %v4763_v0, %v4801_v41  ;;  %v8323_v44 = vld [vmem:[%s13840_s0 + $0xa8] sm:$0xff]  ;;  %v12491_v41 = vld [vmem:[%s13840_s0 + $0xb0] sm:$0xff] }
 0x4df   :  { %5547 = vmatmul.bf16.gmra.mxu3 %v4919_v47  ;;  %5596 = vmatmul.bf16.gmra.mxu0 %v4949_v15  ;;  %v12550_v15 = vld [vmem:[%s13840_s0 + $0xe0] sm:$0xff] }
 0x4e0   :  { %v12495_v58 = vpop.permute.xlu0 %4878 }
 0x4e1   :  { %6586 = vrot.lane.b32.xlu2 %v8322_v53, %s8392_s3 }
 0x4e2   :  { %v12479_v51 = vpop.permute.xlu2 %4862 }
 0x4e4   :  { %6590 = vrot.lane.b32.xlu1 %v8323_v44, %s8392_s3 }
 0x4e5   :  { %v12486_v60 = vpop.permute.xlu1 %4894 }
 0x4e6   :  { %4890 = vrot.lane.b32.xlu0 %v4875_v40, %s8394_s4 }
 0x4e8   :  { %v4827_v42 = vpop.permute.xlu0 %4826 }
 0x4e9   :  { %6592 = vrot.lane.b32.xlu2 %v12491_v41, %s8392_s3 }
 0x4ea   :  { %v4805_v25 = vpop.permute.xlu2 %4804 }
 0x4ec   :  { %6596 = vrot.lane.b32.xlu1 %v12507_v28, %s8392_s3 }
 0x4ee   :  { %6588 = vrot.lane.b32.xlu0 %v12500_v11, %s8392_s3  ;;  %v12511_v31 = vpop.permute.xlu1 %4860 }
 0x4ef   :  { %v5000_v62 = vsel %vm4912_vm0, %v14417_v43, %v12511_v31  ;;  %5552 = vmatmul.bf16.gmra.mxu3 %v4923_v33  ;;  %v14418_v33 = vpack.c.b16 %v11983_v22, %v11914_v12  ;;  %v14420_v12 = vld [vmem:[#allocation67_spill] sm:$0xff] }
 0x4f0   :  { %5694 = vmatmul.bf16.gmra.mxu2 %v5000_v62  ;;  %v12573_v62 = vld [vmem:[%s13848_s8] ss:$0 sm:$0xff] }
 0x4f1   :  { %6598 = vrot.lane.b32.xlu2 %v8327_v45, %s8392_s3  ;;  %v5004_v43 = vsel %vm4912_vm0, %v14418_v33, %v12479_v51  ;;  %v14419_v45 = vld [vmem:[#allocation57_spill] sm:$0xff]  ;;  %v2505_v22 = vadd.f32 %v12573_v62, %v14420_v12  ;;  %v14422_v12 = vld [vmem:[#allocation68_spill] sm:$0xff] }
 0x4f2   :  { %v12525_v27 = vpop.permute.xlu2 %4882 }
 0x4f3   :  { %v2554_v19 = vadd.f32 %v14422_v12, %v2505_v22  ;;  %v2733_v22 = vmax.f32 %v10952_v50, 0.0 }
 0x4f4   :  { %6602 = vrot.lane.b32.xlu1 %v8329_v32, %s8392_s3 }
 0x4f6   :  { %6594 = vrot.lane.b32.xlu0 %v8328_v36, %s8392_s3  ;;  %v4803_v6 = vpop.permute.xlu1 %4802  ;;  %v2500_v36 = vadd.f32 %v12573_v62, %v14419_v45 }
 0x4f7   :  { %v4952_v2 = vsel %vm2073_vm14, %v12433_v3, %v4803_v6  ;;  %v4977_v0 = vsel %vm1343_vm10, %v4803_v6, %v4827_v42  ;;  %v12557_v3 = vld [vmem:[%s13840_s0 + $0x110] sm:$0xff]  ;;  %v8335_v42 = vld [vmem:[%s13840_s0 + $0x108] sm:$0xff]  ;;  %v8336_v6 = vld [vmem:[%s13840_s0 + $0x138] sm:$0xff] }
 0x4f8   :  { %5601 = vmatmul.bf16.gmra.mxu0 %v4952_v2  ;;  %5650 = vmatmul.bf16.gmra.mxu1 %v4977_v0  ;;  %v14421_v2 = vld [vmem:[#allocation59_spill] sm:$0xff] }
 0x4f9   :  { %6604 = vrot.lane.b32.xlu2 %v12541_v30, %s8392_s3  ;;  %v2549_v0 = vadd.f32 %v14421_v2, %v2500_v36  ;;  %v2603_v36 = vadd.f32 %v10980_v17, %v2554_v19 }
 0x4fa   :  { %v12545_v47 = vpop.permute.xlu2 %4830 }
 0x4fc   :  { %6608 = vrot.lane.b32.xlu1 %v12557_v3, %s8392_s3 }
 0x4fd   :  { %v4767_v40 = vpop.permute.xlu0 %4766 }
 0x4fe   :  { %6600 = vrot.lane.b32.xlu0 %v12550_v15, %s8392_s3  ;;  %v12561_v53 = vpop.permute.xlu1 %4880  ;;  %v4927_v44 = vsel %vm4912_vm0, %v11977_v61, %v4767_v40  ;;  %v8334_v61 = vld [vmem:[%s13840_s0 + $0x120] sm:$0xff]  ;;  %v4955_v45 = vsel %vm2073_vm14, %v4767_v40, %v4805_v25 }
 0x4ff   :  { %5557 = vmatmul.bf16.gmra.mxu3 %v4927_v44 }
 0x500   :  { %5699 = vmatmul.bf16.gmra.mxu2 %v5004_v43  ;;  %v2598_v43 = vadd.f32 %v10921_v56, %v2549_v0  ;;  %v14425_v0 = vpack.c.b16 %v12045_v39, %v11985_v7  ;;  %v14427_v39 = vld [vmem:[#allocation110_spill] sm:$0xff] }
 0x501   :  { %6610 = vrot.lane.b32.xlu2 %v8334_v61, %s8392_s3 }
 0x502   :  { %v12581_v32 = vpop.permute.xlu2 %6580  ;;  %v2647_v56 = vadd.f32 %v10945_v63, %v2598_v43  ;;  %v12625_v63 = vld [vmem:[%s13840_s0 + $0x158] sm:$0xff] }
 0x503   :  { %v14426_v43 = vld [vmem:[#allocation64_spill] sm:$0xff] }
 0x504   :  { %6614 = vrot.lane.b32.xlu1 %v8336_v6, %s8392_s3  ;;  %v12618_v6 = vld [vmem:[%s13840_s0 + $0x128] sm:$0xff]  ;;  %v2696_v17 = vadd.f32 %v10984_v57, %v2647_v56  ;;  %v8255_v57 = vld [vmem:[%s13851_s11 + $0x138] sm:$0xff]  ;;  %v6629_v56 = vsel %vm1343_vm10, %v14427_v39, %v12364_v20 }
 0x505   :  { %v12594_v33 = vpop.permute.xlu0 %4898  ;;  %5730 = vmatpush.bf16.msra.mxu3 %v8255_v57 }
 0x506   :  { %6606 = vrot.lane.b32.xlu0 %v8335_v42, %s8392_s3  ;;  %v4829_v44 = vpop.permute.xlu1 %4828  ;;  %v12603_v42 = vld [vmem:[%s13840_s0 + $0x140] sm:$0xff]  ;;  %v2734_v12 = vmax.f32 %v2696_v17, 0.0  ;;  %v14428_v17 = vld [vmem:[#allocation76_spill] sm:$0xff] }
 0x507   :  { %v4980_v61 = vsel %vm1343_vm10, %v4805_v25, %v4829_v44  ;;  %14423 = vst [vmem:[#allocation57_spill] sm:$0xff] %v12603_v42  ;;  %v6626_v25 = vsel %vm1343_vm10, %v12086_v34, %v12203_v8  ;;  %v14424_v34 = vld [vmem:[#allocation108_spill] sm:$0xff] }
 0x508   :  { %5606 = vmatmul.bf16.gmra.mxu0 %v4955_v45  ;;  %5655 = vmatmul.bf16.gmra.mxu1 %v4980_v61  ;;  %v2652_v50 = vadd.f32 %v14424_v34, %v2603_v36  ;;  %v6658_v8 = vadd.f32 %v6626_v25, %v2733_v22  ;;  %v6627_v61 = vsel %vm1343_vm10, %v12234_v55, %v12162_v10  ;;  %v8340_v36 = vld [vmem:[%s13840_s0 + $0x168] sm:$0xff]  ;;  %v8341_v22 = vld [vmem:[%s13840_s0 + $0x150] sm:$0xff] }
 0x509   :  { %6616 = vrot.lane.b32.xlu2 %v12603_v42, %s8392_s3  ;;  %v6659_v25 = vadd.f32 %v6627_v61, %v2734_v12  ;;  %v4734_v34 = vpack.c.b16 %v14428_v17, %v9373_v38  ;;  %v8263_v38 = vld [vmem:[%s13851_s11 + $0x178] sm:$0xff] }
 0x50a   :  { %v2701_v45 = vadd.f32 %v14426_v43, %v2652_v50  ;;  %v6674_v7 = vmax.f32 %v6658_v8, 0.0  ;;  %5779 = vmatpush.bf16.msra.mxu0 %v8263_v38 }
 0x50b   :  { %v12612_v40 = vpop.permute.xlu2 %4770  ;;  %v6675_v43 = vmax.f32 %v6659_v25, 0.0  ;;  %v14431_v25 = vld [vmem:[#allocation96_spill] sm:$0xff] }
 0x50c   :  { %6620 = vrot.lane.b32.xlu1 %v12625_v63, %s8392_s3  ;;  %v2736_v55 = vmax.f32 %v2701_v45, 0.0 }
 0x50d   :  { %v4865_v2 = vpop.permute.xlu0 %4864 }
 0x50e   :  { %6612 = vrot.lane.b32.xlu0 %v12618_v6, %s8392_s3  ;;  %v4901_v19 = vpop.permute.xlu1 %4900  ;;  %v5008_v44 = vsel %vm4912_vm0, %v14425_v0, %v4865_v2  ;;  %v12660_v50 = vsel %vm2073_vm14, %v4865_v2, %v12525_v27  ;;  %v6661_v8 = vadd.f32 %v6629_v56, %v2736_v55  ;;  %v12689_v56 = vld [vmem:[%s13840_s0 + $0x170] sm:$0xff]  ;;  %v2737_v55 = vmax.f32 %v14431_v25, 0.0 }
 0x50f   :  { %v12664_v20 = vsel %vm1343_vm10, %v12525_v27, %v4901_v19  ;;  %v8269_v27 = vld [vmem:[%s13851_s11 + $0x1a8] sm:$0xff]  ;;  %v8254_v19 = vld [vmem:[%s13851_s11 + $0x130] sm:$0xff] }
 0x510   :  { %5704 = vmatmul.bf16.gmra.mxu2 %v5008_v44  ;;  %v6677_v2 = vmax.f32 %v6661_v8, 0.0  ;;  %5830 = vmatpush.bf16.msra.mxu1 %v8269_v27  ;;  %v14432_v27 = vld [vmem:[#allocation111_spill] sm:$0xff] }
 0x511   :  { %6622 = vrot.lane.b32.xlu2 %v8340_v36, %s8392_s3  ;;  %5731 = vmatpush.bf16.msra.mxu3 %v8254_v19  ;;  %v4935_v19 = vsel %vm4912_vm0, %v14432_v27, %v12612_v40 }
 0x513   :  { %v12649_v10 = vpop.permute.xlu2 %4902 }
 0x514   :  { %6706 = vrot.lane.b32.xlu1 %v6674_v7, %s8391_s28  ;;  %v14430_v7 = vld [vmem:[#allocation54_spill] sm:$0xff] }
 0x515   :  { %v4807_v44 = vpop.permute.xlu0 %4806  ;;  %v2735_v39 = vmax.f32 %v14430_v7, 0.0  ;;  %v8261_v7 = vld [vmem:[%s13851_s11 + $0x168] sm:$0xff] }
 0x516   :  { %6618 = vrot.lane.b32.xlu0 %v8341_v22, %s8392_s3  ;;  %v4769_v0 = vpop.permute.xlu1 %4768  ;;  %v4983_v57 = vsel %vm1343_vm10, %v4807_v44, %v12545_v47  ;;  %v14429_v47 = vld [vmem:[#allocation112_spill] sm:$0xff] }
 0x517   :  { %v4931_v45 = vsel %vm4912_vm0, %v4734_v34, %v4769_v0  ;;  %v4958_v61 = vsel %vm2073_vm14, %v4769_v0, %v4807_v44  ;;  %v6628_v12 = vsel %vm1343_vm10, %v14429_v47, %v12324_v16  ;;  %v8253_v0 = vld [vmem:[%s13851_s11 + $0x128] sm:$0xff]  ;;  %v8262_v44 = vld [vmem:[%s13851_s11 + $0x170] sm:$0xff] }
 0x518   :  { %5562 = vmatmul.bf16.gmra.mxu3 %v4931_v45  ;;  %5611 = vmatmul.bf16.gmra.mxu0 %v4958_v61  ;;  %v6660_v22 = vadd.f32 %v6628_v12, %v2735_v39  ;;  %v8252_v61 = vld [vmem:[%s13851_s11 + $0x120] sm:$0xff]  ;;  %v8251_v12 = vld [vmem:[%s13851_s11 + $0x118] sm:$0xff] }
 0x519   :  { %5660 = vmatmul.bf16.gmra.mxu1 %v4983_v57  ;;  %6708 = vrot.lane.b32.xlu2 %v6675_v43, %s8391_s28  ;;  %v8268_v39 = vld [vmem:[%s13851_s11 + $0x1a0] sm:$0xff] }
 0x51a   :  { %v6676_v43 = vmax.f32 %v6660_v22, 0.0  ;;  %5732 = vmatpush.bf16.msra.mxu3 %v8253_v0  ;;  %5780 = vmatpush.bf16.msra.mxu0 %v8262_v44  ;;  %v8259_v0 = vld [vmem:[%s13851_s11 + $0x158] sm:$0xff] }
 0x51b   :  { %v12683_v36 = vpop.permute.xlu2 %4868  ;;  %5831 = vmatpush.bf16.msra.mxu1 %v8268_v39  ;;  %v8267_v44 = vld [vmem:[%s13851_s11 + $0x198] sm:$0xff] }
 0x51c   :  { %6712 = vrot.lane.b32.xlu1 %v6677_v2, %s8391_s28  ;;  %v14433_v2 = vpack.c.b16 %v12231_v26, %v12105_v21  ;;  %v8250_v21 = vld [vmem:[%s13851_s11 + $0x110] sm:$0xff]  ;;  %v8260_v26 = vld [vmem:[%s13851_s11 + $0x160] sm:$0xff] }
 0x51e   :  { %6624 = vrot.lane.b32.xlu0 %v12689_v56, %s8392_s3  ;;  %v6579_v17 = vpop.permute.xlu1 %6578  ;;  %5733 = vmatpush.bf16.msra.mxu3 %v8252_v61 }
 0x51f   :  { %v6630_v34 = vsel %vm1343_vm10, %v6579_v17, %v12581_v32  ;;  %5781 = vmatpush.bf16.msra.mxu0 %v8261_v7  ;;  %5832 = vmatpush.bf16.msra.mxu1 %v8267_v44  ;;  %v14434_v7 = vld [vmem:[#allocation109_spill] sm:$0xff] }
 0x520   :  { %v12695_v16 = vpop.permute.xlu0 %6582  ;;  %v6662_v8 = vadd.f32 %v6630_v34, %v2737_v55  ;;  %v14435_v39 = vpack.c.b16 %v12332_v5, %v14434_v7  ;;  %v8256_v5 = vld [vmem:[%s13851_s11 + $0x140] sm:$0xff] }
 0x522   :  { %v6678_v45 = vmax.f32 %v6662_v8, 0.0  ;;  %5734 = vmatpush.bf16.msra.mxu3 %v8251_v12  ;;  %v8249_v8 = vld [vmem:[%s13851_s11 + $0x108] sm:$0xff] }
 0x523   :  { %v4811_v57 = vpop.permute.xlu2 %4810  ;;  %5782 = vmatpush.bf16.msra.mxu0 %v8260_v26 }
 0x524   :  { %6714 = vrot.lane.b32.xlu2 %v6678_v45, %s8391_s28  ;;  %v8258_v45 = vld [vmem:[%s13851_s11 + $0x150] sm:$0xff] }
 0x526   :  { %6710 = vrot.lane.b32.xlu0 %v6676_v43, %s8391_s28  ;;  %v4867_v32 = vpop.permute.xlu1 %4866  ;;  %5735 = vmatpush.bf16.msra.mxu3 %v8250_v21  ;;  %v5016_v21 = vsel %vm4912_vm0, %v14435_v39, %v12683_v36 }
 0x527   :  { %v5012_v47 = vsel %vm4912_vm0, %v14433_v2, %v4867_v32  ;;  %5783 = vmatpush.bf16.msra.mxu0 %v8259_v0  ;;  %v14437_v0 = vld [vmem:[#allocation74_spill] sm:$0xff] }
 0x528   :  { %v4885_v38 = vpop.permute.xlu0 %4884  ;;  %5567 = vmatmul.bf16.gmra.mxu3 %v4935_v19  ;;  %5709 = vmatmul.bf16.gmra.mxu2 %v5012_v47  ;;  %v8266_v19 = vld [vmem:[%s13851_s11 + $0x190] sm:$0xff] }
 0x529   :  { %v12758_v2 = vsel %vm2073_vm14, %v4867_v32, %v4885_v38  ;;  %v12762_v47 = vsel %vm1343_vm10, %v4885_v38, %v12649_v10  ;;  %5833 = vmatpush.bf16.msra.mxu1 %v8266_v19  ;;  %v8257_v32 = vld [vmem:[%s13851_s11 + $0x148] sm:$0xff]  ;;  %v14436_v38 = vld [vmem:[#allocation72_spill] sm:$0xff] }
 0x52a   :  { %5736 = vmatpush.bf16.msra.mxu3 %v8249_v8  ;;  %v8265_v10 = vld [vmem:[%s13851_s11 + $0x188] sm:$0xff]  ;;  %v2510_v26 = vadd.f32 %v12573_v62, %v14436_v38  ;;  %v14441_v38 = vld [vmem:[#allocation21_spill] sm:$0xff] }
 0x52b   :  { %v12732_v25 = vpop.permute.xlu2 %4888  ;;  %5784 = vmatpush.bf16.msra.mxu0 %v8258_v45  ;;  %v14438_v45 = vld [vmem:[#allocation80_spill] sm:$0xff] }
 0x52c   :  { %v2559_v44 = vadd.f32 %v14437_v0, %v2510_v26  ;;  %v2515_v19 = vadd.f32 %v12573_v62, %v14438_v45 }
 0x52d   :  { %5834 = vmatpush.bf16.msra.mxu1 %v8265_v10  ;;  %v14440_v10 = vld [vmem:[#allocation26_spill] sm:$0xff] }
 0x52e   :  { %v4809_v55 = vpop.permute.xlu1 %4808  ;;  %v2564_v26 = vadd.f32 %v14441_v38, %v2515_v19 }
 0x52f   :  { %v4961_v17 = vsel %vm2073_vm14, %v12612_v40, %v4809_v55  ;;  %v8248_v40 = vld [vmem:[%s13851_s11 + $0x100] sm:$0xff]  ;;  %5785 = vmatpush.bf16.msra.mxu0 %v8257_v32 }
 0x530   :  { %v4833_v22 = vpop.permute.xlu0 %4832  ;;  %5616 = vmatmul.bf16.gmra.mxu0 %v4961_v17  ;;  %5737 = vmatpush.bf16.msra.mxu3 %v8248_v40  ;;  %v8264_v17 = vld [vmem:[%s13851_s11 + $0x180] sm:$0xff] }
 0x531   :  { %v4986_v34 = vsel %vm1343_vm10, %v4809_v55, %v4833_v22  ;;  %5835 = vmatpush.bf16.msra.mxu1 %v8264_v17 }
 0x532   :  { %5665 = vmatmul.bf16.gmra.mxu1 %v4986_v34 }
 0x533   :  { %v12746_v43 = vpop.permute.xlu2 %4836  ;;  %5786 = vmatpush.bf16.msra.mxu0 %v8256_v5 }
 0x536   :  { %v4887_v61 = vpop.permute.xlu1 %4886 }
 0x538   :  { %v4773_v27 = vpop.permute.xlu0 %4772  ;;  %5714 = vmatmul.bf16.gmra.mxu2 %v5016_v21 }
 0x539   :  { %v4939_v12 = vsel %vm4912_vm0, %v12381_v14, %v4773_v27  ;;  %v4964_v34 = vsel %vm2073_vm14, %v4773_v27, %v4811_v57  ;;  %v12797_v27 = vsel %vm2073_vm14, %v12683_v36, %v4887_v61  ;;  %v12811_v36 = vld [vmem:[%s13852_s12] ss:$0 sm:$0xff] }
 0x53a   :  { %5572 = vmatmul.bf16.gmra.mxu3 %v4939_v12  ;;  %v14439_v12 = vld [vmem:[#allocation46_spill] sm:$0xff] }
 0x53b   :  { %v12777_v14 = vpop.permute.xlu2 %6586  ;;  %v2608_v7 = vadd.f32 %v14439_v12, %v2559_v44  ;;  %v14444_v44 = vld [vmem:[#allocation63_spill] sm:$0xff] }
 0x53d   :  { %v2657_v5 = vadd.f32 %v14440_v10, %v2608_v7 }
 0x53e   :  { %v4835_v55 = vpop.permute.xlu1 %4834 }
 0x53f   :  { %v4989_v8 = vsel %vm1343_vm10, %v4811_v57, %v4835_v55  ;;  %v14442_v55 = vld [vmem:[#allocation79_spill] sm:$0xff] }
 0x540   :  { %v4905_v22 = vpop.permute.xlu0 %4904  ;;  %5621 = vmatmul.bf16.gmra.mxu0 %v4964_v34  ;;  %v2706_v17 = vadd.f32 %v14442_v55, %v2657_v5 }
 0x542   :  { %5670 = vmatmul.bf16.gmra.mxu1 %v4989_v8  ;;  %v2738_v0 = vmax.f32 %v2706_v17, 0.0 }
 0x543   :  { %v6593_v40 = vpop.permute.xlu2 %6592 }
 0x546   :  { %v4775_v39 = vpop.permute.xlu1 %4774 }
 0x547   :  { %v4943_v57 = vsel %vm4912_vm0, %v12419_v13, %v4775_v39  ;;  %v14443_v13 = vld [vmem:[#allocation62_spill] sm:$0xff] }
 0x548   :  { %v12793_v21 = vpop.permute.xlu0 %4870  ;;  %v2613_v34 = vadd.f32 %v14443_v13, %v2564_v26  ;;  %v14445_v13 = vld [vmem:[#allocation66_spill] sm:$0xff] }
 0x549   :  { %v5020_v32 = vsel %vm4912_vm0, %v4846_v59, %v12793_v21  ;;  %v5592_v59 = vpop.f32.mrf.mxu0 }
 0x54a   :  { %5577 = vmatmul.bf16.gmra.mxu3 %v4943_v57  ;;  %5719 = vmatmul.bf16.gmra.mxu2 %v5020_v32  ;;  %v2662_v45 = vadd.f32 %v14444_v44, %v2613_v34  ;;  %v12820_v57 = vsel %vm1343_vm10, %v4887_v61, %v4905_v22  ;;  %v5641_v32 = vpop.f32.mrf.mxu1 }
 0x54b   :  { %v12815_v8 = vpop.permute.xlu2 %6598 }
 0x54c   :  { %v2711_v34 = vadd.f32 %v14445_v13, %v2662_v45 }
 0x54d   :  { %v5543_v37 = vpop.f32.mrf.mxu3 }
 0x54e   :  { %v5544_v9 = vadd.f32 %v12811_v36, %v5543_v37  ;;  %v6585_v19 = vpop.permute.xlu1 %6584 }
 0x54f   :  { %v6631_v10 = vsel %vm1343_vm10, %v12695_v16, %v6585_v19 }
 0x550   :  { %v4813_v12 = vpop.permute.xlu0 %4812  ;;  %v5593_v7 = vadd.f32 %v5592_v59, %v5544_v9  ;;  %v6663_v26 = vadd.f32 %v6631_v10, %v2738_v0  ;;  %v2740_v9 = vmax.f32 %v2711_v34, 0.0 }
 0x551   :  { %v4967_v5 = vsel %vm2073_vm14, %v4775_v39, %v4813_v12  ;;  %v4992_v38 = vsel %vm1343_vm10, %v4813_v12, %v12746_v43  ;;  %v5027_v43 = vsel %vm2073_vm14, %v12415_v1, %v12372_v46  ;;  %v12837_v0 = vpop.f32.mrf.mxu0  ;;  %v14449_v1 = vld [vmem:[#allocation44_spill] sm:$0xff] }
 0x552   :  { %5626 = vmatmul.bf16.gmra.mxu0 %v4967_v5  ;;  %5675 = vmatmul.bf16.gmra.mxu1 %v4992_v38  ;;  %v5642_v55 = vadd.f32 %v5641_v32, %v5593_v7  ;;  %v6679_v17 = vmax.f32 %v6663_v26, 0.0  ;;  %v12841_v19 = vpop.f32.mrf.mxu1  ;;  %v14448_v32 = vld [vmem:[#allocation23_spill] sm:$0xff]  ;;  %v2739_v38 = vmax.f32 %v14449_v1, 0.0  ;;  %v5051_v26 = vsel %vm1343_vm10, %v12372_v46, %v12486_v60  ;;  %v14454_v60 = vld [vmem:[#allocation104_spill] sm:$0xff] }
 0x553   :  { %v6605_v37 = vpop.permute.xlu2 %6604  ;;  %14447 = vst [vmem:[#allocation59_spill] sm:$0xff] %v12841_v19  ;;  %v2520_v10 = vadd.f32 %v12573_v62, %v14448_v32 }
 0x554   :  { %6716 = vrot.lane.b32.xlu0 %v6679_v17, %s8391_s28  ;;  %v14450_v17 = vld [vmem:[#allocation93_spill] sm:$0xff] }
 0x555   :  { %v5690_v61 = vpop.f32.mrf.mxu2  ;;  %v12839_v45 = vpop.f32.mrf.mxu3  ;;  %v2569_v13 = vadd.f32 %v14450_v17, %v2520_v10 }
 0x556   :  { %v12829_v22 = vadd.f32 %v5690_v61, %v5642_v55  ;;  %v6591_v16 = vpop.permute.xlu1 %6590  ;;  %v14451_v61 = vld [vmem:[#allocation55_spill] sm:$0xff] }
 0x557   :  { %v6633_v39 = vsel %vm1343_vm10, %v6591_v16, %v6593_v40 }
 0x558   :  { %v12831_v59 = vpop.permute.xlu0 %4890  ;;  %v6665_v44 = vadd.f32 %v6633_v39, %v2740_v9  ;;  %v14452_v9 = vld [vmem:[#allocation73_spill] sm:$0xff] }
 0x559   :  { %14446 = vst [vmem:[#allocation67_spill] sm:$0xff] %v12831_v59  ;;  %v2618_v16 = vadd.f32 %v14452_v9, %v2569_v13 }
 0x55a   :  { %5738 = vmatmul.bf16.vlgmr.msra.gmra.mxu3 %v5027_v43  ;;  %v6681_v12 = vmax.f32 %v6665_v44, 0.0  ;;  %v5646_v39 = vpop.f32.mrf.mxu1 }
 0x55b   :  { %v12843_v7 = vpop.permute.xlu2 %6610 }
 0x55c   :  { %6720 = vrot.lane.b32.xlu2 %v6681_v12, %s8391_s28  ;;  %v5597_v43 = vpop.f32.mrf.mxu0  ;;  %v14453_v12 = vld [vmem:[#allocation97_spill] sm:$0xff] }
 0x55d   :  { %v2525_v32 = vadd.f32 %v12573_v62, %v14453_v12  ;;  %v14458_v12 = vld [vmem:[#allocation101_spill] sm:$0xff] }
 0x55e   :  { %v6597_v5 = vpop.permute.xlu1 %6596 }
 0x55f   :  { %v2574_v52 = vadd.f32 %v14458_v12, %v2525_v32  ;;  %v12880_v32 = vpop.f32.mrf.mxu2 }
 0x560   :  { %v6589_v40 = vpop.permute.xlu0 %6588 }
 0x561   :  { %v6632_v55 = vsel %vm1343_vm10, %v12777_v14, %v6589_v40  ;;  %v2530_v14 = vadd.f32 %v12573_v62, %v14454_v60 }
 0x562   :  { %v6664_v34 = vadd.f32 %v6632_v55, %v2739_v38  ;;  %5787 = vmatmul.bf16.vlgmr.msra.gmra.mxu0 %v5051_v26  ;;  %8064 = vmatmul.msk.bf16.vlgmr.msra.gmra.mxu1 %vm4912_vm0, %v14451_v61  ;;  %v5548_v1 = vpop.f32.mrf.mxu3  ;;  %v14455_v38 = vld [vmem:[#allocation60_spill] sm:$0xff] }
 0x563   :  { %v12860_v46 = vpop.permute.xlu2 %6616  ;;  %v5549_v10 = vadd.f32 %v12811_v36, %v5548_v1  ;;  %v2667_v40 = vadd.f32 %v14455_v38, %v2618_v16  ;;  %v14456_v55 = vld [vmem:[#allocation20_spill] sm:$0xff]  ;;  %v5030_v1 = vsel %vm2073_vm14, %v12511_v31, %v12495_v58  ;;  %v14460_v38 = vld [vmem:[#allocation47_spill] sm:$0xff] }
 0x564   :  { %v6680_v44 = vmax.f32 %v6664_v34, 0.0  ;;  %v2743_v17 = vmax.f32 %v14456_v55, 0.0  ;;  %v14457_v34 = vld [vmem:[#allocation29_spill] sm:$0xff]  ;;  %v2623_v55 = vadd.f32 %v14460_v38, %v2574_v52  ;;  %v14463_v52 = vld [vmem:[#allocation28_spill] sm:$0xff] }
 0x565   :  { %v5598_v26 = vadd.f32 %v5597_v43, %v5549_v10  ;;  %v2741_v61 = vmax.f32 %v14457_v34, 0.0  ;;  %v14461_v34 = vld [vmem:[#allocation69_spill] sm:$0xff] }
 0x566   :  { %6718 = vrot.lane.b32.xlu1 %v6680_v44, %s8391_s28  ;;  %v6603_v13 = vpop.permute.xlu1 %6602  ;;  %v14459_v44 = vld [vmem:[#allocation106_spill] sm:$0xff] }
 0x567   :  { %v6636_v59 = vsel %vm1343_vm10, %v6603_v13, %v6605_v37  ;;  %v2579_v60 = vadd.f32 %v14459_v44, %v2530_v14  ;;  %v12876_v10 = vadd.f32 %v5646_v39, %v5598_v26  ;;  %v2672_v39 = vadd.f32 %v14463_v52, %v2623_v55  ;;  %v14464_v14 = vld [vmem:[#allocation33_spill] sm:$0xff] }
 0x568   :  { %v6595_v9 = vpop.permute.xlu0 %6594  ;;  %v6668_v16 = vadd.f32 %v6636_v59, %v2743_v17  ;;  %v5648_v59 = vpop.f32.mrf.mxu1 }
 0x569   :  { %v6634_v29 = vsel %vm1343_vm10, %v6595_v9, %v6597_v5  ;;  %v2628_v42 = vadd.f32 %v14461_v34, %v2579_v60  ;;  %v14462_v5 = vld [vmem:[#allocation48_spill] sm:$0xff]  ;;  %v5054_v60 = vsel %vm1343_vm10, %v12495_v58, %v12450_v23 }
 0x56a   :  { %v6666_v43 = vadd.f32 %v6634_v29, %v2741_v61  ;;  %5743 = vmatmul.bf16.gmra.mxu3 %v5030_v1  ;;  %v6684_v37 = vmax.f32 %v6668_v16, 0.0  ;;  %v2716_v9 = vadd.f32 %v14462_v5, %v2667_v40  ;;  %v5550_v12 = vpop.f32.mrf.mxu3  ;;  %v5599_v29 = vpop.f32.mrf.mxu0 }
 0x56b   :  { %v12883_v19 = vpop.permute.xlu2 %6622  ;;  %v5551_v31 = vadd.f32 %v12811_v36, %v5550_v12  ;;  %v2677_v26 = vadd.f32 %v14464_v14, %v2628_v42  ;;  %v14466_v42 = vld [vmem:[#allocation43_spill] sm:$0xff] }
 0x56c   :  { %v6682_v13 = vmax.f32 %v6666_v43, 0.0  ;;  %6726 = vrot.lane.b32.xlu2 %v6684_v37, %s8391_s28  ;;  %v2742_v1 = vmax.f32 %v2716_v9, 0.0  ;;  %v14465_v43 = vld [vmem:[#allocation8_spill] sm:$0xff]  ;;  %v14467_v37 = vld [vmem:[#allocation5_spill] sm:$0xff] }
 0x56d   :  { %v5600_v17 = vadd.f32 %v5599_v29, %v5551_v31  ;;  %v2726_v34 = vadd.f32 %v14466_v42, %v2677_v26 }
 0x56e   :  { %6722 = vrot.lane.b32.xlu0 %v6682_v13, %s8391_s28  ;;  %v6609_v61 = vpop.permute.xlu1 %6608  ;;  %v2721_v13 = vadd.f32 %v14467_v37, %v2672_v39 }
 0x56f   :  { %v5649_v38 = vadd.f32 %v5648_v59, %v5600_v17  ;;  %v2746_v29 = vmax.f32 %v2726_v34, 0.0  ;;  %v5033_v17 = vsel %vm2073_vm14, %v12479_v51, %v12561_v53 }
 0x570   :  { %v6601_v44 = vpop.permute.xlu0 %6600  ;;  %v2744_v52 = vmax.f32 %v2721_v13, 0.0 }
 0x571   :  { %v6635_v40 = vsel %vm1343_vm10, %v12815_v8, %v6601_v44 }
 0x572   :  { %v6667_v16 = vadd.f32 %v6635_v40, %v2742_v1  ;;  %5792 = vmatmul.bf16.gmra.mxu0 %v5054_v60  ;;  %8065 = vmatmul.msk.bf16.gmra.mxu1 %vm4912_vm0, %v14465_v43  ;;  %v5553_v5 = vpop.f32.mrf.mxu3 }
 0x573   :  { %v12899_v9 = vpop.f32.mrf.mxu2  ;;  %v5554_v8 = vadd.f32 %v12811_v36, %v5553_v5  ;;  %v6709_v23 = vpop.permute.xlu2 %6708  ;;  %v14468_v5 = vld [vmem:[#allocation107_spill] sm:$0xff] }
 0x574   :  { %v6683_v55 = vmax.f32 %v6667_v16, 0.0  ;;  %6757 = vst.msk [vmem:[#allocation2 + $0x18] sm:$0xff] %vm6754_vm3, %v6709_v23 }
 0x575   :  { %v5602_v58 = vpop.f32.mrf.mxu0  ;;  %v5651_v12 = vpop.f32.mrf.mxu1  ;;  %6758 = vst.msk [vmem:[#allocation2 + $0x20] sm:$0xff] %vm2073_vm14, %v6709_v23  ;;  %v14469_v23 = vld [vmem:[#allocation25_spill] sm:$0xff] }
 0x576   :  { %6724 = vrot.lane.b32.xlu1 %v6683_v55, %s8391_s28  ;;  %v5603_v31 = vadd.f32 %v5602_v58, %v5554_v8  ;;  %v6615_v59 = vpop.permute.xlu1 %6614  ;;  %v2535_v8 = vadd.f32 %v12573_v62, %v14468_v5  ;;  %v2745_v58 = vmax.f32 %v14469_v23, 0.0 }
 0x577   :  { %v6639_v39 = vsel %vm1343_vm10, %v6615_v59, %v12860_v46  ;;  %v14470_v59 = vld [vmem:[#allocation77_spill] sm:$0xff] }
 0x578   :  { %v6607_v14 = vpop.permute.xlu0 %6606  ;;  %v5652_v1 = vadd.f32 %v5651_v12, %v5603_v31  ;;  %v6671_v44 = vadd.f32 %v6639_v39, %v2746_v29  ;;  %v14472_v39 = vld [vmem:[#allocation94_spill] sm:$0xff] }
 0x579   :  { %v6637_v26 = vsel %vm1343_vm10, %v6607_v14, %v6609_v61 }
 0x57a   :  { %v6669_v40 = vadd.f32 %v6637_v26, %v2744_v52  ;;  %5748 = vmatmul.bf16.gmra.mxu3 %v5033_v17  ;;  %v6687_v60 = vmax.f32 %v6671_v44, 0.0  ;;  %v5555_v43 = vpop.f32.mrf.mxu3  ;;  %v14471_v52 = vld [vmem:[#allocation27_spill] sm:$0xff] }
 0x57b   :  { %v5697_v55 = vpop.f32.mrf.mxu2  ;;  %v5556_v42 = vadd.f32 %v12811_v36, %v5555_v43  ;;  %v2584_v14 = vadd.f32 %v14471_v52, %v2535_v8  ;;  %v14473_v26 = vld [vmem:[#allocation51_spill] sm:$0xff] }
 0x57c   :  { %v6685_v16 = vmax.f32 %v6669_v40, 0.0  ;;  %v12912_v34 = vadd.f32 %v5697_v55, %v5649_v38  ;;  %6732 = vrot.lane.b32.xlu2 %v6687_v60, %s8391_s28  ;;  %v5057_v38 = vsel %vm1343_vm10, %v12561_v53, %v12594_v33  ;;  %v2729_v17 = vadd.f32 %v14473_v26, %v14472_v39 }
 0x57d   :  { %v5604_v46 = vpop.f32.mrf.mxu0  ;;  %v5653_v61 = vpop.f32.mrf.mxu1 }
 0x57e   :  { %6728 = vrot.lane.b32.xlu0 %v6685_v16, %s8391_s28  ;;  %v5605_v37 = vadd.f32 %v5604_v46, %v5556_v42  ;;  %v6715_v51 = vpop.permute.xlu2 %6714  ;;  %v6621_v13 = vpop.permute.xlu1 %6620  ;;  %v14474_v16 = vld [vmem:[#allocation34_spill] sm:$0xff] }
 0x57f   :  { %6763 = vst.msk [vmem:[#allocation2 + $0x60] sm:$0xff] %vm6754_vm3, %v6715_v51  ;;  %v2633_v43 = vadd.f32 %v14474_v16, %v2584_v14 }
 0x580   :  { %v6613_v12 = vpop.permute.xlu0 %6612  ;;  %v12923_v31 = vadd.f32 %v5653_v61, %v5605_v37  ;;  %6764 = vst.msk [vmem:[#allocation2 + $0x68] sm:$0xff] %vm2073_vm14, %v6715_v51  ;;  %v2747_v37 = vmax.f32 %v2729_v17, 0.0  ;;  %v14475_v51 = vld [vmem:[#allocation36_spill] sm:$0xff] }
 0x581   :  { %v6638_v29 = vsel %vm1343_vm10, %v12843_v7, %v6613_v12  ;;  %v8343_v7 = vld [vmem:[%s13840_s0 + $0x8] sm:$0xff]  ;;  %v2682_v5 = vadd.f32 %v14475_v51, %v2633_v43 }
 0x582   :  { %5797 = vmatmul.bf16.gmra.mxu0 %v5057_v38  ;;  %8066 = vmatmul.msk.bf16.gmra.mxu1 %vm4912_vm0, %v14470_v59  ;;  %v6670_v62 = vadd.f32 %v6638_v29, %v2745_v58  ;;  %v5558_v40 = vpop.f32.mrf.mxu3  ;;  %v14476_v12 = vld [vmem:[#allocation38_spill] sm:$0xff] }
 0x583   :  { %v5700_v53 = vpop.f32.mrf.mxu2  ;;  %v5559_v33 = vadd.f32 %v12811_v36, %v5558_v40  ;;  %v2731_v38 = vadd.f32 %v14476_v12, %v2682_v5  ;;  %v14480_v5 = vld [vmem:[#allocation14_spill] sm:$0xff] }
 0x584   :  { %v6686_v44 = vmax.f32 %v6670_v62, 0.0  ;;  %v12934_v60 = vadd.f32 %v5700_v53, %v5652_v1  ;;  %6803 = vrot.lane.b32.xlu2 %v8343_v7, %s8394_s4  ;;  %v12955_v62 = vld [vmem:[%s13840_s0 + $0x28] sm:$0xff] }
 0x585   :  { %v5607_v55 = vpop.f32.mrf.mxu0  ;;  %v5656_v46 = vpop.f32.mrf.mxu1  ;;  %v2748_v26 = vmax.f32 %v2731_v38, 0.0 }
 0x586   :  { %6730 = vrot.lane.b32.xlu1 %v6686_v44, %s8391_s28  ;;  %v5608_v42 = vadd.f32 %v5607_v55, %v5559_v33  ;;  %v6707_v61 = vpop.permute.xlu1 %6706 }
 0x587   :  { %6755 = vst.msk [vmem:[#allocation2] sm:$0xff] %vm6754_vm3, %v6707_v61 }
 0x588   :  { %v6619_v1 = vpop.permute.xlu0 %6618  ;;  %v12944_v8 = vadd.f32 %v5656_v46, %v5608_v42  ;;  %6756 = vst.msk [vmem:[#allocation2 + $0x8] sm:$0xff] %vm2073_vm14, %v6707_v61  ;;  %v8345_v42 = vld [vmem:[%s13840_s0 + $0x50] sm:$0xff] }
 0x589   :  { %v6640_v23 = vsel %vm1343_vm10, %v6619_v1, %v6621_v13  ;;  %v14477_v13 = vld [vmem:[#allocation98_spill] sm:$0xff]  ;;  %v4893_v1 = vpack.c.b16 %v14480_v5, %v12470_v54 }
 0x58a   :  { %5753 = vmatmul.bf16.gmra.mxu3 %v12660_v50  ;;  %v6672_v58 = vadd.f32 %v6640_v23, %v2747_v37  ;;  %v14478_v14 = vunpack.c.l.b16 %v14477_v13  ;;  %v14479_v50 = vld [vmem:[#allocation45_spill] sm:$0xff]  ;;  %v5560_v17 = vpop.f32.mrf.mxu3 }
 0x58b   :  { %v12950_v59 = vpop.f32.mrf.mxu2  ;;  %v5561_v16 = vadd.f32 %v12811_v36, %v5560_v17  ;;  %v14481_v13 = vld [vmem:[#allocation113_spill] sm:$0xff]  ;;  %v13010_v17 = vld [vmem:[%s13840_s0 + $0x70] sm:$0xff] }
 0x58c   :  { %v6688_v29 = vmax.f32 %v6672_v58, 0.0  ;;  %6809 = vrot.lane.b32.xlu2 %v12955_v62, %s8394_s4  ;;  %v4910_v39 = vpack.c.b16 %v14479_v50, %v14478_v14 }
 0x58d   :  { %v5609_v40 = vpop.f32.mrf.mxu0  ;;  %v5658_v53 = vpop.f32.mrf.mxu1 }
 0x58e   :  { %6734 = vrot.lane.b32.xlu0 %v6688_v29, %s8391_s28  ;;  %v6713_v52 = vpop.permute.xlu1 %6712  ;;  %v8348_v29 = vld [vmem:[%s13840_s0 + $0x20] sm:$0xff] }
 0x58f   :  { %6761 = vst.msk [vmem:[#allocation2 + $0x48] sm:$0xff] %vm6754_vm3, %v6713_v52 }
 0x590   :  { %v6625_v44 = vpop.permute.xlu0 %6624  ;;  %6762 = vst.msk [vmem:[#allocation2 + $0x50] sm:$0xff] %vm2073_vm14, %v6713_v52 }
 0x591   :  { %v6641_v33 = vsel %vm1343_vm10, %v12883_v19, %v6625_v44  ;;  %v12979_v19 = vld [vmem:[%s13840_s0 + $0x10] sm:$0xff] }
 0x592   :  { %5802 = vmatmul.bf16.gmra.mxu0 %v12664_v20  ;;  %8067 = vmatmul.msk.bf16.gmra.mxu1 %vm4912_vm0, %v4910_v39  ;;  %v6673_v7 = vadd.f32 %v6641_v33, %v2748_v26  ;;  %v5610_v20 = vadd.f32 %v5609_v40, %v5561_v16 }
 0x593   :  { %v12970_v55 = vpop.f32.mrf.mxu2 }
 0x594   :  { %v6689_v43 = vmax.f32 %v6673_v7, 0.0  ;;  %6815 = vrot.lane.b32.xlu2 %v8345_v42, %s8394_s4  ;;  %v5659_v61 = vadd.f32 %v5658_v53, %v5610_v20 }
 0x595   :  { %v5612_v37 = vpop.f32.mrf.mxu0 }
 0x596   :  { %6805 = vrot.lane.b32.xlu0 %v12979_v19, %s8394_s4  ;;  %6736 = vrot.lane.b32.xlu1 %v6689_v43, %s8391_s28  ;;  %v5661_v51 = vpop.f32.mrf.mxu1 }
 0x598   :  { %v6711_v46 = vpop.permute.xlu0 %6710 }
 0x599   :  { %6759 = vst.msk [vmem:[#allocation2 + $0x30] sm:$0xff] %vm6754_vm3, %v6711_v46 }
 0x59a   :  { %5758 = vmatmul.bf16.gmra.mxu3 %v12758_v2  ;;  %6760 = vst.msk [vmem:[#allocation2 + $0x38] sm:$0xff] %vm2073_vm14, %v6711_v46  ;;  %v8347_v2 = vld [vmem:[%s13840_s0 + $0x38] sm:$0xff] }
 0x59b   :  { %v5563_v23 = vpop.f32.mrf.mxu3  ;;  %v5707_v58 = vpop.f32.mrf.mxu2 }
 0x59c   :  { %v5564_v12 = vadd.f32 %v12811_v36, %v5563_v23  ;;  %v12990_v38 = vadd.f32 %v5707_v58, %v5659_v61  ;;  %4908 = vrot.lane.b32.xlu2 %v4893_v1, %s8392_s3  ;;  %v8354_v58 = vld [vmem:[%s13840_s0 + $0x68] sm:$0xff] }
 0x59d   :  { %v5614_v44 = vpop.f32.mrf.mxu0 }
 0x59e   :  { %6811 = vrot.lane.b32.xlu0 %v8347_v2, %s8394_s4  ;;  %6807 = vrot.lane.b32.xlu1 %v8348_v29, %s8394_s4  ;;  %v5613_v52 = vadd.f32 %v5612_v37, %v5564_v12  ;;  %v5663_v40 = vpop.f32.mrf.mxu1 }
 0x5a0   :  { %v13004_v14 = vadd.f32 %v5661_v51, %v5613_v52  ;;  %v5045_v51 = vsel %vm2073_vm14, %v12793_v21, %v12732_v25 }
 0x5a2   :  { %5807 = vmatmul.bf16.gmra.mxu0 %v12762_v47  ;;  %8068 = vmatmul.msk.bf16.gmra.mxu1 %vm4912_vm0, %v14481_v13  ;;  %v13017_v47 = vld [vmem:[%s13840_s0 + $0x58] sm:$0xff]  ;;  %v13091_v13 = vld [vmem:[%s13840_s0 + $0xe8] sm:$0xff] }
 0x5a3   :  { %v5565_v39 = vpop.f32.mrf.mxu3 }
 0x5a4   :  { %v5566_v26 = vadd.f32 %v12811_v36, %v5565_v39  ;;  %6821 = vrot.lane.b32.xlu2 %v13010_v17, %s8394_s4 }
 0x5a6   :  { %6817 = vrot.lane.b32.xlu0 %v13017_v47, %s8394_s4  ;;  %4906 = vrot.lane.b32.xlu1 %v12431_v49, %s8392_s3  ;;  %v5615_v53 = vadd.f32 %v5614_v44, %v5566_v26 }
 0x5a8   :  { %v13024_v33 = vadd.f32 %v5663_v40, %v5615_v53 }
 0x5aa   :  { %5763 = vmatmul.bf16.gmra.mxu3 %v12797_v27 }
 0x5ab   :  { %v5568_v7 = vpop.f32.mrf.mxu3 }
 0x5ac   :  { %v5569_v16 = vadd.f32 %v12811_v36, %v5568_v7  ;;  %6827 = vrot.lane.b32.xlu2 %v12500_v11, %s8394_s4 }
 0x5ad   :  { %v5617_v43 = vpop.f32.mrf.mxu0 }
 0x5ae   :  { %6823 = vrot.lane.b32.xlu0 %v12461_v24, %s8394_s4  ;;  %4872 = vrot.lane.b32.xlu1 %v12454_v48, %s8391_s28  ;;  %v5618_v49 = vadd.f32 %v5617_v43, %v5569_v16  ;;  %v13042_v24 = vld [vmem:[%s13840_s0 + $0xb8] sm:$0xff]  ;;  %v13049_v48 = vld [vmem:[%s13840_s0 + $0xa0] sm:$0xff] }
 0x5af   :  { %v5666_v42 = vpop.f32.mrf.mxu1 }
 0x5b0   :  { %v13033_v20 = vadd.f32 %v5666_v42, %v5618_v49 }
 0x5b2   :  { %5812 = vmatmul.bf16.gmra.mxu0 %v12820_v57  ;;  %8069 = vmatmul.msk.bf16.gmra.mxu1 %vm4912_vm0, %v12394_v35  ;;  %v13056_v35 = vld [vmem:[%s13840_s0 + $0x40] sm:$0xff] }
 0x5b3   :  { %v5570_v27 = vpop.f32.mrf.mxu3 }
 0x5b4   :  { %v5571_v46 = vadd.f32 %v12811_v36, %v5570_v27  ;;  %6833 = vrot.lane.b32.xlu2 %v13042_v24, %s8394_s4 }
 0x5b5   :  { %v5619_v11 = vpop.f32.mrf.mxu0 }
 0x5b6   :  { %6829 = vrot.lane.b32.xlu0 %v13049_v48, %s8394_s4  ;;  %6813 = vrot.lane.b32.xlu1 %v13056_v35, %s8394_s4  ;;  %v5620_v61 = vadd.f32 %v5619_v11, %v5571_v46  ;;  %v6721_v37 = vpop.permute.xlu2 %6720  ;;  %v14485_v46 = vunpack.c.l.b16 %v12444_v18  ;;  %v13132_v18 = vld [vmem:[%s13840_s0 + $0x130] sm:$0xff] }
 0x5b7   :  { %v5668_v57 = vpop.f32.mrf.mxu1  ;;  %6769 = vst.msk [vmem:[#allocation2 + $0xa8] sm:$0xff] %vm6754_vm3, %v6721_v37 }
 0x5b8   :  { %v13064_v5 = vadd.f32 %v5668_v57, %v5620_v61  ;;  %6770 = vst.msk [vmem:[#allocation2 + $0xb0] sm:$0xff] %vm2073_vm14, %v6721_v37  ;;  %v4911_v11 = vpack.c.b16 %v14479_v50, %v14485_v46  ;;  %v14489_v46 = vld [vmem:[#allocation57_spill] sm:$0xff] }
 0x5ba   :  { %14482 = vst [vmem:[#allocation68_spill] sm:$0xff] %v13064_v5  ;;  %5768 = vmatmul.bf16.gmra.mxu3 %v5045_v51 }
 0x5bc   :  { %6839 = vrot.lane.b32.xlu2 %v12550_v15, %s8394_s4 }
 0x5bd   :  { %v5573_v1 = vpop.f32.mrf.mxu3  ;;  %v5622_v21 = vpop.f32.mrf.mxu0 }
 0x5be   :  { %v5574_v23 = vadd.f32 %v12811_v36, %v5573_v1  ;;  %6835 = vrot.lane.b32.xlu0 %v12507_v28, %s8394_s4  ;;  %6819 = vrot.lane.b32.xlu1 %v8354_v58, %s8394_s4  ;;  %v13084_v28 = vld [vmem:[%s13840_s0 + $0x100] sm:$0xff]  ;;  %v5546_v58 = vadd.f32 %v12811_v36, %v12839_v45 }
 0x5bf   :  { %v5671_v12 = vpop.f32.mrf.mxu1 }
 0x5c0   :  { %v5623_v2 = vadd.f32 %v5622_v21, %v5574_v23 }
 0x5c2   :  { %v13076_v29 = vadd.f32 %v5671_v12, %v5623_v2  ;;  %8070 = vmatmul.msk.bf16.gmra.mxu1 %vm4912_vm0, %v12448_v4  ;;  %v13098_v4 = vld [vmem:[%s13840_s0 + $0x88] sm:$0xff]  ;;  %v5595_v2 = vadd.f32 %v12837_v0, %v5546_v58  ;;  %v14488_v0 = vld [vmem:[#allocation59_spill] sm:$0xff] }
 0x5c4   :  { %14483 = vst [vmem:[#allocation108_spill] sm:$0xff] %v13076_v29  ;;  %6845 = vrot.lane.b32.xlu2 %v13084_v28, %s8394_s4  ;;  %v14514_v29 = vld [vmem:[#allocation83_spill] sm:$0xff] }
 0x5c5   :  { %v5575_v52 = vpop.f32.mrf.mxu3  ;;  %v5624_v39 = vpop.f32.mrf.mxu0 }
 0x5c6   :  { %v5576_v15 = vadd.f32 %v12811_v36, %v5575_v52  ;;  %6841 = vrot.lane.b32.xlu0 %v13091_v13, %s8394_s4  ;;  %6825 = vrot.lane.b32.xlu1 %v13098_v4, %s8394_s4  ;;  %v6727_v40 = vpop.permute.xlu2 %6726  ;;  %v6717_v53 = vpop.permute.xlu0 %6716 }
 0x5c7   :  { %v5673_v26 = vpop.f32.mrf.mxu1  ;;  %6775 = vst.msk [vmem:[#allocation2 + $0xf0] sm:$0xff] %vm6754_vm3, %v6727_v40 }
 0x5c8   :  { %v5625_v44 = vadd.f32 %v5624_v39, %v5576_v15  ;;  %6776 = vst.msk [vmem:[#allocation2 + $0xf8] sm:$0xff] %vm2073_vm14, %v6727_v40 }
 0x5c9   :  { %6765 = vst.msk [vmem:[#allocation2 + $0x78] sm:$0xff] %vm6754_vm3, %v6717_v53 }
 0x5ca   :  { %v13103_v7 = vadd.f32 %v5673_v26, %v5625_v44  ;;  %6766 = vst.msk [vmem:[#allocation2 + $0x80] sm:$0xff] %vm2073_vm14, %v6717_v53  ;;  %v5644_v44 = vadd.f32 %v14488_v0, %v5595_v2  ;;  %v13179_v53 = vld [vmem:[%s13840_s0 + $0x118] sm:$0xff] }
 0x5cc   :  { %14484 = vst [vmem:[#allocation64_spill] sm:$0xff] %v13103_v7  ;;  %6851 = vrot.lane.b32.xlu2 %v12618_v6, %s8394_s4 }
 0x5cd   :  { %v5578_v16 = vpop.f32.mrf.mxu3 }
 0x5ce   :  { %v5579_v43 = vadd.f32 %v12811_v36, %v5578_v16  ;;  %6847 = vrot.lane.b32.xlu0 %v12557_v3, %s8394_s4  ;;  %6831 = vrot.lane.b32.xlu1 %v12491_v41, %s8394_s4  ;;  %v13125_v3 = vld [vmem:[%s13840_s0 + $0x148] sm:$0xff]  ;;  %v13139_v41 = vld [vmem:[%s13840_s0 + $0xd0] sm:$0xff] }
 0x5cf   :  { %v5627_v42 = vpop.f32.mrf.mxu0  ;;  %v5676_v49 = vpop.f32.mrf.mxu1 }
 0x5d0   :  { %v5628_v27 = vadd.f32 %v5627_v42, %v5579_v43 }
 0x5d2   :  { %v13118_v57 = vadd.f32 %v5676_v49, %v5628_v27  ;;  %8071 = vmatmul.msk.bf16.gmra.mxu1 %vm4912_vm0, %v4911_v11 }
 0x5d4   :  { %14486 = vst [vmem:[#allocation110_spill] sm:$0xff] %v13118_v57  ;;  %6857 = vrot.lane.b32.xlu2 %v13125_v3, %s8394_s4 }
 0x5d5   :  { %v5580_v61 = vpop.f32.mrf.mxu3 }
 0x5d6   :  { %v5581_v6 = vadd.f32 %v12811_v36, %v5580_v61  ;;  %6853 = vrot.lane.b32.xlu0 %v13132_v18, %s8394_s4  ;;  %6837 = vrot.lane.b32.xlu1 %v13139_v41, %s8394_s4  ;;  %v6733_v1 = vpop.permute.xlu2 %6732 }
 0x5d7   :  { %v5629_v50 = vpop.f32.mrf.mxu0  ;;  %v5678_v37 = vpop.f32.mrf.mxu1  ;;  %6781 = vst.msk [vmem:[#allocation2 + $0x138] sm:$0xff] %vm6754_vm3, %v6733_v1 }
 0x5d8   :  { %v5630_v51 = vadd.f32 %v5629_v50, %v5581_v6  ;;  %v6719_v23 = vpop.permute.xlu1 %6718  ;;  %6782 = vst.msk [vmem:[#allocation2 + $0x140] sm:$0xff] %vm2073_vm14, %v6733_v1 }
 0x5d9   :  { %6767 = vst.msk [vmem:[#allocation2 + $0x90] sm:$0xff] %vm6754_vm3, %v6719_v23 }
 0x5da   :  { %v13146_v21 = vadd.f32 %v5678_v37, %v5630_v51  ;;  %6768 = vst.msk [vmem:[#allocation2 + $0x98] sm:$0xff] %vm2073_vm14, %v6719_v23 }
 0x5dc   :  { %14487 = vst [vmem:[#allocation76_spill] sm:$0xff] %v13146_v21  ;;  %6863 = vrot.lane.b32.xlu2 %v12689_v56, %s8394_s4  ;;  %v5693_v56 = vadd.f32 %v12880_v32, %v5644_v44  ;;  %v14510_v21 = vld [vmem:[#allocation67_spill] sm:$0xff] }
 0x5dd   :  { %v5739_v12 = vpop.f32.mrf.mxu3 }
 0x5de   :  { %v5740_v52 = vadd.f32 %v5739_v12, %v12829_v22  ;;  %6859 = vrot.lane.b32.xlu0 %v12625_v63, %s8394_s4  ;;  %6843 = vrot.lane.b32.xlu1 %v12541_v30, %s8394_s4  ;;  %v13159_v39 = vpop.permute.xlu2 %6803  ;;  %v13172_v30 = vld [vmem:[%s13840_s0 + $0x178] sm:$0xff] }
 0x5df   :  { %v5788_v36 = vpop.f32.mrf.mxu0  ;;  %v5837_v45 = vpop.f32.mrf.mxu1 }
 0x5e0   :  { %v5789_v15 = vadd.f32 %v5788_v36, %v5740_v52  ;;  %v6723_v26 = vpop.permute.xlu0 %6722 }
 0x5e1   :  { %6771 = vst.msk [vmem:[#allocation2 + $0xc0] sm:$0xff] %vm6754_vm3, %v6723_v26 }
 0x5e2   :  { %v13163_v22 = vadd.f32 %v5837_v45, %v5789_v15  ;;  %6772 = vst.msk [vmem:[#allocation2 + $0xc8] sm:$0xff] %vm2073_vm14, %v6723_v26 }
 0x5e4   :  { %7028 = vrot.lane.b32.xlu2 %v12979_v19, %s8391_s28  ;;  %v5877_v0 = vmax.f32 %v13163_v22, 0.0  ;;  %v14493_v22 = vld [vmem:[#allocation70_spill] sm:$0xff] }
 0x5e5   :  { %v5741_v63 = vpop.f32.mrf.mxu3 }
 0x5e6   :  { %v5742_v40 = vadd.f32 %v5741_v63, %v5693_v56  ;;  %6865 = vrot.lane.b32.xlu0 %v13172_v30, %s8394_s4  ;;  %6849 = vrot.lane.b32.xlu1 %v13179_v53, %s8394_s4  ;;  %v13183_v19 = vpop.permute.xlu2 %6809  ;;  %v14491_v63 = vld [vmem:[#allocation11_spill] sm:$0xff] }
 0x5e7   :  { %v5790_v32 = vpop.f32.mrf.mxu0  ;;  %v5839_v16 = vpop.f32.mrf.mxu1 }
 0x5e8   :  { %v5791_v43 = vadd.f32 %v5790_v32, %v5742_v40  ;;  %v6725_v42 = vpop.permute.xlu1 %6724  ;;  %v14492_v40 = vld [vmem:[#allocation71_spill] sm:$0xff] }
 0x5e9   :  { %6773 = vst.msk [vmem:[#allocation2 + $0xd8] sm:$0xff] %vm6754_vm3, %v6725_v42  ;;  %v5989_v32 = vsel %vm1343_vm10, %v14492_v40, %v14491_v63 }
 0x5ea   :  { %v13186_v49 = vadd.f32 %v5839_v16, %v5791_v43  ;;  %6774 = vst.msk [vmem:[#allocation2 + $0xe0] sm:$0xff] %vm2073_vm14, %v6725_v42  ;;  %v14494_v16 = vld [vmem:[#allocation6_spill] sm:$0xff] }
 0x5eb   :  { %v5991_v43 = vsel %vm1343_vm10, %v14494_v16, %v14493_v22 }
 0x5ec   :  { %7034 = vrot.lane.b32.xlu2 %v13017_v47, %s8391_s28 }
 0x5ed   :  { %v13189_v27 = vpop.f32.mrf.mxu3 }
 0x5ee   :  { %7030 = vrot.lane.b32.xlu0 %v12955_v62, %s8391_s28  ;;  %6855 = vrot.lane.b32.xlu1 %v14489_v46, %s8394_s4  ;;  %v13201_v6 = vpop.permute.xlu2 %6815  ;;  %v13213_v62 = vld [vmem:[%s13840_s0 + $0x160] sm:$0xff]  ;;  %v14495_v46 = vld [vmem:[#allocation32_spill] sm:$0xff] }
 0x5ef   :  { %v13197_v11 = vpop.f32.mrf.mxu0  ;;  %v13199_v61 = vpop.f32.mrf.mxu1 }
 0x5f0   :  { %v6729_v50 = vpop.permute.xlu0 %6728 }
 0x5f1   :  { %6777 = vst.msk [vmem:[#allocation2 + $0x108] sm:$0xff] %vm6754_vm3, %v6729_v50 }
 0x5f2   :  { %6778 = vst.msk [vmem:[#allocation2 + $0x110] sm:$0xff] %vm2073_vm14, %v6729_v50  ;;  %v14496_v50 = vld [vmem:[#allocation82_spill] sm:$0xff] }
 0x5f4   :  { %7040 = vrot.lane.b32.xlu2 %v13049_v48, %s8391_s28 }
 0x5f5   :  { %v5746_v37 = vpop.f32.mrf.mxu3 }
 0x5f6   :  { %v5747_v47 = vadd.f32 %v5746_v37, %v12912_v34  ;;  %7036 = vrot.lane.b32.xlu0 %v13010_v17, %s8391_s28  ;;  %6861 = vrot.lane.b32.xlu1 %v13213_v62, %s8394_s4  ;;  %v13217_v58 = vpop.permute.xlu2 %4908  ;;  %v5990_v37 = vsel %vm1343_vm10, %v14496_v50, %v14495_v46  ;;  %v14500_v46 = vld [vmem:[#allocation49_spill] sm:$0xff] }
 0x5f7   :  { %v5795_v51 = vpop.f32.mrf.mxu0  ;;  %v5844_v1 = vpop.f32.mrf.mxu1  ;;  %v14501_v50 = vld [vmem:[#allocation9_spill] sm:$0xff] }
 0x5f8   :  { %v5796_v23 = vadd.f32 %v5795_v51, %v5747_v47  ;;  %v6731_v34 = vpop.permute.xlu1 %6730  ;;  %v5878_v51 = vmax.f32 %v13186_v49, 0.0 }
 0x5f9   :  { %6779 = vst.msk [vmem:[#allocation2 + $0x120] sm:$0xff] %vm6754_vm3, %v6731_v34 }
 0x5fa   :  { %v13219_v12 = vadd.f32 %v5844_v1, %v5796_v23  ;;  %6780 = vst.msk [vmem:[#allocation2 + $0x128] sm:$0xff] %vm2073_vm14, %v6731_v34  ;;  %v6008_v34 = vrot.slane %v5990_v37, 7 }
 0x5fc   :  { %7046 = vrot.lane.b32.xlu2 %v13091_v13, %s8391_s28  ;;  %v5880_v37 = vmax.f32 %v13219_v12, 0.0 }
 0x5fd   :  { %v5749_v17 = vpop.f32.mrf.mxu3 }
 0x5fe   :  { %v5750_v48 = vadd.f32 %v5749_v17, %v12934_v60  ;;  %7042 = vrot.lane.b32.xlu0 %v13042_v24, %s8391_s28  ;;  %7032 = vrot.lane.b32.xlu1 %v13056_v35, %s8391_s28  ;;  %v13230_v45 = vpop.permute.xlu2 %6821 }
 0x5ff   :  { %v5798_v2 = vpop.f32.mrf.mxu0  ;;  %v5847_v52 = vpop.f32.mrf.mxu1 }
 0x600   :  { %v5799_v36 = vadd.f32 %v5798_v2, %v5750_v48  ;;  %v6735_v15 = vpop.permute.xlu0 %6734 }
 0x601   :  { %6783 = vst.msk [vmem:[#allocation2 + $0x150] sm:$0xff] %vm6754_vm3, %v6735_v15 }
 0x602   :  { %v13232_v26 = vadd.f32 %v5847_v52, %v5799_v36  ;;  %6784 = vst.msk [vmem:[#allocation2 + $0x158] sm:$0xff] %vm2073_vm14, %v6735_v15  ;;  %v13296_v15 = vsel %vm1496_vm1, 0.0, %v6008_v34 }
 0x604   :  { %7052 = vrot.lane.b32.xlu2 %v13132_v18, %s8391_s28 }
 0x605   :  { %v13236_v60 = vpop.f32.mrf.mxu3 }
 0x606   :  { %7048 = vrot.lane.b32.xlu0 %v13084_v28, %s8391_s28  ;;  %7038 = vrot.lane.b32.xlu1 %v13098_v4, %s8391_s28  ;;  %v13248_v13 = vpop.permute.xlu2 %6827 }
 0x607   :  { %v13244_v24 = vpop.f32.mrf.mxu0  ;;  %v13246_v35 = vpop.f32.mrf.mxu1 }
 0x608   :  { %v6737_v44 = vpop.permute.xlu1 %6736  ;;  %v6806_v56 = vpop.permute.xlu0 %6805 }
 0x609   :  { %6785 = vst.msk [vmem:[#allocation2 + $0x168] sm:$0xff] %vm6754_vm3, %v6737_v44  ;;  %v6867_v18 = vsel %vm2073_vm14, %v13159_v39, %v6806_v56 }
 0x60a   :  { %6786 = vst.msk [vmem:[#allocation2 + $0x170] sm:$0xff] %vm2073_vm14, %v6737_v44  ;;  %v13255_v28 = vadd.f32 %v6867_v18, %v5877_v0  ;;  %v14498_v0 = vld [vmem:[#allocation15_spill] sm:$0xff]  ;;  %v13304_v18 = vsel %vm1496_vm1, %v6008_v34, 0.0 }
 0x60c   :  { %14490 = vst [vmem:[#allocation112_spill] sm:$0xff] %v13255_v28  ;;  %7058 = vrot.lane.b32.xlu2 %v13172_v30, %s8391_s28  ;;  %v6007_v30 = vrot.slane %v5989_v32, 7 }
 0x60d   :  { %v5754_v4 = vpop.f32.mrf.mxu3 }
 0x60e   :  { %7054 = vrot.lane.b32.xlu0 %v13125_v3, %s8391_s28  ;;  %7044 = vrot.lane.b32.xlu1 %v13139_v41, %s8391_s28  ;;  %v13276_v47 = vpop.permute.xlu2 %6833  ;;  %v6009_v3 = vrot.slane %v5991_v43, 7  ;;  %v13286_v48 = vsel %vm1496_vm1, 0.0, %v6007_v30  ;;  %v13307_v63 = vsel %vm1496_vm1, %v6007_v30, 0.0 }
 0x60f   :  { %v13269_v39 = vpop.f32.mrf.mxu0  ;;  %v13271_v42 = vpop.f32.mrf.mxu1  ;;  %v6109_v40 = vrot.slane %v13286_v48, 1 }
 0x610   :  { %v6808_v1 = vpop.permute.xlu1 %6807  ;;  %v13279_v23 = vpop.permute.xlu0 %6811  ;;  %v13289_v52 = vsel %vm1496_vm1, 0.0, %v6009_v3  ;;  %v13292_v36 = vsel %vm1496_vm1, %v6009_v3, 0.0 }
 0x611   :  { %v6868_v41 = vsel %vm2073_vm14, %v6808_v1, %v13183_v19  ;;  %v14499_v19 = vld [vmem:[#allocation84_spill] sm:$0xff]  ;;  %v6115_v16 = vrot.slane %v13289_v52, 1  ;;  %v6116_v43 = vrot.slane %v13292_v36, 1 }
 0x612   :  { %v13283_v17 = vadd.f32 %v6868_v41, %v5878_v51  ;;  %v5994_v44 = vsel %vm1343_vm10, %v14499_v19, %v14498_v0  ;;  %v5706_v0 = vadd.f32 %v12970_v55, %v12944_v8  ;;  %v13343_v55 = vpop.f32.mrf.mxu2 }
 0x613   :  { %v6012_v30 = vrot.slane %v5994_v44, 7 }
 0x614   :  { %14497 = vst [vmem:[#allocation54_spill] sm:$0xff] %v13283_v17  ;;  %v14515_v17 = vld [vmem:[#allocation78_spill] sm:$0xff] }
 0x615   :  { %v5756_v2 = vpop.f32.mrf.mxu3  ;;  %v6064_v8 = vsel %vm1496_vm1, %v6012_v30, 0.0 }
 0x616   :  { %v5757_v49 = vadd.f32 %v5756_v2, %v12990_v38  ;;  %7050 = vrot.lane.b32.xlu1 %v13179_v53, %s8391_s28  ;;  %v13310_v22 = vpop.permute.xlu2 %6839  ;;  %v5992_v53 = vsel %vm1343_vm10, %v14501_v50, %v14500_v46  ;;  %v6110_v2 = vrot.slane %v13307_v63, 1  ;;  %v14503_v50 = vld [vmem:[#allocation31_spill] sm:$0xff] }
 0x617   :  { %v5805_v56 = vpop.f32.mrf.mxu0  ;;  %v5854_v32 = vpop.f32.mrf.mxu1  ;;  %v6010_v44 = vrot.slane %v5992_v53, 7  ;;  %v14504_v53 = vld [vmem:[#allocation42_spill] sm:$0xff] }
 0x618   :  { %v5806_v38 = vadd.f32 %v5805_v56, %v5757_v49  ;;  %v4907_v51 = vpop.permute.xlu1 %4906  ;;  %v6818_v1 = vpop.permute.xlu0 %6817  ;;  %v5696_v49 = vadd.f32 %v12899_v9, %v12876_v10  ;;  %v6186_v10 = vrot.slane %v13307_v63, 2  ;;  %v13340_v9 = vsel %vm1496_vm1, 0.0, %v6012_v30 }
 0x619   :  { %v6870_v41 = vsel %vm2073_vm14, %v13201_v6, %v6818_v1  ;;  %v5069_v34 = vsel %vm1343_vm10, %v12732_v25, %v4907_v51  ;;  %v13334_v6 = vsel %vm6105_vm15, %v6115_v16, %v6116_v43  ;;  %v6111_v46 = vsel %vm6105_vm15, %v6109_v40, %v6110_v2 }
 0x61a   :  { %v13318_v3 = vadd.f32 %v5854_v32, %v5806_v38  ;;  %v13329_v12 = vadd.f32 %v6870_v41, %v5880_v37  ;;  %5817 = vmatmul.bf16.gmra.mxu0 %v5069_v34  ;;  %v5745_v25 = vadd.f32 %v13189_v27, %v5696_v49  ;;  %v5755_v38 = vadd.f32 %v5754_v4, %v5706_v0  ;;  %v14505_v37 = vld [vmem:[#allocation95_spill] sm:$0xff] }
 0x61b   :  { %v6185_v32 = vrot.slane %v13286_v48, 2  ;;  %v13349_v16 = vsel %vm1343_vm10, %v14504_v53, %v14503_v50  ;;  %v6191_v27 = vrot.slane %v13289_v52, 2  ;;  %v6192_v4 = vrot.slane %v13292_v36, 2  ;;  %v14507_v50 = vld [vmem:[#allocation30_spill] sm:$0xff] }
 0x61c   :  { %14502 = vst [vmem:[#allocation96_spill] sm:$0xff] %v13329_v12  ;;  %v6169_v63 = vadd.f32 %v13334_v6, %v13289_v52  ;;  %v13358_v43 = vsel %vm1496_vm1, 0.0, %v6010_v44  ;;  %v13361_v40 = vsel %vm1496_vm1, %v6010_v44, 0.0  ;;  %v6257_v51 = vadd.f32 %v14505_v37, %v13286_v48  ;;  %v14506_v44 = vld [vmem:[#allocation35_spill] sm:$0xff]  ;;  %v14508_v37 = vld [vmem:[#allocation114_spill] sm:$0xff] }
 0x61d   :  { %v13365_v1 = vpop.f32.mrf.mxu3  ;;  %v6124_v36 = vrot.slane %v13340_v9, 1  ;;  %v6125_v41 = vrot.slane %v6064_v8, 1  ;;  %v5804_v34 = vadd.f32 %v13269_v39, %v5755_v38  ;;  %v6011_v0 = vrot.slane %v13349_v16, 7 }
 0x61e   :  { %7056 = vrot.lane.b32.xlu1 %v13213_v62, %s8391_s28  ;;  %v13367_v30 = vpop.permute.xlu2 %6845  ;;  %v5794_v62 = vadd.f32 %v13197_v11, %v5745_v25  ;;  %v5995_v53 = vsel %vm1343_vm10, %v14507_v50, %v14506_v44  ;;  %v14509_v19 = vpack.c.b16 %v12470_v54, %v14508_v37  ;;  %v6118_v39 = vrot.slane %v13358_v43, 1 }
 0x61f   :  { %v6119_v25 = vrot.slane %v13361_v40, 1  ;;  %v13388_v38 = vsel %vm6181_vm2, %v6191_v27, %v6192_v4  ;;  %v6200_v16 = vrot.slane %v13340_v9, 2  ;;  %v6201_v44 = vrot.slane %v6064_v8, 2  ;;  %v13392_v50 = vpop.f32.mrf.mxu0  ;;  %v13427_v27 = vpop.f32.mrf.mxu1 }
 0x620   :  { %v4873_v2 = vpop.permute.xlu1 %4872  ;;  %v13372_v49 = vpop.permute.xlu0 %6823  ;;  %v6285_v54 = vadd.f32 %v6257_v51, %v6111_v46  ;;  %v6013_v37 = vrot.slane %v5995_v53, 7  ;;  %v5843_v11 = vadd.f32 %v13199_v61, %v5794_v62  ;;  %v5853_v7 = vadd.f32 %v13271_v42, %v5804_v34  ;;  %v14512_v61 = vld [vmem:[#allocation88_spill] sm:$0xff] }
 0x621   :  { %v5024_v56 = vsel %vm4912_vm0, %v14509_v19, %v4873_v2  ;;  %v5048_v57 = vsel %vm2073_vm14, %v4873_v2, %v14510_v21  ;;  %v6245_v19 = vadd.f32 %v13388_v38, %v6169_v63  ;;  %v13395_v2 = vsel %vm6105_vm15, %v6124_v36, %v6125_v41  ;;  %v14511_v36 = vld [vmem:[#allocation58_spill] sm:$0xff] }
 0x622   :  { %5724 = vmatmul.bf16.gmra.mxu2 %v5024_v56  ;;  %5773 = vmatmul.bf16.gmra.mxu3 %v5048_v57  ;;  %v6167_v57 = vadd.f32 %v6111_v46, %v13286_v48  ;;  %v6187_v56 = vsel %vm6181_vm2, %v6185_v32, %v6186_v10  ;;  %v13403_v8 = vsel %vm1496_vm1, 0.0, %v6011_v0  ;;  %v13406_v4 = vsel %vm6105_vm15, %v6118_v39, %v6119_v25  ;;  %v5712_v46 = vpop.f32.mrf.mxu2 }
 0x623   :  { %v6194_v63 = vrot.slane %v13358_v43, 2  ;;  %v6195_v51 = vrot.slane %v13361_v40, 2  ;;  %v6000_v42 = vsel %vm1343_vm10, %v14512_v61, %v14511_v36  ;;  %v6172_v41 = vadd.f32 %v13395_v2, %v13340_v9 }
 0x624   :  { %v13416_v48 = vsel %vm6181_vm2, %v6200_v16, %v6201_v44  ;;  %v6309_v32 = vadd.f32 %v6285_v54, %v6187_v56  ;;  %v6260_v10 = vadd.f32 %v6245_v19, %v13358_v43  ;;  %v13422_v34 = vsel %vm1496_vm1, 0.0, %v6013_v37 }
 0x625   :  { %v13425_v40 = vsel %vm1496_vm1, %v6013_v37, 0.0  ;;  %v5879_v53 = vmax.f32 %v5843_v11, 0.0  ;;  %v5883_v39 = vmax.f32 %v5853_v7, 0.0  ;;  %v6018_v61 = vrot.slane %v6000_v42, 7  ;;  %v5761_v16 = vpop.f32.mrf.mxu3 }
 0x626   :  { %v13419_v62 = vpop.permute.xlu2 %6851  ;;  %v5072_v19 = vsel %vm1343_vm10, %v14510_v21, %v13217_v58  ;;  %v5703_v11 = vadd.f32 %v12950_v59, %v12923_v31  ;;  %v5713_v7 = vadd.f32 %v5712_v46, %v13024_v33  ;;  %v6288_v21 = vadd.f32 %v6260_v10, %v13406_v4 }
 0x627   :  { %v6127_v58 = vrot.slane %v13422_v34, 1  ;;  %v6128_v31 = vrot.slane %v13425_v40, 1  ;;  %v14516_v46 = vrot.slane %v13304_v18, 1  ;;  %v13466_v10 = vsel %vm6181_vm2, %v6194_v63, %v6195_v51 }
 0x628   :  { %v6814_v25 = vpop.permute.xlu1 %6813  ;;  %v6830_v36 = vpop.permute.xlu0 %6829  ;;  %v5752_v59 = vadd.f32 %v13236_v60, %v5703_v11  ;;  %v5762_v33 = vadd.f32 %v5761_v16, %v5713_v7  ;;  %v6070_v16 = vsel %vm1496_vm1, %v6018_v61, 0.0  ;;  %v5881_v51 = vmax.f32 %v13232_v26, 0.0 }
 0x629   :  { %v6869_v44 = vsel %vm2073_vm14, %v13279_v23, %v6814_v25  ;;  %v6873_v54 = vsel %vm2073_vm14, %v13248_v13, %v6830_v36  ;;  %v5996_v23 = vsel %vm1343_vm10, %v14515_v17, %v14514_v29  ;;  %v6248_v13 = vadd.f32 %v13416_v48, %v6172_v41 }
 0x62a   :  { %v13439_v37 = vadd.f32 %v6869_v44, %v5879_v53  ;;  %v13441_v42 = vadd.f32 %v6873_v54, %v5883_v39  ;;  %5822 = vmatmul.bf16.gmra.mxu0 %v5072_v19  ;;  %v6325_v25 = vadd.f32 %v6309_v32, %v13296_v15  ;;  %v14517_v53 = vrot.slane %v13296_v15, 1  ;;  %v5810_v32 = vpop.f32.mrf.mxu0  ;;  %v14518_v54 = vld [vmem:[#allocation102_spill] sm:$0xff] }
 0x62b   :  { %v13459_v29 = vadd.f32 %v6187_v56, %v6167_v57  ;;  %v13462_v17 = vsel %vm1496_vm1, %v6011_v0, 0.0  ;;  %v6121_v41 = vrot.slane %v13403_v8, 1  ;;  %v6014_v60 = vrot.slane %v5996_v23, 7  ;;  %v14519_v57 = vld [vmem:[#allocation37_spill] sm:$0xff] }
 0x62c   :  { %14513 = vst [vmem:[#allocation111_spill] sm:$0xff] %v13441_v42  ;;  %v13457_v39 = vsel %vm6105_vm15, %v14517_v53, %v14516_v46  ;;  %v13469_v36 = vsel %vm1496_vm1, 0.0, %v6018_v61  ;;  %v6263_v44 = vadd.f32 %v6248_v13, %v13422_v34  ;;  %v6174_v56 = vadd.f32 %v14519_v57, %v14518_v54  ;;  %v14523_v57 = vld [vmem:[#allocation90_spill] sm:$0xff]  ;;  %v5859_v42 = vpop.f32.mrf.mxu1 }
 0x62d   :  { %v6341_v0 = vadd.f32 %v6325_v25, %v13457_v39  ;;  %v6312_v19 = vadd.f32 %v6288_v21, %v13466_v10  ;;  %v13480_v63 = vsel %vm6105_vm15, %v6127_v58, %v6128_v31  ;;  %v5801_v7 = vadd.f32 %v13244_v24, %v5752_v59 }
 0x62e   :  { %v13477_v11 = vpop.permute.xlu2 %6857  ;;  %v5811_v23 = vadd.f32 %v5810_v32, %v5762_v33  ;;  %v6122_v13 = vrot.slane %v13462_v17, 1  ;;  %v6139_v53 = vrot.slane %v13469_v36, 1  ;;  %v6140_v25 = vrot.slane %v6070_v16, 1 }
 0x62f   :  { %v6203_v54 = vrot.slane %v13422_v34, 2  ;;  %v6204_v58 = vrot.slane %v13425_v40, 2  ;;  %v14520_v26 = vrot.slane %v13304_v18, 2  ;;  %v14521_v24 = vrot.slane %v13296_v15, 2 }
 0x630   :  { %v6820_v61 = vpop.permute.xlu1 %6819  ;;  %v13484_v46 = vpop.permute.xlu0 %6835  ;;  %v6197_v33 = vrot.slane %v13403_v8, 2  ;;  %v13503_v32 = vsel %vm1496_vm1, 0.0, %v6014_v60  ;;  %v6328_v18 = vadd.f32 %v6312_v19, %v13403_v8  ;;  %v5850_v12 = vadd.f32 %v13246_v35, %v5801_v7  ;;  %v14524_v19 = vld [vmem:[#allocation16_spill] sm:$0xff] }
 0x631   :  { %v6871_v21 = vsel %vm2073_vm14, %v6820_v61, %v13230_v45  ;;  %v13497_v31 = vsel %vm6181_vm2, %v14521_v24, %v14520_v26  ;;  %v6291_v45 = vadd.f32 %v6263_v44, %v13480_v63  ;;  %v6250_v61 = vadd.f32 %v14523_v57, %v6174_v56  ;;  %v14525_v57 = vld [vmem:[#allocation19_spill] sm:$0xff]  ;;  %v14527_v7 = vld [vmem:[#allocation52_spill] sm:$0xff] }
 0x632   :  { %v13499_v59 = vadd.f32 %v6871_v21, %v5881_v51  ;;  %v6357_v40 = vadd.f32 %v6341_v0, %v13497_v31  ;;  %v5860_v26 = vadd.f32 %v5859_v42, %v5811_v23  ;;  %v13511_v51 = vsel %vm6105_vm15, %v6121_v41, %v6122_v13  ;;  %v14526_v42 = vld [vmem:[#allocation65_spill] sm:$0xff] }
 0x633   :  { %v6198_v21 = vrot.slane %v13462_v17, 2  ;;  %v13515_v24 = vsel %vm1496_vm1, %v6014_v60, 0.0  ;;  %v13518_v44 = vsel %vm6105_vm15, %v6139_v53, %v6140_v25  ;;  %v6277_v56 = vrot.slane %v13503_v32, 1 }
 0x634   :  { %14522 = vst [vmem:[#allocation109_spill] sm:$0xff] %v13499_v59  ;;  %v13522_v0 = vsel %vm6181_vm2, %v6203_v54, %v6204_v58  ;;  %v5999_v35 = vsel %vm1343_vm10, %v14525_v57, %v14524_v19  ;;  %v6430_v41 = vmul.f32 %v14526_v42, %v6357_v40  ;;  %v6266_v23 = vadd.f32 %v6250_v61, %v14527_v7 }
 0x635   :  { %v6215_v17 = vrot.slane %v13469_v36, 2  ;;  %v6216_v60 = vrot.slane %v6070_v16, 2  ;;  %v6315_v13 = vadd.f32 %v6291_v45, %v13522_v0  ;;  %v6177_v25 = vadd.f32 %v13518_v44, %v13469_v36 }
 0x636   :  { %v13531_v53 = vpop.permute.xlu2 %6863  ;;  %v6344_v54 = vadd.f32 %v6328_v18, %v13511_v51  ;;  %v5882_v58 = vmax.f32 %v5850_v12, 0.0  ;;  %v5886_v59 = vmax.f32 %v5860_v26, 0.0  ;;  %v6278_v40 = vrot.slane %v13515_v24, 1  ;;  %v13550_v12 = vld [vmem:[%s13846_s6] ss:$0 sm:$0xff]  ;;  %v14530_v26 = vld [vmem:[#allocation92_spill] sm:$0xff] }
 0x637   :  { %v6017_v57 = vrot.slane %v5999_v35, 7  ;;  %v5711_v45 = vadd.f32 %v13343_v55, %v13004_v14  ;;  %v6450_v18 = vadd.f32 %v13550_v12, %v6430_v41  ;;  %v6294_v35 = vadd.f32 %v6266_v23, %v14530_v26  ;;  %s8396_s6 = smov [#allocation2]  }
 0x638   :  { %v6826_v28 = vpop.permute.xlu1 %6825  ;;  %v6842_v19 = vpop.permute.xlu0 %6841  ;;  %v6331_v14 = vadd.f32 %v6315_v13, %v13503_v32  ;;  %v6301_v13 = vrot.slane %v13503_v32, 2  ;;  %vm6995_vm0 = vcmask 1048064  }
 0x639   :  { %v6872_v61 = vsel %vm2073_vm14, %v13372_v49, %v6826_v28  ;;  %v6876_v16 = vsel %vm2073_vm14, %v13310_v22, %v6842_v19  ;;  %v13555_v28 = vsel %vm6181_vm2, %v6215_v17, %v6216_v60  ;;  %v13558_v22 = vsel %vm6181_vm2, %v6197_v33, %v6198_v21  ;;  %v14532_v17 = vld [vmem:[#allocation40_spill] sm:$0xff] }
 0x63a   :  { %v13543_v42 = vadd.f32 %v6872_v61, %v5882_v58  ;;  %v13545_v5 = vadd.f32 %v6876_v16, %v5886_v59  ;;  %14531 = vst [vmem:[#allocation80_spill] sm:$0xff] %v13555_v28  ;;  %v6253_v55 = vadd.f32 %v13555_v28, %v6177_v25  ;;  %v6360_v49 = vadd.f32 %v6344_v54, %v13558_v22  ;;  %v14533_v54 = vld [vmem:[#allocation41_spill] sm:$0xff]  ;;  %v14534_v16 = vld [vmem:[#allocation12_spill] sm:$0xff] }
 0x63b   :  { %v5760_v59 = vadd.f32 %v13365_v1, %v5711_v45  ;;  %v6258_v58 = vadd.f32 %v13459_v29, %v13296_v15  ;;  %v13567_v41 = vsel %vm1496_vm1, 0.0, %v6017_v57  ;;  %v6069_v23 = vsel %vm1496_vm1, %v6017_v57, 0.0  ;;  %v5715_v29 = vpop.f32.mrf.mxu2 }
 0x63c   :  { %14528 = vst [vmem:[#allocation72_spill] sm:$0xff] %v13543_v42  ;;  %v6433_v60 = vmul.f32 %v14532_v17, %v6360_v49  ;;  %v13572_v33 = vsel %vm6105_vm15, %v6277_v56, %v6278_v40  ;;  %v6466_v21 = vmax.f32 %v6450_v18, 0.0  ;;  %v6302_v25 = vrot.slane %v13515_v24, 2  ;;  %v5764_v17 = vpop.f32.mrf.mxu3 }
 0x63d   :  { %14529 = vst [vmem:[#allocation74_spill] sm:$0xff] %v13545_v5  ;;  %v6318_v1 = vadd.f32 %v6294_v35, %v14533_v54  ;;  %v6347_v19 = vadd.f32 %v6331_v14, %v13572_v33  ;;  %v6269_v45 = vadd.f32 %v6253_v55, %v14534_v16  ;;  %v5884_v57 = vmax.f32 %v13318_v3, 0.0 }
 0x63e   :  { %v7029_v61 = vpop.permute.xlu2 %7028  ;;  %v5809_v49 = vadd.f32 %v13392_v50, %v5760_v59  ;;  %v6170_v18 = vadd.f32 %v13406_v4, %v13358_v43  ;;  %v6136_v24 = vrot.slane %v13567_v41, 1  ;;  %v6137_v35 = vrot.slane %v6069_v23, 1 }
 0x63f   :  { %v7076_v5 = vadd.f32 %v7029_v61, %v6466_v21  ;;  %v5716_v55 = vadd.f32 %v5715_v29, %v13033_v20  ;;  %v6453_v50 = vadd.f32 %v13550_v12, %v6433_v60  ;;  %v6286_v59 = vadd.f32 %v6258_v58, %v13457_v39 }
 0x640   :  { %v6832_v56 = vpop.permute.xlu1 %6831  ;;  %v13581_v40 = vpop.permute.xlu0 %6847  ;;  %v6334_v21 = vadd.f32 %v6318_v1, %v13567_v41  ;;  %v13595_v61 = vsel %vm6181_vm2, %v6301_v13, %v6302_v25  ;;  %v6246_v20 = vadd.f32 %v13466_v10, %v6170_v18  ;;  %v6168_v58 = vadd.f32 %v13457_v39, %v13296_v15  ;;  %v14537_v13 = vld [vmem:[#allocation100_spill] sm:$0xff] }
 0x641   :  { %14535 = vst [vmem:[#allocation46_spill] sm:$0xff] %v13581_v40  ;;  %v6874_v14 = vsel %vm2073_vm14, %v6832_v56, %v13276_v47  ;;  %v7092_v42 = vmax.f32 %v7076_v5, 0.0  ;;  %v14536_v40 = vld [vmem:[#allocation7_spill] sm:$0xff]  ;;  %v6363_v28 = vadd.f32 %v6347_v19, %v13595_v61  ;;  %v5858_v47 = vadd.f32 %v13427_v27, %v5809_v49  ;;  %v5813_v5 = vpop.f32.mrf.mxu0 }
 0x642   :  { %v13589_v3 = vadd.f32 %v6874_v14, %v5884_v57  ;;  %v6297_v16 = vadd.f32 %v6269_v45, %v14536_v40  ;;  %v5765_v56 = vadd.f32 %v5764_v17, %v5716_v55  ;;  %v13605_v60 = vsel %vm6105_vm15, %v6136_v24, %v6137_v35  ;;  %v14538_v45 = vld [vmem:[#allocation24_spill] sm:$0xff] }
 0x643   :  { %7124 = vrot.lane.b32.xlu0 %v7092_v42, %s8392_s3  ;;  %v6436_v25 = vmul.f32 %v14537_v13, %v6363_v28  ;;  %v6469_v1 = vmax.f32 %v6453_v50, 0.0  ;;  %v6212_v29 = vrot.slane %v13567_v41, 2  ;;  %v6213_v19 = vrot.slane %v6069_v23, 2 }
 0x644   :  { %v6310_v27 = vadd.f32 %v6286_v59, %v13497_v31  ;;  %v6350_v17 = vadd.f32 %v6334_v21, %v13605_v60  ;;  %v6321_v57 = vadd.f32 %v6297_v16, %v14538_v45  ;;  %v5885_v49 = vmax.f32 %v5858_v47, 0.0  ;;  %v5862_v21 = vpop.f32.mrf.mxu1 }
 0x645   :  { %v5814_v18 = vadd.f32 %v5813_v5, %v5765_v56  ;;  %v6261_v24 = vadd.f32 %v6246_v20, %v13403_v8  ;;  %v6173_v28 = vadd.f32 %v13480_v63, %v13422_v34  ;;  %v6456_v16 = vadd.f32 %v13550_v12, %v6436_v25  ;;  %v14539_v20 = vld [vmem:[#allocation85_spill] sm:$0xff]  ;;  %v14540_v25 = vld [vmem:[#allocation39_spill] sm:$0xff] }
 0x646   :  { %v7035_v42 = vpop.permute.xlu2 %7034  ;;  %v13625_v59 = vsel %vm6181_vm2, %v6212_v29, %v6213_v19  ;;  %v6326_v47 = vadd.f32 %v6310_v27, %v13289_v52  ;;  %v6337_v5 = vadd.f32 %v6321_v57, %v14539_v20  ;;  %v6244_v13 = vadd.f32 %v13497_v31, %v6168_v58 }
 0x647   :  { %v7079_v14 = vadd.f32 %v7035_v42, %v6469_v1  ;;  %v6366_v56 = vadd.f32 %v6350_v17, %v13625_v59  ;;  %v6289_v1 = vadd.f32 %v6261_v24, %v13511_v51  ;;  %v6472_v29 = vmax.f32 %v6456_v16, 0.0  ;;  %v14541_v17 = vld [vmem:[#allocation89_spill] sm:$0xff] }
 0x648   :  { %v6838_v15 = vpop.permute.xlu1 %6837  ;;  %v6854_v39 = vpop.permute.xlu0 %6853  ;;  %v6259_v19 = vadd.f32 %v6244_v13, %v13289_v52  ;;  %v6342_v27 = vadd.f32 %v6326_v47, %v13334_v6  ;;  %v6175_v31 = vadd.f32 %v14530_v26, %v14527_v7  ;;  %v14542_v47 = vld [vmem:[#allocation86_spill] sm:$0xff]  ;;  %vm7172_vm1 = vcmask 1047808  }
 0x649   :  { %v6875_v23 = vsel %vm2073_vm14, %v13484_v46, %v6838_v15  ;;  %v13619_v35 = vsel %vm2073_vm14, %v13419_v62, %v6854_v39  ;;  %v7095_v55 = vmax.f32 %v7079_v14, 0.0  ;;  %v5863_v46 = vadd.f32 %v5862_v21, %v5814_v18 }
 0x64a   :  { %v13621_v50 = vadd.f32 %v6875_v23, %v5885_v49  ;;  %v6249_v62 = vadd.f32 %v13522_v0, %v6173_v28  ;;  %v6439_v42 = vmul.f32 %v14540_v25, %v6366_v56  ;;  %v6353_v14 = vadd.f32 %v6337_v5, %v14541_v17 }
 0x64b   :  { %7130 = vrot.lane.b32.xlu0 %v7095_v55, %s8392_s3  ;;  %v5887_v57 = vmax.f32 %v5863_v46, 0.0  ;;  %v6313_v58 = vadd.f32 %v6289_v1, %v13558_v22  ;;  %v6171_v28 = vadd.f32 %v13511_v51, %v13403_v8  ;;  %v6287_v21 = vadd.f32 %v6259_v19, %v13334_v6  ;;  %v14543_v51 = vld [vmem:[#allocation87_spill] sm:$0xff] }
 0x64c   :  { %v6264_v24 = vadd.f32 %v6249_v62, %v13503_v32  ;;  %v6459_v16 = vadd.f32 %v13550_v12, %v6439_v42  ;;  %v6369_v56 = vadd.f32 %v6353_v14, %v14542_v47  ;;  %v6251_v7 = vadd.f32 %v14533_v54, %v6175_v31  ;;  %v14544_v14 = vld [vmem:[#allocation22_spill] sm:$0xff] }
 0x64d   :  { %v6358_v32 = vadd.f32 %v6342_v27, %v13388_v38  ;;  %v6329_v26 = vadd.f32 %v6313_v58, %v13340_v9  ;;  %v6247_v8 = vadd.f32 %v13558_v22, %v6171_v28  ;;  %v6311_v62 = vadd.f32 %v6287_v21, %v13388_v38 }
 0x64e   :  { %v7041_v49 = vpop.permute.xlu2 %7040  ;;  %v6442_v20 = vmul.f32 %v14543_v51, %v6369_v56  ;;  %v6475_v5 = vmax.f32 %v6459_v16, 0.0  ;;  %v6176_v58 = vadd.f32 %v13605_v60, %v13567_v41  ;;  %v14545_v16 = vld [vmem:[#allocation50_spill] sm:$0xff] }
 0x64f   :  { %v7082_v18 = vadd.f32 %v7041_v49, %v6472_v29  ;;  %v6431_v46 = vmul.f32 %v14540_v25, %v6358_v32  ;;  %v6262_v13 = vadd.f32 %v6247_v8, %v13340_v9  ;;  %v6345_v22 = vadd.f32 %v6329_v26, %v13395_v2  ;;  %v14546_v26 = vld [vmem:[#allocation10_spill] sm:$0xff] }
 0x650   :  { %v6844_v15 = vpop.permute.xlu1 %6843  ;;  %v13638_v39 = vpop.permute.xlu0 %6859  ;;  %v6462_v49 = vadd.f32 %v13550_v12, %v6442_v20  ;;  %v6327_v27 = vadd.f32 %v6311_v62, %v13358_v43 }
 0x651   :  { %v6877_v52 = vsel %vm2073_vm14, %v6844_v15, %v13367_v30  ;;  %v7098_v23 = vmax.f32 %v7082_v18, 0.0  ;;  %v6292_v30 = vadd.f32 %v13572_v33, %v6264_v24  ;;  %v6267_v33 = vadd.f32 %v6251_v7, %v13567_v41 }
 0x652   :  { %v13648_v55 = vadd.f32 %v6877_v52, %v5887_v57  ;;  %v6451_v38 = vadd.f32 %v13550_v12, %v6431_v46  ;;  %v6290_v9 = vadd.f32 %v6262_v13, %v13395_v2  ;;  %v6478_v18 = vmax.f32 %v6462_v49, 0.0  ;;  %v14549_v49 = vld [vmem:[#allocation80_spill] sm:$0xff] }
 0x653   :  { %7136 = vrot.lane.b32.xlu0 %v7098_v23, %s8392_s3  ;;  %v6316_v29 = vadd.f32 %v13595_v61, %v6292_v30  ;;  %v6295_v17 = vadd.f32 %v6267_v33, %v13605_v60  ;;  %v6361_v61 = vadd.f32 %v6345_v22, %v13416_v48  ;;  %v6343_v43 = vadd.f32 %v6327_v27, %v13406_v4  ;;  %v5717_v33 = vpop.f32.mrf.mxu2 }
 0x654   :  { %v6467_v31 = vmax.f32 %v6451_v38, 0.0  ;;  %v6314_v2 = vadd.f32 %v6290_v9, %v13416_v48  ;;  %v6252_v48 = vadd.f32 %v13625_v59, %v6176_v58  ;;  %v5766_v9 = vpop.f32.mrf.mxu3  ;;  %v5815_v58 = vpop.f32.mrf.mxu0 }
 0x655   :  { %v6332_v57 = vadd.f32 %v6316_v29, %v14544_v14  ;;  %v6319_v23 = vadd.f32 %v6295_v17, %v13625_v59  ;;  %v6359_v30 = vadd.f32 %v6343_v43, %v13466_v10  ;;  %v14552_v43 = vld [vmem:[#allocation12_spill] sm:$0xff] }
 0x656   :  { %v7047_v6 = vpop.permute.xlu2 %7046  ;;  %v6330_v4 = vadd.f32 %v6314_v2, %v13422_v34 }
 0x657   :  { %v7085_v1 = vadd.f32 %v7047_v6, %v6475_v5  ;;  %v6348_v21 = vadd.f32 %v6332_v57, %v14545_v16  ;;  %v6335_v60 = vadd.f32 %v6319_v23, %v13469_v36  ;;  %v14548_v5 = vld [vmem:[#allocation81_spill] sm:$0xff] }
 0x658   :  { %v13663_v54 = vpop.permute.xlu1 %6849  ;;  %v6866_v42 = vpop.permute.xlu0 %6865  ;;  %v6346_v13 = vadd.f32 %v6330_v4, %v13480_v63 }
 0x659   :  { %v13670_v19 = vsel %vm2073_vm14, %v13531_v53, %v6866_v42  ;;  %v7101_v25 = vmax.f32 %v7085_v1, 0.0  ;;  %v6434_v53 = vmul.f32 %v14543_v51, %v6361_v61  ;;  %v6364_v8 = vadd.f32 %v6348_v21, %v14546_v26  ;;  %v14547_v51 = vld [vmem:[#allocation18_spill] sm:$0xff] }
 0x65a   :  { %v6432_v20 = vmul.f32 %v14547_v51, %v6359_v30  ;;  %v6351_v34 = vadd.f32 %v6335_v60, %v13518_v44  ;;  %v6362_v63 = vadd.f32 %v6346_v13, %v13522_v0 }
 0x65b   :  { %7142 = vrot.lane.b32.xlu0 %v7101_v25, %s8392_s3  ;;  %v6454_v41 = vadd.f32 %v13550_v12, %v6434_v53  ;;  %v6437_v46 = vmul.f32 %v14548_v5, %v6364_v8 }
 0x65c   :  { %v6452_v22 = vadd.f32 %v13550_v12, %v6432_v20  ;;  %v6367_v38 = vadd.f32 %v6351_v34, %v14549_v49 }
 0x65d   :  { %v6470_v6 = vmax.f32 %v6454_v41, 0.0  ;;  %v6457_v25 = vadd.f32 %v13550_v12, %v6437_v46  ;;  %v6923_v46 = vmax.f32 %v13621_v50, 0.0 }
 0x65e   :  { %v7053_v15 = vpop.permute.xlu2 %7052  ;;  %v6440_v61 = vmul.f32 %v14547_v51, %v6367_v38  ;;  %v6468_v57 = vmax.f32 %v6452_v22, 0.0 }
 0x65f   :  { %v7088_v24 = vadd.f32 %v7053_v15, %v6478_v18  ;;  %v6473_v18 = vmax.f32 %v6457_v25, 0.0  ;;  %v14557_v25 = vld [vmem:[#allocation112_spill] sm:$0xff] }
 0x660   :  { %v6856_v52 = vpop.permute.xlu1 %6855  ;;  %v7031_v28 = vpop.permute.xlu0 %7030 }
 0x661   :  { %v13689_v47 = vsel %vm2073_vm14, %v6856_v52, %v13477_v11  ;;  %v7077_v56 = vadd.f32 %v7031_v28, %v6467_v31  ;;  %v7104_v7 = vmax.f32 %v7088_v24, 0.0  ;;  %v6268_v11 = vadd.f32 %v6252_v48, %v13469_v36  ;;  %v14553_v52 = vld [vmem:[#allocation72_spill] sm:$0xff]  ;;  %v5864_v48 = vpop.f32.mrf.mxu1 }
 0x662   :  { %v6917_v36 = vmax.f32 %v13439_v37, 0.0  ;;  %v14551_v37 = vld [vmem:[#allocation99_spill] sm:$0xff]  ;;  %v6920_v28 = vmax.f32 %v14553_v52, 0.0 }
 0x663   :  { %v7093_v32 = vmax.f32 %v7077_v56, 0.0  ;;  %7148 = vrot.lane.b32.xlu0 %v7104_v7, %s8392_s3  ;;  %v6296_v42 = vadd.f32 %v6268_v11, %v13518_v44  ;;  %v14550_v44 = vld [vmem:[#allocation68_spill] sm:$0xff]  ;;  %v6435_v17 = vmul.f32 %v14551_v37, %v6362_v63  ;;  %v6460_v7 = vadd.f32 %v13550_v12, %v6440_v61 }
 0x664   :  { %v5718_v27 = vadd.f32 %v5717_v33, %v14550_v44  ;;  %v14556_v33 = vld [vmem:[#allocation61_spill] sm:$0xff]  ;;  %v6915_v63 = vmax.f32 %v14557_v25, 0.0  ;;  %v14558_v44 = vld [vmem:[#allocation96_spill] sm:$0xff] }
 0x665   :  { %7126 = vrot.lane.b32.xlu1 %v7093_v32, %s8392_s3  ;;  %v6455_v56 = vadd.f32 %v13550_v12, %v6435_v17  ;;  %v6476_v60 = vmax.f32 %v6460_v7, 0.0  ;;  %v6474_v50 = vmax.f32 %v14556_v33, 0.0  ;;  %v14559_v17 = vld [vmem:[#allocation91_spill] sm:$0xff]  ;;  %v14560_v61 = vld [vmem:[#allocation56_spill] sm:$0xff] }
 0x666   :  { %v5767_v53 = vadd.f32 %v5766_v9, %v5718_v27  ;;  %v6918_v27 = vmax.f32 %v14558_v44, 0.0 }
 0x667   :  { %v6471_v4 = vmax.f32 %v6455_v56, 0.0 }
 0x668   :  { %v6862_v59 = vpop.permute.xlu1 %6861  ;;  %v7037_v62 = vpop.permute.xlu0 %7036  ;;  %v5816_v32 = vadd.f32 %v5815_v58, %v5767_v53  ;;  %v14562_v58 = vld [vmem:[#allocation54_spill] sm:$0xff] }
 0x669   :  { %v13706_v10 = vsel %vm2073_vm14, %v13638_v39, %v6862_v59  ;;  %v7080_v1 = vadd.f32 %v7037_v62, %v6470_v6  ;;  %v6320_v39 = vadd.f32 %v6296_v42, %v14549_v49  ;;  %v14554_v59 = vld [vmem:[#allocation46_spill] sm:$0xff]  ;;  %v14555_v42 = vld [vmem:[#allocation40_spill] sm:$0xff]  ;;  %v5769_v53 = vpop.f32.mrf.mxu3 }
 0x66a   :  { %v5865_v30 = vadd.f32 %v5864_v48, %v5816_v32  ;;  %v6878_v62 = vsel %vm2073_vm14, %v14554_v59, %v13663_v54  ;;  %v14566_v48 = vld [vmem:[#allocation53_spill] sm:$0xff] }
 0x66b   :  { %v7096_v29 = vmax.f32 %v7080_v1, 0.0  ;;  %6951 = vrot.lane.b32.xlu0 %v6917_v36, %s8394_s4  ;;  %v6336_v24 = vadd.f32 %v6320_v39, %v14552_v43 }
 0x66c   :  { %v5888_v1 = vmax.f32 %v5865_v30, 0.0  ;;  %v14567_v30 = vld [vmem:[#allocation109_spill] sm:$0xff] }
 0x66d   :  { %7132 = vrot.lane.b32.xlu1 %v7096_v29, %s8392_s3  ;;  %v6352_v41 = vadd.f32 %v6336_v24, %v14536_v40  ;;  %v14564_v24 = vld [vmem:[#allocation108_spill] sm:$0xff] }
 0x66e   :  { %v6910_v40 = vadd.f32 %v6878_v62, %v5888_v1  ;;  %v14570_v62 = vld [vmem:[#allocation75_spill] sm:$0xff] }
 0x66f   :  { %v6368_v6 = vadd.f32 %v6352_v41, %v14538_v45 }
 0x670   :  { %v7033_v15 = vpop.permute.xlu1 %7032  ;;  %v7043_v31 = vpop.permute.xlu0 %7042  ;;  %v6926_v22 = vmax.f32 %v6910_v40, 0.0 }
 0x671   :  { %v7078_v0 = vadd.f32 %v7033_v15, %v6468_v57  ;;  %v7083_v2 = vadd.f32 %v7043_v31, %v6473_v18  ;;  %v6441_v36 = vmul.f32 %v14555_v42, %v6368_v6  ;;  %v6180_v57 = vadd.f32 %v14560_v61, %v14559_v17  ;;  %v5720_v18 = vpop.f32.mrf.mxu2  ;;  %v14561_v15 = vld [vmem:[#allocation103_spill] sm:$0xff] }
 0x672   :  { %v5721_v52 = vadd.f32 %v5720_v18, %v14564_v24  ;;  %v14572_v18 = vld [vmem:[#allocation76_spill] sm:$0xff] }
 0x673   :  { %v7094_v23 = vmax.f32 %v7078_v0, 0.0  ;;  %v7099_v21 = vmax.f32 %v7083_v2, 0.0  ;;  %6957 = vrot.lane.b32.xlu0 %v6920_v28, %s8394_s4  ;;  %v6461_v49 = vadd.f32 %v13550_v12, %v6441_v36  ;;  %v6256_v31 = vadd.f32 %v14561_v15, %v6180_v57  ;;  %v14563_v2 = vld [vmem:[#allocation111_spill] sm:$0xff]  ;;  %v5867_v28 = vpop.f32.mrf.mxu1 }
 0x674   :  { %v6916_v0 = vmax.f32 %v14562_v58, 0.0  ;;  %v6921_v43 = vmax.f32 %v14563_v2, 0.0  ;;  %v5770_v56 = vadd.f32 %v5769_v53, %v5721_v52 }
 0x675   :  { %7128 = vrot.lane.b32.xlu2 %v7094_v23, %s8392_s3  ;;  %7138 = vrot.lane.b32.xlu1 %v7099_v21, %s8392_s3  ;;  %v6477_v38 = vmax.f32 %v6461_v49, 0.0  ;;  %v14565_v23 = vld [vmem:[#allocation13_spill] sm:$0xff]  ;;  %v14571_v49 = vld [vmem:[#allocation110_spill] sm:$0xff] }
 0x676   :  { %v6272_v21 = vadd.f32 %v6256_v31, %v14565_v23  ;;  %v14573_v23 = vld [vmem:[#allocation17_spill] sm:$0xff] }
 0x678   :  { %v7039_v8 = vpop.permute.xlu1 %7038  ;;  %v7049_v11 = vpop.permute.xlu0 %7048 }
 0x679   :  { %v7081_v51 = vadd.f32 %v7039_v8, %v6471_v4  ;;  %v7086_v20 = vadd.f32 %v7049_v11, %v6476_v60  ;;  %v5722_v41 = vpop.f32.mrf.mxu2  ;;  %v6300_v4 = vadd.f32 %v14566_v48, %v6272_v21  ;;  %v6919_v8 = vmax.f32 %v14567_v30, 0.0  ;;  %v14568_v11 = vld [vmem:[#allocation74_spill] sm:$0xff] }
 0x67a   :  { %v6480_v21 = vmax.f32 %v14573_v23, 0.0 }
 0x67b   :  { %v7097_v13 = vmax.f32 %v7081_v51, 0.0  ;;  %v7102_v34 = vmax.f32 %v7086_v20, 0.0  ;;  %6963 = vrot.lane.b32.xlu0 %v6923_v46, %s8394_s4  ;;  %v6924_v51 = vmax.f32 %v14568_v11, 0.0  ;;  %v5771_v20 = vpop.f32.mrf.mxu3  ;;  %v14569_v46 = vld [vmem:[#allocation64_spill] sm:$0xff]  ;;  %v5869_v40 = vpop.f32.mrf.mxu1 }
 0x67c   :  { %v5723_v6 = vadd.f32 %v5722_v41, %v14569_v46 }
 0x67d   :  { %7134 = vrot.lane.b32.xlu2 %v7097_v13, %s8392_s3  ;;  %7144 = vrot.lane.b32.xlu1 %v7102_v34, %s8392_s3  ;;  %v6324_v13 = vadd.f32 %v14570_v62, %v6300_v4 }
 0x67e   :  { %v5772_v34 = vadd.f32 %v5771_v20, %v5723_v6 }
 0x67f   :  { %v6340_v33 = vadd.f32 %v6324_v13, %v14544_v14 }
 0x680   :  { %v7045_v29 = vpop.permute.xlu1 %7044  ;;  %v7055_v57 = vpop.permute.xlu0 %7054 }
 0x681   :  { %v7084_v45 = vadd.f32 %v7045_v29, %v6474_v50  ;;  %v6922_v29 = vmax.f32 %v13589_v3, 0.0 }
 0x683   :  { %v7100_v54 = vmax.f32 %v7084_v45, 0.0  ;;  %6969 = vrot.lane.b32.xlu0 %v6926_v22, %s8394_s4  ;;  %v5872_v14 = vpop.f32.mrf.mxu1 }
 0x685   :  { %7140 = vrot.lane.b32.xlu2 %v7100_v54, %s8392_s3  ;;  %6947 = vrot.lane.b32.xlu1 %v6915_v63, %s8394_s4  ;;  %v6356_v54 = vadd.f32 %v6340_v33, %v14545_v16 }
 0x687   :  { %v6372_v44 = vadd.f32 %v6356_v54, %v14546_v26 }
 0x688   :  { %v7051_v9 = vpop.permute.xlu1 %7050 }
 0x689   :  { %v7087_v39 = vadd.f32 %v7051_v9, %v6477_v38 }
 0x68b   :  { %v7103_v37 = vmax.f32 %v7087_v39, 0.0 }
 0x68d   :  { %7146 = vrot.lane.b32.xlu2 %v7103_v37, %s8392_s3  ;;  %6953 = vrot.lane.b32.xlu1 %v6918_v27, %s8394_s4  ;;  %v6925_v27 = vmax.f32 %v13648_v55, 0.0  ;;  %v6445_v37 = vmul.f32 %v14548_v5, %v6372_v44  ;;  %v5874_v55 = vpop.f32.mrf.mxu1 }
 0x68f   :  { %v6465_v15 = vadd.f32 %v13550_v12, %v6445_v37 }
 0x690   :  { %v7057_v52 = vpop.permute.xlu1 %7056 }
 0x691   :  { %v6481_v24 = vmax.f32 %v6465_v15, 0.0 }
 0x695   :  { %6949 = vrot.lane.b32.xlu2 %v6916_v0, %s8394_s4  ;;  %6959 = vrot.lane.b32.xlu1 %v6921_v43, %s8394_s4  ;;  %v7059_v43 = vpop.permute.xlu2 %7058 }
 0x697   :  { %v5818_v7 = vpop.f32.mrf.mxu0 }
 0x698   :  { %v5819_v32 = vadd.f32 %v5818_v7, %v5770_v56  ;;  %v7091_v56 = vadd.f32 %v7059_v43, %v6481_v24 }
 0x69a   :  { %v5868_v60 = vadd.f32 %v5867_v28, %v5819_v32  ;;  %v7107_v41 = vmax.f32 %v7091_v56, 0.0 }
 0x69c   :  { %v5889_v59 = vmax.f32 %v5868_v60, 0.0  ;;  %v14574_v60 = vld [vmem:[#allocation105_spill] sm:$0xff] }
 0x69d   :  { %6955 = vrot.lane.b32.xlu2 %v6919_v8, %s8394_s4  ;;  %6965 = vrot.lane.b32.xlu1 %v6924_v51, %s8394_s4  ;;  %v6479_v30 = vmax.f32 %v14574_v60, 0.0 }
 0x69e   :  { %v6911_v1 = vadd.f32 %v13619_v35, %v5889_v59 }
 0x69f   :  { %v5820_v42 = vpop.f32.mrf.mxu0  ;;  %v7089_v8 = vadd.f32 %v7055_v57, %v6479_v30 }
 0x6a0   :  { %v5821_v36 = vadd.f32 %v5820_v42, %v5772_v34  ;;  %v6927_v45 = vmax.f32 %v6911_v1, 0.0 }
 0x6a1   :  { %v7105_v51 = vmax.f32 %v7089_v8, 0.0 }
 0x6a2   :  { %v5870_v50 = vadd.f32 %v5869_v40, %v5821_v36 }
 0x6a4   :  { %v5890_v22 = vmax.f32 %v5870_v50, 0.0 }
 0x6a5   :  { %v5725_v25 = vpop.f32.mrf.mxu2  ;;  %v5774_v63 = vpop.f32.mrf.mxu3  ;;  %6961 = vrot.lane.b32.xlu2 %v6922_v29, %s8394_s4  ;;  %6971 = vrot.lane.b32.xlu1 %v6927_v45, %s8394_s4 }
 0x6a6   :  { %v6912_v35 = vadd.f32 %v13689_v47, %v5890_v22  ;;  %v5726_v38 = vadd.f32 %v5725_v25, %v14571_v49 }
 0x6a7   :  { %v5823_v9 = vpop.f32.mrf.mxu0 }
 0x6a8   :  { %v5775_v39 = vadd.f32 %v5774_v63, %v5726_v38  ;;  %v6928_v5 = vmax.f32 %v6912_v35, 0.0 }
 0x6aa   :  { %v5824_v3 = vadd.f32 %v5823_v9, %v5775_v39 }
 0x6ac   :  { %v5873_v17 = vadd.f32 %v5872_v14, %v5824_v3 }
 0x6ad   :  { %v5727_v61 = vpop.f32.mrf.mxu2  ;;  %6967 = vrot.lane.b32.xlu2 %v6925_v27, %s8394_s4  ;;  %v5776_v53 = vpop.f32.mrf.mxu3 }
 0x6ae   :  { %v5891_v16 = vmax.f32 %v5873_v17, 0.0  ;;  %v5728_v47 = vadd.f32 %v5727_v61, %v14572_v18 }
 0x6af   :  { %v5825_v26 = vpop.f32.mrf.mxu0 }
 0x6b0   :  { %v6913_v31 = vadd.f32 %v13706_v10, %v5891_v16  ;;  %v5777_v58 = vadd.f32 %v5776_v53, %v5728_v47  ;;  %v7090_v10 = vadd.f32 %v7057_v52, %v6480_v21 }
 0x6b2   :  { %v6929_v0 = vmax.f32 %v6913_v31, 0.0  ;;  %v5826_v2 = vadd.f32 %v5825_v26, %v5777_v58  ;;  %v7106_v4 = vmax.f32 %v7090_v10, 0.0 }
 0x6b4   :  { %v5875_v28 = vadd.f32 %v5874_v55, %v5826_v2  ;;  %6975 = vrot.lane.b32.xlu0 %v6929_v0, %s8394_s4 }
 0x6b5   :  { %6973 = vrot.lane.b32.xlu2 %v6928_v5, %s8394_s4  ;;  %v7125_v7 = vpop.permute.xlu0 %7124 }
 0x6b6   :  { %v5892_v12 = vmax.f32 %v5875_v28, 0.0 }
 0x6b8   :  { %v6914_v32 = vadd.f32 %v13670_v19, %v5892_v12 }
 0x6ba   :  { %v6930_v48 = vmax.f32 %v6914_v32, 0.0 }
 0x6bc   :  { %7154 = vrot.lane.b32.xlu0 %v7107_v41, %s8392_s3  ;;  %6977 = vrot.lane.b32.xlu1 %v6930_v48, %s8394_s4 }
 0x6bd   :  { %7152 = vrot.lane.b32.xlu2 %v7106_v4, %s8392_s3  ;;  %v7131_v11 = vpop.permute.xlu0 %7130 }
 0x6c4   :  { %7150 = vrot.lane.b32.xlu1 %v7105_v51, %s8392_s3  ;;  %s7193_s3 = sshll.u32 %s8396_s6, 4  ;;  %s7194_s3 = int_to_ptr.vmem [resolvable:$true] %s7193_s3 }
 0x6c5   :  { %v7137_v20 = vpop.permute.xlu0 %7136 }
 0x6cd   :  { %v7143_v46 = vpop.permute.xlu0 %7142 }
 0x6cf   :  { %v7129_v6 = vpop.permute.xlu2 %7128 }
 0x6d5   :  { %v13786_v19 = vpop.permute.xlu0 %7148 }
 0x6d7   :  { %v7135_v59 = vpop.permute.xlu2 %7134  ;;  %v7127_v62 = vpop.permute.xlu1 %7126 }
 0x6dd   :  { %v6952_v13 = vpop.permute.xlu0 %6951 }
 0x6de   :  { %7000 = vst.msk [vmem:[#allocation2 + $0x38] sm:$0xff] %vm6995_vm0, %v6952_v13 }
 0x6df   :  { %v7141_v34 = vpop.permute.xlu2 %7140  ;;  %v7133_v1 = vpop.permute.xlu1 %7132  ;;  %7001 = vst.msk [vmem:[#allocation2 + $0x40] sm:$0xff] %vm1343_vm10, %v6952_v13 }
 0x6e0   :  { %7175 = vst.msk [vmem:[#allocation2 + $0x40] sm:$0xff] %vm7172_vm1, %v7129_v6 }
 0x6e5   :  { %v6958_v40 = vpop.permute.xlu0 %6957 }
 0x6e6   :  { %7006 = vst.msk [vmem:[#allocation2 + $0x80] sm:$0xff] %vm6995_vm0, %v6958_v40 }
 0x6e7   :  { %v7147_v42 = vpop.permute.xlu2 %7146  ;;  %v7139_v36 = vpop.permute.xlu1 %7138  ;;  %7007 = vst.msk [vmem:[#allocation2 + $0x88] sm:$0xff] %vm1343_vm10, %v6958_v40 }
 0x6e8   :  { %7178 = vst.msk [vmem:[#allocation2 + $0x88] sm:$0xff] %vm7172_vm1, %v7135_v59 }
 0x6ed   :  { %v6964_v33 = vpop.permute.xlu0 %6963 }
 0x6ee   :  { %7012 = vst.msk [vmem:[#allocation2 + $0xc8] sm:$0xff] %vm6995_vm0, %v6964_v33 }
 0x6ef   :  { %v6950_v50 = vpop.permute.xlu2 %6949  ;;  %v7145_v29 = vpop.permute.xlu1 %7144  ;;  %7013 = vst.msk [vmem:[#allocation2 + $0xd0] sm:$0xff] %vm1343_vm10, %v6964_v33 }
 0x6f0   :  { %6998 = vst.msk [vmem:[#allocation2 + $0x20] sm:$0xff] %vm6995_vm0, %v6950_v50 }
 0x6f1   :  { %6999 = vst.msk [vmem:[#allocation2 + $0x28] sm:$0xff] %vm1343_vm10, %v6950_v50 }
 0x6f2   :  { %7174 = vst.msk [vmem:[#allocation2 + $0x28] sm:$0xff] %vm7172_vm1, %v7127_v62 }
 0x6f3   :  { %7181 = vst.msk [vmem:[#allocation2 + $0xd0] sm:$0xff] %vm7172_vm1, %v7141_v34 }
 0x6f5   :  { %v6970_v45 = vpop.permute.xlu0 %6969 }
 0x6f6   :  { %7018 = vst.msk [vmem:[#allocation2 + $0x110] sm:$0xff] %vm6995_vm0, %v6970_v45 }
 0x6f7   :  { %v6956_v22 = vpop.permute.xlu2 %6955  ;;  %v6948_v25 = vpop.permute.xlu1 %6947  ;;  %7019 = vst.msk [vmem:[#allocation2 + $0x118] sm:$0xff] %vm1343_vm10, %v6970_v45 }
 0x6f8   :  { %7004 = vst.msk [vmem:[#allocation2 + $0x68] sm:$0xff] %vm6995_vm0, %v6956_v22 }
 0x6f9   :  { %7005 = vst.msk [vmem:[#allocation2 + $0x70] sm:$0xff] %vm1343_vm10, %v6956_v22 }
 0x6fa   :  { %7177 = vst.msk [vmem:[#allocation2 + $0x70] sm:$0xff] %vm7172_vm1, %v7133_v1 }
 0x6fb   :  { %6996 = vst.msk [vmem:[#allocation2 + $0x8] sm:$0xff] %vm6995_vm0, %v6948_v25 }
 0x6fc   :  { %6997 = vst.msk [vmem:[#allocation2 + $0x10] sm:$0xff] %vm1343_vm10, %v6948_v25 }
 0x6fd   :  { %7173 = vst.msk [vmem:[#allocation2 + $0x10] sm:$0xff] %vm7172_vm1, %v7125_v7 }
 0x6fe   :  { %7184 = vst.msk [vmem:[#allocation2 + $0x118] sm:$0xff] %vm7172_vm1, %v7147_v42 }
 0x6ff   :  { %v6962_v63 = vpop.permute.xlu2 %6961  ;;  %v6954_v54 = vpop.permute.xlu1 %6953 }
 0x700   :  { %7010 = vst.msk [vmem:[#allocation2 + $0xb0] sm:$0xff] %vm6995_vm0, %v6962_v63 }
 0x701   :  { %7011 = vst.msk [vmem:[#allocation2 + $0xb8] sm:$0xff] %vm1343_vm10, %v6962_v63 }
 0x702   :  { %7180 = vst.msk [vmem:[#allocation2 + $0xb8] sm:$0xff] %vm7172_vm1, %v7139_v36 }
 0x703   :  { %7002 = vst.msk [vmem:[#allocation2 + $0x50] sm:$0xff] %vm6995_vm0, %v6954_v54 }
 0x704   :  { %7003 = vst.msk [vmem:[#allocation2 + $0x58] sm:$0xff] %vm1343_vm10, %v6954_v54 }
 0x705   :  { %7176 = vst.msk [vmem:[#allocation2 + $0x58] sm:$0xff] %vm7172_vm1, %v7131_v11 }
 0x707   :  { %v6968_v35 = vpop.permute.xlu2 %6967  ;;  %v6960_v49 = vpop.permute.xlu1 %6959 }
 0x708   :  { %7016 = vst.msk [vmem:[#allocation2 + $0xf8] sm:$0xff] %vm6995_vm0, %v6968_v35 }
 0x709   :  { %7017 = vst.msk [vmem:[#allocation2 + $0x100] sm:$0xff] %vm1343_vm10, %v6968_v35 }
 0x70a   :  { %7183 = vst.msk [vmem:[#allocation2 + $0x100] sm:$0xff] %vm7172_vm1, %v7145_v29 }
 0x70b   :  { %7008 = vst.msk [vmem:[#allocation2 + $0x98] sm:$0xff] %vm6995_vm0, %v6960_v49 }
 0x70c   :  { %7009 = vst.msk [vmem:[#allocation2 + $0xa0] sm:$0xff] %vm1343_vm10, %v6960_v49 }
 0x70d   :  { %7179 = vst.msk [vmem:[#allocation2 + $0xa0] sm:$0xff] %vm7172_vm1, %v7137_v20 }
 0x70f   :  { %v6974_v38 = vpop.permute.xlu2 %6973  ;;  %v6966_v9 = vpop.permute.xlu1 %6965 }
 0x710   :  { %7022 = vst.msk [vmem:[#allocation2 + $0x140] sm:$0xff] %vm6995_vm0, %v6974_v38 }
 0x711   :  { %7023 = vst.msk [vmem:[#allocation2 + $0x148] sm:$0xff] %vm1343_vm10, %v6974_v38 }
 0x712   :  { %7014 = vst.msk [vmem:[#allocation2 + $0xe0] sm:$0xff] %vm6995_vm0, %v6966_v9 }
 0x713   :  { %7015 = vst.msk [vmem:[#allocation2 + $0xe8] sm:$0xff] %vm1343_vm10, %v6966_v9 }
 0x714   :  { %7182 = vst.msk [vmem:[#allocation2 + $0xe8] sm:$0xff] %vm7172_vm1, %v7143_v46 }
 0x717   :  { %v6972_v39 = vpop.permute.xlu1 %6971  ;;  %v7153_v44 = vpop.permute.xlu2 %7152 }
 0x718   :  { %7020 = vst.msk [vmem:[#allocation2 + $0x128] sm:$0xff] %vm6995_vm0, %v6972_v39 }
 0x719   :  { %7021 = vst.msk [vmem:[#allocation2 + $0x130] sm:$0xff] %vm1343_vm10, %v6972_v39 }
 0x71a   :  { %7185 = vst.msk [vmem:[#allocation2 + $0x130] sm:$0xff] %vm7172_vm1, %v13786_v19 }
 0x726   :  { %v6976_v14 = vpop.permute.xlu0 %6975 }
 0x727   :  { %7024 = vst.msk [vmem:[#allocation2 + $0x158] sm:$0xff] %vm6995_vm0, %v6976_v14 }
 0x728   :  { %7025 = vst.msk [vmem:[#allocation2 + $0x160] sm:$0xff] %vm1343_vm10, %v6976_v14 }
 0x729   :  { %7187 = vst.msk [vmem:[#allocation2 + $0x160] sm:$0xff] %vm7172_vm1, %v7153_v44 }
 0x72e   :  { %v6978_v3 = vpop.permute.xlu1 %6977  ;;  %v7155_v27 = vpop.permute.xlu0 %7154 }
 0x72f   :  { %7026 = vst.msk [vmem:[#allocation2 + $0x170] sm:$0xff] %vm6995_vm0, %v6978_v3 }
 0x730   :  { %7027 = vst.msk [vmem:[#allocation2 + $0x178] sm:$0xff] %vm1343_vm10, %v6978_v3 }
 0x731   :  { %7188 = vst.msk [vmem:[#allocation2 + $0x178] sm:$0xff] %vm7172_vm1, %v7155_v27 }
 0x736   :  { %v7151_v37 = vpop.permute.xlu1 %7150 }
 0x737   :  { %7186 = vst.msk [vmem:[#allocation2 + $0x148] sm:$0xff] %vm7172_vm1, %v7151_v37 }
 0x738   :  { %7201 = dma.vmem_to_hbm [thread:$0]  %s7194_s3, 6144, %s7196_s17, [#allocation3], %s8397_s18, %s8397_s18, %s8398_s19  }
 0x739   :  { %8389 = dma.done.wait [#allocation3], 6144  }
 0x73a   :  { %8390 = vsyncadd [#allocation3], 4294961152 }
 0x73b   :  { %7206 = vsyncpa [#allocation3], 1 }

</bundles_post_ra>
